<compile_context>
chip_gen: v6e
topology: v6e:2x2x1
jax: 0.10.0
libtpu: 0.0.40
codegen_flags: <defaults>
</compile_context>

<pallas_src>
import functools

import jax
import jax.numpy as jnp
from jax import lax
from jax.experimental import pallas as pl
from jax.experimental.pallas import tpu as pltpu

LN_EPS = 1e-5             # torch LayerNorm default
DILATIONS = (1, 2, 4, 8)  # fixed by the module


def _round_up(x, m):
    return (x + m - 1) // m * m


def _fused_tcn_kernel(x_ref, w_ref, b_ref, g_ref, beta_ref, o_ref, h_ref, *,
                      dilations, t, tv, pad_l, n_inv):
    """All 4 (dilated conv k=3 + bias + ReLU + LayerNorm) layers, one batch tile.

    x_ref    : (Bt, T, C)       input tile (channels zero-padded to C)
    w_ref    : (L, 3, C, C)     conv weights, one (C_in, C_out) block per tap
    b_ref    : (L, 1, C)        conv bias
    g_ref    : (L, tv, C)       LayerNorm gamma (zero in padded rows/channels)
    beta_ref : (L, tv, C)       LayerNorm beta  (zero in padded rows/channels)
    o_ref    : (Bt, tv, C)      output tile (rows >= t are zero, sliced off host-side)
    h_ref    : (Bt, tp, C)      VMEM activation slab, fully redefined every step
    """
    bt, tp, c = h_ref.shape
    f32 = jnp.float32

    # ---- stage the batch tile ------------------------------------------
    #   rows [0, pad_l)       : zeros  (left conv time padding)
    #   rows [pad_l, pad_l+t) : input tile (all C lanes; pad channels are 0)
    #   rows [pad_l+t, tp)    : zeros  (right conv time padding + tv-t slack)
    # Only the ~(tp - t) padding rows are zero-stored; the interior is written
    # exactly once by the x stage (no redundant full-slab zeroing).
    h_ref[:, :pad_l, :] = jnp.zeros((bt, pad_l, c), h_ref.dtype)
    h_ref[:, pad_l + t:, :] = jnp.zeros((bt, tp - pad_l - t, c), h_ref.dtype)
    h_ref[:, pad_l:pad_l + t, :] = x_ref[...].astype(h_ref.dtype)

    # Time-row validity mask for the tv-row working set (hoisted out of the
    # layer loop).  Rows >= t are junk produced by the aligned matmul and must
    # be zero so LN statistics and the conv right padding stay exact.
    row_ok = lax.broadcasted_iota(jnp.int32, (1, tv, 1), 1) < t

    n_layers = len(dilations)
    for l, d in enumerate(dilations):
        # Dilated conv (k=3) as three K=C matmuls accumulated in f32 — no
        # materialized (bt, tv, 3C) im2col temp.
        acc = None
        for j in range(3):
            start = pad_l + (j - 1) * d
            lhs = h_ref[:, start:start + tv, :].reshape(bt * tv, c)
            part = jnp.dot(lhs, w_ref[l, j], preferred_element_type=f32)
            acc = part if acc is None else acc + part
        y = acc.reshape(bt, tv, c)

        # bias + ReLU; junk rows forced to exactly zero.
        y = jnp.where(row_ok, jnp.maximum(y + b_ref[l], 0.0), 0.0)

        # LayerNorm over (channels, time) per batch element.  Reduce the time
        # (sublane) axis first with cheap VPU adds, then a single lane (XLU)
        # reduction per statistic.  Padded rows/channels are exactly zero, so
        # dividing the plain sums by the real element count (n_inv) is exact.
        s = jnp.sum(jnp.sum(y, axis=1, keepdims=True), axis=2, keepdims=True)
        ss = jnp.sum(jnp.sum(y * y, axis=1, keepdims=True), axis=2,
                     keepdims=True)
        mean = s * n_inv
        var = jnp.maximum(ss * n_inv - mean * mean, 0.0)
        y = (y - mean) * lax.rsqrt(var + LN_EPS) * g_ref[l] + beta_ref[l]
        # gamma/beta are zero in padded rows/channels, so y stays zero there.

        if l == n_layers - 1:
            o_ref[...] = y.astype(o_ref.dtype)               # aligned full-tile store
        else:
            h_ref[:, pad_l:pad_l + tv, :] = y.astype(h_ref.dtype)  # aligned writeback


def shared_encoder_tcn_forward(x, params, *, block_b=32, use_bf16=False):
    """SharedEncoder.forward for arch='tcn'.  x: (B, T, input_dim) -> (B, T, d_model).

    use_bf16=True keeps the activation slab and conv weights in bf16 (MXU
    operands) with f32 accumulation / f32 LayerNorm math — recommended on
    v6e/v7x when ~1e-2 tolerance is acceptable.
    """
    B, T, c_in = x.shape
    assert len(params) == len(DILATIONS)
    assert params[0][0].shape[1] == c_in
    d_model = params[-1][0].shape[2]

    slab_dtype = jnp.bfloat16 if use_bf16 else jnp.float32
    align = 16 if use_bf16 else 8              # sublane packing granularity

    # Lane-dense channel padding shared by every layer.
    C = _round_up(max(c_in, d_model), 128)
    maxd = max(DILATIONS)
    pad_l = _round_up(maxd, align)             # leading time pad (aligned)
    tv = _round_up(T, align)                   # aligned time rows per tile
    tp = pad_l + tv + _round_up(maxd, align)   # padded time extent of the slab

    # Pack parameters once: per-tap (C_in, C_out) blocks, channels padded to C,
    # gamma/beta padded to tv rows (zeros in the padding).
    w_l, b_l, g_l, beta_l = [], [], [], []
    for (w, b, g, bt_) in params:
        _, ci, co = w.shape
        w_l.append(jnp.zeros((3, C, C), jnp.float32)
                   .at[:, :ci, :co].set(w).astype(slab_dtype))
        b_l.append(jnp.zeros((1, C), jnp.float32).at[:, :co].set(b))
        g_l.append(jnp.zeros((tv, C), jnp.float32).at[:T, :co].set(g))
        beta_l.append(jnp.zeros((tv, C), jnp.float32).at[:T, :co].set(bt_))
    w_stk = jnp.stack(w_l)        # (L, 3, C, C)
    b_stk = jnp.stack(b_l)        # (L, 1, C)
    g_stk = jnp.stack(g_l)        # (L, tv, C)
    beta_stk = jnp.stack(beta_l)  # (L, tv, C)

    # Batch tile size: smallest padded-batch waste with a tile at least half
    # of the requested block_b (ties -> larger tile).  For large B this keeps
    # the grid length >= 2 so both v7x TensorCores get work.
    req = max(1, min(block_b, B))
    cands = range(max(1, (req + 1) // 2), req + 1)
    bt_b = min(cands, key=lambda cand: (_round_up(B, cand), -cand))
    Bp = _round_up(B, bt_b)

    # Channel (and batch) pad the input once on the host so the in-kernel
    # x stage fully overwrites the slab interior with aligned-lane stores.
    xp = jnp.zeros((Bp, T, C), slab_dtype).at[:B, :, :c_in].set(
        x.astype(slab_dtype))

    kern = functools.partial(
        _fused_tcn_kernel, dilations=DILATIONS, t=T, tv=tv, pad_l=pad_l,
        n_inv=1.0 / float(d_model * T))

    out = pl.pallas_call(
        kern,
        out_shape=jax.ShapeDtypeStruct((Bp, tv, C), jnp.float32),
        grid=(Bp // bt_b,),
        in_specs=[
            pl.BlockSpec((bt_b, T, C), lambda i: (i, 0, 0)),      # x tile
            pl.BlockSpec(memory_space=pltpu.MemorySpace.VMEM),    # weights
            pl.BlockSpec(memory_space=pltpu.MemorySpace.VMEM),    # bias
            pl.BlockSpec(memory_space=pltpu.MemorySpace.VMEM),    # gamma
            pl.BlockSpec(memory_space=pltpu.MemorySpace.VMEM),    # beta
        ],
        out_specs=pl.BlockSpec((bt_b, tv, C), lambda i: (i, 0, 0)),
        scratch_shapes=[pltpu.VMEM((bt_b, tp, C), slab_dtype)],
        compiler_params=pltpu.CompilerParams(
            dimension_semantics=("parallel",)),
    )(xp, w_stk, b_stk, g_stk, beta_stk)

    return out[:B, :T, :d_model]


def init_shared_encoder_tcn_params(key, input_dim, d_model, T):
    """Deterministic synthetic params (shapes follow the torch module)."""
    params = []
    c_in = input_dim
    for _ in DILATIONS:
        key, kw, kb, kg, kbt = jax.random.split(key, 5)
        # torch Conv1d weight is (C_out, C_in, 3); we store (3, C_in, C_out).
        w = jax.random.normal(kw, (3, c_in, d_model), jnp.float32) * 0.1
        b = jax.random.normal(kb, (1, d_model), jnp.float32) * 0.05
        # torch LayerNorm([d_model, T]) affine is (d_model, T); we store (T, d_model).
        gamma = 1.0 + 0.1 * jax.random.normal(kg, (T, d_model), jnp.float32)
        beta = 0.05 * jax.random.normal(kbt, (T, d_model), jnp.float32)
        params.append((w, b, gamma, beta))
        c_in = d_model
    return params


def _reference_forward(x, params):
    """Pure-JAX reference (lax conv) for correctness checking."""
    h = x
    for (w, b, g, bt_), d in zip(params, DILATIONS):
        y = lax.conv_general_dilated(
            h, w, window_strides=(1,), padding=[(d, d)], rhs_dilation=(d,),
            dimension_numbers=("NWC", "WIO", "NWC"))
        y = y + b
        y = jnp.maximum(y, 0.0)
        mean = jnp.mean(y, axis=(1, 2), keepdims=True)
        var = jnp.mean((y - mean) ** 2, axis=(1, 2), keepdims=True)
        h = (y - mean) / jnp.sqrt(var + LN_EPS) * g + bt_
    return h


if __name__ == "__main__":
    B = 5            # small odd batch
    T = 60           # fixed by LayerNorm([d_model, 60]) in the module
    INPUT_DIM = 84   # module default
    D_MODEL = 96     # exercises the output-channel padding / masked-LN path

    key = jax.random.PRNGKey(0)
    key, kx = jax.random.split(key)
    x = jax.random.normal(kx, (B, T, INPUT_DIM), jnp.float32)
    params = init_shared_encoder_tcn_params(key, INPUT_DIM, D_MODEL, T)

    ref = jax.block_until_ready(_reference_forward(x, params))

    # 1) f32 path, default tiling (single tile covers the whole small batch).
    feat = jax.block_until_ready(shared_encoder_tcn_forward(x, params))
    assert feat.shape == (B, T, D_MODEL), feat.shape
    err = float(jnp.max(jnp.abs(feat - ref)))
    assert jnp.allclose(feat, ref, rtol=2e-4, atol=2e-4), err

    # 2) f32 path with a small batch tile: exercises grid > 1 and batch padding.
    feat2 = jax.block_until_ready(
        shared_encoder_tcn_forward(x, params, block_b=3))
    err2 = float(jnp.max(jnp.abs(feat2 - ref)))
    assert jnp.allclose(feat2, ref, rtol=2e-4, atol=2e-4), err2

    # 3) bf16 matmul-operand path (v6e/v7x option): looser tolerance.
    feat3 = jax.block_until_ready(
        shared_encoder_tcn_forward(x, params, use_bf16=True))
    err3 = float(jnp.max(jnp.abs(feat3 - ref)))
    assert jnp.allclose(feat3, ref, rtol=2e-2, atol=5e-2), err3

    print("KERNEL_OK")
</pallas_src>

<mosaic_0001>
module attributes {stable_mosaic.version = 11 : i64} {
  func.func @_fused_tcn_kernel(%arg0: i32, %arg1: memref<5x60x128xf32, #tpu.memory_space<vmem>>, %arg2: memref<4x3x128x128xf32, #tpu.memory_space<vmem>>, %arg3: memref<4x1x128xf32, #tpu.memory_space<vmem>>, %arg4: memref<4x64x128xf32, #tpu.memory_space<vmem>>, %arg5: memref<4x64x128xf32, #tpu.memory_space<vmem>>, %arg6: memref<5x64x128xf32, #tpu.memory_space<vmem>>, %arg7: memref<5x80x128xf32, #tpu.memory_space<vmem>>) attributes {dimension_semantics = [#tpu.dimension_semantics<parallel>], iteration_bounds = array<i64: 1>, scalar_prefetch = 0 : i64, scratch_operands = 1 : i64, tpu.core_type = #tpu.core_type<tc>, window_params = [{transform_indices = @transform_0, window_bounds = array<i64: 5, 60, 128>}, {pipeline_mode = #tpu.pipeline_mode<synchronous>, transform_indices = @transform_1, window_bounds = array<i64: 4, 3, 128, 128>}, {pipeline_mode = #tpu.pipeline_mode<synchronous>, transform_indices = @transform_2, window_bounds = array<i64: 4, 1, 128>}, {pipeline_mode = #tpu.pipeline_mode<synchronous>, transform_indices = @transform_3, window_bounds = array<i64: 4, 64, 128>}, {pipeline_mode = #tpu.pipeline_mode<synchronous>, transform_indices = @transform_4, window_bounds = array<i64: 4, 64, 128>}, {transform_indices = @transform_5, window_bounds = array<i64: 5, 64, 128>}]} {
    %cst = arith.constant 0.000000e+00 : f32
    %0 = vector.broadcast %cst : f32 to vector<5x8x128xf32>
    %c0 = arith.constant 0 : index
    %c0_0 = arith.constant 0 : index
    %c0_1 = arith.constant 0 : index
    %1 = vector.load %arg7[%c0, %c0_0, %c0_1] : memref<5x80x128xf32, #tpu.memory_space<vmem>>, vector<5x8x128xf32>
    tpu.vector_store %arg7[%c0, %c0_0, %c0_1], %0 {strides = array<i32>} : memref<5x80x128xf32, #tpu.memory_space<vmem>>, vector<5x8x128xf32>,
    %cst_2 = arith.constant 0.000000e+00 : f32
    %2 = vector.broadcast %cst_2 : f32 to vector<5x12x128xf32>
    %c0_3 = arith.constant 0 : index
    %c68 = arith.constant 68 : index
    %c0_4 = arith.constant 0 : index
    %3 = vector.load %arg7[%c0_3, %c68, %c0_4] : memref<5x80x128xf32, #tpu.memory_space<vmem>>, vector<5x12x128xf32>
    tpu.vector_store %arg7[%c0_3, %c68, %c0_4], %2 {strides = array<i32>} : memref<5x80x128xf32, #tpu.memory_space<vmem>>, vector<5x12x128xf32>,
    %c0_5 = arith.constant 0 : index
    %c0_6 = arith.constant 0 : index
    %c0_7 = arith.constant 0 : index
    %4 = vector.load %arg1[%c0_5, %c0_6, %c0_7] : memref<5x60x128xf32, #tpu.memory_space<vmem>>, vector<5x60x128xf32>
    %c0_8 = arith.constant 0 : index
    %c8 = arith.constant 8 : index
    %c0_9 = arith.constant 0 : index
    %5 = vector.load %arg7[%c0_8, %c8, %c0_9] : memref<5x80x128xf32, #tpu.memory_space<vmem>>, vector<5x60x128xf32>
    tpu.vector_store %arg7[%c0_8, %c8, %c0_9], %4 {strides = array<i32>} : memref<5x80x128xf32, #tpu.memory_space<vmem>>, vector<5x60x128xf32>,
    %6 = tpu.iota {dimensions = array<i32: 1>} : vector<1x64x1xi32>
    %c60_i32 = arith.constant 60 : i32
    %7 = vector.broadcast %c60_i32 : i32 to vector<1x64x1xi32>
    %8 = arith.cmpi slt, %6, %7 : vector<1x64x1xi32>
    %c0_10 = arith.constant 0 : index
    %c7 = arith.constant 7 : index
    %c0_11 = arith.constant 0 : index
    %9 = vector.load %arg7[%c0_10, %c7, %c0_11] : memref<5x80x128xf32, #tpu.memory_space<vmem>>, vector<5x64x128xf32>
    %10 = vector.shape_cast %9 : vector<5x64x128xf32> to vector<320x128xf32>
    %c0_12 = arith.constant 0 : index
    %c0_13 = arith.constant 0 : index
    %c0_14 = arith.constant 0 : index
    %c0_15 = arith.constant 0 : index
    %11 = vector.load %arg2[%c0_12, %c0_13, %c0_14, %c0_15] : memref<4x3x128x128xf32, #tpu.memory_space<vmem>>, vector<1x1x128x128xf32>
    %12 = vector.shape_cast %11 : vector<1x1x128x128xf32> to vector<128x128xf32>
    %cst_16 = arith.constant dense<0.000000e+00> : vector<320x128xf32>
    %13 = tpu.matmul %10, %12, %cst_16 {dimension_numbers = #tpu.dot_dimension_numbers<[1], [0], [0], [1], [0, 0, 1, 1], [], []>} : vector<320x128xf32>, vector<128x128xf32>, vector<320x128xf32> -> vector<320x128xf32>
    %c0_17 = arith.constant 0 : index
    %c8_18 = arith.constant 8 : index
    %c0_19 = arith.constant 0 : index
    %14 = vector.load %arg7[%c0_17, %c8_18, %c0_19] : memref<5x80x128xf32, #tpu.memory_space<vmem>>, vector<5x64x128xf32>
    %15 = vector.shape_cast %14 : vector<5x64x128xf32> to vector<320x128xf32>
    %c0_20 = arith.constant 0 : index
    %c1 = arith.constant 1 : index
    %c0_21 = arith.constant 0 : index
    %c0_22 = arith.constant 0 : index
    %16 = vector.load %arg2[%c0_20, %c1, %c0_21, %c0_22] : memref<4x3x128x128xf32, #tpu.memory_space<vmem>>, vector<1x1x128x128xf32>
    %17 = vector.shape_cast %16 : vector<1x1x128x128xf32> to vector<128x128xf32>
    %cst_23 = arith.constant dense<0.000000e+00> : vector<320x128xf32>
    %18 = tpu.matmul %15, %17, %cst_23 {dimension_numbers = #tpu.dot_dimension_numbers<[1], [0], [0], [1], [0, 0, 1, 1], [], []>} : vector<320x128xf32>, vector<128x128xf32>, vector<320x128xf32> -> vector<320x128xf32>
    %19 = arith.addf %13, %18 : vector<320x128xf32>
    %c0_24 = arith.constant 0 : index
    %c9 = arith.constant 9 : index
    %c0_25 = arith.constant 0 : index
    %20 = vector.load %arg7[%c0_24, %c9, %c0_25] : memref<5x80x128xf32, #tpu.memory_space<vmem>>, vector<5x64x128xf32>
    %21 = vector.shape_cast %20 : vector<5x64x128xf32> to vector<320x128xf32>
    %c0_26 = arith.constant 0 : index
    %c2 = arith.constant 2 : index
    %c0_27 = arith.constant 0 : index
    %c0_28 = arith.constant 0 : index
    %22 = vector.load %arg2[%c0_26, %c2, %c0_27, %c0_28] : memref<4x3x128x128xf32, #tpu.memory_space<vmem>>, vector<1x1x128x128xf32>
    %23 = vector.shape_cast %22 : vector<1x1x128x128xf32> to vector<128x128xf32>
    %cst_29 = arith.constant dense<0.000000e+00> : vector<320x128xf32>
    %24 = tpu.matmul %21, %23, %cst_29 {dimension_numbers = #tpu.dot_dimension_numbers<[1], [0], [0], [1], [0, 0, 1, 1], [], []>} : vector<320x128xf32>, vector<128x128xf32>, vector<320x128xf32> -> vector<320x128xf32>
    %25 = arith.addf %19, %24 : vector<320x128xf32>
    %26 = vector.shape_cast %25 : vector<320x128xf32> to vector<5x64x128xf32>
    %c0_30 = arith.constant 0 : index
    %c0_31 = arith.constant 0 : index
    %c0_32 = arith.constant 0 : index
    %27 = vector.load %arg3[%c0_30, %c0_31, %c0_32] : memref<4x1x128xf32, #tpu.memory_space<vmem>>, vector<1x1x128xf32>
    %28 = vector.shape_cast %27 : vector<1x1x128xf32> to vector<1x128xf32>
    %29 = vector.shape_cast %28 : vector<1x128xf32> to vector<1x1x128xf32>
    %30 = vector.broadcast %29 : vector<1x1x128xf32> to vector<5x64x128xf32>
    %31 = arith.addf %26, %30 : vector<5x64x128xf32>
    %cst_33 = arith.constant 0.000000e+00 : f32
    %32 = vector.broadcast %cst_33 : f32 to vector<5x64x128xf32>
    %33 = arith.maximumf %31, %32 : vector<5x64x128xf32>
    %cst_34 = arith.constant 0.000000e+00 : f32
    %34 = vector.shape_cast %8 : vector<1x64x1xi1> to vector<1x64x1xi1>
    %35 = vector.broadcast %34 : vector<1x64x1xi1> to vector<5x64x128xi1>
    %36 = vector.broadcast %cst_34 : f32 to vector<5x64x128xf32>
    %37 = arith.select %35, %33, %36 : vector<5x64x128xi1>, vector<5x64x128xf32>
    %cst_35 = arith.constant dense<0.000000e+00> : vector<5x128xf32>
    %38 = vector.multi_reduction <add>, %37, %cst_35 [1] : vector<5x64x128xf32> to vector<5x128xf32>
    %39 = vector.shape_cast %38 : vector<5x128xf32> to vector<5x1x128xf32>
    %cst_36 = arith.constant dense<0.000000e+00> : vector<5x1xf32>
    %40 = vector.multi_reduction <add>, %39, %cst_36 [2] : vector<5x1x128xf32> to vector<5x1xf32>
    %41 = vector.shape_cast %40 : vector<5x1xf32> to vector<5x1x1xf32>
    %42 = arith.mulf %37, %37 : vector<5x64x128xf32>
    %cst_37 = arith.constant dense<0.000000e+00> : vector<5x128xf32>
    %43 = vector.multi_reduction <add>, %42, %cst_37 [1] : vector<5x64x128xf32> to vector<5x128xf32>
    %44 = vector.shape_cast %43 : vector<5x128xf32> to vector<5x1x128xf32>
    %cst_38 = arith.constant dense<0.000000e+00> : vector<5x1xf32>
    %45 = vector.multi_reduction <add>, %44, %cst_38 [2] : vector<5x1x128xf32> to vector<5x1xf32>
    %46 = vector.shape_cast %45 : vector<5x1xf32> to vector<5x1x1xf32>
    %cst_39 = arith.constant 1.73611115E-4 : f32
    %47 = vector.broadcast %cst_39 : f32 to vector<5x1x1xf32>
    %48 = arith.mulf %41, %47 : vector<5x1x1xf32>
    %cst_40 = arith.constant 1.73611115E-4 : f32
    %49 = vector.broadcast %cst_40 : f32 to vector<5x1x1xf32>
    %50 = arith.mulf %46, %49 : vector<5x1x1xf32>
    %51 = arith.mulf %48, %48 : vector<5x1x1xf32>
    %52 = arith.subf %50, %51 : vector<5x1x1xf32>
    %cst_41 = arith.constant 0.000000e+00 : f32
    %53 = vector.broadcast %cst_41 : f32 to vector<5x1x1xf32>
    %54 = arith.maximumf %52, %53 : vector<5x1x1xf32>
    %55 = vector.broadcast %48 : vector<5x1x1xf32> to vector<5x64x128xf32>
    %56 = arith.subf %37, %55 : vector<5x64x128xf32>
    %cst_42 = arith.constant 9.99999974E-6 : f32
    %57 = vector.broadcast %cst_42 : f32 to vector<5x1x1xf32>
    %58 = arith.addf %54, %57 : vector<5x1x1xf32>
    %59 = math.rsqrt %58 : vector<5x1x1xf32>
    %60 = vector.broadcast %59 : vector<5x1x1xf32> to vector<5x64x128xf32>
    %61 = arith.mulf %56, %60 : vector<5x64x128xf32>
    %c0_43 = arith.constant 0 : index
    %c0_44 = arith.constant 0 : index
    %c0_45 = arith.constant 0 : index
    %62 = vector.load %arg4[%c0_43, %c0_44, %c0_45] : memref<4x64x128xf32, #tpu.memory_space<vmem>>, vector<1x64x128xf32>
    %63 = vector.shape_cast %62 : vector<1x64x128xf32> to vector<64x128xf32>
    %64 = vector.shape_cast %63 : vector<64x128xf32> to vector<1x64x128xf32>
    %65 = vector.broadcast %64 : vector<1x64x128xf32> to vector<5x64x128xf32>
    %66 = arith.mulf %61, %65 : vector<5x64x128xf32>
    %c0_46 = arith.constant 0 : index
    %c0_47 = arith.constant 0 : index
    %c0_48 = arith.constant 0 : index
    %67 = vector.load %arg5[%c0_46, %c0_47, %c0_48] : memref<4x64x128xf32, #tpu.memory_space<vmem>>, vector<1x64x128xf32>
    %68 = vector.shape_cast %67 : vector<1x64x128xf32> to vector<64x128xf32>
    %69 = vector.shape_cast %68 : vector<64x128xf32> to vector<1x64x128xf32>
    %70 = vector.broadcast %69 : vector<1x64x128xf32> to vector<5x64x128xf32>
    %71 = arith.addf %66, %70 : vector<5x64x128xf32>
    %c0_49 = arith.constant 0 : index
    %c8_50 = arith.constant 8 : index
    %c0_51 = arith.constant 0 : index
    %72 = vector.load %arg7[%c0_49, %c8_50, %c0_51] : memref<5x80x128xf32, #tpu.memory_space<vmem>>, vector<5x64x128xf32>
    tpu.vector_store %arg7[%c0_49, %c8_50, %c0_51], %71 {strides = array<i32>} : memref<5x80x128xf32, #tpu.memory_space<vmem>>, vector<5x64x128xf32>,
    %c0_52 = arith.constant 0 : index
    %c6 = arith.constant 6 : index
    %c0_53 = arith.constant 0 : index
    %73 = vector.load %arg7[%c0_52, %c6, %c0_53] : memref<5x80x128xf32, #tpu.memory_space<vmem>>, vector<5x64x128xf32>
    %74 = vector.shape_cast %73 : vector<5x64x128xf32> to vector<320x128xf32>
    %c1_54 = arith.constant 1 : index
    %c0_55 = arith.constant 0 : index
    %c0_56 = arith.constant 0 : index
    %c0_57 = arith.constant 0 : index
    %75 = vector.load %arg2[%c1_54, %c0_55, %c0_56, %c0_57] : memref<4x3x128x128xf32, #tpu.memory_space<vmem>>, vector<1x1x128x128xf32>
    %76 = vector.shape_cast %75 : vector<1x1x128x128xf32> to vector<128x128xf32>
    %cst_58 = arith.constant dense<0.000000e+00> : vector<320x128xf32>
    %77 = tpu.matmul %74, %76, %cst_58 {dimension_numbers = #tpu.dot_dimension_numbers<[1], [0], [0], [1], [0, 0, 1, 1], [], []>} : vector<320x128xf32>, vector<128x128xf32>, vector<320x128xf32> -> vector<320x128xf32>
    %c0_59 = arith.constant 0 : index
    %c8_60 = arith.constant 8 : index
    %c0_61 = arith.constant 0 : index
    %78 = vector.load %arg7[%c0_59, %c8_60, %c0_61] : memref<5x80x128xf32, #tpu.memory_space<vmem>>, vector<5x64x128xf32>
    %79 = vector.shape_cast %78 : vector<5x64x128xf32> to vector<320x128xf32>
    %c1_62 = arith.constant 1 : index
    %c1_63 = arith.constant 1 : index
    %c0_64 = arith.constant 0 : index
    %c0_65 = arith.constant 0 : index
    %80 = vector.load %arg2[%c1_62, %c1_63, %c0_64, %c0_65] : memref<4x3x128x128xf32, #tpu.memory_space<vmem>>, vector<1x1x128x128xf32>
    %81 = vector.shape_cast %80 : vector<1x1x128x128xf32> to vector<128x128xf32>
    %cst_66 = arith.constant dense<0.000000e+00> : vector<320x128xf32>
    %82 = tpu.matmul %79, %81, %cst_66 {dimension_numbers = #tpu.dot_dimension_numbers<[1], [0], [0], [1], [0, 0, 1, 1], [], []>} : vector<320x128xf32>, vector<128x128xf32>, vector<320x128xf32> -> vector<320x128xf32>
    %83 = arith.addf %77, %82 : vector<320x128xf32>
    %c0_67 = arith.constant 0 : index
    %c10 = arith.constant 10 : index
    %c0_68 = arith.constant 0 : index
    %84 = vector.load %arg7[%c0_67, %c10, %c0_68] : memref<5x80x128xf32, #tpu.memory_space<vmem>>, vector<5x64x128xf32>
    %85 = vector.shape_cast %84 : vector<5x64x128xf32> to vector<320x128xf32>
    %c1_69 = arith.constant 1 : index
    %c2_70 = arith.constant 2 : index
    %c0_71 = arith.constant 0 : index
    %c0_72 = arith.constant 0 : index
    %86 = vector.load %arg2[%c1_69, %c2_70, %c0_71, %c0_72] : memref<4x3x128x128xf32, #tpu.memory_space<vmem>>, vector<1x1x128x128xf32>
    %87 = vector.shape_cast %86 : vector<1x1x128x128xf32> to vector<128x128xf32>
    %cst_73 = arith.constant dense<0.000000e+00> : vector<320x128xf32>
    %88 = tpu.matmul %85, %87, %cst_73 {dimension_numbers = #tpu.dot_dimension_numbers<[1], [0], [0], [1], [0, 0, 1, 1], [], []>} : vector<320x128xf32>, vector<128x128xf32>, vector<320x128xf32> -> vector<320x128xf32>
    %89 = arith.addf %83, %88 : vector<320x128xf32>
    %90 = vector.shape_cast %89 : vector<320x128xf32> to vector<5x64x128xf32>
    %c1_74 = arith.constant 1 : index
    %c0_75 = arith.constant 0 : index
    %c0_76 = arith.constant 0 : index
    %91 = vector.load %arg3[%c1_74, %c0_75, %c0_76] : memref<4x1x128xf32, #tpu.memory_space<vmem>>, vector<1x1x128xf32>
    %92 = vector.shape_cast %91 : vector<1x1x128xf32> to vector<1x128xf32>
    %93 = vector.shape_cast %92 : vector<1x128xf32> to vector<1x1x128xf32>
    %94 = vector.broadcast %93 : vector<1x1x128xf32> to vector<5x64x128xf32>
    %95 = arith.addf %90, %94 : vector<5x64x128xf32>
    %cst_77 = arith.constant 0.000000e+00 : f32
    %96 = vector.broadcast %cst_77 : f32 to vector<5x64x128xf32>
    %97 = arith.maximumf %95, %96 : vector<5x64x128xf32>
    %cst_78 = arith.constant 0.000000e+00 : f32
    %98 = vector.shape_cast %8 : vector<1x64x1xi1> to vector<1x64x1xi1>
    %99 = vector.broadcast %98 : vector<1x64x1xi1> to vector<5x64x128xi1>
    %100 = vector.broadcast %cst_78 : f32 to vector<5x64x128xf32>
    %101 = arith.select %99, %97, %100 : vector<5x64x128xi1>, vector<5x64x128xf32>
    %cst_79 = arith.constant dense<0.000000e+00> : vector<5x128xf32>
    %102 = vector.multi_reduction <add>, %101, %cst_79 [1] : vector<5x64x128xf32> to vector<5x128xf32>
    %103 = vector.shape_cast %102 : vector<5x128xf32> to vector<5x1x128xf32>
    %cst_80 = arith.constant dense<0.000000e+00> : vector<5x1xf32>
    %104 = vector.multi_reduction <add>, %103, %cst_80 [2] : vector<5x1x128xf32> to vector<5x1xf32>
    %105 = vector.shape_cast %104 : vector<5x1xf32> to vector<5x1x1xf32>
    %106 = arith.mulf %101, %101 : vector<5x64x128xf32>
    %cst_81 = arith.constant dense<0.000000e+00> : vector<5x128xf32>
    %107 = vector.multi_reduction <add>, %106, %cst_81 [1] : vector<5x64x128xf32> to vector<5x128xf32>
    %108 = vector.shape_cast %107 : vector<5x128xf32> to vector<5x1x128xf32>
    %cst_82 = arith.constant dense<0.000000e+00> : vector<5x1xf32>
    %109 = vector.multi_reduction <add>, %108, %cst_82 [2] : vector<5x1x128xf32> to vector<5x1xf32>
    %110 = vector.shape_cast %109 : vector<5x1xf32> to vector<5x1x1xf32>
    %cst_83 = arith.constant 1.73611115E-4 : f32
    %111 = vector.broadcast %cst_83 : f32 to vector<5x1x1xf32>
    %112 = arith.mulf %105, %111 : vector<5x1x1xf32>
    %cst_84 = arith.constant 1.73611115E-4 : f32
    %113 = vector.broadcast %cst_84 : f32 to vector<5x1x1xf32>
    %114 = arith.mulf %110, %113 : vector<5x1x1xf32>
    %115 = arith.mulf %112, %112 : vector<5x1x1xf32>
    %116 = arith.subf %114, %115 : vector<5x1x1xf32>
    %cst_85 = arith.constant 0.000000e+00 : f32
    %117 = vector.broadcast %cst_85 : f32 to vector<5x1x1xf32>
    %118 = arith.maximumf %116, %117 : vector<5x1x1xf32>
    %119 = vector.broadcast %112 : vector<5x1x1xf32> to vector<5x64x128xf32>
    %120 = arith.subf %101, %119 : vector<5x64x128xf32>
    %cst_86 = arith.constant 9.99999974E-6 : f32
    %121 = vector.broadcast %cst_86 : f32 to vector<5x1x1xf32>
    %122 = arith.addf %118, %121 : vector<5x1x1xf32>
    %123 = math.rsqrt %122 : vector<5x1x1xf32>
    %124 = vector.broadcast %123 : vector<5x1x1xf32> to vector<5x64x128xf32>
    %125 = arith.mulf %120, %124 : vector<5x64x128xf32>
    %c1_87 = arith.constant 1 : index
    %c0_88 = arith.constant 0 : index
    %c0_89 = arith.constant 0 : index
    %126 = vector.load %arg4[%c1_87, %c0_88, %c0_89] : memref<4x64x128xf32, #tpu.memory_space<vmem>>, vector<1x64x128xf32>
    %127 = vector.shape_cast %126 : vector<1x64x128xf32> to vector<64x128xf32>
    %128 = vector.shape_cast %127 : vector<64x128xf32> to vector<1x64x128xf32>
    %129 = vector.broadcast %128 : vector<1x64x128xf32> to vector<5x64x128xf32>
    %130 = arith.mulf %125, %129 : vector<5x64x128xf32>
    %c1_90 = arith.constant 1 : index
    %c0_91 = arith.constant 0 : index
    %c0_92 = arith.constant 0 : index
    %131 = vector.load %arg5[%c1_90, %c0_91, %c0_92] : memref<4x64x128xf32, #tpu.memory_space<vmem>>, vector<1x64x128xf32>
    %132 = vector.shape_cast %131 : vector<1x64x128xf32> to vector<64x128xf32>
    %133 = vector.shape_cast %132 : vector<64x128xf32> to vector<1x64x128xf32>
    %134 = vector.broadcast %133 : vector<1x64x128xf32> to vector<5x64x128xf32>
    %135 = arith.addf %130, %134 : vector<5x64x128xf32>
    %c0_93 = arith.constant 0 : index
    %c8_94 = arith.constant 8 : index
    %c0_95 = arith.constant 0 : index
    %136 = vector.load %arg7[%c0_93, %c8_94, %c0_95] : memref<5x80x128xf32, #tpu.memory_space<vmem>>, vector<5x64x128xf32>
    tpu.vector_store %arg7[%c0_93, %c8_94, %c0_95], %135 {strides = array<i32>} : memref<5x80x128xf32, #tpu.memory_space<vmem>>, vector<5x64x128xf32>,
    %c0_96 = arith.constant 0 : index
    %c4 = arith.constant 4 : index
    %c0_97 = arith.constant 0 : index
    %137 = vector.load %arg7[%c0_96, %c4, %c0_97] : memref<5x80x128xf32, #tpu.memory_space<vmem>>, vector<5x64x128xf32>
    %138 = vector.shape_cast %137 : vector<5x64x128xf32> to vector<320x128xf32>
    %c2_98 = arith.constant 2 : index
    %c0_99 = arith.constant 0 : index
    %c0_100 = arith.constant 0 : index
    %c0_101 = arith.constant 0 : index
    %139 = vector.load %arg2[%c2_98, %c0_99, %c0_100, %c0_101] : memref<4x3x128x128xf32, #tpu.memory_space<vmem>>, vector<1x1x128x128xf32>
    %140 = vector.shape_cast %139 : vector<1x1x128x128xf32> to vector<128x128xf32>
    %cst_102 = arith.constant dense<0.000000e+00> : vector<320x128xf32>
    %141 = tpu.matmul %138, %140, %cst_102 {dimension_numbers = #tpu.dot_dimension_numbers<[1], [0], [0], [1], [0, 0, 1, 1], [], []>} : vector<320x128xf32>, vector<128x128xf32>, vector<320x128xf32> -> vector<320x128xf32>
    %c0_103 = arith.constant 0 : index
    %c8_104 = arith.constant 8 : index
    %c0_105 = arith.constant 0 : index
    %142 = vector.load %arg7[%c0_103, %c8_104, %c0_105] : memref<5x80x128xf32, #tpu.memory_space<vmem>>, vector<5x64x128xf32>
    %143 = vector.shape_cast %142 : vector<5x64x128xf32> to vector<320x128xf32>
    %c2_106 = arith.constant 2 : index
    %c1_107 = arith.constant 1 : index
    %c0_108 = arith.constant 0 : index
    %c0_109 = arith.constant 0 : index
    %144 = vector.load %arg2[%c2_106, %c1_107, %c0_108, %c0_109] : memref<4x3x128x128xf32, #tpu.memory_space<vmem>>, vector<1x1x128x128xf32>
    %145 = vector.shape_cast %144 : vector<1x1x128x128xf32> to vector<128x128xf32>
    %cst_110 = arith.constant dense<0.000000e+00> : vector<320x128xf32>
    %146 = tpu.matmul %143, %145, %cst_110 {dimension_numbers = #tpu.dot_dimension_numbers<[1], [0], [0], [1], [0, 0, 1, 1], [], []>} : vector<320x128xf32>, vector<128x128xf32>, vector<320x128xf32> -> vector<320x128xf32>
    %147 = arith.addf %141, %146 : vector<320x128xf32>
    %c0_111 = arith.constant 0 : index
    %c12 = arith.constant 12 : index
    %c0_112 = arith.constant 0 : index
    %148 = vector.load %arg7[%c0_111, %c12, %c0_112] : memref<5x80x128xf32, #tpu.memory_space<vmem>>, vector<5x64x128xf32>
    %149 = vector.shape_cast %148 : vector<5x64x128xf32> to vector<320x128xf32>
    %c2_113 = arith.constant 2 : index
    %c2_114 = arith.constant 2 : index
    %c0_115 = arith.constant 0 : index
    %c0_116 = arith.constant 0 : index
    %150 = vector.load %arg2[%c2_113, %c2_114, %c0_115, %c0_116] : memref<4x3x128x128xf32, #tpu.memory_space<vmem>>, vector<1x1x128x128xf32>
    %151 = vector.shape_cast %150 : vector<1x1x128x128xf32> to vector<128x128xf32>
    %cst_117 = arith.constant dense<0.000000e+00> : vector<320x128xf32>
    %152 = tpu.matmul %149, %151, %cst_117 {dimension_numbers = #tpu.dot_dimension_numbers<[1], [0], [0], [1], [0, 0, 1, 1], [], []>} : vector<320x128xf32>, vector<128x128xf32>, vector<320x128xf32> -> vector<320x128xf32>
    %153 = arith.addf %147, %152 : vector<320x128xf32>
    %154 = vector.shape_cast %153 : vector<320x128xf32> to vector<5x64x128xf32>
    %c2_118 = arith.constant 2 : index
    %c0_119 = arith.constant 0 : index
    %c0_120 = arith.constant 0 : index
    %155 = vector.load %arg3[%c2_118, %c0_119, %c0_120] : memref<4x1x128xf32, #tpu.memory_space<vmem>>, vector<1x1x128xf32>
    %156 = vector.shape_cast %155 : vector<1x1x128xf32> to vector<1x128xf32>
    %157 = vector.shape_cast %156 : vector<1x128xf32> to vector<1x1x128xf32>
    %158 = vector.broadcast %157 : vector<1x1x128xf32> to vector<5x64x128xf32>
    %159 = arith.addf %154, %158 : vector<5x64x128xf32>
    %cst_121 = arith.constant 0.000000e+00 : f32
    %160 = vector.broadcast %cst_121 : f32 to vector<5x64x128xf32>
    %161 = arith.maximumf %159, %160 : vector<5x64x128xf32>
    %cst_122 = arith.constant 0.000000e+00 : f32
    %162 = vector.shape_cast %8 : vector<1x64x1xi1> to vector<1x64x1xi1>
    %163 = vector.broadcast %162 : vector<1x64x1xi1> to vector<5x64x128xi1>
    %164 = vector.broadcast %cst_122 : f32 to vector<5x64x128xf32>
    %165 = arith.select %163, %161, %164 : vector<5x64x128xi1>, vector<5x64x128xf32>
    %cst_123 = arith.constant dense<0.000000e+00> : vector<5x128xf32>
    %166 = vector.multi_reduction <add>, %165, %cst_123 [1] : vector<5x64x128xf32> to vector<5x128xf32>
    %167 = vector.shape_cast %166 : vector<5x128xf32> to vector<5x1x128xf32>
    %cst_124 = arith.constant dense<0.000000e+00> : vector<5x1xf32>
    %168 = vector.multi_reduction <add>, %167, %cst_124 [2] : vector<5x1x128xf32> to vector<5x1xf32>
    %169 = vector.shape_cast %168 : vector<5x1xf32> to vector<5x1x1xf32>
    %170 = arith.mulf %165, %165 : vector<5x64x128xf32>
    %cst_125 = arith.constant dense<0.000000e+00> : vector<5x128xf32>
    %171 = vector.multi_reduction <add>, %170, %cst_125 [1] : vector<5x64x128xf32> to vector<5x128xf32>
    %172 = vector.shape_cast %171 : vector<5x128xf32> to vector<5x1x128xf32>
    %cst_126 = arith.constant dense<0.000000e+00> : vector<5x1xf32>
    %173 = vector.multi_reduction <add>, %172, %cst_126 [2] : vector<5x1x128xf32> to vector<5x1xf32>
    %174 = vector.shape_cast %173 : vector<5x1xf32> to vector<5x1x1xf32>
    %cst_127 = arith.constant 1.73611115E-4 : f32
    %175 = vector.broadcast %cst_127 : f32 to vector<5x1x1xf32>
    %176 = arith.mulf %169, %175 : vector<5x1x1xf32>
    %cst_128 = arith.constant 1.73611115E-4 : f32
    %177 = vector.broadcast %cst_128 : f32 to vector<5x1x1xf32>
    %178 = arith.mulf %174, %177 : vector<5x1x1xf32>
    %179 = arith.mulf %176, %176 : vector<5x1x1xf32>
    %180 = arith.subf %178, %179 : vector<5x1x1xf32>
    %cst_129 = arith.constant 0.000000e+00 : f32
    %181 = vector.broadcast %cst_129 : f32 to vector<5x1x1xf32>
    %182 = arith.maximumf %180, %181 : vector<5x1x1xf32>
    %183 = vector.broadcast %176 : vector<5x1x1xf32> to vector<5x64x128xf32>
    %184 = arith.subf %165, %183 : vector<5x64x128xf32>
    %cst_130 = arith.constant 9.99999974E-6 : f32
    %185 = vector.broadcast %cst_130 : f32 to vector<5x1x1xf32>
    %186 = arith.addf %182, %185 : vector<5x1x1xf32>
    %187 = math.rsqrt %186 : vector<5x1x1xf32>
    %188 = vector.broadcast %187 : vector<5x1x1xf32> to vector<5x64x128xf32>
    %189 = arith.mulf %184, %188 : vector<5x64x128xf32>
    %c2_131 = arith.constant 2 : index
    %c0_132 = arith.constant 0 : index
    %c0_133 = arith.constant 0 : index
    %190 = vector.load %arg4[%c2_131, %c0_132, %c0_133] : memref<4x64x128xf32, #tpu.memory_space<vmem>>, vector<1x64x128xf32>
    %191 = vector.shape_cast %190 : vector<1x64x128xf32> to vector<64x128xf32>
    %192 = vector.shape_cast %191 : vector<64x128xf32> to vector<1x64x128xf32>
    %193 = vector.broadcast %192 : vector<1x64x128xf32> to vector<5x64x128xf32>
    %194 = arith.mulf %189, %193 : vector<5x64x128xf32>
    %c2_134 = arith.constant 2 : index
    %c0_135 = arith.constant 0 : index
    %c0_136 = arith.constant 0 : index
    %195 = vector.load %arg5[%c2_134, %c0_135, %c0_136] : memref<4x64x128xf32, #tpu.memory_space<vmem>>, vector<1x64x128xf32>
    %196 = vector.shape_cast %195 : vector<1x64x128xf32> to vector<64x128xf32>
    %197 = vector.shape_cast %196 : vector<64x128xf32> to vector<1x64x128xf32>
    %198 = vector.broadcast %197 : vector<1x64x128xf32> to vector<5x64x128xf32>
    %199 = arith.addf %194, %198 : vector<5x64x128xf32>
    %c0_137 = arith.constant 0 : index
    %c8_138 = arith.constant 8 : index
    %c0_139 = arith.constant 0 : index
    %200 = vector.load %arg7[%c0_137, %c8_138, %c0_139] : memref<5x80x128xf32, #tpu.memory_space<vmem>>, vector<5x64x128xf32>
    tpu.vector_store %arg7[%c0_137, %c8_138, %c0_139], %199 {strides = array<i32>} : memref<5x80x128xf32, #tpu.memory_space<vmem>>, vector<5x64x128xf32>,
    %c0_140 = arith.constant 0 : index
    %c0_141 = arith.constant 0 : index
    %c0_142 = arith.constant 0 : index
    %201 = vector.load %arg7[%c0_140, %c0_141, %c0_142] : memref<5x80x128xf32, #tpu.memory_space<vmem>>, vector<5x64x128xf32>
    %202 = vector.shape_cast %201 : vector<5x64x128xf32> to vector<320x128xf32>
    %c3 = arith.constant 3 : index
    %c0_143 = arith.constant 0 : index
    %c0_144 = arith.constant 0 : index
    %c0_145 = arith.constant 0 : index
    %203 = vector.load %arg2[%c3, %c0_143, %c0_144, %c0_145] : memref<4x3x128x128xf32, #tpu.memory_space<vmem>>, vector<1x1x128x128xf32>
    %204 = vector.shape_cast %203 : vector<1x1x128x128xf32> to vector<128x128xf32>
    %cst_146 = arith.constant dense<0.000000e+00> : vector<320x128xf32>
    %205 = tpu.matmul %202, %204, %cst_146 {dimension_numbers = #tpu.dot_dimension_numbers<[1], [0], [0], [1], [0, 0, 1, 1], [], []>} : vector<320x128xf32>, vector<128x128xf32>, vector<320x128xf32> -> vector<320x128xf32>
    %c0_147 = arith.constant 0 : index
    %c8_148 = arith.constant 8 : index
    %c0_149 = arith.constant 0 : index
    %206 = vector.load %arg7[%c0_147, %c8_148, %c0_149] : memref<5x80x128xf32, #tpu.memory_space<vmem>>, vector<5x64x128xf32>
    %207 = vector.shape_cast %206 : vector<5x64x128xf32> to vector<320x128xf32>
    %c3_150 = arith.constant 3 : index
    %c1_151 = arith.constant 1 : index
    %c0_152 = arith.constant 0 : index
    %c0_153 = arith.constant 0 : index
    %208 = vector.load %arg2[%c3_150, %c1_151, %c0_152, %c0_153] : memref<4x3x128x128xf32, #tpu.memory_space<vmem>>, vector<1x1x128x128xf32>
    %209 = vector.shape_cast %208 : vector<1x1x128x128xf32> to vector<128x128xf32>
    %cst_154 = arith.constant dense<0.000000e+00> : vector<320x128xf32>
    %210 = tpu.matmul %207, %209, %cst_154 {dimension_numbers = #tpu.dot_dimension_numbers<[1], [0], [0], [1], [0, 0, 1, 1], [], []>} : vector<320x128xf32>, vector<128x128xf32>, vector<320x128xf32> -> vector<320x128xf32>
    %211 = arith.addf %205, %210 : vector<320x128xf32>
    %c0_155 = arith.constant 0 : index
    %c16 = arith.constant 16 : index
    %c0_156 = arith.constant 0 : index
    %212 = vector.load %arg7[%c0_155, %c16, %c0_156] : memref<5x80x128xf32, #tpu.memory_space<vmem>>, vector<5x64x128xf32>
    %213 = vector.shape_cast %212 : vector<5x64x128xf32> to vector<320x128xf32>
    %c3_157 = arith.constant 3 : index
    %c2_158 = arith.constant 2 : index
    %c0_159 = arith.constant 0 : index
    %c0_160 = arith.constant 0 : index
    %214 = vector.load %arg2[%c3_157, %c2_158, %c0_159, %c0_160] : memref<4x3x128x128xf32, #tpu.memory_space<vmem>>, vector<1x1x128x128xf32>
    %215 = vector.shape_cast %214 : vector<1x1x128x128xf32> to vector<128x128xf32>
    %cst_161 = arith.constant dense<0.000000e+00> : vector<320x128xf32>
    %216 = tpu.matmul %213, %215, %cst_161 {dimension_numbers = #tpu.dot_dimension_numbers<[1], [0], [0], [1], [0, 0, 1, 1], [], []>} : vector<320x128xf32>, vector<128x128xf32>, vector<320x128xf32> -> vector<320x128xf32>
    %217 = arith.addf %211, %216 : vector<320x128xf32>
    %218 = vector.shape_cast %217 : vector<320x128xf32> to vector<5x64x128xf32>
    %c3_162 = arith.constant 3 : index
    %c0_163 = arith.constant 0 : index
    %c0_164 = arith.constant 0 : index
    %219 = vector.load %arg3[%c3_162, %c0_163, %c0_164] : memref<4x1x128xf32, #tpu.memory_space<vmem>>, vector<1x1x128xf32>
    %220 = vector.shape_cast %219 : vector<1x1x128xf32> to vector<1x128xf32>
    %221 = vector.shape_cast %220 : vector<1x128xf32> to vector<1x1x128xf32>
    %222 = vector.broadcast %221 : vector<1x1x128xf32> to vector<5x64x128xf32>
    %223 = arith.addf %218, %222 : vector<5x64x128xf32>
    %cst_165 = arith.constant 0.000000e+00 : f32
    %224 = vector.broadcast %cst_165 : f32 to vector<5x64x128xf32>
    %225 = arith.maximumf %223, %224 : vector<5x64x128xf32>
    %cst_166 = arith.constant 0.000000e+00 : f32
    %226 = vector.shape_cast %8 : vector<1x64x1xi1> to vector<1x64x1xi1>
    %227 = vector.broadcast %226 : vector<1x64x1xi1> to vector<5x64x128xi1>
    %228 = vector.broadcast %cst_166 : f32 to vector<5x64x128xf32>
    %229 = arith.select %227, %225, %228 : vector<5x64x128xi1>, vector<5x64x128xf32>
    %cst_167 = arith.constant dense<0.000000e+00> : vector<5x128xf32>
    %230 = vector.multi_reduction <add>, %229, %cst_167 [1] : vector<5x64x128xf32> to vector<5x128xf32>
    %231 = vector.shape_cast %230 : vector<5x128xf32> to vector<5x1x128xf32>
    %cst_168 = arith.constant dense<0.000000e+00> : vector<5x1xf32>
    %232 = vector.multi_reduction <add>, %231, %cst_168 [2] : vector<5x1x128xf32> to vector<5x1xf32>
    %233 = vector.shape_cast %232 : vector<5x1xf32> to vector<5x1x1xf32>
    %234 = arith.mulf %229, %229 : vector<5x64x128xf32>
    %cst_169 = arith.constant dense<0.000000e+00> : vector<5x128xf32>
    %235 = vector.multi_reduction <add>, %234, %cst_169 [1] : vector<5x64x128xf32> to vector<5x128xf32>
    %236 = vector.shape_cast %235 : vector<5x128xf32> to vector<5x1x128xf32>
    %cst_170 = arith.constant dense<0.000000e+00> : vector<5x1xf32>
    %237 = vector.multi_reduction <add>, %236, %cst_170 [2] : vector<5x1x128xf32> to vector<5x1xf32>
    %238 = vector.shape_cast %237 : vector<5x1xf32> to vector<5x1x1xf32>
    %cst_171 = arith.constant 1.73611115E-4 : f32
    %239 = vector.broadcast %cst_171 : f32 to vector<5x1x1xf32>
    %240 = arith.mulf %233, %239 : vector<5x1x1xf32>
    %cst_172 = arith.constant 1.73611115E-4 : f32
    %241 = vector.broadcast %cst_172 : f32 to vector<5x1x1xf32>
    %242 = arith.mulf %238, %241 : vector<5x1x1xf32>
    %243 = arith.mulf %240, %240 : vector<5x1x1xf32>
    %244 = arith.subf %242, %243 : vector<5x1x1xf32>
    %cst_173 = arith.constant 0.000000e+00 : f32
    %245 = vector.broadcast %cst_173 : f32 to vector<5x1x1xf32>
    %246 = arith.maximumf %244, %245 : vector<5x1x1xf32>
    %247 = vector.broadcast %240 : vector<5x1x1xf32> to vector<5x64x128xf32>
    %248 = arith.subf %229, %247 : vector<5x64x128xf32>
    %cst_174 = arith.constant 9.99999974E-6 : f32
    %249 = vector.broadcast %cst_174 : f32 to vector<5x1x1xf32>
    %250 = arith.addf %246, %249 : vector<5x1x1xf32>
    %251 = math.rsqrt %250 : vector<5x1x1xf32>
    %252 = vector.broadcast %251 : vector<5x1x1xf32> to vector<5x64x128xf32>
    %253 = arith.mulf %248, %252 : vector<5x64x128xf32>
    %c3_175 = arith.constant 3 : index
    %c0_176 = arith.constant 0 : index
    %c0_177 = arith.constant 0 : index
    %254 = vector.load %arg4[%c3_175, %c0_176, %c0_177] : memref<4x64x128xf32, #tpu.memory_space<vmem>>, vector<1x64x128xf32>
    %255 = vector.shape_cast %254 : vector<1x64x128xf32> to vector<64x128xf32>
    %256 = vector.shape_cast %255 : vector<64x128xf32> to vector<1x64x128xf32>
    %257 = vector.broadcast %256 : vector<1x64x128xf32> to vector<5x64x128xf32>
    %258 = arith.mulf %253, %257 : vector<5x64x128xf32>
    %c3_178 = arith.constant 3 : index
    %c0_179 = arith.constant 0 : index
    %c0_180 = arith.constant 0 : index
    %259 = vector.load %arg5[%c3_178, %c0_179, %c0_180] : memref<4x64x128xf32, #tpu.memory_space<vmem>>, vector<1x64x128xf32>
    %260 = vector.shape_cast %259 : vector<1x64x128xf32> to vector<64x128xf32>
    %261 = vector.shape_cast %260 : vector<64x128xf32> to vector<1x64x128xf32>
    %262 = vector.broadcast %261 : vector<1x64x128xf32> to vector<5x64x128xf32>
    %263 = arith.addf %258, %262 : vector<5x64x128xf32>
    %c0_181 = arith.constant 0 : index
    %c0_182 = arith.constant 0 : index
    %c0_183 = arith.constant 0 : index
    %264 = vector.load %arg6[%c0_181, %c0_182, %c0_183] : memref<5x64x128xf32, #tpu.memory_space<vmem>>, vector<5x64x128xf32>
    tpu.vector_store %arg6[%c0_181, %c0_182, %c0_183], %263 {strides = array<i32>} : memref<5x64x128xf32, #tpu.memory_space<vmem>>, vector<5x64x128xf32>,
    return
  }
  func.func @transform_0(%arg0: i32) -> (i32, i32, i32) {
    %c0_i32 = arith.constant 0 : i32
    %c0_i32_0 = arith.constant 0 : i32
    %c0_i32_1 = arith.constant 0 : i32
    return %arg0, %c0_i32, %c0_i32_0 : i32, i32, i32
  }
  func.func @transform_1(%arg0: i32) -> (i32, i32, i32, i32) {
    %c0_i32 = arith.constant 0 : i32
    %c0_i32_0 = arith.constant 0 : i32
    %c0_i32_1 = arith.constant 0 : i32
    %c0_i32_2 = arith.constant 0 : i32
    %c0_i32_3 = arith.constant 0 : i32
    return %c0_i32, %c0_i32_0, %c0_i32_1, %c0_i32_2 : i32, i32, i32, i32
  }
  func.func @transform_2(%arg0: i32) -> (i32, i32, i32) {
    %c0_i32 = arith.constant 0 : i32
    %c0_i32_0 = arith.constant 0 : i32
    %c0_i32_1 = arith.constant 0 : i32
    %c0_i32_2 = arith.constant 0 : i32
    return %c0_i32, %c0_i32_0, %c0_i32_1 : i32, i32, i32
  }
  func.func @transform_3(%arg0: i32) -> (i32, i32, i32) {
    %c0_i32 = arith.constant 0 : i32
    %c0_i32_0 = arith.constant 0 : i32
    %c0_i32_1 = arith.constant 0 : i32
    %c0_i32_2 = arith.constant 0 : i32
    return %c0_i32, %c0_i32_0, %c0_i32_1 : i32, i32, i32
  }
  func.func @transform_4(%arg0: i32) -> (i32, i32, i32) {
    %c0_i32 = arith.constant 0 : i32
    %c0_i32_0 = arith.constant 0 : i32
    %c0_i32_1 = arith.constant 0 : i32
    %c0_i32_2 = arith.constant 0 : i32
    return %c0_i32, %c0_i32_0, %c0_i32_1 : i32, i32, i32
  }
  func.func @transform_5(%arg0: i32) -> (i32, i32, i32) {
    %c0_i32 = arith.constant 0 : i32
    %c0_i32_0 = arith.constant 0 : i32
    %c0_i32_1 = arith.constant 0 : i32
    return %arg0, %c0_i32, %c0_i32_0 : i32, i32, i32
  }
}

</mosaic_0001>

<bundles_post_ra>
// kernel: tpu_custom_call.1
= control target key start
LH: loop header
LB: loop body
LE: loop exit
PB: predicated region body
PF: predicated region fallthrough
CT: control target
= control target key end

     0   :  { %10 = vsyncpa [#allocation4], 0  ;;  %s11858_s0 = inlined_call_operand.hbm [shape: f32[5,60,128], index: 0, kind: input, shape index: {}]   ;;  %s11859_s1 = inlined_call_operand.hbm [shape: f32[4,3,128,128], index: 1, kind: input, shape index: {}]   ;;  %s11860_s2 = inlined_call_operand.hbm [shape: f32[4,1,128], index: 2, kind: input, shape index: {}]   ;;  %s11861_s3 = inlined_call_operand.hbm [shape: f32[4,64,128], index: 3, kind: input, shape index: {}]   ;;  %s11862_s4 = inlined_call_operand.hbm [shape: f32[4,64,128], index: 4, kind: input, shape index: {}]   ;;  %s11863_s5 = inlined_call_operand.hbm [shape: f32[5,64,128], index: 5, kind: output, shape index: {}]  }
   0x1   :  { %11 = vsyncpa [#allocation7], 0 }
   0x2   :  { %12 = vsyncpa [#allocation10], 0 }
   0x3   :  { %13 = vsyncpa [#allocation5], 0  ;;  %s8466_s18 = smov [#allocation6]   ;;  %s8467_s20 = smov [#allocation9]  }
   0x4   :  { %s31_s19 = sshll.u32 %s8466_s18, 4  ;;  %s55_s21 = sshll.u32 %s8467_s20, 4  ;;  %s32_s19 = int_to_ptr.vmem [resolvable:$true] %s31_s19  ;;  %s56_s21 = int_to_ptr.vmem [resolvable:$true] %s55_s21 }
   0x5   :  { %s8346_s22 = scalar_lea.vmem %s32_s19, 24576  ;;  %p8351_p1 = scmp.lt.s32.totalorder %s32_s19, %s32_s19 }
   0x6   :  { %p8347_p0 = scmp.ne.s32.totalorder %s32_s19, %s8346_s22  ;;  %p8352_p2 = scmp.lt.s32.totalorder %s8346_s22, %s8346_s22 }
   0x8   :  { %p8353_p3 = por %p8352_p2, %p8351_p1 }
   0xa   :  { %p8354_p4 = pnand %p8353_p3, %p8347_p0 }
   0xc   :  { %8357 = shalt.err (!%p8354_p4)
}
   0xd   :  { %s8468_s23 = smov 128   ;;  %s8469_s24 = smov 8  }
   0xe   :  { %37 = dma.hbm_to_vmem [thread:$0]  %s11859_s1, 24576, %s32_s19, [#allocation7], %s8468_s23, %s8468_s23, %s8469_s24  }
   0xf   :  { %s8366_s27 = scalar_lea.vmem %s56_s21, 4096  ;;  %p8371_p6 = scmp.lt.s32.totalorder %s56_s21, %s56_s21 }
  0x10   :  { %p8367_p5 = scmp.ne.s32.totalorder %s56_s21, %s8366_s27  ;;  %p8372_p7 = scmp.lt.s32.totalorder %s8366_s27, %s8366_s27 }
  0x12   :  { %p8373_p8 = por %p8372_p7, %p8371_p6 }
  0x14   :  { %p8374_p9 = pnand %p8373_p8, %p8367_p5 }
  0x16   :  { %8377 = shalt.err (!%p8374_p9)
}
  0x17   :  { %61 = dma.hbm_to_vmem [thread:$0]  %s11861_s3, 4096, %s56_s21, [#allocation10], %s8468_s23, %s8468_s23, %s8469_s24  }
  0x18   :  { %s8470_s30 = smov [#allocation3]   ;;  %s8471_s7 = smov [#allocation8]  }
  0x19   :  { %s19_s6 = sshll.u32 %s8470_s30, 4  ;;  %s43_s8 = sshll.u32 %s8471_s7, 4  ;;  %s20_s6 = int_to_ptr.vmem [resolvable:$true] %s19_s6  ;;  %s44_s8 = int_to_ptr.vmem [resolvable:$true] %s43_s8 }
  0x1a   :  { %s8386_s1 = scalar_lea.vmem %s20_s6, 5120  ;;  %p8391_p11 = scmp.lt.s32.totalorder %s20_s6, %s20_s6 }
  0x1b   :  { %p8387_p10 = scmp.ne.s32.totalorder %s20_s6, %s8386_s1  ;;  %p8392_p12 = scmp.lt.s32.totalorder %s8386_s1, %s8386_s1 }
  0x1d   :  { %p8393_p13 = por %p8392_p12, %p8391_p11 }
  0x1f   :  { %p8394_p0 = pnand %p8393_p13, %p8387_p10 }
  0x21   :  { %8397 = shalt.err (!%p8394_p0)
}
  0x22   :  { %25 = dma.hbm_to_vmem [thread:$0]  %s11858_s0, 5120, %s20_s6, [#allocation4], %s8468_s23, %s8468_s23, %s8469_s24  }
  0x23   :  { %s8406_s3 = scalar_lea.vmem %s44_s8, 64  ;;  %p8411_p2 = scmp.lt.s32.totalorder %s44_s8, %s44_s8 }
  0x24   :  { %p8407_p1 = scmp.ne.s32.totalorder %s44_s8, %s8406_s3  ;;  %p8412_p3 = scmp.lt.s32.totalorder %s8406_s3, %s8406_s3 }
  0x26   :  { %p8413_p4 = por %p8412_p3, %p8411_p2 }
  0x28   :  { %p8414_p5 = pnand %p8413_p4, %p8407_p1 }
  0x2a   :  { %8417 = shalt.err (!%p8414_p5)
}
  0x2b   :  { %s8472_s11 = smov 16   ;;  %s8473_s12 = smov 1  }
  0x2c   :  { %49 = dma.hbm_to_vmem [thread:$0]  %s11860_s2, 64, %s44_s8, [#allocation7], %s8472_s11, %s8472_s11, %s8473_s12  }
  0x2d   :  { %s8474_s15 = smov [#allocation11]  }
  0x2e   :  { %s67_s16 = sshll.u32 %s8474_s15, 4  ;;  %s68_s16 = int_to_ptr.vmem [resolvable:$true] %s67_s16 }
  0x2f   :  { %s8426_s17 = scalar_lea.vmem %s68_s16, 4096  ;;  %p8431_p7 = scmp.lt.s32.totalorder %s68_s16, %s68_s16 }
  0x30   :  { %p8427_p6 = scmp.ne.s32.totalorder %s68_s16, %s8426_s17  ;;  %p8432_p8 = scmp.lt.s32.totalorder %s8426_s17, %s8426_s17 }
  0x32   :  { %p8433_p9 = por %p8432_p8, %p8431_p7 }
  0x34   :  { %p8434_p10 = pnand %p8433_p9, %p8427_p6 }
  0x36   :  { %8437 = shalt.err (!%p8434_p10)
}
  0x37   :  { %73 = dma.hbm_to_vmem [thread:$0]  %s11862_s4, 4096, %s68_s16, [#allocation10], %s8468_s23, %s8468_s23, %s8469_s24  }
  0x38   :  { %8458 = dma.done.wait [#allocation4], 5120  }
  0x39   :  { %8459 = vsyncadd [#allocation4], 4294962176 }
  0x3a   :  { %8460 = dma.done.wait [#allocation7], 24640  }
  0x3b   :  { %8461 = vsyncadd [#allocation7], 4294942656 }
  0x3c   :  { %8462 = dma.done.wait [#allocation10], 8192  }
  0x3d   :  { %8463 = vsyncadd [#allocation10], 4294959104  ;;  %v8475_v0 = vmov 0.0   ;;  %v313_v1 = vld [vmem:[#allocation6 + $0xf8] sm:$0xff]  ;;  %v312_v3 = vld [vmem:[#allocation6 + $0xf0] sm:$0xff]  ;;  %s8476_s2 = smov [#allocation12]  }
  0x3e   :  { %89 = vst [vmem:[#allocation2] sm:$0xff] %v8475_v0  ;;  %90 = vst [vmem:[#allocation2 + $0x50] sm:$0xff] %v8475_v0  ;;  %v256_v2 = vld [vmem:[#allocation6 + $0x78] sm:$0xff]  ;;  %7181 = vmatprep.subr.mxu0 %v313_v1  ;;  %v255_v4 = vld [vmem:[#allocation6 + $0x70] sm:$0xff]  ;;  %s6491_s4 = sshll.u32 %s8476_s2, 4  ;;  %s6492_s4 = int_to_ptr.vmem [resolvable:$true] %s6491_s4 }
  0x3f   :  { %91 = vst [vmem:[#allocation2 + $0xa0] sm:$0xff] %v8475_v0  ;;  %92 = vst [vmem:[#allocation2 + $0xf0] sm:$0xff] %v8475_v0  ;;  %7273 = vmatprep.subr.mxu1 %v256_v2  ;;  %7182 = vmatpush3.msra.mxu0 %v313_v1  ;;  %v311_v5 = vld [vmem:[#allocation6 + $0xe8] sm:$0xff]  ;;  %v310_v7 = vld [vmem:[#allocation6 + $0xe0] sm:$0xff]  ;;  %s8438_s19 = scalar_lea.vmem %s6492_s4, 5120  ;;  %p8443_p12 = scmp.lt.s32.totalorder %s6492_s4, %s6492_s4 }
  0x40   :  { %93 = vst [vmem:[#allocation2 + $0x140] sm:$0xff] %v8475_v0  ;;  %94 = vst [vmem:[#allocation2 + $0x44] sm:$0xff] %v8475_v0  ;;  %7274 = vmatpush3.msra.mxu1 %v256_v2  ;;  %v254_v6 = vld [vmem:[#allocation6 + $0x68] sm:$0xff]  ;;  %7183 = vmatprep.subr.mxu0 %v312_v3  ;;  %v253_v8 = vld [vmem:[#allocation6 + $0x60] sm:$0xff]  ;;  %p8439_p11 = scmp.ne.s32.totalorder %s6492_s4, %s8438_s19  ;;  %p8444_p13 = scmp.lt.s32.totalorder %s8438_s19, %s8438_s19 }
  0x41   :  { %95 = vst [vmem:[#allocation2 + $0x4c] sm:$0xf] %v8475_v0  ;;  %96 = vst [vmem:[#allocation2 + $0x94] sm:$0xff] %v8475_v0  ;;  %7275 = vmatprep.subr.mxu1 %v255_v4  ;;  %7184 = vmatpush3.msra.mxu0 %v312_v3  ;;  %v309_v9 = vld [vmem:[#allocation6 + $0xd8] sm:$0xff]  ;;  %v308_v11 = vld [vmem:[#allocation6 + $0xd0] sm:$0xff] }
  0x42   :  { %97 = vst [vmem:[#allocation2 + $0x9c] sm:$0xf] %v8475_v0  ;;  %98 = vst [vmem:[#allocation2 + $0xe4] sm:$0xff] %v8475_v0  ;;  %7276 = vmatpush3.msra.mxu1 %v255_v4  ;;  %7185 = vmatprep.subr.mxu0 %v311_v5  ;;  %v252_v10 = vld [vmem:[#allocation6 + $0x58] sm:$0xff]  ;;  %v251_v12 = vld [vmem:[#allocation6 + $0x50] sm:$0xff]  ;;  %p8445_p0 = por %p8444_p13, %p8443_p12 }
  0x43   :  { %99 = vst [vmem:[#allocation2 + $0xec] sm:$0xf] %v8475_v0  ;;  %100 = vst [vmem:[#allocation2 + $0x134] sm:$0xff] %v8475_v0  ;;  %7277 = vmatprep.subr.mxu1 %v254_v6  ;;  %7186 = vmatpush3.msra.mxu0 %v311_v5  ;;  %v307_v13 = vld [vmem:[#allocation6 + $0xc8] sm:$0xff]  ;;  %v306_v15 = vld [vmem:[#allocation6 + $0xc0] sm:$0xff] }
  0x44   :  { %101 = vst [vmem:[#allocation2 + $0x13c] sm:$0xf] %v8475_v0  ;;  %102 = vst [vmem:[#allocation2 + $0x184] sm:$0xff] %v8475_v0  ;;  %7278 = vmatpush3.msra.mxu1 %v254_v6  ;;  %7187 = vmatprep.subr.mxu0 %v310_v7  ;;  %v250_v14 = vld [vmem:[#allocation6 + $0x48] sm:$0xff]  ;;  %v8534_v16 = vld [vmem:[#allocation3] sm:$0xff]  ;;  %p8446_p1 = pnand %p8445_p0, %p8439_p11 }
  0x45   :  { %103 = vst [vmem:[#allocation2 + $0x18c] sm:$0xf] %v8475_v0  ;;  %7279 = vmatprep.subr.mxu1 %v253_v8  ;;  %7188 = vmatpush3.msra.mxu0 %v310_v7  ;;  %v249_v17 = vld [vmem:[#allocation6 + $0x40] sm:$0xff]  ;;  %144 = vst [vmem:[#allocation2 + $0x8] sm:$0xff] %v8534_v16  ;;  %v8537_v18 = vld [vmem:[#allocation3 + $0x8] sm:$0xff] }
  0x46   :  { %7280 = vmatpush3.msra.mxu1 %v253_v8  ;;  %7189 = vmatprep.subr.mxu0 %v309_v9  ;;  %v8539_v19 = vld [vmem:[#allocation3 + $0x10] sm:$0xff]  ;;  %v305_v20 = vld [vmem:[#allocation6 + $0xb8] sm:$0xff]  ;;  %145 = vst [vmem:[#allocation2 + $0x10] sm:$0xff] %v8537_v18  ;;  %v8545_v22 = vld [vmem:[#allocation3 + $0x20] sm:$0xff] }
  0x47   :  { %7281 = vmatprep.subr.mxu1 %v252_v10  ;;  %7190 = vmatpush3.msra.mxu0 %v309_v9  ;;  %146 = vst [vmem:[#allocation2 + $0x18] sm:$0xff] %v8539_v19  ;;  %v8543_v21 = vld [vmem:[#allocation3 + $0x18] sm:$0xff]  ;;  %148 = vst [vmem:[#allocation2 + $0x28] sm:$0xff] %v8545_v22  ;;  %v8549_v24 = vld [vmem:[#allocation3 + $0x28] sm:$0xff] }
  0x48   :  { %7282 = vmatpush3.msra.mxu1 %v252_v10  ;;  %7191 = vmatprep.subr.mxu0 %v308_v11  ;;  %v248_v23 = vld [vmem:[#allocation6 + $0x38] sm:$0xff]  ;;  %147 = vst [vmem:[#allocation2 + $0x20] sm:$0xff] %v8543_v21  ;;  %v8551_v25 = vld [vmem:[#allocation3 + $0x30] sm:$0xff]  ;;  %149 = vst [vmem:[#allocation2 + $0x30] sm:$0xff] %v8549_v24 }
  0x49   :  { %7283 = vmatprep.subr.mxu1 %v251_v12  ;;  %7192 = vmatpush3.msra.mxu0 %v308_v11  ;;  %v304_v26 = vld [vmem:[#allocation6 + $0xb0] sm:$0xff]  ;;  %150 = vst [vmem:[#allocation2 + $0x38] sm:$0xff] %v8551_v25  ;;  %v111_v27 = vld [vmem:[#allocation3 + $0x38] sm:$0xf]  ;;  %v8555_v28 = vld [vmem:[#allocation3 + $0x40] sm:$0xff] }
  0x4a   :  { %7284 = vmatpush3.msra.mxu1 %v251_v12  ;;  %7193 = vmatprep.subr.mxu0 %v307_v13  ;;  %151 = vst [vmem:[#allocation2 + $0x40] sm:$0xf] %v111_v27  ;;  %152 = vst [vmem:[#allocation2 + $0x58] sm:$0xff] %v8555_v28  ;;  %v8558_v29 = vld [vmem:[#allocation3 + $0x48] sm:$0xff]  ;;  %v8560_v30 = vld [vmem:[#allocation3 + $0x50] sm:$0xff] }
  0x4b   :  { %7285 = vmatprep.subr.mxu1 %v250_v14  ;;  %7194 = vmatpush3.msra.mxu0 %v307_v13  ;;  %v8562_v31 = vld [vmem:[#allocation3 + $0x58] sm:$0xff]  ;;  %v247_v32 = vld [vmem:[#allocation6 + $0x30] sm:$0xff]  ;;  %153 = vst [vmem:[#allocation2 + $0x60] sm:$0xff] %v8558_v29  ;;  %154 = vst [vmem:[#allocation2 + $0x68] sm:$0xff] %v8560_v30 }
  0x4c   :  { %7286 = vmatpush3.msra.mxu1 %v250_v14  ;;  %7195 = vmatprep.subr.mxu0 %v306_v15  ;;  %155 = vst [vmem:[#allocation2 + $0x70] sm:$0xff] %v8562_v31  ;;  %v8567_v33 = vld [vmem:[#allocation3 + $0x60] sm:$0xff]  ;;  %v8569_v34 = vld [vmem:[#allocation3 + $0x68] sm:$0xff]  ;;  %v8573_v35 = vld [vmem:[#allocation3 + $0x70] sm:$0xff] }
  0x4d   :  { %7287 = vmatprep.subr.mxu1 %v249_v17  ;;  %7196 = vmatpush3.msra.mxu0 %v306_v15  ;;  %156 = vst [vmem:[#allocation2 + $0x78] sm:$0xff] %v8567_v33  ;;  %157 = vst [vmem:[#allocation2 + $0x80] sm:$0xff] %v8569_v34  ;;  %v119_v36 = vld [vmem:[#allocation3 + $0x78] sm:$0xf]  ;;  %v303_v37 = vld [vmem:[#allocation6 + $0xa8] sm:$0xff] }
  0x4e   :  { %7288 = vmatpush3.msra.mxu1 %v249_v17  ;;  %7197 = vmatprep.subr.mxu0 %v305_v20  ;;  %v246_v38 = vld [vmem:[#allocation6 + $0x28] sm:$0xff]  ;;  %158 = vst [vmem:[#allocation2 + $0x88] sm:$0xff] %v8573_v35  ;;  %159 = vst [vmem:[#allocation2 + $0x90] sm:$0xf] %v119_v36  ;;  %v8576_v39 = vld [vmem:[#allocation3 + $0x80] sm:$0xff] }
  0x4f   :  { %7289 = vmatprep.subr.mxu1 %v248_v23  ;;  %7198 = vmatpush3.msra.mxu0 %v305_v20  ;;  %160 = vst [vmem:[#allocation2 + $0xa8] sm:$0xff] %v8576_v39  ;;  %v8579_v40 = vld [vmem:[#allocation3 + $0x88] sm:$0xff]  ;;  %v302_v41 = vld [vmem:[#allocation6 + $0xa0] sm:$0xff]  ;;  %v8582_v43 = vld [vmem:[#allocation3 + $0x90] sm:$0xff] }
  0x50   :  { %7290 = vmatpush3.msra.mxu1 %v248_v23  ;;  %7199 = vmatprep.subr.mxu0 %v304_v26  ;;  %v245_v42 = vld [vmem:[#allocation6 + $0x20] sm:$0xff]  ;;  %161 = vst [vmem:[#allocation2 + $0xb0] sm:$0xff] %v8579_v40  ;;  %162 = vst [vmem:[#allocation2 + $0xb8] sm:$0xff] %v8582_v43  ;;  %v301_v44 = vld [vmem:[#allocation6 + $0x98] sm:$0xff] }
  0x51   :  { %7291 = vmatprep.subr.mxu1 %v247_v32  ;;  %7200 = vmatpush3.msra.mxu0 %v304_v26  ;;  %v244_v45 = vld [vmem:[#allocation6 + $0x18] sm:$0xff]  ;;  %v300_v46 = vld [vmem:[#allocation6 + $0x90] sm:$0xff]  ;;  %v299_v49 = vld [vmem:[#allocation6 + $0x88] sm:$0xff] }
  0x52   :  { %7292 = vmatpush3.msra.mxu1 %v247_v32  ;;  %7201 = vmatprep.subr.mxu0 %v303_v37  ;;  %v243_v47 = vld [vmem:[#allocation6 + $0x10] sm:$0xff]  ;;  %v8585_v48 = vld [vmem:[#allocation3 + $0x98] sm:$0xff]  ;;  %v242_v50 = vld [vmem:[#allocation6 + $0x8] sm:$0xff] }
  0x53   :  { %7293 = vmatprep.subr.mxu1 %v246_v38  ;;  %7202 = vmatpush3.msra.mxu0 %v303_v37  ;;  %163 = vst [vmem:[#allocation2 + $0xc0] sm:$0xff] %v8585_v48  ;;  %v8588_v51 = vld [vmem:[#allocation3 + $0xa0] sm:$0xff]  ;;  %v8590_v52 = vld [vmem:[#allocation3 + $0xa8] sm:$0xff]  ;;  %v8594_v53 = vld [vmem:[#allocation3 + $0xb0] sm:$0xff] }
  0x54   :  { %7294 = vmatpush3.msra.mxu1 %v246_v38  ;;  %7203 = vmatprep.subr.mxu0 %v302_v41  ;;  %164 = vst [vmem:[#allocation2 + $0xc8] sm:$0xff] %v8588_v51  ;;  %165 = vst [vmem:[#allocation2 + $0xd0] sm:$0xff] %v8590_v52  ;;  %v298_v54 = vld [vmem:[#allocation6 + $0x80] sm:$0xff]  ;;  %v127_v56 = vld [vmem:[#allocation3 + $0xb8] sm:$0xf] }
  0x55   :  { %7295 = vmatprep.subr.mxu1 %v245_v42  ;;  %7204 = vmatpush3.msra.mxu0 %v302_v41  ;;  %v241_v55 = vld [vmem:[#allocation6] sm:$0xff]  ;;  %166 = vst [vmem:[#allocation2 + $0xd8] sm:$0xff] %v8594_v53  ;;  %v201_v57 = vld [vmem:[#allocation2 + $0x7] sm:$0xff]  ;;  %167 = vst [vmem:[#allocation2 + $0xe0] sm:$0xf] %v127_v56 }
  0x56   :  { %7296 = vmatpush3.msra.mxu1 %v245_v42  ;;  %7205 = vmatprep.subr.mxu0 %v301_v44  ;;  %v8597_v58 = vld [vmem:[#allocation3 + $0xc0] sm:$0xff]  ;;  %v8599_v59 = vld [vmem:[#allocation3 + $0xc8] sm:$0xff]  ;;  %v8603_v60 = vld [vmem:[#allocation3 + $0xd0] sm:$0xff] }
  0x57   :  { %7297 = vmatprep.subr.mxu1 %v244_v45  ;;  %7206 = vmatpush3.msra.mxu0 %v301_v44  ;;  %168 = vst [vmem:[#allocation2 + $0xf8] sm:$0xff] %v8597_v58  ;;  %169 = vst [vmem:[#allocation2 + $0x100] sm:$0xff] %v8599_v59  ;;  %v8605_v61 = vld [vmem:[#allocation3 + $0xd8] sm:$0xff]  ;;  %v8607_v62 = vld [vmem:[#allocation3 + $0xe0] sm:$0xff] }
  0x58   :  { %7298 = vmatpush3.msra.mxu1 %v244_v45  ;;  %7207 = vmatprep.subr.mxu0 %v300_v46  ;;  %v202_v63 = vld [vmem:[#allocation2 + $0xf] sm:$0xff]  ;;  %170 = vst [vmem:[#allocation2 + $0x108] sm:$0xff] %v8603_v60  ;;  %171 = vst [vmem:[#allocation2 + $0x110] sm:$0xff] %v8605_v61  ;;  %v8612_v0 = vld [vmem:[#allocation3 + $0xe8] sm:$0xff] }
  0x59   :  { %7299 = vmatprep.subr.mxu1 %v243_v47  ;;  %7208 = vmatpush3.msra.mxu0 %v300_v46  ;;  %172 = vst [vmem:[#allocation2 + $0x118] sm:$0xff] %v8607_v62  ;;  %v8614_v1 = vld [vmem:[#allocation3 + $0xf0] sm:$0xff]  ;;  %v900_v2 = vld [vmem:[#allocation6 + $0x178] sm:$0xff]  ;;  %173 = vst [vmem:[#allocation2 + $0x120] sm:$0xff] %v8612_v0 }
  0x5a   :  { %7300 = vmatpush3.msra.mxu1 %v243_v47  ;;  %7209 = vmatprep.subr.mxu0 %v299_v49  ;;  %174 = vst [vmem:[#allocation2 + $0x128] sm:$0xff] %v8614_v1  ;;  %v135_v3 = vld [vmem:[#allocation3 + $0xf8] sm:$0xf]  ;;  %v203_v4 = vld [vmem:[#allocation2 + $0x17] sm:$0xff]  ;;  %v899_v7 = vld [vmem:[#allocation6 + $0x170] sm:$0xff] }
  0x5b   :  { %7301 = vmatprep.subr.mxu1 %v242_v50  ;;  %7210 = vmatpush3.msra.mxu0 %v299_v49  ;;  %175 = vst [vmem:[#allocation2 + $0x130] sm:$0xf] %v135_v3  ;;  %v8619_v5 = vld [vmem:[#allocation3 + $0x100] sm:$0xff]  ;;  %v8621_v6 = vld [vmem:[#allocation3 + $0x108] sm:$0xff]  ;;  %v8626_v8 = vld [vmem:[#allocation3 + $0x110] sm:$0xff] }
  0x5c   :  { %7302 = vmatpush3.msra.mxu1 %v242_v50  ;;  %7211 = vmatprep.subr.mxu0 %v298_v54  ;;  %176 = vst [vmem:[#allocation2 + $0x148] sm:$0xff] %v8619_v5  ;;  %177 = vst [vmem:[#allocation2 + $0x150] sm:$0xff] %v8621_v6  ;;  %v204_v9 = vld [vmem:[#allocation2 + $0x1f] sm:$0xff]  ;;  %v8630_v10 = vld [vmem:[#allocation3 + $0x118] sm:$0xff] }
  0x5d   :  { %7303 = vmatprep.subr.mxu1 %v241_v55  ;;  %7212 = vmatpush3.msra.mxu0 %v298_v54  ;;  %178 = vst [vmem:[#allocation2 + $0x158] sm:$0xff] %v8626_v8  ;;  %179 = vst [vmem:[#allocation2 + $0x160] sm:$0xff] %v8630_v10  ;;  %v8633_v11 = vld [vmem:[#allocation3 + $0x120] sm:$0xff]  ;;  %v205_v12 = vld [vmem:[#allocation2 + $0x27] sm:$0xff] }
  0x5e   :  { %7213 = vmatprep.mubr.f32.mxu0 %v8534_v16  ;;  %7304 = vmatpush3.msra.mxu1 %v241_v55  ;;  %v898_v13 = vld [vmem:[#allocation6 + $0x168] sm:$0xff]  ;;  %180 = vst [vmem:[#allocation2 + $0x168] sm:$0xff] %v8633_v11  ;;  %v206_v15 = vld [vmem:[#allocation2 + $0x2f] sm:$0xff]  ;;  %v8641_v16 = vld [vmem:[#allocation3 + $0x130] sm:$0xff] }
  0x5f   :  { %7305 = vmatprep.mubr.f32.mxu1 %v201_v57  ;;  %7214 = vmatmul.mubr.f32.vlgmr.msra.gmra.mxu0 %v8537_v18  ;;  %v8636_v14 = vld [vmem:[#allocation3 + $0x128] sm:$0xff]  ;;  %182 = vst [vmem:[#allocation2 + $0x178] sm:$0xff] %v8641_v16  ;;  %v897_v18 = vld [vmem:[#allocation6 + $0x160] sm:$0xff]  ;;  %v264_v20 = vld [vmem:[#allocation2 + $0x40] sm:$0xff] }
  0x60   :  { %7306 = vmatmul.mubr.f32.vlgmr.msra.gmra.mxu1 %v202_v63  ;;  %7365 = vmatprep.subr.mxu0 %v900_v2  ;;  %181 = vst [vmem:[#allocation2 + $0x170] sm:$0xff] %v8636_v14  ;;  %v207_v17 = vld [vmem:[#allocation2 + $0x37] sm:$0xff]  ;;  %v896_v23 = vld [vmem:[#allocation6 + $0x158] sm:$0xff]  ;;  %v210_v26 = vld [vmem:[#allocation2 + $0x5f] sm:$0xff] }
  0x61   :  { %7216 = vmatprep.mubr.f32.mxu0 %v8539_v19  ;;  %7366 = vmatpush3.msra.mxu0 %v900_v2  ;;  %v143_v19 = vld [vmem:[#allocation3 + $0x138] sm:$0xf]  ;;  %v213_v32 = vld [vmem:[#allocation2 + $0x77] sm:$0xff]  ;;  %v216_v38 = vld [vmem:[#allocation2 + $0x8f] sm:$0xff] }
  0x62   :  { %7308 = vmatprep.mubr.f32.mxu1 %v203_v4  ;;  %7367 = vmatprep.subr.mxu0 %v899_v7  ;;  %183 = vst [vmem:[#allocation2 + $0x180] sm:$0xf] %v143_v19  ;;  %v211_v27 = vld [vmem:[#allocation2 + $0x67] sm:$0xff]  ;;  %v894_v36 = vld [vmem:[#allocation6 + $0x148] sm:$0xff] }
  0x63   :  { %7217 = vmatmul.mubr.f32.gmra.mxu0 %v8543_v21  ;;  %v208_v21 = vld [vmem:[#allocation2 + $0x3f] sm:$0xff]  ;;  %v215_v37 = vld [vmem:[#allocation2 + $0x87] sm:$0xff]  ;;  %v219_v42 = vld [vmem:[#allocation2 + $0xb7] sm:$0xff] }
  0x64   :  { %7309 = vmatmul.mubr.f32.gmra.mxu1 %v204_v9  ;;  %7368 = vmatpush3.msra.mxu0 %v899_v7  ;;  %v217_v41 = vld [vmem:[#allocation2 + $0xa7] sm:$0xff]  ;;  %v890_v45 = vld [vmem:[#allocation6 + $0x128] sm:$0xff] }
  0x65   :  { %7219 = vmatprep.mubr.f32.mxu0 %v8545_v22  ;;  %7311 = vmatprep.mubr.f32.mxu1 %v205_v12  ;;  %v209_v22 = vld [vmem:[#allocation2 + $0x57] sm:$0xff]  ;;  %v221_v44 = vld [vmem:[#allocation2 + $0xc7] sm:$0xff]  ;;  %v224_v47 = vld [vmem:[#allocation2 + $0xdf] sm:$0xff] }
  0x66   :  { %7369 = vmatprep.subr.mxu0 %v898_v13  ;;  %v223_v46 = vld [vmem:[#allocation2 + $0xd7] sm:$0xff]  ;;  %v226_v50 = vld [vmem:[#allocation2 + $0xff] sm:$0xff]  ;;  %v231_v57 = vld [vmem:[#allocation2 + $0x127] sm:$0xff] }
  0x67   :  { %7370 = vmatpush3.msra.mxu0 %v898_v13  ;;  %v225_v49 = vld [vmem:[#allocation2 + $0xf7] sm:$0xff]  ;;  %v230_v56 = vld [vmem:[#allocation2 + $0x11f] sm:$0xff]  ;;  %v233_v63 = vld [vmem:[#allocation2 + $0x147] sm:$0xff] }
  0x68   :  { %7220 = vmatmul.mubr.f32.gmra.mxu0 %v8549_v24  ;;  %7312 = vmatmul.mubr.f32.gmra.mxu1 %v206_v15  ;;  %v895_v24 = vld [vmem:[#allocation6 + $0x150] sm:$0xff]  ;;  %v229_v54 = vld [vmem:[#allocation2 + $0x117] sm:$0xff]  ;;  %v238_v2 = vld [vmem:[#allocation2 + $0x16f] sm:$0xff] }
  0x69   :  { %7222 = vmatprep.mubr.f32.mxu0 %v8551_v25  ;;  %7314 = vmatprep.mubr.f32.mxu1 %v207_v17  ;;  %v212_v25 = vld [vmem:[#allocation2 + $0x6f] sm:$0xff]  ;;  %v886_v55 = vld [vmem:[#allocation6 + $0x108] sm:$0xff]  ;;  %v296_v4 = vld [vmem:[#allocation2 + $0x180] sm:$0xff] }
  0x6a   :  { %7371 = vmatprep.subr.mxu0 %v897_v18  ;;  %v239_v3 = vld [vmem:[#allocation2 + $0x177] sm:$0xff]  ;;  %v847_v9 = vld [vmem:[#allocation2 + $0x21] sm:$0xff] }
  0x6b   :  { %7372 = vmatpush3.msra.mxu0 %v897_v18  ;;  %v845_v7 = vld [vmem:[#allocation2 + $0x11] sm:$0xff]  ;;  %v850_v12 = vld [vmem:[#allocation2 + $0x39] sm:$0xff]  ;;  %v851_v13 = vld [vmem:[#allocation2 + $0x41] sm:$0xff] }
  0x6c   :  { %7223 = vmatmul.mubr.f32.gmra.mxu0 %v264_v20  ;;  %7315 = vmatmul.mubr.f32.gmra.mxu1 %v208_v21  ;;  %v853_v15 = vld [vmem:[#allocation2 + $0x61] sm:$0xff]  ;;  %v855_v17 = vld [vmem:[#allocation2 + $0x71] sm:$0xff]  ;;  %v856_v18 = vld [vmem:[#allocation2 + $0x79] sm:$0xff] }
  0x6d   :  { %7225 = vmatprep.mubr.f32.mxu0 %v8555_v28  ;;  %7317 = vmatprep.mubr.f32.mxu1 %v209_v22  ;;  %v214_v28 = vld [vmem:[#allocation2 + $0x7f] sm:$0xff]  ;;  %v858_v20 = vld [vmem:[#allocation2 + $0x89] sm:$0xff]  ;;  %v859_v21 = vld [vmem:[#allocation2 + $0x91] sm:$0xff] }
  0x6e   :  { %7373 = vmatprep.subr.mxu0 %v896_v23  ;;  %v857_v19 = vld [vmem:[#allocation2 + $0x81] sm:$0xff]  ;;  %v860_v22 = vld [vmem:[#allocation2 + $0xa9] sm:$0xff] }
  0x6f   :  { %7374 = vmatpush3.msra.mxu0 %v896_v23  ;;  %v861_v23 = vld [vmem:[#allocation2 + $0xb1] sm:$0xff] }
  0x70   :  { %7226 = vmatmul.mubr.f32.gmra.mxu0 %v8558_v29  ;;  %7318 = vmatmul.mubr.f32.gmra.mxu1 %v210_v26  ;;  %v893_v29 = vld [vmem:[#allocation6 + $0x140] sm:$0xff]  ;;  %v862_v26 = vld [vmem:[#allocation2 + $0xb9] sm:$0xff] }
  0x71   :  { %7228 = vmatprep.mubr.f32.mxu0 %v8560_v30  ;;  %7320 = vmatprep.mubr.f32.mxu1 %v211_v27  ;;  %v272_v30 = vld [vmem:[#allocation2 + $0x90] sm:$0xff]  ;;  %v863_v27 = vld [vmem:[#allocation2 + $0xc1] sm:$0xff] }
  0x72   :  { %7375 = vmatprep.subr.mxu0 %v895_v24 }
  0x73   :  { %7376 = vmatpush3.msra.mxu0 %v895_v24  ;;  %v864_v24 = vld [vmem:[#allocation2 + $0xc9] sm:$0xff] }
  0x74   :  { %7229 = vmatmul.mubr.f32.gmra.mxu0 %v8562_v31  ;;  %7321 = vmatmul.mubr.f32.gmra.mxu1 %v212_v25  ;;  %v892_v31 = vld [vmem:[#allocation6 + $0x138] sm:$0xff]  ;;  %v865_v25 = vld [vmem:[#allocation2 + $0xd1] sm:$0xff] }
  0x75   :  { %7231 = vmatprep.mubr.f32.mxu0 %v8567_v33  ;;  %7323 = vmatprep.mubr.f32.mxu1 %v213_v32  ;;  %v218_v33 = vld [vmem:[#allocation2 + $0xaf] sm:$0xff]  ;;  %v866_v32 = vld [vmem:[#allocation2 + $0xd9] sm:$0xff] }
  0x76   :  { %7377 = vmatprep.subr.mxu0 %v894_v36 }
  0x77   :  { %7378 = vmatpush3.msra.mxu0 %v894_v36  ;;  %v867_v36 = vld [vmem:[#allocation2 + $0xe1] sm:$0xff] }
  0x78   :  { %7232 = vmatmul.mubr.f32.gmra.mxu0 %v8569_v34  ;;  %7324 = vmatmul.mubr.f32.gmra.mxu1 %v214_v28  ;;  %v891_v34 = vld [vmem:[#allocation6 + $0x130] sm:$0xff] }
  0x79   :  { %7234 = vmatprep.mubr.f32.mxu0 %v8573_v35  ;;  %7326 = vmatprep.mubr.f32.mxu1 %v215_v37  ;;  %v220_v35 = vld [vmem:[#allocation2 + $0xbf] sm:$0xff] }
  0x7a   :  { %7379 = vmatprep.subr.mxu0 %v893_v29  ;;  %v868_v28 = vld [vmem:[#allocation2 + $0xf9] sm:$0xff]  ;;  %v869_v37 = vld [vmem:[#allocation2 + $0x101] sm:$0xff] }
  0x7b   :  { %7380 = vmatpush3.msra.mxu0 %v893_v29  ;;  %v870_v29 = vld [vmem:[#allocation2 + $0x109] sm:$0xff] }
  0x7c   :  { %7235 = vmatmul.mubr.f32.gmra.mxu0 %v272_v30  ;;  %7327 = vmatmul.mubr.f32.gmra.mxu1 %v216_v38  ;;  %v871_v30 = vld [vmem:[#allocation2 + $0x111] sm:$0xff]  ;;  %v872_v38 = vld [vmem:[#allocation2 + $0x119] sm:$0xff] }
  0x7d   :  { %7237 = vmatprep.mubr.f32.mxu0 %v8576_v39  ;;  %7329 = vmatprep.mubr.f32.mxu1 %v217_v41  ;;  %v222_v39 = vld [vmem:[#allocation2 + $0xcf] sm:$0xff]  ;;  %v873_v41 = vld [vmem:[#allocation2 + $0x121] sm:$0xff] }
  0x7e   :  { %7381 = vmatprep.subr.mxu0 %v892_v31 }
  0x7f   :  { %7382 = vmatpush3.msra.mxu0 %v892_v31  ;;  %v874_v31 = vld [vmem:[#allocation2 + $0x129] sm:$0xff] }
  0x80   :  { %7238 = vmatmul.mubr.f32.gmra.mxu0 %v8579_v40  ;;  %7330 = vmatmul.mubr.f32.gmra.mxu1 %v218_v33  ;;  %v889_v40 = vld [vmem:[#allocation6 + $0x120] sm:$0xff] }
  0x81   :  { %7240 = vmatprep.mubr.f32.mxu0 %v8582_v43  ;;  %7332 = vmatprep.mubr.f32.mxu1 %v219_v42  ;;  %v280_v43 = vld [vmem:[#allocation2 + $0xe0] sm:$0xff]  ;;  %v875_v33 = vld [vmem:[#allocation2 + $0x131] sm:$0xff]  ;;  %v876_v42 = vld [vmem:[#allocation2 + $0x149] sm:$0xff] }
  0x82   :  { %7383 = vmatprep.subr.mxu0 %v891_v34 }
  0x83   :  { %7384 = vmatpush3.msra.mxu0 %v891_v34  ;;  %v877_v34 = vld [vmem:[#allocation2 + $0x151] sm:$0xff] }
  0x84   :  { %7241 = vmatmul.mubr.f32.gmra.mxu0 %v8585_v48  ;;  %7333 = vmatmul.mubr.f32.gmra.mxu1 %v220_v35  ;;  %v888_v48 = vld [vmem:[#allocation6 + $0x118] sm:$0xff]  ;;  %v878_v35 = vld [vmem:[#allocation2 + $0x159] sm:$0xff] }
  0x85   :  { %7243 = vmatprep.mubr.f32.mxu0 %v8588_v51  ;;  %7335 = vmatprep.mubr.f32.mxu1 %v221_v44  ;;  %v227_v51 = vld [vmem:[#allocation2 + $0x107] sm:$0xff] }
  0x86   :  { %7385 = vmatprep.subr.mxu0 %v890_v45  ;;  %v879_v44 = vld [vmem:[#allocation2 + $0x161] sm:$0xff] }
  0x87   :  { %7386 = vmatpush3.msra.mxu0 %v890_v45  ;;  %v880_v45 = vld [vmem:[#allocation2 + $0x169] sm:$0xff] }
  0x88   :  { %7244 = vmatmul.mubr.f32.gmra.mxu0 %v8590_v52  ;;  %7336 = vmatmul.mubr.f32.gmra.mxu1 %v222_v39  ;;  %v887_v52 = vld [vmem:[#allocation6 + $0x110] sm:$0xff]  ;;  %v881_v39 = vld [vmem:[#allocation2 + $0x171] sm:$0xff] }
  0x89   :  { %7246 = vmatprep.mubr.f32.mxu0 %v8594_v53  ;;  %7338 = vmatprep.mubr.f32.mxu1 %v223_v46  ;;  %v228_v53 = vld [vmem:[#allocation2 + $0x10f] sm:$0xff]  ;;  %v882_v46 = vld [vmem:[#allocation2 + $0x179] sm:$0xff] }
  0x8a   :  { %7387 = vmatprep.subr.mxu0 %v889_v40 }
  0x8b   :  { %7388 = vmatpush3.msra.mxu0 %v889_v40  ;;  %v883_v40 = vld [vmem:[#allocation2 + $0x181] sm:$0xff] }
  0x8c   :  { %7247 = vmatmul.mubr.f32.gmra.mxu0 %v280_v43  ;;  %7339 = vmatmul.mubr.f32.gmra.mxu1 %v224_v47 }
  0x8d   :  { %7249 = vmatprep.mubr.f32.mxu0 %v8597_v58  ;;  %7341 = vmatprep.mubr.f32.mxu1 %v225_v49  ;;  %v885_v58 = vld [vmem:[#allocation6 + $0x100] sm:$0xff] }
  0x8e   :  { %7389 = vmatprep.subr.mxu0 %v888_v48 }
  0x8f   :  { %7390 = vmatpush3.msra.mxu0 %v888_v48 }
  0x90   :  { %7250 = vmatmul.mubr.f32.gmra.mxu0 %v8599_v59  ;;  %7342 = vmatmul.mubr.f32.gmra.mxu1 %v226_v50  ;;  %v288_v59 = vld [vmem:[#allocation2 + $0x130] sm:$0xff] }
  0x91   :  { %7252 = vmatprep.mubr.f32.mxu0 %v8603_v60  ;;  %7344 = vmatprep.mubr.f32.mxu1 %v227_v51  ;;  %v232_v60 = vld [vmem:[#allocation2 + $0x12f] sm:$0xff] }
  0x92   :  { %7391 = vmatprep.subr.mxu0 %v887_v52 }
  0x93   :  { %7392 = vmatpush3.msra.mxu0 %v887_v52 }
  0x94   :  { %7253 = vmatmul.mubr.f32.gmra.mxu0 %v8605_v61  ;;  %7345 = vmatmul.mubr.f32.gmra.mxu1 %v228_v53  ;;  %v234_v61 = vld [vmem:[#allocation2 + $0x14f] sm:$0xff] }
  0x95   :  { %7255 = vmatprep.mubr.f32.mxu0 %v8607_v62  ;;  %7347 = vmatprep.mubr.f32.mxu1 %v229_v54  ;;  %v235_v62 = vld [vmem:[#allocation2 + $0x157] sm:$0xff] }
  0x96   :  { %7393 = vmatprep.subr.mxu0 %v886_v55 }
  0x97   :  { %7394 = vmatpush3.msra.mxu0 %v886_v55 }
  0x98   :  { %7256 = vmatmul.mubr.f32.gmra.mxu0 %v8612_v0  ;;  %7348 = vmatmul.mubr.f32.gmra.mxu1 %v230_v56  ;;  %v236_v0 = vld [vmem:[#allocation2 + $0x15f] sm:$0xff] }
  0x99   :  { %7258 = vmatprep.mubr.f32.mxu0 %v8614_v1  ;;  %7350 = vmatprep.mubr.f32.mxu1 %v231_v57  ;;  %v237_v1 = vld [vmem:[#allocation2 + $0x167] sm:$0xff] }
  0x9a   :  { %7395 = vmatprep.subr.mxu0 %v885_v58 }
  0x9b   :  { %7396 = vmatpush3.msra.mxu0 %v885_v58 }
  0x9c   :  { %7259 = vmatmul.mubr.f32.gmra.mxu0 %v288_v59  ;;  %7351 = vmatmul.mubr.f32.gmra.mxu1 %v232_v60 }
  0x9d   :  { %7261 = vmatprep.mubr.f32.mxu0 %v8619_v5  ;;  %7353 = vmatprep.mubr.f32.mxu1 %v233_v63  ;;  %v240_v5 = vld [vmem:[#allocation2 + $0x17f] sm:$0xff] }
  0xa0   :  { %7262 = vmatmul.mubr.f32.gmra.mxu0 %v8621_v6  ;;  %7354 = vmatmul.mubr.f32.gmra.mxu1 %v234_v61  ;;  %v844_v6 = vld [vmem:[#allocation2 + $0x9] sm:$0xff] }
  0xa1   :  { %7264 = vmatprep.mubr.f32.mxu0 %v8626_v8  ;;  %7356 = vmatprep.mubr.f32.mxu1 %v235_v62  ;;  %v846_v8 = vld [vmem:[#allocation2 + $0x19] sm:$0xff] }
  0xa4   :  { %7265 = vmatmul.mubr.f32.gmra.mxu0 %v8630_v10  ;;  %7357 = vmatmul.mubr.f32.gmra.mxu1 %v236_v0  ;;  %v848_v10 = vld [vmem:[#allocation2 + $0x29] sm:$0xff] }
  0xa5   :  { %7267 = vmatprep.mubr.f32.mxu0 %v8633_v11  ;;  %7359 = vmatprep.mubr.f32.mxu1 %v237_v1  ;;  %v849_v11 = vld [vmem:[#allocation2 + $0x31] sm:$0xff] }
  0xa8   :  { %7268 = vmatmul.mubr.f32.gmra.mxu0 %v8636_v14  ;;  %7360 = vmatmul.mubr.f32.gmra.mxu1 %v238_v2  ;;  %v852_v14 = vld [vmem:[#allocation2 + $0x59] sm:$0xff] }
  0xa9   :  { %7270 = vmatprep.mubr.f32.mxu0 %v8641_v16  ;;  %7362 = vmatprep.mubr.f32.mxu1 %v239_v3  ;;  %v854_v16 = vld [vmem:[#allocation2 + $0x69] sm:$0xff] }
  0xac   :  { %7271 = vmatmul.mubr.f32.gmra.mxu0 %v296_v4  ;;  %7363 = vmatmul.mubr.f32.gmra.mxu1 %v240_v5 }
  0xad   :  { %7397 = vmatprep.mubr.f32.mxu0 %v844_v6 }
  0xb0   :  { %7398 = vmatmul.mubr.f32.vlgmr.msra.gmra.mxu0 %v845_v7 }
  0xb1   :  { %7400 = vmatprep.mubr.f32.mxu0 %v846_v8 }
  0xb4   :  { %7401 = vmatmul.mubr.f32.gmra.mxu0 %v847_v9 }
  0xb5   :  { %7403 = vmatprep.mubr.f32.mxu0 %v848_v10 }
  0xb8   :  { %7404 = vmatmul.mubr.f32.gmra.mxu0 %v849_v11 }
  0xb9   :  { %7406 = vmatprep.mubr.f32.mxu0 %v850_v12 }
  0xbc   :  { %7407 = vmatmul.mubr.f32.gmra.mxu0 %v851_v13 }
  0xbd   :  { %7409 = vmatprep.mubr.f32.mxu0 %v852_v14 }
  0xc0   :  { %7410 = vmatmul.mubr.f32.gmra.mxu0 %v853_v15 }
  0xc1   :  { %7412 = vmatprep.mubr.f32.mxu0 %v854_v16 }
  0xc4   :  { %7413 = vmatmul.mubr.f32.gmra.mxu0 %v855_v17 }
  0xc5   :  { %7415 = vmatprep.mubr.f32.mxu0 %v856_v18 }
  0xc8   :  { %7416 = vmatmul.mubr.f32.gmra.mxu0 %v857_v19 }
  0xc9   :  { %7418 = vmatprep.mubr.f32.mxu0 %v858_v20 }
  0xcc   :  { %7419 = vmatmul.mubr.f32.gmra.mxu0 %v859_v21 }
  0xcd   :  { %7421 = vmatprep.mubr.f32.mxu0 %v860_v22 }
  0xd0   :  { %7422 = vmatmul.mubr.f32.gmra.mxu0 %v861_v23 }
  0xd1   :  { %7424 = vmatprep.mubr.f32.mxu0 %v862_v26 }
  0xd4   :  { %7425 = vmatmul.mubr.f32.gmra.mxu0 %v863_v27 }
  0xd5   :  { %7427 = vmatprep.mubr.f32.mxu0 %v864_v24 }
  0xd8   :  { %7428 = vmatmul.mubr.f32.gmra.mxu0 %v865_v25  ;;  %v1903_v25 = vld [vmem:[#allocation6 + $0x278] sm:$0xff] }
  0xd9   :  { %7430 = vmatprep.mubr.f32.mxu0 %v866_v32  ;;  %v1902_v32 = vld [vmem:[#allocation6 + $0x270] sm:$0xff]  ;;  %7457 = vmatprep.subr.mxu1 %v1903_v25 }
  0xda   :  { %7458 = vmatpush3.msra.mxu1 %v1903_v25 }
  0xdb   :  { %7459 = vmatprep.subr.mxu1 %v1902_v32 }
  0xdc   :  { %7431 = vmatmul.mubr.f32.gmra.mxu0 %v867_v36  ;;  %7460 = vmatpush3.msra.mxu1 %v1902_v32 }
  0xdd   :  { %7433 = vmatprep.mubr.f32.mxu0 %v868_v28  ;;  %v1901_v28 = vld [vmem:[#allocation6 + $0x268] sm:$0xff] }
  0xde   :  { %7461 = vmatprep.subr.mxu1 %v1901_v28 }
  0xdf   :  { %7462 = vmatpush3.msra.mxu1 %v1901_v28 }
  0xe0   :  { %7434 = vmatmul.mubr.f32.gmra.mxu0 %v869_v37 }
  0xe1   :  { %7436 = vmatprep.mubr.f32.mxu0 %v870_v29 }
  0xe4   :  { %7437 = vmatmul.mubr.f32.gmra.mxu0 %v871_v30  ;;  %v1900_v30 = vld [vmem:[#allocation6 + $0x260] sm:$0xff] }
  0xe5   :  { %7439 = vmatprep.mubr.f32.mxu0 %v872_v38  ;;  %7463 = vmatprep.subr.mxu1 %v1900_v30 }
  0xe6   :  { %7464 = vmatpush3.msra.mxu1 %v1900_v30 }
  0xe8   :  { %7440 = vmatmul.mubr.f32.gmra.mxu0 %v873_v41  ;;  %v1899_v41 = vld [vmem:[#allocation6 + $0x258] sm:$0xff] }
  0xe9   :  { %7442 = vmatprep.mubr.f32.mxu0 %v874_v31  ;;  %7465 = vmatprep.subr.mxu1 %v1899_v41 }
  0xea   :  { %7466 = vmatpush3.msra.mxu1 %v1899_v41 }
  0xec   :  { %7443 = vmatmul.mubr.f32.gmra.mxu0 %v875_v33 }
  0xed   :  { %7445 = vmatprep.mubr.f32.mxu0 %v876_v42  ;;  %v1898_v42 = vld [vmem:[#allocation6 + $0x250] sm:$0xff] }
  0xee   :  { %7467 = vmatprep.subr.mxu1 %v1898_v42 }
  0xef   :  { %7468 = vmatpush3.msra.mxu1 %v1898_v42  ;;  %v184_v42 = vlaneseq }
  0xf0   :  { %7446 = vmatmul.mubr.f32.gmra.mxu0 %v877_v34 }
  0xf1   :  { %7448 = vmatprep.mubr.f32.mxu0 %v878_v35  ;;  %v1897_v35 = vld [vmem:[#allocation6 + $0x248] sm:$0xff] }
  0xf2   :  { %7469 = vmatprep.subr.mxu1 %v1897_v35 }
  0xf3   :  { %7470 = vmatpush3.msra.mxu1 %v1897_v35 }
  0xf4   :  { %7449 = vmatmul.mubr.f32.gmra.mxu0 %v879_v44 }
  0xf5   :  { %7451 = vmatprep.mubr.f32.mxu0 %v880_v45 }
  0xf8   :  { %7452 = vmatmul.mubr.f32.gmra.mxu0 %v881_v39  ;;  %v1896_v39 = vld [vmem:[#allocation6 + $0x240] sm:$0xff] }
  0xf9   :  { %7454 = vmatprep.mubr.f32.mxu0 %v882_v46  ;;  %7471 = vmatprep.subr.mxu1 %v1896_v39 }
  0xfa   :  { %7472 = vmatpush3.msra.mxu1 %v1896_v39 }
  0xfc   :  { %7455 = vmatmul.mubr.f32.gmra.mxu0 %v883_v40 }
 0x11f   :  { %v8674_v43 = vpop.f32.mrf.mxu0 }
 0x120   :  { %v8676_v47 = vpop.f32.mrf.mxu1 }
 0x121   :  { %v8678_v49 = vpop.f32.mrf.mxu0 }
 0x122   :  { %v8680_v48 = vpop.f32.mrf.mxu1 }
 0x123   :  { %v8682_v50 = vpop.f32.mrf.mxu0  ;;  %v646_v39 = vadd.f32 %v8680_v48, %v8678_v49 }
 0x124   :  { %v8684_v51 = vpop.f32.mrf.mxu1 }
 0x125   :  { %v8686_v52 = vpop.f32.mrf.mxu0 }
 0x126   :  { %v8688_v53 = vpop.f32.mrf.mxu1 }
 0x128   :  { %v8690_v54 = vpop.f32.mrf.mxu0  ;;  %v8694_v56 = vpop.f32.mrf.mxu1 }
 0x12a   :  { %v8692_v55 = vpop.f32.mrf.mxu0  ;;  %v8700_v59 = vpop.f32.mrf.mxu1 }
 0x12c   :  { %v8696_v57 = vpop.f32.mrf.mxu0  ;;  %v8706_v61 = vpop.f32.mrf.mxu1 }
 0x12e   :  { %v8698_v58 = vpop.f32.mrf.mxu0  ;;  %v8712_v1 = vpop.f32.mrf.mxu1 }
 0x130   :  { %v8702_v60 = vpop.f32.mrf.mxu0  ;;  %v8718_v4 = vpop.f32.mrf.mxu1 }
 0x132   :  { %v8704_v63 = vpop.f32.mrf.mxu0  ;;  %v8724_v7 = vpop.f32.mrf.mxu1 }
 0x134   :  { %v8708_v62 = vpop.f32.mrf.mxu0  ;;  %v8730_v10 = vpop.f32.mrf.mxu1 }
 0x136   :  { %v8710_v0 = vpop.f32.mrf.mxu0  ;;  %v8736_v13 = vpop.f32.mrf.mxu1 }
 0x138   :  { %v8714_v2 = vpop.f32.mrf.mxu0  ;;  %v8742_v16 = vpop.f32.mrf.mxu1 }
 0x13a   :  { %v8716_v3 = vpop.f32.mrf.mxu0  ;;  %v8748_v19 = vpop.f32.mrf.mxu1 }
 0x13c   :  { %v8720_v5 = vpop.f32.mrf.mxu0  ;;  %v8754_v22 = vpop.f32.mrf.mxu1 }
 0x13e   :  { %v8722_v6 = vpop.f32.mrf.mxu0  ;;  %v8760_v27 = vpop.f32.mrf.mxu1 }
 0x140   :  { %v8726_v8 = vpop.f32.mrf.mxu0  ;;  %v8766_v37 = vpop.f32.mrf.mxu1 }
 0x142   :  { %v8728_v9 = vpop.f32.mrf.mxu0  ;;  %v8772_v31 = vpop.f32.mrf.mxu1 }
 0x144   :  { %v8732_v11 = vpop.f32.mrf.mxu0  ;;  %v8778_v44 = vpop.f32.mrf.mxu1 }
 0x146   :  { %v8734_v12 = vpop.f32.mrf.mxu0  ;;  %v8784_v40 = vpop.f32.mrf.mxu1 }
 0x148   :  { %v8738_v14 = vpop.f32.mrf.mxu0  ;;  %v8790_v28 = vpop.f32.mrf.mxu1 }
 0x14a   :  { %v8740_v15 = vpop.f32.mrf.mxu0 }
 0x14c   :  { %v8744_v17 = vpop.f32.mrf.mxu0 }
 0x14e   :  { %v8746_v18 = vpop.f32.mrf.mxu0 }
 0x150   :  { %v8750_v20 = vpop.f32.mrf.mxu0 }
 0x152   :  { %v8752_v21 = vpop.f32.mrf.mxu0 }
 0x154   :  { %v8756_v23 = vpop.f32.mrf.mxu0 }
 0x156   :  { %v8758_v26 = vpop.f32.mrf.mxu0 }
 0x157   :  { %11891 = vst [vmem:[#allocation17_spill] sm:$0xff] %v8758_v26 }
 0x158   :  { %v8762_v24 = vpop.f32.mrf.mxu0 }
 0x159   :  { %11892 = vst [vmem:[#allocation18_spill] sm:$0xff] %v8762_v24 }
 0x15a   :  { %v8764_v36 = vpop.f32.mrf.mxu0 }
 0x15b   :  { %11893 = vst [vmem:[#allocation19_spill] sm:$0xff] %v8764_v36 }
 0x15c   :  { %v8768_v29 = vpop.f32.mrf.mxu0 }
 0x15d   :  { %11894 = vst [vmem:[#allocation20_spill] sm:$0xff] %v8768_v29 }
 0x15e   :  { %v8770_v38 = vpop.f32.mrf.mxu0 }
 0x15f   :  { %11895 = vst [vmem:[#allocation21_spill] sm:$0xff] %v8770_v38 }
 0x160   :  { %v8774_v33 = vpop.f32.mrf.mxu0 }
 0x161   :  { %11896 = vst [vmem:[#allocation22_spill] sm:$0xff] %v8774_v33  ;;  %v185_v33 = vshrl.u32 %v184_v42, 7 }
 0x162   :  { %v8776_v34 = vpop.f32.mrf.mxu0 }
 0x163   :  { %11897 = vst [vmem:[#allocation23_spill] sm:$0xff] %v8776_v34  ;;  %v8800_v34 = vld [vmem:[#allocation8] ss:$0 sm:$0xff]  ;;  %v8814_v48 = vadd.s32 56, %v185_v33  ;;  %v676_v33 = vadd.f32 %v8712_v1, %v8698_v58 }
 0x164   :  { %v8780_v45 = vpop.f32.mrf.mxu0 }
 0x165   :  { %11898 = vst [vmem:[#allocation24_spill] sm:$0xff] %v8780_v45  ;;  %v651_v45 = vadd.f32 %v8676_v47, %v8674_v43  ;;  %v656_v47 = vadd.f32 %v8688_v53, %v8686_v52  ;;  %11904 = vst [vmem:[#allocation30_spill] sm:$0xff] %v8814_v48  ;;  %vm200_vm0 = vcmp.lt.s32.totalorder %v8814_v48, 60 }
 0x166   :  { %v8782_v46 = vpop.f32.mrf.mxu0 }
 0x167   :  { %11899 = vst [vmem:[#allocation25_spill] sm:$0xff] %v8782_v46  ;;  %v8798_v46 = vpop.f32.mrf.mxu1 }
 0x168   :  { %v8786_v25 = vpop.f32.mrf.mxu0 }
 0x169   :  { %11900 = vst [vmem:[#allocation26_spill] sm:$0xff] %v8786_v25  ;;  %v8807_v29 = vpop.f32.mrf.mxu1 }
 0x16a   :  { %v8788_v32 = vpop.f32.mrf.mxu0 }
 0x16b   :  { %11901 = vst [vmem:[#allocation27_spill] sm:$0xff] %v8788_v32  ;;  %v8823_v52 = vpop.f32.mrf.mxu1 }
 0x16c   :  { %v8792_v30 = vpop.f32.mrf.mxu0 }
 0x16d   :  { %11902 = vst [vmem:[#allocation28_spill] sm:$0xff] %v8792_v30  ;;  %v661_v30 = vadd.f32 %v8684_v51, %v8682_v50 }
 0x16e   :  { %v8794_v41 = vpop.f32.mrf.mxu0 }
 0x16f   :  { %11903 = vst [vmem:[#allocation29_spill] sm:$0xff] %v8794_v41 }
 0x170   :  { %v7399_v35 = vpop.f32.mrf.mxu0 }
 0x171   :  { %v1167_v25 = vadd.f32 %v7399_v35, %v651_v45 }
 0x172   :  { %v967_v32 = vpop.f32.mrf.mxu0 }
 0x173   :  { %v1214_v41 = vadd.f32 %v8800_v34, %v1167_v25  ;;  %v1166_v38 = vadd.f32 %v967_v32, %v646_v39  ;;  %v671_v25 = vadd.f32 %v8694_v56, %v8690_v54  ;;  %v666_v32 = vadd.f32 %v8700_v59, %v8692_v55 }
 0x174   :  { %v7402_v43 = vpop.f32.mrf.mxu0  ;;  %v691_v54 = vadd.f32 %v8718_v4, %v8702_v60  ;;  %v701_v60 = vadd.f32 %v8730_v10, %v8708_v62  ;;  %v696_v4 = vadd.f32 %v8736_v13, %v8710_v0  ;;  %v8858_v62 = vadd.f32 %v8748_v19, %v8716_v3 }
 0x175   :  { %v1213_v36 = vadd.f32 %v8800_v34, %v1166_v38  ;;  %v1169_v24 = vadd.f32 %v7402_v43, %v661_v30  ;;  %v8812_v26 = vmax.f32 %v1214_v41, 0.0  ;;  %v681_v38 = vadd.f32 %v8706_v61, %v8696_v57  ;;  %v7343_v41 = vpop.f32.mrf.mxu1 }
 0x176   :  { %v977_v49 = vpop.f32.mrf.mxu0  ;;  %v686_v57 = vadd.f32 %v8724_v7, %v8704_v63  ;;  %v8874_v3 = vadd.f32 %v8760_v27, %v8722_v6  ;;  %v8889_v6 = vadd.f32 %v8778_v44, %v8732_v11 }
 0x177   :  { %v8816_v45 = vmax.f32 %v1213_v36, 0.0  ;;  %v1216_v50 = vadd.f32 %v8800_v34, %v1169_v24  ;;  %v1168_v51 = vadd.f32 %v977_v49, %v656_v47  ;;  %v1425_v55 = vmul.f32 %v8812_v26, %v8812_v26  ;;  %v765_v19 = vpop.f32.mrf.mxu1 }
 0x178   :  { %v7405_v53 = vpop.f32.mrf.mxu0  ;;  %v711_v49 = vadd.f32 %v8742_v16, %v8714_v2  ;;  %v8870_v2 = vadd.f32 %v8754_v22, %v8720_v5  ;;  %v8878_v16 = vadd.f32 %v8766_v37, %v8726_v8  ;;  %v8885_v5 = vadd.f32 %v8772_v31, %v8728_v9 }
 0x179   :  { %v1424_v36 = vmul.f32 %v8816_v45, %v8816_v45  ;;  %v1215_v24 = vadd.f32 %v8800_v34, %v1168_v51  ;;  %v8836_v56 = vmax.f32 %v1216_v50, 0.0  ;;  %v1171_v59 = vadd.f32 %v7405_v53, %v671_v25  ;;  %v7346_v11 = vpop.f32.mrf.mxu1 }
 0x17a   :  { %v987_v30 = vpop.f32.mrf.mxu0  ;;  %v1349_v58 = vadd.f32 %v8812_v26, %v8816_v45  ;;  %v8901_v9 = vadd.f32 %v8790_v28, %v8738_v14 }
 0x17b   :  { %v8843_v61 = vmax.f32 %v1215_v24, 0.0  ;;  %v1170_v1 = vadd.f32 %v987_v30, %v666_v32  ;;  %v1464_v42 = vadd.f32 %v1425_v55, %v1424_v36  ;;  %v1218_v35 = vadd.f32 %v8800_v34, %v1171_v59 }
 0x17c   :  { %v7408_v39 = vpop.f32.mrf.mxu0  ;;  %v1427_v0 = vmul.f32 %v8836_v56, %v8836_v56 }
 0x17d   :  { %v1350_v43 = vadd.f32 %v1349_v58, %v8843_v61  ;;  %v1426_v63 = vmul.f32 %v8843_v61, %v8843_v61  ;;  %v1217_v7 = vadd.f32 %v8800_v34, %v1170_v1  ;;  %v1173_v47 = vadd.f32 %v7408_v39, %v681_v38 }
 0x17e   :  { %v8862_v10 = vmax.f32 %v1218_v35, 0.0  ;;  %v997_v13 = vpop.f32.mrf.mxu0  ;;  %v8897_v1 = vadd.f32 %v8784_v40, %v8734_v12  ;;  %v8913_v12 = vadd.f32 %v8798_v46, %v8740_v15  ;;  %v8929_v15 = vadd.f32 %v8823_v52, %v8746_v18  ;;  %v8931_v46 = vpop.f32.mrf.mxu1 }
 0x17f   :  { %v1465_v50 = vadd.f32 %v1464_v42, %v1426_v63  ;;  %v8864_v51 = vmax.f32 %v1217_v7, 0.0  ;;  %v1351_v25 = vadd.f32 %v1350_v43, %v8836_v56  ;;  %v1220_v32 = vadd.f32 %v8800_v34, %v1173_v47 }
 0x180   :  { %v1172_v53 = vadd.f32 %v997_v13, %v676_v33  ;;  %v7411_v38 = vpop.f32.mrf.mxu0  ;;  %v1429_v37 = vmul.f32 %v8862_v10, %v8862_v10  ;;  %v8922_v63 = vadd.f32 %v8807_v29, %v8744_v17  ;;  %v8937_v17 = vadd.f32 %v7343_v41, %v8750_v20 }
 0x181   :  { %v1352_v36 = vadd.f32 %v1351_v25, %v8864_v51  ;;  %v1428_v24 = vmul.f32 %v8864_v51, %v8864_v51  ;;  %v1466_v55 = vadd.f32 %v1465_v50, %v1427_v0  ;;  %v1260_v59 = vmax.f32 %v1220_v32, 0.0 }
 0x182   :  { %v1219_v8 = vadd.f32 %v8800_v34, %v1172_v53  ;;  %v1175_v22 = vadd.f32 %v7411_v38, %v691_v54  ;;  %v1007_v27 = vpop.f32.mrf.mxu0 }
 0x183   :  { %v1467_v33 = vadd.f32 %v1466_v55, %v1428_v24  ;;  %v1174_v30 = vadd.f32 %v1007_v27, %v686_v57  ;;  %v1353_v58 = vadd.f32 %v1352_v36, %v8862_v10  ;;  %v8908_v42 = vsel %vm200_vm0, %v1260_v59, 0.0  ;;  %v7349_v59 = vpop.f32.mrf.mxu1 }
 0x184   :  { %v8903_v31 = vmax.f32 %v1219_v8, 0.0  ;;  %v1222_v44 = vadd.f32 %v8800_v34, %v1175_v22  ;;  %v7414_v54 = vpop.f32.mrf.mxu0  ;;  %v1431_v0 = vmul.f32 %v8908_v42, %v8908_v42  ;;  %v8947_v24 = vadd.f32 %v765_v19, %v8752_v21 }
 0x185   :  { %v1221_v57 = vadd.f32 %v8800_v34, %v1174_v30  ;;  %v1177_v35 = vadd.f32 %v7414_v54, %v701_v60  ;;  %v1468_v39 = vadd.f32 %v1467_v33, %v1429_v37 }
 0x186   :  { %v1430_v14 = vmul.f32 %v8903_v31, %v8903_v31  ;;  %v8917_v40 = vmax.f32 %v1222_v44, 0.0  ;;  %v1017_v28 = vpop.f32.mrf.mxu0  ;;  %v1354_v43 = vadd.f32 %v1353_v58, %v8903_v31 }
 0x187   :  { %v8924_v7 = vmax.f32 %v1221_v57, 0.0  ;;  %v1224_v60 = vadd.f32 %v8800_v34, %v1177_v35  ;;  %v1176_v47 = vadd.f32 %v1017_v28, %v696_v4 }
 0x188   :  { %v7417_v13 = vpop.f32.mrf.mxu0  ;;  %v1355_v50 = vadd.f32 %v1354_v43, %v8908_v42  ;;  %v1469_v25 = vadd.f32 %v1468_v39, %v1430_v14  ;;  %v1433_v29 = vmul.f32 %v8917_v40, %v8917_v40  ;;  %v8969_v43 = vadd.f32 %v7346_v11, %v8756_v23 }
 0x189   :  { %v1432_v4 = vmul.f32 %v8924_v7, %v8924_v7  ;;  %v1223_v18 = vadd.f32 %v8800_v34, %v1176_v47  ;;  %v8944_v52 = vmax.f32 %v1224_v60, 0.0  ;;  %v1179_v32 = vadd.f32 %v7417_v13, %v711_v49  ;;  %v785_v60 = vpop.f32.mrf.mxu1 }
 0x18a   :  { %v1027_v53 = vpop.f32.mrf.mxu0  ;;  %v1356_v38 = vrot.slane %v1355_v50, 4  ;;  %v1470_v36 = vadd.f32 %v1469_v25, %v1431_v0  ;;  %v1362_v20 = vadd.f32 %v8917_v40, %v8924_v7 }
 0x18b   :  { %v8951_v41 = vmax.f32 %v1223_v18, 0.0  ;;  %v1178_v55 = vadd.f32 %v1027_v53, %v8858_v62  ;;  %v1477_v8 = vadd.f32 %v1433_v29, %v1432_v4  ;;  %v1226_v22 = vadd.f32 %v8800_v34, %v1179_v32 }
 0x18c   :  { %v7420_v27 = vpop.f32.mrf.mxu0  ;;  %v1357_v37 = vadd.f32 %v1356_v38, %v1355_v50  ;;  %v1471_v49 = vrot.slane %v1470_v36, 4  ;;  %v1435_v58 = vmul.f32 %v8944_v52, %v8944_v52 }
 0x18d   :  { %v1363_v33 = vadd.f32 %v1362_v20, %v8951_v41  ;;  %v1434_v21 = vmul.f32 %v8951_v41, %v8951_v41  ;;  %v1225_v19 = vadd.f32 %v8800_v34, %v1178_v55  ;;  %v1181_v30 = vadd.f32 %v7420_v27, %v8870_v2  ;;  %v7352_v55 = vpop.f32.mrf.mxu1 }
 0x18e   :  { %v8962_v62 = vmax.f32 %v1226_v22, 0.0  ;;  %v1037_v44 = vpop.f32.mrf.mxu0  ;;  %v1358_v54 = vrot.slane %v1357_v37, 2  ;;  %v1472_v57 = vadd.f32 %v1471_v49, %v1470_v36 }
 0x18f   :  { %v1478_v35 = vadd.f32 %v1477_v8, %v1434_v21  ;;  %v8964_v39 = vmax.f32 %v1225_v19, 0.0  ;;  %v1364_v14 = vadd.f32 %v1363_v33, %v8944_v52  ;;  %v1228_v28 = vadd.f32 %v8800_v34, %v1181_v30 }
 0x190   :  { %v1180_v2 = vadd.f32 %v1037_v44, %v8874_v3  ;;  %v7423_v47 = vpop.f32.mrf.mxu0  ;;  %v1359_v0 = vadd.f32 %v1358_v54, %v1357_v37  ;;  %v1473_v13 = vrot.slane %v1472_v57, 2  ;;  %v1437_v3 = vmul.f32 %v8962_v62, %v8962_v62 }
 0x191   :  { %v1365_v50 = vadd.f32 %v1364_v14, %v8964_v39  ;;  %v1436_v25 = vmul.f32 %v8964_v39, %v8964_v39  ;;  %v1479_v29 = vadd.f32 %v1478_v35, %v1435_v58  ;;  %v1268_v4 = vmax.f32 %v1228_v28, 0.0  ;;  %v11906_v35 = vld [vmem:[#allocation18_spill] sm:$0xff] }
 0x192   :  { %v1227_v18 = vadd.f32 %v8800_v34, %v1180_v2  ;;  %v1183_v32 = vadd.f32 %v7423_v47, %v8878_v16  ;;  %v1047_v53 = vpop.f32.mrf.mxu0  ;;  %v1360_v23 = vrot.slane %v1359_v0, 1  ;;  %v1474_v11 = vadd.f32 %v1473_v13, %v1472_v57 }
 0x193   :  { %v1480_v38 = vadd.f32 %v1479_v29, %v1436_v25  ;;  %v1182_v36 = vadd.f32 %v1047_v53, %v8885_v5  ;;  %v1366_v20 = vadd.f32 %v1365_v50, %v8962_v62  ;;  %v8983_v8 = vsel %vm200_vm0, %v1268_v4, 0.0  ;;  %v11905_v5 = vld [vmem:[#allocation17_spill] sm:$0xff]  ;;  %v11907_v29 = vld [vmem:[#allocation19_spill] sm:$0xff] }
 0x194   :  { %v8985_v22 = vmax.f32 %v1227_v18, 0.0  ;;  %v1230_v16 = vadd.f32 %v8800_v34, %v1183_v32  ;;  %v7426_v27 = vpop.f32.mrf.mxu0  ;;  %v1361_v37 = vadd.f32 %v1360_v23, %v1359_v0  ;;  %v1475_v21 = vrot.slane %v1474_v11, 1 }
 0x195   :  { %v1229_v49 = vadd.f32 %v8800_v34, %v1182_v36  ;;  %v1185_v33 = vadd.f32 %v7426_v27, %v8889_v6  ;;  %v1481_v19 = vadd.f32 %v1480_v38, %v1437_v3  ;;  %v8992_v30 = vadd.f32 %v8931_v46, %v11905_v5  ;;  %v795_v46 = vpop.f32.mrf.mxu1  ;;  %v11908_v38 = vld [vmem:[#allocation20_spill] sm:$0xff] }
 0x196   :  { %v1438_v58 = vmul.f32 %v8985_v22, %v8985_v22  ;;  %v8996_v44 = vmax.f32 %v1230_v16, 0.0  ;;  %1414 = vadd.xlane.f32.xlu0 %v1361_v37  ;;  %v1057_v54 = vpop.f32.mrf.mxu0  ;;  %v1367_v57 = vadd.f32 %v1366_v20, %v8985_v22  ;;  %v9000_v14 = vadd.f32 %v7349_v59, %v11906_v35 }
 0x197   :  { %v9002_v28 = vmax.f32 %v1229_v49, 0.0  ;;  %v1232_v6 = vadd.f32 %v8800_v34, %v1185_v33  ;;  %v1184_v2 = vadd.f32 %v1057_v54, %v8897_v1  ;;  %v1439_v47 = vmul.f32 %v8983_v8, %v8983_v8  ;;  %v7355_v27 = vpop.f32.mrf.mxu1 }
 0x198   :  { %v7429_v0 = vpop.f32.mrf.mxu0  ;;  %v1476_v13 = vadd.f32 %v1475_v21, %v1474_v11  ;;  %v1368_v50 = vadd.f32 %v1367_v57, %v8983_v8  ;;  %v1482_v25 = vadd.f32 %v1481_v19, %v1438_v58  ;;  %v9010_v4 = vadd.f32 %v785_v60, %v11907_v29 }
 0x199   :  { %v1441_v59 = vmul.f32 %v8996_v44, %v8996_v44  ;;  %v1440_v18 = vmul.f32 %v9002_v28, %v9002_v28  ;;  %v1231_v1 = vadd.f32 %v8800_v34, %v1184_v2  ;;  %v9017_v32 = vmax.f32 %v1232_v6, 0.0  ;;  %v805_v29 = vpop.f32.mrf.mxu1 }
 0x19a   :  { %v1187_v53 = vadd.f32 %v7429_v0, %v8901_v9  ;;  %1529 = vadd.xlane.f32.xlu0 %v1476_v13  ;;  %v1067_v23 = vpop.f32.mrf.mxu0  ;;  %v1369_v11 = vrot.slane %v1368_v50, 4  ;;  %v1483_v3 = vadd.f32 %v1482_v25, %v1439_v47  ;;  %v9021_v36 = vadd.f32 %v7352_v55, %v11908_v38 }
 0x19b   :  { %v1375_v60 = vadd.f32 %v8996_v44, %v9002_v28  ;;  %v9025_v20 = vmax.f32 %v1231_v1, 0.0  ;;  %v1186_v16 = vadd.f32 %v1067_v23, %v8913_v12  ;;  %v1490_v37 = vadd.f32 %v1441_v59, %v1440_v18 }
 0x19c   :  { %v1234_v49 = vadd.f32 %v8800_v34, %v1187_v53  ;;  %v7432_v33 = vpop.f32.mrf.mxu0  ;;  %v1370_v9 = vadd.f32 %v1369_v11, %v1368_v50  ;;  %v1484_v21 = vrot.slane %v1483_v3, 4  ;;  %v1443_v54 = vmul.f32 %v9017_v32, %v9017_v32  ;;  %v11909_v50 = vld [vmem:[#allocation21_spill] sm:$0xff] }
 0x19d   :  { %v1376_v19 = vadd.f32 %v1375_v60, %v9025_v20  ;;  %v1442_v55 = vmul.f32 %v9025_v20, %v9025_v20  ;;  %v1233_v5 = vadd.f32 %v8800_v34, %v1186_v16  ;;  %v1189_v58 = vadd.f32 %v7432_v33, %v8922_v63 }
 0x19e   :  { %v9036_v12 = vmax.f32 %v1234_v49, 0.0  ;;  %v1077_v57 = vpop.f32.mrf.mxu0  ;;  %v1371_v35 = vrot.slane %v1370_v9, 2  ;;  %v1485_v6 = vadd.f32 %v1484_v21, %v1483_v3  ;;  %v9043_v25 = vadd.f32 %v795_v46, %v11909_v50  ;;  %v1895_v21 = vld [vmem:[#allocation6 + $0x238] sm:$0xff] }
 0x19f   :  { %v1491_v2 = vadd.f32 %v1490_v37, %v1442_v55  ;;  %v9038_v47 = vmax.f32 %v1233_v5, 0.0  ;;  %v1377_v0 = vadd.f32 %v1376_v19, %v9017_v32  ;;  %v1236_v13 = vadd.f32 %v8800_v34, %v1189_v58  ;;  %v7358_v19 = vpop.f32.mrf.mxu1  ;;  %7473 = vmatprep.subr.mxu1 %v1895_v21 }
 0x1a0   :  { %v1188_v63 = vadd.f32 %v1077_v57, %v8929_v15  ;;  %v7435_v59 = vpop.f32.mrf.mxu0  ;;  %v1372_v18 = vadd.f32 %v1371_v35, %v1370_v9  ;;  %v1486_v1 = vrot.slane %v1485_v6, 2  ;;  %v1445_v15 = vmul.f32 %v9036_v12, %v9036_v12  ;;  %7474 = vmatpush3.msra.mxu1 %v1895_v21 }
 0x1a1   :  { %v1378_v53 = vadd.f32 %v1377_v0, %v9038_v47  ;;  %v1444_v23 = vmul.f32 %v9038_v47, %v9038_v47  ;;  %v1492_v11 = vadd.f32 %v1491_v2, %v1443_v54  ;;  %v1276_v3 = vmax.f32 %v1236_v13, 0.0 }
 0x1a2   :  { %v1235_v38 = vadd.f32 %v8800_v34, %v1188_v63  ;;  %v1191_v60 = vadd.f32 %v7435_v59, %v8937_v17  ;;  %v1087_v16 = vpop.f32.mrf.mxu0  ;;  %v1373_v46 = vrot.slane %v1372_v18, 1  ;;  %v1487_v37 = vadd.f32 %v1486_v1, %v1485_v6 }
 0x1a3   :  { %v1493_v49 = vadd.f32 %v1492_v11, %v1444_v23  ;;  %v1379_v33 = vadd.f32 %v1378_v53, %v9036_v12  ;;  %v1190_v9 = vadd.f32 %v1087_v16, %v8947_v24  ;;  %v9057_v55 = vsel %vm200_vm0, %v1276_v3, 0.0  ;;  %v11910_v24 = vld [vmem:[#allocation22_spill] sm:$0xff] }
 0x1a4   :  { %v9059_v5 = vmax.f32 %v1235_v38, 0.0  ;;  %v1238_v17 = vadd.f32 %v8800_v34, %v1191_v60  ;;  %v7438_v58 = vpop.f32.mrf.mxu0  ;;  %v1374_v54 = vadd.f32 %v1373_v46, %v1372_v18  ;;  %v1488_v6 = vrot.slane %v1487_v37, 1  ;;  %v11911_v18 = vld [vmem:[#allocation23_spill] sm:$0xff]  ;;  %v11912_v46 = vld [vmem:[#allocation24_spill] sm:$0xff] }
 0x1a5   :  { %v1237_v57 = vadd.f32 %v8800_v34, %v1190_v9  ;;  %v1193_v35 = vadd.f32 %v7438_v58, %v8969_v43  ;;  %v1494_v2 = vadd.f32 %v1493_v49, %v1445_v15  ;;  %v9065_v0 = vadd.f32 %v7355_v27, %v11910_v24  ;;  %v815_v27 = vpop.f32.mrf.mxu1  ;;  %v1846_v58 = vld [vmem:[#allocation6 + $0x1f8] sm:$0xff] }
 0x1a6   :  { %v1380_v13 = vadd.f32 %v1379_v33, %v9059_v5  ;;  %v1446_v50 = vmul.f32 %v9059_v5, %v9059_v5  ;;  %v9070_v63 = vmax.f32 %v1238_v17, 0.0  ;;  %1416 = vadd.xlane.f32.xlu1 %v1374_v54  ;;  %v1097_v59 = vpop.f32.mrf.mxu0  ;;  %v9073_v1 = vadd.f32 %v805_v29, %v11911_v18  ;;  %v11913_v54 = vld [vmem:[#allocation25_spill] sm:$0xff]  ;;  %7549 = vmatprep.subr.mxu0 %v1846_v58  ;;  %v1894_v18 = vld [vmem:[#allocation6 + $0x230] sm:$0xff] }
 0x1a7   :  { %v9075_v53 = vmax.f32 %v1237_v57, 0.0  ;;  %v1240_v43 = vadd.f32 %v8800_v34, %v1193_v35  ;;  %v1192_v23 = vadd.f32 %v1097_v59, %v8992_v30  ;;  %v1447_v11 = vmul.f32 %v9057_v55, %v9057_v55  ;;  %7550 = vmatpush3.msra.mxu0 %v1846_v58  ;;  %7475 = vmatprep.subr.mxu1 %v1894_v18  ;;  %v11914_v58 = vld [vmem:[#allocation26_spill] sm:$0xff] }
 0x1a8   :  { %v7441_v3 = vpop.f32.mrf.mxu0  ;;  %v1489_v38 = vadd.f32 %v1488_v6, %v1487_v37  ;;  %v1381_v60 = vadd.f32 %v1380_v13, %v9057_v55  ;;  %v1495_v16 = vadd.f32 %v1494_v2, %v1446_v50  ;;  %v9083_v15 = vadd.f32 %v7358_v19, %v11912_v46  ;;  %v7361_v2 = vpop.f32.mrf.mxu1  ;;  %7476 = vmatpush3.msra.mxu1 %v1894_v18 }
 0x1a9   :  { %v1449_v29 = vmul.f32 %v9070_v63, %v9070_v63  ;;  %v1448_v49 = vmul.f32 %v9075_v53, %v9075_v53  ;;  %v1239_v30 = vadd.f32 %v8800_v34, %v1192_v23  ;;  %v9090_v33 = vmax.f32 %v1240_v43, 0.0  ;;  %v1893_v43 = vld [vmem:[#allocation6 + $0x228] sm:$0xff]  ;;  %v1845_v23 = vld [vmem:[#allocation6 + $0x1f0] sm:$0xff] }
 0x1aa   :  { %v1195_v9 = vadd.f32 %v7441_v3, %v9000_v14  ;;  %1531 = vadd.xlane.f32.xlu1 %v1489_v38  ;;  %v1107_v37 = vpop.f32.mrf.mxu0  ;;  %v1382_v21 = vrot.slane %v1381_v60, 4  ;;  %v1496_v17 = vadd.f32 %v1495_v16, %v1447_v11  ;;  %v9094_v19 = vadd.f32 %v815_v27, %v11913_v54  ;;  %v1844_v38 = vld [vmem:[#allocation6 + $0x1e8] sm:$0xff]  ;;  %7551 = vmatprep.subr.mxu0 %v1845_v23 }
 0x1ab   :  { %v1388_v57 = vadd.f32 %v9070_v63, %v9075_v53  ;;  %v9098_v35 = vmax.f32 %v1239_v30, 0.0  ;;  %v1194_v6 = vadd.f32 %v1107_v37, %v9010_v4  ;;  %v1503_v24 = vadd.f32 %v1449_v29, %v1448_v49  ;;  %7477 = vmatprep.subr.mxu1 %v1893_v43  ;;  %7552 = vmatpush3.msra.mxu0 %v1845_v23 }
 0x1ac   :  { %v1242_v14 = vadd.f32 %v8800_v34, %v1195_v9  ;;  %v7444_v13 = vpop.f32.mrf.mxu0  ;;  %v1383_v50 = vadd.f32 %v1382_v21, %v1381_v60  ;;  %v1497_v59 = vrot.slane %v1496_v17, 4  ;;  %v1451_v16 = vmul.f32 %v9090_v33, %v9090_v33  ;;  %7478 = vmatpush3.msra.mxu1 %v1893_v43  ;;  %7553 = vmatprep.subr.mxu0 %v1844_v38 }
 0x1ad   :  { %v1389_v27 = vadd.f32 %v1388_v57, %v9098_v35  ;;  %v1450_v11 = vmul.f32 %v9098_v35, %v9098_v35  ;;  %v1241_v3 = vadd.f32 %v8800_v34, %v1194_v6  ;;  %v1197_v4 = vadd.f32 %v7444_v13, %v9021_v36  ;;  %v1843_v36 = vld [vmem:[#allocation6 + $0x1e0] sm:$0xff]  ;;  %v825_v57 = vpop.f32.mrf.mxu1  ;;  %7554 = vmatpush3.msra.mxu0 %v1844_v38  ;;  %v1841_v38 = vld [vmem:[#allocation6 + $0x1d0] sm:$0xff] }
 0x1ae   :  { %v9109_v60 = vmax.f32 %v1242_v14, 0.0  ;;  %v1117_v46 = vpop.f32.mrf.mxu0  ;;  %v1384_v29 = vrot.slane %v1383_v50, 2  ;;  %v1498_v49 = vadd.f32 %v1497_v59, %v1496_v17  ;;  %v9116_v54 = vadd.f32 %v7361_v2, %v11914_v58  ;;  %7555 = vmatprep.subr.mxu0 %v1843_v36 }
 0x1af   :  { %v1504_v30 = vadd.f32 %v1503_v24, %v1450_v11  ;;  %v9111_v9 = vmax.f32 %v1241_v3, 0.0  ;;  %v1390_v37 = vadd.f32 %v1389_v27, %v9090_v33  ;;  %v1244_v21 = vadd.f32 %v8800_v34, %v1197_v4  ;;  %7556 = vmatpush3.msra.mxu0 %v1843_v36 }
 0x1b0   :  { %v1196_v6 = vadd.f32 %v1117_v46, %v9043_v25  ;;  %v7447_v14 = vpop.f32.mrf.mxu0  ;;  %v1385_v17 = vadd.f32 %v1384_v29, %v1383_v50  ;;  %v1499_v13 = vrot.slane %v1498_v49, 2  ;;  %v1842_v50 = vld [vmem:[#allocation6 + $0x1d8] sm:$0xff]  ;;  %v1453_v43 = vmul.f32 %v9109_v60, %v9109_v60 }
 0x1b1   :  { %v1391_v24 = vadd.f32 %v1390_v37, %v9111_v9  ;;  %v1452_v59 = vmul.f32 %v9111_v9, %v9111_v9  ;;  %v1505_v18 = vadd.f32 %v1504_v30, %v1451_v16  ;;  %v1284_v27 = vmax.f32 %v1244_v21, 0.0  ;;  %v1892_v16 = vld [vmem:[#allocation6 + $0x220] sm:$0xff]  ;;  %v7364_v30 = vpop.f32.mrf.mxu1  ;;  %7557 = vmatprep.subr.mxu0 %v1842_v50 }
 0x1b2   :  { %v1243_v23 = vadd.f32 %v8800_v34, %v1196_v6  ;;  %v1199_v2 = vadd.f32 %v7447_v14, %v9065_v0  ;;  %v1127_v11 = vpop.f32.mrf.mxu0  ;;  %v1386_v3 = vrot.slane %v1385_v17, 1  ;;  %v1500_v25 = vadd.f32 %v1499_v13, %v1498_v49  ;;  %7479 = vmatprep.subr.mxu1 %v1892_v16  ;;  %7558 = vmatpush3.msra.mxu0 %v1842_v50  ;;  %v11915_v13 = vld [vmem:[#allocation27_spill] sm:$0xff] }
 0x1b3   :  { %v1506_v4 = vadd.f32 %v1505_v18, %v1452_v59  ;;  %v1392_v46 = vadd.f32 %v1391_v24, %v9109_v60  ;;  %v1198_v29 = vadd.f32 %v1127_v11, %v9073_v1  ;;  %v9130_v0 = vsel %vm200_vm0, %v1284_v27, 0.0  ;;  %7480 = vmatpush3.msra.mxu1 %v1892_v16  ;;  %7559 = vmatprep.subr.mxu0 %v1841_v38 }
 0x1b4   :  { %v9132_v37 = vmax.f32 %v1243_v23, 0.0  ;;  %v1246_v49 = vadd.f32 %v8800_v34, %v1199_v2  ;;  %v7450_v21 = vpop.f32.mrf.mxu0  ;;  %v1387_v58 = vadd.f32 %v1386_v3, %v1385_v17  ;;  %v1501_v14 = vrot.slane %v1500_v25, 1  ;;  %v1840_v23 = vld [vmem:[#allocation6 + $0x1c8] sm:$0xff]  ;;  %7560 = vmatpush3.msra.mxu0 %v1841_v38 }
 0x1b5   :  { %v1245_v6 = vadd.f32 %v8800_v34, %v1198_v29  ;;  %v1201_v1 = vadd.f32 %v7450_v21, %v9083_v15  ;;  %v1507_v36 = vadd.f32 %v1506_v4, %v1453_v43  ;;  %v826_v24 = vadd.f32 %v825_v57, %v11915_v13  ;;  %v11917_v57 = vld [vmem:[#allocation28_spill] sm:$0xff]  ;;  %v835_v43 = vpop.f32.mrf.mxu1  ;;  %7561 = vmatprep.subr.mxu0 %v1840_v23  ;;  %v11918_v13 = vld [vmem:[#allocation29_spill] sm:$0xff] }
 0x1b6   :  { %v1393_v59 = vadd.f32 %v1392_v46, %v9132_v37  ;;  %v1454_v18 = vmul.f32 %v9132_v37, %v9132_v37  ;;  %v9141_v27 = vmax.f32 %v1246_v49, 0.0  ;;  %1418 = vadd.xlane.f32.xlu0 %v1387_v58  ;;  %v1137_v17 = vpop.f32.mrf.mxu0  ;;  %v1502_v3 = vadd.f32 %v1501_v14, %v1500_v25  ;;  %v1839_v49 = vld [vmem:[#allocation6 + $0x1c0] sm:$0xff]  ;;  %7562 = vmatpush3.msra.mxu0 %v1840_v23  ;;  %v1891_v14 = vld [vmem:[#allocation6 + $0x218] sm:$0xff] }
 0x1b7   :  { %v9143_v2 = vmax.f32 %v1245_v6, 0.0  ;;  %v1248_v15 = vadd.f32 %v8800_v34, %v1201_v1  ;;  %v1200_v11 = vadd.f32 %v1137_v17, %v9094_v19  ;;  %v841_v50 = vadd.f32 %v7364_v30, %v11917_v57  ;;  %7563 = vmatprep.subr.mxu0 %v1839_v49  ;;  %7481 = vmatprep.subr.mxu1 %v1891_v14 }
 0x1b8   :  { %11916 = vst [vmem:[#allocation17_spill] sm:$0xff] %v9141_v27  ;;  %v1455_v4 = vmul.f32 %v9130_v0, %v9130_v0  ;;  %v7453_v46 = vpop.f32.mrf.mxu0  ;;  %v1394_v29 = vadd.f32 %v1393_v59, %v9130_v0  ;;  %v1508_v16 = vadd.f32 %v1507_v36, %v1454_v18  ;;  %v1457_v21 = vmul.f32 %v9141_v27, %v9141_v27  ;;  %v1838_v36 = vld [vmem:[#allocation6 + $0x1b8] sm:$0xff] }
 0x1b9   :  { %v1456_v19 = vmul.f32 %v9143_v2, %v9143_v2  ;;  %v1247_v25 = vadd.f32 %v8800_v34, %v1200_v11  ;;  %1533 = vadd.xlane.f32.xlu1 %v1502_v3  ;;  %v9156_v38 = vmax.f32 %v1248_v15, 0.0  ;;  %v1203_v30 = vadd.f32 %v7453_v46, %v9116_v54  ;;  %7564 = vmatpush3.msra.mxu0 %v1839_v49  ;;  %v1837_v46 = vld [vmem:[#allocation6 + $0x1b0] sm:$0xff]  ;;  %v1889_v49 = vld [vmem:[#allocation6 + $0x208] sm:$0xff] }
 0x1ba   :  { %v1147_v58 = vpop.f32.mrf.mxu0  ;;  %v1395_v6 = vrot.slane %v1394_v29, 4  ;;  %v1509_v1 = vadd.f32 %v1508_v16, %v1455_v4  ;;  %v836_v59 = vadd.f32 %v835_v43, %v11918_v13  ;;  %v1401_v18 = vadd.f32 %v9141_v27, %v9143_v2  ;;  %7482 = vmatpush3.msra.mxu1 %v1891_v14  ;;  %7565 = vmatprep.subr.mxu0 %v1838_v36  ;;  %v1890_v4 = vld [vmem:[#allocation6 + $0x210] sm:$0xff]  ;;  %v1888_v27 = vld [vmem:[#allocation6 + $0x200] sm:$0xff] }
 0x1bb   :  { %v9162_v17 = vmax.f32 %v1247_v25, 0.0  ;;  %v1202_v11 = vadd.f32 %v1147_v58, %v826_v24  ;;  %v1516_v23 = vadd.f32 %v1457_v21, %v1456_v19  ;;  %v1250_v15 = vadd.f32 %v8800_v34, %v1203_v30  ;;  %7483 = vmatprep.subr.mxu1 %v1890_v4  ;;  %7566 = vmatpush3.msra.mxu0 %v1838_v36 }
 0x1bc   :  { %v7456_v54 = vpop.f32.mrf.mxu0  ;;  %v1396_v3 = vadd.f32 %v1395_v6, %v1394_v29  ;;  %v1510_v57 = vrot.slane %v1509_v1, 4  ;;  %v1459_v21 = vmul.f32 %v9156_v38, %v9156_v38  ;;  %7484 = vmatpush3.msra.mxu1 %v1890_v4  ;;  %v1836_v6 = vld [vmem:[#allocation6 + $0x1a8] sm:$0xff]  ;;  %7567 = vmatprep.subr.mxu0 %v1837_v46 }
 0x1bd   :  { %11919 = vst [vmem:[#allocation18_spill] sm:$0xff] %v9162_v17  ;;  %v1402_v43 = vadd.f32 %v1401_v18, %v9162_v17  ;;  %v1458_v16 = vmul.f32 %v9162_v17, %v9162_v17  ;;  %v1249_v25 = vadd.f32 %v8800_v34, %v1202_v11  ;;  %v1205_v24 = vadd.f32 %v7456_v54, %v841_v50 }
 0x1be   :  { %v9171_v19 = vmax.f32 %v1250_v15, 0.0  ;;  %v1157_v29 = vpop.f32.mrf.mxu0  ;;  %v1397_v30 = vrot.slane %v1396_v3, 2  ;;  %v1511_v58 = vadd.f32 %v1510_v57, %v1509_v1  ;;  %7485 = vmatprep.subr.mxu1 %v1889_v49  ;;  %7568 = vmatpush3.msra.mxu0 %v1837_v46  ;;  %v1835_v15 = vld [vmem:[#allocation6 + $0x1a0] sm:$0xff] }
 0x1bf   :  { %v1517_v14 = vadd.f32 %v1516_v23, %v1458_v16  ;;  %v9173_v13 = vmax.f32 %v1249_v25, 0.0  ;;  %v1403_v18 = vadd.f32 %v1402_v43, %v9156_v38  ;;  %v1252_v50 = vadd.f32 %v8800_v34, %v1205_v24  ;;  %7486 = vmatpush3.msra.mxu1 %v1889_v49  ;;  %7569 = vmatprep.subr.mxu0 %v1836_v6 }
 0x1c0   :  { %11920 = vst [vmem:[#allocation19_spill] sm:$0xff] %v9171_v19  ;;  %v1204_v11 = vadd.f32 %v1157_v29, %v836_v59  ;;  %v1398_v54 = vadd.f32 %v1397_v30, %v1396_v3  ;;  %v1512_v17 = vrot.slane %v1511_v58, 2  ;;  %7487 = vmatprep.subr.mxu1 %v1888_v27  ;;  %7570 = vmatpush3.msra.mxu0 %v1836_v6  ;;  %v1834_v59 = vld [vmem:[#allocation6 + $0x198] sm:$0xff]  ;;  %v1833_v29 = vld [vmem:[#allocation6 + $0x190] sm:$0xff]  ;;  %v1832_v6 = vld [vmem:[#allocation6 + $0x188] sm:$0xff] }
 0x1c1   :  { %11921 = vst [vmem:[#allocation20_spill] sm:$0xff] %v9173_v13  ;;  %v1404_v1 = vadd.f32 %v1403_v18, %v9173_v13  ;;  %v1460_v36 = vmul.f32 %v9173_v13, %v9173_v13  ;;  %v1518_v23 = vadd.f32 %v1517_v14, %v1459_v21  ;;  %v1292_v57 = vmax.f32 %v1252_v50, 0.0  ;;  %7488 = vmatpush3.msra.mxu1 %v1888_v27 }
 0x1c2   :  { %v1251_v4 = vadd.f32 %v8800_v34, %v1204_v11  ;;  %v1399_v43 = vrot.slane %v1398_v54, 1  ;;  %v1513_v16 = vadd.f32 %v1512_v17, %v1511_v58  ;;  %v1461_v3 = vmul.f32 %v9171_v19, %v9171_v19  ;;  %7571 = vmatprep.subr.mxu0 %v1835_v15  ;;  %v1831_v11 = vld [vmem:[#allocation6 + $0x180] sm:$0xff] }
 0x1c3   :  { %v1519_v46 = vadd.f32 %v1518_v23, %v1460_v36  ;;  %v1405_v25 = vadd.f32 %v1404_v1, %v9171_v19  ;;  %7572 = vmatpush3.msra.mxu0 %v1835_v15  ;;  %v9188_v34 = vsel %vm200_vm0, %v1292_v57, 0.0  ;;  %v9196_v23 = vld [vmem:[#allocation6 + $0x2f8] sm:$0xff] }
 0x1c4   :  { %v9184_v24 = vmax.f32 %v1251_v4, 0.0  ;;  %v1400_v49 = vadd.f32 %v1399_v43, %v1398_v54  ;;  %v1514_v21 = vrot.slane %v1513_v16, 1  ;;  %11923 = vst [vmem:[#allocation22_spill] sm:$0xff] %v9188_v34  ;;  %7573 = vmatprep.subr.mxu0 %v1834_v59  ;;  %v1463_v14 = vmul.f32 %v9188_v34, %v9188_v34  ;;  %7641 = vmatprep.subr.mxu1 %v9196_v23 }
 0x1c5   :  { %v1520_v17 = vadd.f32 %v1519_v46, %v1461_v3  ;;  %7574 = vmatpush3.msra.mxu0 %v1834_v59 }
 0x1c6   :  { %11922 = vst [vmem:[#allocation21_spill] sm:$0xff] %v9184_v24  ;;  %v1406_v27 = vadd.f32 %v1405_v25, %v9184_v24  ;;  %v1462_v30 = vmul.f32 %v9184_v24, %v9184_v24  ;;  %1420 = vadd.xlane.f32.xlu0 %v1400_v49  ;;  %v1515_v58 = vadd.f32 %v1514_v21, %v1513_v16 }
 0x1c7   :  { %7575 = vmatprep.subr.mxu0 %v1833_v29 }
 0x1c8   :  { %1535 = vadd.xlane.f32.xlu1 %v1515_v58  ;;  %v1407_v18 = vadd.f32 %v1406_v27, %v9188_v34  ;;  %v1521_v50 = vadd.f32 %v1520_v17, %v1462_v30  ;;  %7576 = vmatpush3.msra.mxu0 %v1833_v29 }
 0x1c9   :  { %7577 = vmatprep.subr.mxu0 %v1832_v6 }
 0x1ca   :  { %v1408_v54 = vrot.slane %v1407_v18, 4  ;;  %v1522_v15 = vadd.f32 %v1521_v50, %v1463_v14  ;;  %7578 = vmatpush3.msra.mxu0 %v1832_v6 }
 0x1cb   :  { %7579 = vmatprep.subr.mxu0 %v1831_v11 }
 0x1cc   :  { %v1409_v1 = vadd.f32 %v1408_v54, %v1407_v18  ;;  %v1523_v36 = vrot.slane %v1522_v15, 4  ;;  %7580 = vmatpush3.msra.mxu0 %v1831_v11 }
 0x1ce   :  { %v1410_v57 = vrot.slane %v1409_v1, 2  ;;  %v1524_v4 = vadd.f32 %v1523_v36, %v1522_v15 }
 0x1d0   :  { %v1411_v43 = vadd.f32 %v1410_v57, %v1409_v1  ;;  %v1525_v16 = vrot.slane %v1524_v4, 2 }
 0x1d2   :  { %v1412_v59 = vrot.slane %v1411_v43, 1  ;;  %v1526_v3 = vadd.f32 %v1525_v16, %v1524_v4 }
 0x1d4   :  { %v1413_v46 = vadd.f32 %v1412_v59, %v1411_v43  ;;  %v1527_v25 = vrot.slane %v1526_v3, 1  ;;  %v9207_v59 = vld [vmem:[#allocation9] sm:$0xff] }
 0x1d6   :  { %1422 = vadd.xlane.f32.xlu0 %v1413_v46  ;;  %v1528_v49 = vadd.f32 %v1527_v25, %v1526_v3  ;;  %v9209_v3 = vld [vmem:[#allocation9 + $0x8] sm:$0xff] }
 0x1d8   :  { %1537 = vadd.xlane.f32.xlu1 %v1528_v49 }
 0x21f   :  { %v1415_v21 = vpop.xlane.xlu0 %1414 }
 0x220   :  { %v1539_v29 = vmul.f32 0.00017361112, %v1415_v21 }
 0x222   :  { %v1549_v27 = vmul.f32 %v1539_v29, %v1539_v29  ;;  %v1564_v36 = vsub.f32 %v8816_v45, %v1539_v29  ;;  %v1565_v57 = vsub.f32 %v8812_v26, %v1539_v29  ;;  %v1566_v4 = vsub.f32 %v8843_v61, %v1539_v29  ;;  %v9217_v26 = vld [vmem:[#allocation9 + $0x10] sm:$0xff]  ;;  %v9219_v61 = vld [vmem:[#allocation9 + $0x18] sm:$0xff] }
 0x223   :  { %v1530_v17 = vpop.xlane.xlu0 %1529  ;;  %v1567_v43 = vsub.f32 %v8836_v56, %v1539_v29  ;;  %v1568_v25 = vsub.f32 %v8864_v51, %v1539_v29  ;;  %v1569_v49 = vsub.f32 %v8862_v10, %v1539_v29  ;;  %v1570_v21 = vsub.f32 %v8903_v31, %v1539_v29  ;;  %v9225_v51 = vld [vmem:[#allocation9 + $0x30] sm:$0xff]  ;;  %v9227_v10 = vld [vmem:[#allocation11 + $0x8] sm:$0xff] }
 0x224   :  { %v1544_v30 = vmul.f32 0.00017361112, %v1530_v17  ;;  %v1571_v45 = vsub.f32 %v8908_v42, %v1539_v29  ;;  %v9215_v17 = vld [vmem:[#allocation11] sm:$0xff]  ;;  %v9229_v31 = vld [vmem:[#allocation11 + $0x10] sm:$0xff]  ;;  %v9231_v29 = vld [vmem:[#allocation11 + $0x18] sm:$0xff] }
 0x226   :  { %v1554_v58 = vsub.f32 %v1544_v30, %v1549_v27 }
 0x228   :  { %v1559_v6 = vmax.f32 %v1554_v58, 0.0 }
 0x22a   :  { %v1604_v14 = vadd.f32 1e-05, %v1559_v6  ;;  %v9221_v6 = vld [vmem:[#allocation9 + $0x20] sm:$0xff] }
 0x22c   :  { %8296 = vrsqrt.f32 %v1604_v14  ;;  %v9223_v14 = vld [vmem:[#allocation9 + $0x28] sm:$0xff] }
 0x22f   :  { %v1417_v18 = vpop.xlane.xlu1 %1416 }
 0x230   :  { %v9199_v50 = vmul.f32 0.00017361112, %v1417_v18 }
 0x232   :  { %v1550_v54 = vmul.f32 %v9199_v50, %v9199_v50 }
 0x233   :  { %v1532_v11 = vpop.xlane.xlu1 %1531 }
 0x234   :  { %v1545_v15 = vmul.f32 0.00017361112, %v1532_v11 }
 0x236   :  { %v1555_v1 = vsub.f32 %v1545_v15, %v1550_v54 }
 0x238   :  { %v1560_v16 = vmax.f32 %v1555_v1, 0.0 }
 0x239   :  { %v8297_v46 = vpop.eup %8296 }
 0x23a   :  { %v1605_v56 = vadd.f32 1e-05, %v1560_v16  ;;  %v1614_v27 = vmul.f32 %v8297_v46, %v1564_v36  ;;  %v1615_v30 = vmul.f32 %v8297_v46, %v1565_v57  ;;  %v1616_v58 = vmul.f32 %v8297_v46, %v1566_v4  ;;  %v9236_v57 = vld [vmem:[#allocation11 + $0x20] sm:$0xff]  ;;  %v9238_v4 = vld [vmem:[#allocation11 + $0x28] sm:$0xff]  ;;  %v9240_v16 = vld [vmem:[#allocation11 + $0x30] sm:$0xff] }
 0x23b   :  { %v1617_v42 = vmul.f32 %v8297_v46, %v1567_v43  ;;  %v1618_v18 = vmul.f32 %v8297_v46, %v1568_v25  ;;  %v1619_v11 = vmul.f32 %v8297_v46, %v1569_v49  ;;  %v1620_v54 = vmul.f32 %v8297_v46, %v1570_v21  ;;  %v9246_v21 = vld [vmem:[#allocation9 + $0x38] sm:$0xff] }
 0x23c   :  { %8298 = vrsqrt.f32 %v1605_v56  ;;  %v1662_v15 = vmul.f32 %v9207_v59, %v1614_v27  ;;  %v1663_v1 = vmul.f32 %v9209_v3, %v1615_v30  ;;  %v1664_v36 = vmul.f32 %v9217_v26, %v1616_v58 }
 0x23d   :  { %v1665_v43 = vmul.f32 %v9219_v61, %v1617_v42  ;;  %v1666_v48 = vmul.f32 %v9221_v6, %v1618_v18  ;;  %v1667_v25 = vmul.f32 %v9223_v14, %v1619_v11  ;;  %v1668_v49 = vmul.f32 %v9225_v51, %v1620_v54 }
 0x23e   :  { %v1710_v56 = vadd.f32 %v9215_v17, %v1662_v15  ;;  %v1711_v27 = vadd.f32 %v9227_v10, %v1663_v1  ;;  %v1712_v30 = vadd.f32 %v9229_v31, %v1664_v36  ;;  %v1621_v58 = vmul.f32 %v8297_v46, %v1571_v45  ;;  %v2489_v46 = vld [vmem:[#allocation6 + $0x2f0] sm:$0xff]  ;;  %v9258_v45 = vld [vmem:[#allocation11 + $0x38] sm:$0xff]  ;;  %v2488_v1 = vld [vmem:[#allocation6 + $0x2e8] sm:$0xff] }
 0x23f   :  { %v1419_v34 = vpop.xlane.xlu0 %1418  ;;  %v1713_v24 = vadd.f32 %v9231_v29, %v1665_v43  ;;  %v1714_v42 = vadd.f32 %v9236_v57, %v1666_v48  ;;  %v1715_v18 = vadd.f32 %v9238_v4, %v1667_v25  ;;  %v1716_v11 = vadd.f32 %v9240_v16, %v1668_v49 }
 0x240   :  { %v9255_v19 = vmul.f32 0.00017361112, %v1419_v34  ;;  %1750 = vst [vmem:[#allocation2 + $0x8] sm:$0xff] %v1710_v56  ;;  %7489 = vmatprep.mubr.f32.mxu1 %v1710_v56  ;;  %1751 = vst [vmem:[#allocation2 + $0x10] sm:$0xff] %v1711_v27  ;;  %v1669_v54 = vmul.f32 %v9246_v21, %v1621_v58  ;;  %v1572_v25 = vsub.f32 %v8924_v7, %v9199_v50 }
 0x241   :  { %1752 = vst [vmem:[#allocation2 + $0x18] sm:$0xff] %v1712_v30  ;;  %7490 = vmatmul.mubr.f32.vlgmr.msra.gmra.mxu1 %v1711_v27  ;;  %1753 = vst [vmem:[#allocation2 + $0x20] sm:$0xff] %v1713_v24  ;;  %v1573_v49 = vsub.f32 %v8917_v40, %v9199_v50  ;;  %v1574_v27 = vsub.f32 %v8951_v41, %v9199_v50  ;;  %v1577_v40 = vsub.f32 %v8962_v62, %v9199_v50 }
 0x242   :  { %1754 = vst [vmem:[#allocation2 + $0x28] sm:$0xff] %v1714_v42  ;;  %1755 = vst [vmem:[#allocation2 + $0x30] sm:$0xff] %v1715_v18  ;;  %v1534_v48 = vpop.xlane.xlu1 %1533  ;;  %7492 = vmatprep.mubr.f32.mxu1 %v1712_v30  ;;  %7642 = vmatpush3.msra.mxu1 %v9196_v23  ;;  %v1551_v15 = vmul.f32 %v9255_v19, %v9255_v19  ;;  %v1717_v36 = vadd.f32 %v9258_v45, %v1669_v54 }
 0x243   :  { %1756 = vst [vmem:[#allocation2 + $0x38] sm:$0xff] %v1716_v11  ;;  %v1546_v34 = vmul.f32 0.00017361112, %v1534_v48  ;;  %7643 = vmatprep.subr.mxu1 %v2489_v46  ;;  %v1575_v30 = vsub.f32 %v8944_v52, %v9199_v50  ;;  %v1578_v54 = vsub.f32 %v8985_v22, %v9199_v50  ;;  %v1579_v41 = vsub.f32 %v8983_v8, %v9199_v50 }
 0x244   :  { %7644 = vmatpush3.msra.mxu1 %v2489_v46  ;;  %1757 = vst [vmem:[#allocation2 + $0x40] sm:$0xff] %v1717_v36 }
 0x245   :  { %7493 = vmatmul.mubr.f32.gmra.mxu1 %v1713_v24  ;;  %v1556_v43 = vsub.f32 %v1546_v34, %v1551_v15  ;;  %7645 = vmatprep.subr.mxu1 %v2488_v1  ;;  %v1576_v24 = vsub.f32 %v8964_v39, %v9199_v50 }
 0x246   :  { %7495 = vmatprep.mubr.f32.mxu1 %v1714_v42  ;;  %7646 = vmatpush3.msra.mxu1 %v2488_v1  ;;  %v2487_v42 = vld [vmem:[#allocation6 + $0x2e0] sm:$0xff]  ;;  %v2486_v1 = vld [vmem:[#allocation6 + $0x2d8] sm:$0xff] }
 0x247   :  { %v1790_v23 = vld [vmem:[#allocation2 + $0x6] sm:$0xff]  ;;  %v1791_v56 = vld [vmem:[#allocation2 + $0xe] sm:$0xff]  ;;  %v1561_v58 = vmax.f32 %v1556_v43, 0.0  ;;  %7647 = vmatprep.subr.mxu1 %v2487_v42 }
 0x248   :  { %7581 = vmatprep.mubr.f32.mxu0 %v1790_v23  ;;  %v1792_v46 = vld [vmem:[#allocation2 + $0x16] sm:$0xff]  ;;  %v1793_v22 = vld [vmem:[#allocation2 + $0x1e] sm:$0xff]  ;;  %7648 = vmatpush3.msra.mxu1 %v2487_v42 }
 0x249   :  { %v8299_v7 = vpop.eup %8298  ;;  %7582 = vmatmul.mubr.f32.vlgmr.msra.gmra.mxu0 %v1791_v56  ;;  %7496 = vmatmul.mubr.f32.gmra.mxu1 %v1715_v18  ;;  %v1606_v52 = vadd.f32 1e-05, %v1561_v58  ;;  %v1794_v18 = vld [vmem:[#allocation2 + $0x26] sm:$0xff] }
 0x24a   :  { %7584 = vmatprep.mubr.f32.mxu0 %v1792_v46  ;;  %7498 = vmatprep.mubr.f32.mxu1 %v1716_v11  ;;  %v1622_v39 = vmul.f32 %v8299_v7, %v1572_v25  ;;  %v1623_v48 = vmul.f32 %v8299_v7, %v1573_v49  ;;  %v1624_v34 = vmul.f32 %v8299_v7, %v1574_v27  ;;  %v2485_v56 = vld [vmem:[#allocation6 + $0x2d0] sm:$0xff] }
 0x24b   :  { %v1625_v15 = vmul.f32 %v8299_v7, %v1575_v30  ;;  %v1626_v43 = vmul.f32 %v8299_v7, %v1576_v24  ;;  %v1627_v62 = vmul.f32 %v8299_v7, %v1577_v40  ;;  %v1628_v23 = vmul.f32 %v8299_v7, %v1578_v54  ;;  %7649 = vmatprep.subr.mxu1 %v2486_v1 }
 0x24c   :  { %8300 = vrsqrt.f32 %v1606_v52  ;;  %v1670_v13 = vmul.f32 %v9207_v59, %v1622_v39  ;;  %v1671_v8 = vmul.f32 %v9209_v3, %v1623_v48  ;;  %v1672_v50 = vmul.f32 %v9217_v26, %v1624_v34  ;;  %7650 = vmatpush3.msra.mxu1 %v2486_v1  ;;  %v1795_v52 = vld [vmem:[#allocation2 + $0x2e] sm:$0xff]  ;;  %v1796_v48 = vld [vmem:[#allocation2 + $0x36] sm:$0xff] }
 0x24d   :  { %7585 = vmatmul.mubr.f32.gmra.mxu0 %v1793_v22  ;;  %7499 = vmatmul.mubr.f32.gmra.mxu1 %v1717_v36  ;;  %v1673_v11 = vmul.f32 %v9219_v61, %v1625_v15  ;;  %v1674_v25 = vmul.f32 %v9221_v6, %v1626_v43  ;;  %v1675_v49 = vmul.f32 %v9223_v14, %v1627_v62  ;;  %v2484_v15 = vld [vmem:[#allocation6 + $0x2c8] sm:$0xff] }
 0x24e   :  { %7587 = vmatprep.mubr.f32.mxu0 %v1794_v18  ;;  %v1718_v27 = vadd.f32 %v9215_v17, %v1670_v13  ;;  %v1719_v30 = vadd.f32 %v9227_v10, %v1671_v8  ;;  %v1720_v24 = vadd.f32 %v9229_v31, %v1672_v50  ;;  %v1676_v54 = vmul.f32 %v9225_v51, %v1628_v23  ;;  %v1797_v62 = vld [vmem:[#allocation2 + $0x3e] sm:$0xff] }
 0x24f   :  { %v1421_v58 = vpop.xlane.xlu0 %1420  ;;  %v1721_v42 = vadd.f32 %v9231_v29, %v1673_v11  ;;  %v1722_v36 = vadd.f32 %v9236_v57, %v1674_v25  ;;  %v1723_v40 = vadd.f32 %v9238_v4, %v1675_v49  ;;  %7651 = vmatprep.subr.mxu1 %v2485_v56  ;;  %v1629_v13 = vmul.f32 %v8299_v7, %v1579_v41  ;;  %v2483_v41 = vld [vmem:[#allocation6 + $0x2c0] sm:$0xff] }
 0x250   :  { %v9293_v46 = vmul.f32 0.00017361112, %v1421_v58  ;;  %1758 = vst [vmem:[#allocation2 + $0x58] sm:$0xff] %v1718_v27  ;;  %7501 = vmatprep.mubr.f32.mxu1 %v1718_v27  ;;  %1759 = vst [vmem:[#allocation2 + $0x60] sm:$0xff] %v1719_v30  ;;  %v1724_v34 = vadd.f32 %v9240_v16, %v1676_v54  ;;  %7652 = vmatpush3.msra.mxu1 %v2485_v56  ;;  %v1580_v8 = vsub.f32 %v9002_v28, %v9255_v19 }
 0x251   :  { %1760 = vst [vmem:[#allocation2 + $0x68] sm:$0xff] %v1720_v24  ;;  %v1536_v39 = vpop.xlane.xlu1 %1535  ;;  %7588 = vmatmul.mubr.f32.gmra.mxu0 %v1795_v52  ;;  %7502 = vmatmul.mubr.f32.gmra.mxu1 %v1719_v30  ;;  %1761 = vst [vmem:[#allocation2 + $0x70] sm:$0xff] %v1721_v42  ;;  %v1677_v7 = vmul.f32 %v9246_v21, %v1629_v13  ;;  %v1581_v50 = vsub.f32 %v8996_v44, %v9255_v19 }
 0x252   :  { %1762 = vst [vmem:[#allocation2 + $0x78] sm:$0xff] %v1722_v36  ;;  %1763 = vst [vmem:[#allocation2 + $0x80] sm:$0xff] %v1723_v40  ;;  %7590 = vmatprep.mubr.f32.mxu0 %v1796_v48  ;;  %7504 = vmatprep.mubr.f32.mxu1 %v1720_v24  ;;  %v1547_v1 = vmul.f32 0.00017361112, %v1536_v39  ;;  %v1552_v43 = vmul.f32 %v9293_v46, %v9293_v46  ;;  %v1582_v25 = vsub.f32 %v9025_v20, %v9255_v19 }
 0x253   :  { %1764 = vst [vmem:[#allocation2 + $0x88] sm:$0xff] %v1724_v34  ;;  %v1725_v22 = vadd.f32 %v9258_v45, %v1677_v7  ;;  %7653 = vmatprep.subr.mxu1 %v2484_v15  ;;  %v1583_v49 = vsub.f32 %v9017_v32, %v9255_v19  ;;  %v1584_v56 = vsub.f32 %v9038_v47, %v9255_v19  ;;  %v2482_v32 = vld [vmem:[#allocation6 + $0x2b8] sm:$0xff] }
 0x254   :  { %v1557_v23 = vsub.f32 %v1547_v1, %v1552_v43  ;;  %7654 = vmatpush3.msra.mxu1 %v2484_v15  ;;  %v1585_v44 = vsub.f32 %v9036_v12, %v9255_v19  ;;  %v1586_v30 = vsub.f32 %v9059_v5, %v9255_v19  ;;  %v1587_v20 = vsub.f32 %v9057_v55, %v9255_v19  ;;  %v2481_v1 = vld [vmem:[#allocation6 + $0x2b0] sm:$0xff] }
 0x255   :  { %7591 = vmatmul.mubr.f32.gmra.mxu0 %v1797_v62  ;;  %7505 = vmatmul.mubr.f32.gmra.mxu1 %v1721_v42  ;;  %1765 = vst [vmem:[#allocation2 + $0x90] sm:$0xff] %v1725_v22 }
 0x256   :  { %7507 = vmatprep.mubr.f32.mxu1 %v1722_v36  ;;  %v1562_v27 = vmax.f32 %v1557_v23, 0.0  ;;  %7655 = vmatprep.subr.mxu1 %v2483_v41 }
 0x257   :  { %v1798_v18 = vld [vmem:[#allocation2 + $0x56] sm:$0xff]  ;;  %v1799_v11 = vld [vmem:[#allocation2 + $0x5e] sm:$0xff]  ;;  %7656 = vmatpush3.msra.mxu1 %v2483_v41 }
 0x258   :  { %7593 = vmatprep.mubr.f32.mxu0 %v1798_v18  ;;  %v1800_v24 = vld [vmem:[#allocation2 + $0x66] sm:$0xff]  ;;  %v1607_v58 = vadd.f32 1e-05, %v1562_v27  ;;  %v1801_v5 = vld [vmem:[#allocation2 + $0x6e] sm:$0xff]  ;;  %7657 = vmatprep.subr.mxu1 %v2482_v32 }
 0x259   :  { %v8301_v28 = vpop.eup %8300  ;;  %7594 = vmatmul.mubr.f32.gmra.mxu0 %v1799_v11  ;;  %7508 = vmatmul.mubr.f32.gmra.mxu1 %v1723_v40  ;;  %v1802_v40 = vld [vmem:[#allocation2 + $0x76] sm:$0xff] }
 0x25a   :  { %7596 = vmatprep.mubr.f32.mxu0 %v1800_v24  ;;  %7510 = vmatprep.mubr.f32.mxu1 %v1724_v34  ;;  %v1630_v47 = vmul.f32 %v8301_v28, %v1580_v8  ;;  %v1631_v42 = vmul.f32 %v8301_v28, %v1581_v50  ;;  %v1632_v36 = vmul.f32 %v8301_v28, %v1582_v25  ;;  %8302 = vrsqrt.f32 %v1607_v58  ;;  %v1803_v25 = vld [vmem:[#allocation2 + $0x7e] sm:$0xff]  ;;  %v1804_v27 = vld [vmem:[#allocation2 + $0x86] sm:$0xff]  ;;  %v2479_v58 = vld [vmem:[#allocation6 + $0x2a0] sm:$0xff] }
 0x25b   :  { %v1633_v54 = vmul.f32 %v8301_v28, %v1583_v49  ;;  %v1634_v52 = vmul.f32 %v8301_v28, %v1584_v56  ;;  %v1635_v12 = vmul.f32 %v8301_v28, %v1585_v44  ;;  %v1636_v13 = vmul.f32 %v8301_v28, %v1586_v30  ;;  %7658 = vmatpush3.msra.mxu1 %v2482_v32 }
 0x25c   :  { %v1678_v39 = vmul.f32 %v9207_v59, %v1630_v47  ;;  %v1679_v55 = vmul.f32 %v9209_v3, %v1631_v42  ;;  %v1680_v19 = vmul.f32 %v9217_v26, %v1632_v36  ;;  %v1637_v18 = vmul.f32 %v8301_v28, %v1587_v20  ;;  %7659 = vmatprep.subr.mxu1 %v2481_v1  ;;  %v2480_v28 = vld [vmem:[#allocation6 + $0x2a8] sm:$0xff]  ;;  %v1805_v24 = vld [vmem:[#allocation2 + $0x8e] sm:$0xff] }
 0x25d   :  { %7597 = vmatmul.mubr.f32.gmra.mxu0 %v1801_v5  ;;  %7511 = vmatmul.mubr.f32.gmra.mxu1 %v1725_v22  ;;  %v1681_v48 = vmul.f32 %v9219_v61, %v1633_v54  ;;  %v1682_v34 = vmul.f32 %v9221_v6, %v1634_v52  ;;  %v1683_v15 = vmul.f32 %v9223_v14, %v1635_v12 }
 0x25e   :  { %7599 = vmatprep.mubr.f32.mxu0 %v1802_v40  ;;  %v1726_v43 = vadd.f32 %v9215_v17, %v1678_v39  ;;  %v1727_v62 = vadd.f32 %v9227_v10, %v1679_v55  ;;  %v1728_v7 = vadd.f32 %v9229_v31, %v1680_v19  ;;  %v1684_v41 = vmul.f32 %v9225_v51, %v1636_v13 }
 0x25f   :  { %v1423_v23 = vpop.xlane.xlu0 %1422  ;;  %v1729_v8 = vadd.f32 %v9231_v29, %v1681_v48  ;;  %v1730_v22 = vadd.f32 %v9236_v57, %v1682_v34  ;;  %v1731_v50 = vadd.f32 %v9238_v4, %v1683_v15  ;;  %v1685_v44 = vmul.f32 %v9246_v21, %v1637_v18  ;;  %7660 = vmatpush3.msra.mxu1 %v2481_v1 }
 0x260   :  { %v9329_v11 = vmul.f32 0.00017361112, %v1423_v23  ;;  %1766 = vst [vmem:[#allocation2 + $0xa8] sm:$0xff] %v1726_v43  ;;  %7513 = vmatprep.mubr.f32.mxu1 %v1726_v43  ;;  %1767 = vst [vmem:[#allocation2 + $0xb0] sm:$0xff] %v1727_v62  ;;  %v1732_v49 = vadd.f32 %v9240_v16, %v1684_v41  ;;  %7661 = vmatprep.subr.mxu1 %v2480_v28  ;;  %v1588_v42 = vsub.f32 %v9075_v53, %v9293_v46 }
 0x261   :  { %1768 = vst [vmem:[#allocation2 + $0xb8] sm:$0xff] %v1728_v7  ;;  %v1538_v56 = vpop.xlane.xlu1 %1537  ;;  %7600 = vmatmul.mubr.f32.gmra.mxu0 %v1803_v25  ;;  %7514 = vmatmul.mubr.f32.gmra.mxu1 %v1727_v62  ;;  %1769 = vst [vmem:[#allocation2 + $0xc0] sm:$0xff] %v1729_v8  ;;  %v1733_v32 = vadd.f32 %v9258_v45, %v1685_v44  ;;  %v1589_v36 = vsub.f32 %v9070_v63, %v9293_v46 }
 0x262   :  { %1770 = vst [vmem:[#allocation2 + $0xc8] sm:$0xff] %v1730_v22  ;;  %1771 = vst [vmem:[#allocation2 + $0xd0] sm:$0xff] %v1731_v50  ;;  %7602 = vmatprep.mubr.f32.mxu0 %v1804_v27  ;;  %7516 = vmatprep.mubr.f32.mxu1 %v1728_v7  ;;  %v1548_v30 = vmul.f32 0.00017361112, %v1538_v56  ;;  %v1553_v20 = vmul.f32 %v9329_v11, %v9329_v11  ;;  %v1590_v52 = vsub.f32 %v9098_v35, %v9293_v46 }
 0x263   :  { %1772 = vst [vmem:[#allocation2 + $0xd8] sm:$0xff] %v1732_v49  ;;  %1773 = vst [vmem:[#allocation2 + $0xe0] sm:$0xff] %v1733_v32  ;;  %7662 = vmatpush3.msra.mxu1 %v2480_v28  ;;  %v1591_v12 = vsub.f32 %v9090_v33, %v9293_v46  ;;  %v1592_v13 = vsub.f32 %v9111_v9, %v9293_v46  ;;  %v1593_v53 = vsub.f32 %v9109_v60, %v9293_v46  ;;  %v2478_v33 = vld [vmem:[#allocation6 + $0x298] sm:$0xff] }
 0x264   :  { %v1558_v47 = vsub.f32 %v1548_v30, %v1553_v20  ;;  %7663 = vmatprep.subr.mxu1 %v2479_v58  ;;  %v1594_v63 = vsub.f32 %v9132_v37, %v9293_v46  ;;  %v1595_v35 = vsub.f32 %v9130_v0, %v9293_v46 }
 0x265   :  { %7603 = vmatmul.mubr.f32.gmra.mxu0 %v1805_v24  ;;  %7517 = vmatmul.mubr.f32.gmra.mxu1 %v1729_v8 }
 0x266   :  { %7519 = vmatprep.mubr.f32.mxu1 %v1730_v22  ;;  %v1563_v5 = vmax.f32 %v1558_v47, 0.0  ;;  %7664 = vmatpush3.msra.mxu1 %v2479_v58  ;;  %v2477_v22 = vld [vmem:[#allocation6 + $0x290] sm:$0xff]  ;;  %v2476_v58 = vld [vmem:[#allocation6 + $0x288] sm:$0xff] }
 0x267   :  { %v1806_v54 = vld [vmem:[#allocation2 + $0xa6] sm:$0xff]  ;;  %v1807_v39 = vld [vmem:[#allocation2 + $0xae] sm:$0xff]  ;;  %v8303_v55 = vpop.eup %8302  ;;  %7665 = vmatprep.subr.mxu1 %v2478_v33 }
 0x268   :  { %7605 = vmatprep.mubr.f32.mxu0 %v1806_v54  ;;  %v1808_v19 = vld [vmem:[#allocation2 + $0xb6] sm:$0xff]  ;;  %v1608_v40 = vadd.f32 1e-05, %v1563_v5  ;;  %v1638_v9 = vmul.f32 %v8303_v55, %v1588_v42  ;;  %v1639_v48 = vmul.f32 %v8303_v55, %v1589_v36  ;;  %v1640_v34 = vmul.f32 %v8303_v55, %v1590_v52  ;;  %v1809_v37 = vld [vmem:[#allocation2 + $0xbe] sm:$0xff]  ;;  %7666 = vmatpush3.msra.mxu1 %v2478_v33 }
 0x269   :  { %7606 = vmatmul.mubr.f32.gmra.mxu0 %v1807_v39  ;;  %7520 = vmatmul.mubr.f32.gmra.mxu1 %v1731_v50  ;;  %v1641_v15 = vmul.f32 %v8303_v55, %v1591_v12  ;;  %v1642_v1 = vmul.f32 %v8303_v55, %v1592_v13  ;;  %v1643_v43 = vmul.f32 %v8303_v55, %v1593_v53  ;;  %v1810_v7 = vld [vmem:[#allocation2 + $0xc6] sm:$0xff]  ;;  %v1811_v30 = vld [vmem:[#allocation2 + $0xce] sm:$0xff]  ;;  %v11925_v5 = vld [vmem:[#allocation18_spill] sm:$0xff] }
 0x26a   :  { %7608 = vmatprep.mubr.f32.mxu0 %v1808_v19  ;;  %7522 = vmatprep.mubr.f32.mxu1 %v1732_v49  ;;  %v1644_v60 = vmul.f32 %v8303_v55, %v1594_v63  ;;  %8304 = vrsqrt.f32 %v1608_v40  ;;  %v1686_v62 = vmul.f32 %v9207_v59, %v1638_v9  ;;  %v1687_v0 = vmul.f32 %v9209_v3, %v1639_v48  ;;  %v1812_v24 = vld [vmem:[#allocation2 + $0xd6] sm:$0xff]  ;;  %v1813_v42 = vld [vmem:[#allocation2 + $0xde] sm:$0xff]  ;;  %v11926_v53 = vld [vmem:[#allocation20_spill] sm:$0xff] }
 0x26b   :  { %v1688_v46 = vmul.f32 %v9217_v26, %v1640_v34  ;;  %v1689_v41 = vmul.f32 %v9219_v61, %v1641_v15  ;;  %v1690_v23 = vmul.f32 %v9221_v6, %v1642_v1  ;;  %v1691_v8 = vmul.f32 %v9223_v14, %v1643_v43  ;;  %7667 = vmatprep.subr.mxu1 %v2477_v22  ;;  %v2475_v36 = vld [vmem:[#allocation6 + $0x280] sm:$0xff]  ;;  %v11929_v48 = vld [vmem:[#allocation22_spill] sm:$0xff] }
 0x26c   :  { %v1734_v50 = vadd.f32 %v9215_v17, %v1686_v62  ;;  %v1735_v18 = vadd.f32 %v9227_v10, %v1687_v0  ;;  %v1692_v49 = vmul.f32 %v9225_v51, %v1644_v60  ;;  %v1645_v28 = vmul.f32 %v8303_v55, %v1595_v35  ;;  %7668 = vmatpush3.msra.mxu1 %v2477_v22  ;;  %v11924_v52 = vld [vmem:[#allocation17_spill] sm:$0xff] }
 0x26d   :  { %7609 = vmatmul.mubr.f32.gmra.mxu0 %v1809_v37  ;;  %7523 = vmatmul.mubr.f32.gmra.mxu1 %v1733_v32  ;;  %v1736_v25 = vadd.f32 %v9229_v31, %v1688_v46  ;;  %v1737_v56 = vadd.f32 %v9231_v29, %v1689_v41  ;;  %v1738_v27 = vadd.f32 %v9236_v57, %v1690_v23  ;;  %v11928_v40 = vld [vmem:[#allocation21_spill] sm:$0xff] }
 0x26e   :  { %7611 = vmatprep.mubr.f32.mxu0 %v1810_v7  ;;  %v1739_v44 = vadd.f32 %v9238_v4, %v1691_v8  ;;  %1774 = vst [vmem:[#allocation2 + $0xf8] sm:$0xff] %v1734_v50  ;;  %7525 = vmatprep.mubr.f32.mxu1 %v1734_v50  ;;  %1775 = vst [vmem:[#allocation2 + $0x100] sm:$0xff] %v1735_v18  ;;  %v1740_v20 = vadd.f32 %v9240_v16, %v1692_v49 }
 0x26f   :  { %1776 = vst [vmem:[#allocation2 + $0x108] sm:$0xff] %v1736_v25  ;;  %1777 = vst [vmem:[#allocation2 + $0x110] sm:$0xff] %v1737_v56  ;;  %v1693_v32 = vmul.f32 %v9246_v21, %v1645_v28  ;;  %7669 = vmatprep.subr.mxu1 %v2476_v58  ;;  %v1596_v54 = vsub.f32 %v9143_v2, %v9329_v11  ;;  %v1597_v12 = vsub.f32 %v11924_v52, %v9329_v11  ;;  %v11927_v2 = vld [vmem:[#allocation19_spill] sm:$0xff] }
 0x270   :  { %1778 = vst [vmem:[#allocation2 + $0x118] sm:$0xff] %v1738_v27  ;;  %1779 = vst [vmem:[#allocation2 + $0x120] sm:$0xff] %v1739_v44  ;;  %7670 = vmatpush3.msra.mxu1 %v2476_v58  ;;  %v1598_v39 = vsub.f32 %v11925_v5, %v9329_v11  ;;  %v1599_v55 = vsub.f32 %v9156_v38, %v9329_v11  ;;  %v1600_v63 = vsub.f32 %v11926_v53, %v9329_v11  ;;  %v2439_v58 = vld [vmem:[#allocation2 + $0x32] sm:$0xff]  ;;  %v2444_v52 = vld [vmem:[#allocation2 + $0x6a] sm:$0xff] }
 0x271   :  { %7612 = vmatmul.mubr.f32.gmra.mxu0 %v1811_v30  ;;  %7526 = vmatmul.mubr.f32.gmra.mxu1 %v1735_v18  ;;  %1780 = vst [vmem:[#allocation2 + $0x128] sm:$0xff] %v1740_v20  ;;  %v1741_v47 = vadd.f32 %v9258_v45, %v1693_v32  ;;  %v1601_v33 = vsub.f32 %v11927_v2, %v9329_v11  ;;  %v2436_v30 = vld [vmem:[#allocation2 + $0x1a] sm:$0xff]  ;;  %v2438_v32 = vld [vmem:[#allocation2 + $0x2a] sm:$0xff]  ;;  %v2447_v5 = vld [vmem:[#allocation2 + $0x82] sm:$0xff] }
 0x272   :  { %7614 = vmatprep.mubr.f32.mxu0 %v1812_v24  ;;  %7528 = vmatprep.mubr.f32.mxu1 %v1736_v25  ;;  %v1602_v9 = vsub.f32 %v11928_v40, %v9329_v11  ;;  %v1603_v34 = vsub.f32 %v11929_v48, %v9329_v11  ;;  %v2437_v24 = vld [vmem:[#allocation2 + $0x22] sm:$0xff]  ;;  %v2450_v53 = vld [vmem:[#allocation2 + $0xaa] sm:$0xff]  ;;  %v2456_v40 = vld [vmem:[#allocation2 + $0xda] sm:$0xff] }
 0x273   :  { %1781 = vst [vmem:[#allocation2 + $0x130] sm:$0xff] %v1741_v47  ;;  %7671 = vmatprep.subr.mxu1 %v2475_v36  ;;  %v2454_v2 = vld [vmem:[#allocation2 + $0xca] sm:$0xff] }
 0x274   :  { %7672 = vmatpush3.msra.mxu1 %v2475_v36  ;;  %v2442_v36 = vld [vmem:[#allocation2 + $0x5a] sm:$0xff] }
 0x275   :  { %7615 = vmatmul.mubr.f32.gmra.mxu0 %v1813_v42  ;;  %7529 = vmatmul.mubr.f32.gmra.mxu1 %v1737_v56  ;;  %v1814_v13 = vld [vmem:[#allocation2 + $0xf6] sm:$0xff]  ;;  %v1815_v35 = vld [vmem:[#allocation2 + $0xfe] sm:$0xff] }
 0x276   :  { %7531 = vmatprep.mubr.f32.mxu1 %v1738_v27  ;;  %7617 = vmatprep.mubr.f32.mxu0 %v1814_v13  ;;  %v1816_v15 = vld [vmem:[#allocation2 + $0x106] sm:$0xff]  ;;  %v1817_v46 = vld [vmem:[#allocation2 + $0x10e] sm:$0xff]  ;;  %v2446_v13 = vld [vmem:[#allocation2 + $0x7a] sm:$0xff] }
 0x277   :  { %v8305_v19 = vpop.eup %8304  ;;  %v1818_v8 = vld [vmem:[#allocation2 + $0x116] sm:$0xff]  ;;  %v2441_v42 = vld [vmem:[#allocation2 + $0x42] sm:$0xff] }
 0x278   :  { %v1646_v38 = vmul.f32 %v8305_v19, %v1596_v54  ;;  %v1647_v1 = vmul.f32 %v8305_v19, %v1597_v12  ;;  %v1648_v43 = vmul.f32 %v8305_v19, %v1598_v39  ;;  %v1649_v60 = vmul.f32 %v8305_v19, %v1599_v55  ;;  %v2443_v54 = vld [vmem:[#allocation2 + $0x62] sm:$0xff]  ;;  %v2445_v12 = vld [vmem:[#allocation2 + $0x72] sm:$0xff]  ;;  %v2448_v39 = vld [vmem:[#allocation2 + $0x8a] sm:$0xff] }
 0x279   :  { %7618 = vmatmul.mubr.f32.gmra.mxu0 %v1815_v35  ;;  %7532 = vmatmul.mubr.f32.gmra.mxu1 %v1739_v44  ;;  %v1650_v37 = vmul.f32 %v8305_v19, %v1600_v63  ;;  %v1651_v62 = vmul.f32 %v8305_v19, %v1601_v33  ;;  %v1652_v0 = vmul.f32 %v8305_v19, %v1602_v9  ;;  %v2435_v44 = vld [vmem:[#allocation2 + $0x12] sm:$0xff]  ;;  %v2452_v35 = vld [vmem:[#allocation2 + $0xba] sm:$0xff]  ;;  %v2457_v9 = vld [vmem:[#allocation2 + $0xe2] sm:$0xff] }
 0x27a   :  { %7620 = vmatprep.mubr.f32.mxu0 %v1816_v15  ;;  %7534 = vmatprep.mubr.f32.mxu1 %v1740_v20  ;;  %v1694_v7 = vmul.f32 %v9207_v59, %v1646_v38  ;;  %v1695_v41 = vmul.f32 %v9209_v3, %v1647_v1  ;;  %v1696_v23 = vmul.f32 %v9217_v26, %v1648_v43  ;;  %v2449_v55 = vld [vmem:[#allocation2 + $0x92] sm:$0xff]  ;;  %v2458_v48 = vld [vmem:[#allocation2 + $0xfa] sm:$0xff]  ;;  %v2460_v15 = vld [vmem:[#allocation2 + $0x10a] sm:$0xff] }
 0x27b   :  { %v1653_v11 = vmul.f32 %v8305_v19, %v1603_v34  ;;  %v1697_v22 = vmul.f32 %v9219_v61, %v1649_v60  ;;  %v1698_v50 = vmul.f32 %v9221_v6, %v1650_v37  ;;  %v1699_v18 = vmul.f32 %v9223_v14, %v1651_v62  ;;  %v1819_v6 = vld [vmem:[#allocation2 + $0x11e] sm:$0xff]  ;;  %v1820_v14 = vld [vmem:[#allocation2 + $0x126] sm:$0xff]  ;;  %v2451_v63 = vld [vmem:[#allocation2 + $0xb2] sm:$0xff] }
 0x27c   :  { %v1742_v25 = vadd.f32 %v9215_v17, %v1694_v7  ;;  %v1743_v49 = vadd.f32 %v9227_v10, %v1695_v41  ;;  %v1744_v59 = vadd.f32 %v9229_v31, %v1696_v23  ;;  %v1700_v3 = vmul.f32 %v9225_v51, %v1652_v0  ;;  %v1821_v10 = vld [vmem:[#allocation2 + $0x12e] sm:$0xff]  ;;  %v2453_v19 = vld [vmem:[#allocation2 + $0xc2] sm:$0xff]  ;;  %v2462_v1 = vld [vmem:[#allocation2 + $0x11a] sm:$0xff] }
 0x27d   :  { %7621 = vmatmul.mubr.f32.gmra.mxu0 %v1817_v46  ;;  %7535 = vmatmul.mubr.f32.gmra.mxu1 %v1741_v47  ;;  %v1745_v26 = vadd.f32 %v9231_v29, %v1697_v22  ;;  %v1746_v56 = vadd.f32 %v9236_v57, %v1698_v50  ;;  %v1747_v27 = vadd.f32 %v9238_v4, %v1699_v18  ;;  %v2440_v47 = vld [vmem:[#allocation2 + $0x3a] sm:$0xff]  ;;  %v2455_v33 = vld [vmem:[#allocation2 + $0xd2] sm:$0xff]  ;;  %v2459_v34 = vld [vmem:[#allocation2 + $0x102] sm:$0xff] }
 0x27e   :  { %7623 = vmatprep.mubr.f32.mxu0 %v1818_v8  ;;  %v1701_v61 = vmul.f32 %v9246_v21, %v1653_v11  ;;  %1782 = vst [vmem:[#allocation2 + $0x148] sm:$0xff] %v1742_v25  ;;  %7537 = vmatprep.mubr.f32.mxu1 %v1742_v25  ;;  %1783 = vst [vmem:[#allocation2 + $0x150] sm:$0xff] %v1743_v49  ;;  %v1748_v17 = vadd.f32 %v9240_v16, %v1700_v3  ;;  %v2434_v21 = vld [vmem:[#allocation2 + $0xa] sm:$0xff]  ;;  %v2461_v38 = vld [vmem:[#allocation2 + $0x112] sm:$0xff] }
 0x27f   :  { %1784 = vst [vmem:[#allocation2 + $0x158] sm:$0xff] %v1744_v59  ;;  %1785 = vst [vmem:[#allocation2 + $0x160] sm:$0xff] %v1745_v26  ;;  %v2463_v43 = vld [vmem:[#allocation2 + $0x122] sm:$0xff]  ;;  %v2464_v60 = vld [vmem:[#allocation2 + $0x12a] sm:$0xff] }
 0x280   :  { %1786 = vst [vmem:[#allocation2 + $0x168] sm:$0xff] %v1746_v56  ;;  %1787 = vst [vmem:[#allocation2 + $0x170] sm:$0xff] %v1747_v27  ;;  %v1749_v51 = vadd.f32 %v9258_v45, %v1701_v61  ;;  %v2465_v37 = vld [vmem:[#allocation2 + $0x132] sm:$0xff] }
 0x281   :  { %7624 = vmatmul.mubr.f32.gmra.mxu0 %v1819_v6  ;;  %7538 = vmatmul.mubr.f32.gmra.mxu1 %v1743_v49  ;;  %1788 = vst [vmem:[#allocation2 + $0x178] sm:$0xff] %v1748_v17 }
 0x282   :  { %7626 = vmatprep.mubr.f32.mxu0 %v1820_v14  ;;  %7540 = vmatprep.mubr.f32.mxu1 %v1744_v59  ;;  %1789 = vst [vmem:[#allocation2 + $0x180] sm:$0xff] %v1749_v51 }
 0x285   :  { %7627 = vmatmul.mubr.f32.gmra.mxu0 %v1821_v10  ;;  %7541 = vmatmul.mubr.f32.gmra.mxu1 %v1745_v26  ;;  %v1822_v31 = vld [vmem:[#allocation2 + $0x146] sm:$0xff]  ;;  %v1823_v29 = vld [vmem:[#allocation2 + $0x14e] sm:$0xff] }
 0x286   :  { %7543 = vmatprep.mubr.f32.mxu1 %v1746_v56  ;;  %7629 = vmatprep.mubr.f32.mxu0 %v1822_v31  ;;  %v1824_v57 = vld [vmem:[#allocation2 + $0x156] sm:$0xff]  ;;  %v1825_v4 = vld [vmem:[#allocation2 + $0x15e] sm:$0xff]  ;;  %v2466_v62 = vld [vmem:[#allocation2 + $0x14a] sm:$0xff] }
 0x287   :  { %v1826_v16 = vld [vmem:[#allocation2 + $0x166] sm:$0xff]  ;;  %v1827_v45 = vld [vmem:[#allocation2 + $0x16e] sm:$0xff]  ;;  %v2468_v46 = vld [vmem:[#allocation2 + $0x15a] sm:$0xff] }
 0x288   :  { %v1828_v28 = vld [vmem:[#allocation2 + $0x176] sm:$0xff]  ;;  %v2469_v7 = vld [vmem:[#allocation2 + $0x162] sm:$0xff]  ;;  %v2470_v41 = vld [vmem:[#allocation2 + $0x16a] sm:$0xff] }
 0x289   :  { %7630 = vmatmul.mubr.f32.gmra.mxu0 %v1823_v29  ;;  %7544 = vmatmul.mubr.f32.gmra.mxu1 %v1747_v27  ;;  %v1829_v20 = vld [vmem:[#allocation2 + $0x17e] sm:$0xff]  ;;  %v2467_v0 = vld [vmem:[#allocation2 + $0x152] sm:$0xff] }
 0x28a   :  { %7632 = vmatprep.mubr.f32.mxu0 %v1824_v57  ;;  %7546 = vmatprep.mubr.f32.mxu1 %v1748_v17  ;;  %v2471_v23 = vld [vmem:[#allocation2 + $0x172] sm:$0xff]  ;;  %v2472_v11 = vld [vmem:[#allocation2 + $0x17a] sm:$0xff]  ;;  %v2473_v8 = vld [vmem:[#allocation2 + $0x182] sm:$0xff] }
 0x28d   :  { %7633 = vmatmul.mubr.f32.gmra.mxu0 %v1825_v4  ;;  %7547 = vmatmul.mubr.f32.gmra.mxu1 %v1749_v51 }
 0x28e   :  { %7635 = vmatprep.mubr.f32.mxu0 %v1826_v16  ;;  %7673 = vmatprep.mubr.f32.mxu1 %v2434_v21 }
 0x291   :  { %7636 = vmatmul.mubr.f32.gmra.mxu0 %v1827_v45  ;;  %7674 = vmatmul.mubr.f32.vlgmr.msra.gmra.mxu1 %v2435_v44 }
 0x292   :  { %7638 = vmatprep.mubr.f32.mxu0 %v1828_v28  ;;  %7676 = vmatprep.mubr.f32.mxu1 %v2436_v30 }
 0x295   :  { %7639 = vmatmul.mubr.f32.gmra.mxu0 %v1829_v20  ;;  %7677 = vmatmul.mubr.f32.gmra.mxu1 %v2437_v24 }
 0x296   :  { %7679 = vmatprep.mubr.f32.mxu1 %v2438_v32 }
 0x299   :  { %7680 = vmatmul.mubr.f32.gmra.mxu1 %v2439_v58 }
 0x29a   :  { %7682 = vmatprep.mubr.f32.mxu1 %v2440_v47 }
 0x29d   :  { %7683 = vmatmul.mubr.f32.gmra.mxu1 %v2441_v42 }
 0x29e   :  { %7685 = vmatprep.mubr.f32.mxu1 %v2442_v36 }
 0x2a1   :  { %7686 = vmatmul.mubr.f32.gmra.mxu1 %v2443_v54 }
 0x2a2   :  { %7688 = vmatprep.mubr.f32.mxu1 %v2444_v52 }
 0x2a5   :  { %7689 = vmatmul.mubr.f32.gmra.mxu1 %v2445_v12 }
 0x2a6   :  { %7691 = vmatprep.mubr.f32.mxu1 %v2446_v13 }
 0x2a9   :  { %7692 = vmatmul.mubr.f32.gmra.mxu1 %v2447_v5 }
 0x2aa   :  { %7694 = vmatprep.mubr.f32.mxu1 %v2448_v39 }
 0x2ad   :  { %7695 = vmatmul.mubr.f32.gmra.mxu1 %v2449_v55 }
 0x2ae   :  { %7697 = vmatprep.mubr.f32.mxu1 %v2450_v53 }
 0x2b1   :  { %7698 = vmatmul.mubr.f32.gmra.mxu1 %v2451_v63 }
 0x2b2   :  { %7700 = vmatprep.mubr.f32.mxu1 %v2452_v35 }
 0x2b5   :  { %7701 = vmatmul.mubr.f32.gmra.mxu1 %v2453_v19 }
 0x2b6   :  { %7703 = vmatprep.mubr.f32.mxu1 %v2454_v2 }
 0x2b9   :  { %7704 = vmatmul.mubr.f32.gmra.mxu1 %v2455_v33  ;;  %v3480_v33 = vld [vmem:[#allocation6 + $0x3f8] sm:$0xff] }
 0x2ba   :  { %7706 = vmatprep.mubr.f32.mxu1 %v2456_v40  ;;  %v3479_v40 = vld [vmem:[#allocation6 + $0x3f0] sm:$0xff]  ;;  %7733 = vmatprep.subr.mxu0 %v3480_v33 }
 0x2bb   :  { %7734 = vmatpush3.msra.mxu0 %v3480_v33 }
 0x2bc   :  { %7735 = vmatprep.subr.mxu0 %v3479_v40 }
 0x2bd   :  { %7707 = vmatmul.mubr.f32.gmra.mxu1 %v2457_v9  ;;  %7736 = vmatpush3.msra.mxu0 %v3479_v40 }
 0x2be   :  { %7709 = vmatprep.mubr.f32.mxu1 %v2458_v48  ;;  %v3478_v48 = vld [vmem:[#allocation6 + $0x3e8] sm:$0xff] }
 0x2bf   :  { %7737 = vmatprep.subr.mxu0 %v3478_v48 }
 0x2c0   :  { %7738 = vmatpush3.msra.mxu0 %v3478_v48 }
 0x2c1   :  { %7710 = vmatmul.mubr.f32.gmra.mxu1 %v2459_v34 }
 0x2c2   :  { %7712 = vmatprep.mubr.f32.mxu1 %v2460_v15 }
 0x2c5   :  { %7713 = vmatmul.mubr.f32.gmra.mxu1 %v2461_v38  ;;  %v3477_v38 = vld [vmem:[#allocation6 + $0x3e0] sm:$0xff] }
 0x2c6   :  { %7715 = vmatprep.mubr.f32.mxu1 %v2462_v1  ;;  %7739 = vmatprep.subr.mxu0 %v3477_v38 }
 0x2c7   :  { %7740 = vmatpush3.msra.mxu0 %v3477_v38 }
 0x2c9   :  { %7716 = vmatmul.mubr.f32.gmra.mxu1 %v2463_v43  ;;  %v3476_v43 = vld [vmem:[#allocation6 + $0x3d8] sm:$0xff] }
 0x2ca   :  { %7718 = vmatprep.mubr.f32.mxu1 %v2464_v60  ;;  %7741 = vmatprep.subr.mxu0 %v3476_v43 }
 0x2cb   :  { %7742 = vmatpush3.msra.mxu0 %v3476_v43 }
 0x2cd   :  { %7719 = vmatmul.mubr.f32.gmra.mxu1 %v2465_v37 }
 0x2ce   :  { %7721 = vmatprep.mubr.f32.mxu1 %v2466_v62  ;;  %v3475_v62 = vld [vmem:[#allocation6 + $0x3d0] sm:$0xff] }
 0x2cf   :  { %7743 = vmatprep.subr.mxu0 %v3475_v62 }
 0x2d0   :  { %7744 = vmatpush3.msra.mxu0 %v3475_v62 }
 0x2d1   :  { %7722 = vmatmul.mubr.f32.gmra.mxu1 %v2467_v0 }
 0x2d2   :  { %7724 = vmatprep.mubr.f32.mxu1 %v2468_v46  ;;  %v3474_v46 = vld [vmem:[#allocation6 + $0x3c8] sm:$0xff] }
 0x2d3   :  { %7745 = vmatprep.subr.mxu0 %v3474_v46 }
 0x2d4   :  { %7746 = vmatpush3.msra.mxu0 %v3474_v46 }
 0x2d5   :  { %7725 = vmatmul.mubr.f32.gmra.mxu1 %v2469_v7 }
 0x2d6   :  { %7727 = vmatprep.mubr.f32.mxu1 %v2470_v41 }
 0x2d9   :  { %7728 = vmatmul.mubr.f32.gmra.mxu1 %v2471_v23  ;;  %v3473_v23 = vld [vmem:[#allocation6 + $0x3c0] sm:$0xff] }
 0x2da   :  { %7730 = vmatprep.mubr.f32.mxu1 %v2472_v11  ;;  %7747 = vmatprep.subr.mxu0 %v3473_v23 }
 0x2db   :  { %7748 = vmatpush3.msra.mxu0 %v3473_v23 }
 0x2dd   :  { %7731 = vmatmul.mubr.f32.gmra.mxu1 %v2473_v8  ;;  %v3472_v8 = vld [vmem:[#allocation6 + $0x3b8] sm:$0xff] }
 0x2de   :  { %7749 = vmatprep.subr.mxu0 %v3472_v8 }
 0x2df   :  { %7750 = vmatpush3.msra.mxu0 %v3472_v8 }
 0x301   :  { %v9400_v22 = vpop.f32.mrf.mxu1 }
 0x303   :  { %v9402_v50 = vpop.f32.mrf.mxu1 }
 0x305   :  { %v9404_v18 = vpop.f32.mrf.mxu1 }
 0x307   :  { %v9406_v25 = vpop.f32.mrf.mxu1 }
 0x309   :  { %v9408_v49 = vpop.f32.mrf.mxu0  ;;  %v9410_v59 = vpop.f32.mrf.mxu1 }
 0x30a   :  { %v2241_v46 = vadd.f32 %v9408_v49, %v9400_v22 }
 0x30b   :  { %v9412_v3 = vpop.f32.mrf.mxu0  ;;  %v9414_v26 = vpop.f32.mrf.mxu1 }
 0x30c   :  { %v2236_v23 = vadd.f32 %v9412_v3, %v9402_v50 }
 0x30d   :  { %v9416_v56 = vpop.f32.mrf.mxu0  ;;  %v9418_v27 = vpop.f32.mrf.mxu1 }
 0x30e   :  { %v2251_v8 = vadd.f32 %v9416_v56, %v9404_v18 }
 0x30f   :  { %v9420_v61 = vpop.f32.mrf.mxu0  ;;  %v9422_v6 = vpop.f32.mrf.mxu1 }
 0x311   :  { %v9424_v17 = vpop.f32.mrf.mxu0  ;;  %v9426_v14 = vpop.f32.mrf.mxu1 }
 0x312   :  { %v2261_v50 = vadd.f32 %v9424_v17, %v9410_v59 }
 0x313   :  { %v9428_v51 = vpop.f32.mrf.mxu0  ;;  %v9430_v10 = vpop.f32.mrf.mxu1 }
 0x314   :  { %v2256_v18 = vadd.f32 %v9428_v51, %v9414_v26 }
 0x315   :  { %v9432_v31 = vpop.f32.mrf.mxu0  ;;  %v9434_v29 = vpop.f32.mrf.mxu1 }
 0x317   :  { %v9436_v57 = vpop.f32.mrf.mxu1  ;;  %v9438_v4 = vpop.f32.mrf.mxu0 }
 0x319   :  { %v9440_v16 = vpop.f32.mrf.mxu1  ;;  %v9444_v45 = vpop.f32.mrf.mxu0 }
 0x31a   :  { %v2281_v59 = vadd.f32 %v9444_v45, %v9426_v14 }
 0x31b   :  { %v9442_v21 = vpop.f32.mrf.mxu1  ;;  %v9450_v30 = vpop.f32.mrf.mxu0 }
 0x31d   :  { %v9446_v44 = vpop.f32.mrf.mxu1  ;;  %v9456_v32 = vpop.f32.mrf.mxu0 }
 0x31e   :  { %v2291_v26 = vadd.f32 %v9456_v32, %v9434_v29 }
 0x31f   :  { %v9448_v28 = vpop.f32.mrf.mxu1  ;;  %v9462_v42 = vpop.f32.mrf.mxu0 }
 0x321   :  { %v9452_v20 = vpop.f32.mrf.mxu1  ;;  %v9468_v52 = vpop.f32.mrf.mxu0 }
 0x323   :  { %v9454_v24 = vpop.f32.mrf.mxu1  ;;  %v9474_v5 = vpop.f32.mrf.mxu0 }
 0x325   :  { %v9458_v58 = vpop.f32.mrf.mxu1  ;;  %v9480_v53 = vpop.f32.mrf.mxu0 }
 0x326   :  { %v9585_v32 = vadd.f32 %v9480_v53, %v9446_v44 }
 0x327   :  { %v9460_v47 = vpop.f32.mrf.mxu1  ;;  %v9486_v19 = vpop.f32.mrf.mxu0 }
 0x329   :  { %v9464_v36 = vpop.f32.mrf.mxu1  ;;  %v9492_v34 = vpop.f32.mrf.mxu0 }
 0x32b   :  { %v9466_v54 = vpop.f32.mrf.mxu1  ;;  %v9498_v60 = vpop.f32.mrf.mxu0 }
 0x32d   :  { %v9470_v12 = vpop.f32.mrf.mxu1  ;;  %v9504_v7 = vpop.f32.mrf.mxu0 }
 0x32f   :  { %v9472_v13 = vpop.f32.mrf.mxu1  ;;  %v9510_v33 = vpop.f32.mrf.mxu0 }
 0x331   :  { %v9476_v39 = vpop.f32.mrf.mxu1  ;;  %v9516_v38 = vpop.f32.mrf.mxu0 }
 0x333   :  { %v9478_v55 = vpop.f32.mrf.mxu1 }
 0x335   :  { %v9482_v63 = vpop.f32.mrf.mxu1 }
 0x337   :  { %v9484_v35 = vpop.f32.mrf.mxu1 }
 0x339   :  { %v9488_v2 = vpop.f32.mrf.mxu1 }
 0x33b   :  { %v9490_v9 = vpop.f32.mrf.mxu1 }
 0x33c   :  { %11930 = vst [vmem:[#allocation23_spill] sm:$0xff] %v9490_v9 }
 0x33d   :  { %v9494_v15 = vpop.f32.mrf.mxu1 }
 0x33e   :  { %11931 = vst [vmem:[#allocation24_spill] sm:$0xff] %v9494_v15  ;;  %v2246_v15 = vadd.f32 %v9420_v61, %v9406_v25  ;;  %v2271_v25 = vadd.f32 %v9432_v31, %v9418_v27  ;;  %v2266_v61 = vadd.f32 %v9438_v4, %v9422_v6  ;;  %v2286_v27 = vadd.f32 %v9462_v42, %v9436_v57 }
 0x33f   :  { %v9496_v1 = vpop.f32.mrf.mxu1  ;;  %v9566_v6 = vadd.f32 %v9468_v52, %v9440_v16  ;;  %v9581_v16 = vadd.f32 %v9474_v5, %v9442_v21  ;;  %v9597_v21 = vadd.f32 %v9492_v34, %v9452_v20 }
 0x340   :  { %11932 = vst [vmem:[#allocation25_spill] sm:$0xff] %v9496_v1 }
 0x341   :  { %v9500_v37 = vpop.f32.mrf.mxu1 }
 0x342   :  { %11933 = vst [vmem:[#allocation26_spill] sm:$0xff] %v9500_v37 }
 0x343   :  { %v9502_v0 = vpop.f32.mrf.mxu1 }
 0x344   :  { %11934 = vst [vmem:[#allocation27_spill] sm:$0xff] %v9502_v0  ;;  %v9526_v0 = vld [vmem:[#allocation8 + $0x1] ss:$0 sm:$0xff] }
 0x345   :  { %v9506_v41 = vpop.f32.mrf.mxu1 }
 0x346   :  { %11935 = vst [vmem:[#allocation28_spill] sm:$0xff] %v9506_v41 }
 0x347   :  { %v9508_v11 = vpop.f32.mrf.mxu1 }
 0x348   :  { %11936 = vst [vmem:[#allocation29_spill] sm:$0xff] %v9508_v11  ;;  %v9524_v11 = vpop.f32.mrf.mxu0 }
 0x349   :  { %v9512_v40 = vpop.f32.mrf.mxu1 }
 0x34a   :  { %11937 = vst [vmem:[#allocation17_spill] sm:$0xff] %v9512_v40 }
 0x34b   :  { %v9514_v48 = vpop.f32.mrf.mxu1 }
 0x34c   :  { %11938 = vst [vmem:[#allocation18_spill] sm:$0xff] %v9514_v48 }
 0x34d   :  { %v9518_v43 = vpop.f32.mrf.mxu1 }
 0x34e   :  { %11939 = vst [vmem:[#allocation20_spill] sm:$0xff] %v9518_v43 }
 0x34f   :  { %v9520_v62 = vpop.f32.mrf.mxu1 }
 0x350   :  { %11940 = vst [vmem:[#allocation19_spill] sm:$0xff] %v9520_v62  ;;  %v9533_v62 = vpop.f32.mrf.mxu0 }
 0x351   :  { %v7675_v41 = vpop.f32.mrf.mxu1 }
 0x352   :  { %v2757_v40 = vadd.f32 %v7675_v41, %v2241_v46  ;;  %v9546_v56 = vpop.f32.mrf.mxu0 }
 0x353   :  { %v2557_v48 = vpop.f32.mrf.mxu1 }
 0x354   :  { %v2805_v43 = vadd.f32 %v9526_v0, %v2757_v40  ;;  %v2756_v37 = vadd.f32 %v2557_v48, %v2236_v23  ;;  %v2276_v48 = vadd.f32 %v9450_v30, %v9430_v10  ;;  %v9570_v31 = vpop.f32.mrf.mxu0 }
 0x355   :  { %v7678_v1 = vpop.f32.mrf.mxu1 }
 0x356   :  { %v2804_v22 = vadd.f32 %v9526_v0, %v2756_v37  ;;  %v2759_v49 = vadd.f32 %v7678_v1, %v2251_v8  ;;  %v9540_v3 = vmax.f32 %v2805_v43, 0.0  ;;  %v9590_v43 = vadd.f32 %v9486_v19, %v9448_v28 }
 0x357   :  { %v2567_v9 = vpop.f32.mrf.mxu1 }
 0x358   :  { %v9542_v41 = vmax.f32 %v2804_v22, 0.0  ;;  %v2807_v40 = vadd.f32 %v9526_v0, %v2759_v49  ;;  %v2758_v37 = vadd.f32 %v2567_v9, %v2246_v15  ;;  %v3000_v14 = vmul.f32 %v9540_v3, %v9540_v3  ;;  %v2355_v49 = vpop.f32.mrf.mxu0 }
 0x359   :  { %v7681_v1 = vpop.f32.mrf.mxu1 }
 0x35a   :  { %v2761_v17 = vadd.f32 %v7681_v1, %v2261_v50  ;;  %v2999_v51 = vmul.f32 %v9542_v41, %v9542_v41  ;;  %v2806_v9 = vadd.f32 %v9526_v0, %v2758_v37  ;;  %v2924_v29 = vadd.f32 %v9540_v3, %v9542_v41 }
 0x35b   :  { %v2577_v15 = vpop.f32.mrf.mxu1  ;;  %v9574_v4 = vmax.f32 %v2807_v40, 0.0 }
 0x35c   :  { %v2760_v10 = vadd.f32 %v2577_v15, %v2256_v18  ;;  %v9576_v45 = vmax.f32 %v2806_v9, 0.0  ;;  %v2809_v30 = vadd.f32 %v9526_v0, %v2761_v17  ;;  %v3039_v46 = vadd.f32 %v3000_v14, %v2999_v51 }
 0x35d   :  { %v7684_v57 = vpop.f32.mrf.mxu1  ;;  %v3002_v28 = vmul.f32 %v9574_v4, %v9574_v4  ;;  %v9621_v15 = vadd.f32 %v9510_v33, %v9460_v47 }
 0x35e   :  { %v2808_v42 = vadd.f32 %v9526_v0, %v2760_v10  ;;  %v2763_v52 = vadd.f32 %v7684_v57, %v2271_v25  ;;  %v2925_v23 = vadd.f32 %v2924_v29, %v9576_v45  ;;  %v3001_v8 = vmul.f32 %v9576_v45, %v9576_v45  ;;  %v7622_v29 = vpop.f32.mrf.mxu0 }
 0x35f   :  { %v2587_v22 = vpop.f32.mrf.mxu1  ;;  %v9604_v50 = vmax.f32 %v2809_v30, 0.0  ;;  %v9612_v25 = vadd.f32 %v9498_v60, %v9454_v24 }
 0x360   :  { %v9599_v44 = vmax.f32 %v2808_v42, 0.0  ;;  %v2811_v5 = vadd.f32 %v9526_v0, %v2763_v52  ;;  %v2762_v53 = vadd.f32 %v2587_v22, %v2266_v61  ;;  %v3040_v19 = vadd.f32 %v3039_v46, %v3001_v8 }
 0x361   :  { %v2926_v18 = vadd.f32 %v2925_v23, %v9574_v4  ;;  %v7687_v40 = vpop.f32.mrf.mxu1  ;;  %v9616_v61 = vadd.f32 %v9504_v7, %v9458_v58  ;;  %v3004_v24 = vmul.f32 %v9604_v50, %v9604_v50  ;;  %v9640_v52 = vadd.f32 %v9516_v38, %v9464_v36  ;;  %v9658_v38 = vpop.f32.mrf.mxu0 }
 0x362   :  { %v3003_v37 = vmul.f32 %v9599_v44, %v9599_v44  ;;  %v2851_v20 = vmax.f32 %v2811_v5, 0.0  ;;  %v2810_v34 = vadd.f32 %v9526_v0, %v2762_v53  ;;  %v2765_v1 = vadd.f32 %v7687_v40, %v2281_v59 }
 0x363   :  { %v2927_v17 = vadd.f32 %v2926_v18, %v9599_v44  ;;  %v3041_v51 = vadd.f32 %v3040_v19, %v3002_v28  ;;  %v2597_v9 = vpop.f32.mrf.mxu1  ;;  %v9644_v46 = vadd.f32 %v9524_v11, %v9466_v54  ;;  %v9649_v5 = vadd.f32 %v9533_v62, %v9470_v12 }
 0x364   :  { %v9623_v14 = vmax.f32 %v2810_v34, 0.0  ;;  %v2813_v59 = vadd.f32 %v9526_v0, %v2765_v1  ;;  %v2764_v10 = vadd.f32 %v2597_v9, %v2276_v48  ;;  %v9630_v7 = vsel %vm200_vm0, %v2851_v20, 0.0 }
 0x365   :  { %v3042_v60 = vadd.f32 %v3041_v51, %v3003_v37  ;;  %v2928_v30 = vadd.f32 %v2927_v17, %v9604_v50  ;;  %v7690_v57 = vpop.f32.mrf.mxu1  ;;  %v9656_v36 = vadd.f32 %v9546_v56, %v9472_v13  ;;  %v3006_v54 = vmul.f32 %v9630_v7, %v9630_v7  ;;  %v7625_v51 = vpop.f32.mrf.mxu0 }
 0x366   :  { %v3005_v47 = vmul.f32 %v9623_v14, %v9623_v14  ;;  %v9635_v33 = vmax.f32 %v2813_v59, 0.0  ;;  %v2812_v42 = vadd.f32 %v9526_v0, %v2764_v10  ;;  %v2767_v48 = vadd.f32 %v7690_v57, %v2291_v26 }
 0x367   :  { %v2929_v23 = vadd.f32 %v2928_v30, %v9623_v14  ;;  %v2607_v8 = vpop.f32.mrf.mxu1  ;;  %v3043_v22 = vadd.f32 %v3042_v60, %v3004_v24  ;;  %v9665_v12 = vadd.f32 %v9570_v31, %v9476_v39  ;;  %v9676_v1 = vadd.f32 %v2355_v49, %v9478_v55 }
 0x368   :  { %v9651_v53 = vmax.f32 %v2812_v42, 0.0  ;;  %v2815_v26 = vadd.f32 %v9526_v0, %v2767_v48  ;;  %v2766_v28 = vadd.f32 %v2607_v8, %v2286_v27  ;;  %v3008_v62 = vmul.f32 %v9635_v33, %v9635_v33 }
 0x369   :  { %v7693_v11 = vpop.f32.mrf.mxu1  ;;  %v2930_v19 = vadd.f32 %v2929_v23, %v9630_v7  ;;  %v3044_v18 = vadd.f32 %v3043_v22, %v3005_v47 }
 0x36a   :  { %v3007_v13 = vmul.f32 %v9651_v53, %v9651_v53  ;;  %v2814_v56 = vadd.f32 %v9526_v0, %v2766_v28  ;;  %v9672_v27 = vmax.f32 %v2815_v26, 0.0  ;;  %v2769_v40 = vadd.f32 %v7693_v11, %v9566_v6 }
 0x36b   :  { %v2617_v37 = vpop.f32.mrf.mxu1  ;;  %v2931_v20 = vrot.slane %v2930_v19, 4  ;;  %v3045_v34 = vadd.f32 %v3044_v18, %v3006_v54  ;;  %v2937_v39 = vadd.f32 %v9635_v33, %v9651_v53  ;;  %v9698_v28 = vadd.f32 %v7622_v29, %v9482_v63  ;;  %v2375_v54 = vpop.f32.mrf.mxu0 }
 0x36c   :  { %v9680_v31 = vmax.f32 %v2814_v56, 0.0  ;;  %v2768_v17 = vadd.f32 %v2617_v37, %v9581_v16  ;;  %v3052_v9 = vadd.f32 %v3008_v62, %v3007_v13  ;;  %v2817_v59 = vadd.f32 %v9526_v0, %v2769_v40 }
 0x36d   :  { %v7696_v10 = vpop.f32.mrf.mxu1  ;;  %v2932_v24 = vadd.f32 %v2931_v20, %v2930_v19  ;;  %v3046_v6 = vrot.slane %v3045_v34, 4  ;;  %v3010_v57 = vmul.f32 %v9672_v27, %v9672_v27 }
 0x36e   :  { %v2938_v60 = vadd.f32 %v2937_v39, %v9680_v31  ;;  %v3009_v55 = vmul.f32 %v9680_v31, %v9680_v31  ;;  %v2816_v49 = vadd.f32 %v9526_v0, %v2768_v17  ;;  %v2771_v30 = vadd.f32 %v7696_v10, %v9585_v32 }
 0x36f   :  { %v9691_v16 = vmax.f32 %v2817_v59, 0.0  ;;  %v2627_v47 = vpop.f32.mrf.mxu1  ;;  %v2933_v42 = vrot.slane %v2932_v24, 2  ;;  %v3047_v48 = vadd.f32 %v3046_v6, %v3045_v34  ;;  %v7628_v59 = vpop.f32.mrf.mxu0 }
 0x370   :  { %v3053_v23 = vadd.f32 %v3052_v9, %v3009_v55  ;;  %v9693_v8 = vmax.f32 %v2816_v49, 0.0  ;;  %v2939_v22 = vadd.f32 %v2938_v60, %v9672_v27  ;;  %v2819_v26 = vadd.f32 %v9526_v0, %v2771_v30 }
 0x371   :  { %v2770_v32 = vadd.f32 %v2627_v47, %v9590_v43  ;;  %v7699_v11 = vpop.f32.mrf.mxu1  ;;  %v2934_v19 = vadd.f32 %v2933_v42, %v2932_v24  ;;  %v3048_v18 = vrot.slane %v3047_v48, 2  ;;  %v3012_v43 = vmul.f32 %v9691_v16, %v9691_v16 }
 0x372   :  { %v2940_v62 = vadd.f32 %v2939_v22, %v9693_v8  ;;  %v3011_v13 = vmul.f32 %v9693_v8, %v9693_v8  ;;  %v3054_v56 = vadd.f32 %v3053_v23, %v3010_v57  ;;  %v2859_v40 = vmax.f32 %v2819_v26, 0.0 }
 0x373   :  { %v2818_v37 = vadd.f32 %v9526_v0, %v2770_v32  ;;  %v2773_v20 = vadd.f32 %v7699_v11, %v9597_v21  ;;  %v2637_v34 = vpop.f32.mrf.mxu1  ;;  %v2935_v63 = vrot.slane %v2934_v19, 1  ;;  %v3049_v29 = vadd.f32 %v3048_v18, %v3047_v48 }
 0x374   :  { %v3055_v39 = vadd.f32 %v3054_v56, %v3011_v13  ;;  %v2941_v17 = vadd.f32 %v2940_v62, %v9691_v16  ;;  %v2772_v9 = vadd.f32 %v2637_v34, %v9612_v25  ;;  %v9712_v10 = vsel %vm200_vm0, %v2859_v40, 0.0  ;;  %v11942_v13 = vld [vmem:[#allocation23_spill] sm:$0xff] }
 0x375   :  { %v9714_v24 = vmax.f32 %v2818_v37, 0.0  ;;  %v2821_v21 = vadd.f32 %v9526_v0, %v2773_v20  ;;  %v7702_v6 = vpop.f32.mrf.mxu1  ;;  %v2936_v60 = vadd.f32 %v2935_v63, %v2934_v19  ;;  %v3050_v30 = vrot.slane %v3049_v29, 1 }
 0x376   :  { %v2820_v55 = vadd.f32 %v9526_v0, %v2772_v9  ;;  %v2775_v49 = vadd.f32 %v7702_v6, %v9616_v61  ;;  %v3056_v57 = vadd.f32 %v3055_v39, %v3012_v43  ;;  %v9721_v25 = vadd.f32 %v9658_v38, %v9484_v35  ;;  %v2385_v35 = vpop.f32.mrf.mxu0 }
 0x377   :  { %v2942_v47 = vadd.f32 %v2941_v17, %v9714_v24  ;;  %v3013_v42 = vmul.f32 %v9714_v24, %v9714_v24  ;;  %v9726_v48 = vmax.f32 %v2821_v21, 0.0  ;;  %2989 = vadd.xlane.f32.xlu0 %v2936_v60  ;;  %v2647_v23 = vpop.f32.mrf.mxu1  ;;  %v3051_v32 = vadd.f32 %v3050_v30, %v3049_v29  ;;  %v11943_v29 = vld [vmem:[#allocation24_spill] sm:$0xff] }
 0x378   :  { %v9728_v22 = vmax.f32 %v2820_v55, 0.0  ;;  %v2823_v26 = vadd.f32 %v9526_v0, %v2775_v49  ;;  %v2774_v61 = vadd.f32 %v2647_v23, %v9621_v15  ;;  %v9733_v11 = vadd.f32 %v7625_v51, %v9488_v2  ;;  %v7631_v9 = vpop.f32.mrf.mxu0 }
 0x379   :  { %v3014_v38 = vmul.f32 %v9712_v10, %v9712_v10  ;;  %v7705_v19 = vpop.f32.mrf.mxu1  ;;  %v2943_v18 = vadd.f32 %v2942_v47, %v9712_v10  ;;  %v3057_v62 = vadd.f32 %v3056_v57, %v3013_v42  ;;  %v9739_v56 = vadd.f32 %v2375_v54, %v11942_v13  ;;  %3104 = vadd.xlane.f32.xlu1 %v3051_v32 }
 0x37a   :  { %v3016_v40 = vmul.f32 %v9726_v48, %v9726_v48  ;;  %v3015_v15 = vmul.f32 %v9728_v22, %v9728_v22  ;;  %v2822_v2 = vadd.f32 %v9526_v0, %v2774_v61  ;;  %v9746_v51 = vmax.f32 %v2823_v26, 0.0  ;;  %v2395_v13 = vpop.f32.mrf.mxu0 }
 0x37b   :  { %v2777_v37 = vadd.f32 %v7705_v19, %v9640_v52  ;;  %v2657_v20 = vpop.f32.mrf.mxu1  ;;  %v2944_v34 = vrot.slane %v2943_v18, 4  ;;  %v3058_v63 = vadd.f32 %v3057_v62, %v3014_v38  ;;  %v9750_v43 = vadd.f32 %v7628_v59, %v11943_v29 }
 0x37c   :  { %v2950_v54 = vadd.f32 %v9726_v48, %v9728_v22  ;;  %v9754_v39 = vmax.f32 %v2822_v2, 0.0  ;;  %v2776_v17 = vadd.f32 %v2657_v20, %v9644_v46  ;;  %v3065_v21 = vadd.f32 %v3016_v40, %v3015_v15 }
 0x37d   :  { %v2825_v6 = vadd.f32 %v9526_v0, %v2777_v37  ;;  %v7708_v60 = vpop.f32.mrf.mxu1  ;;  %v2945_v55 = vadd.f32 %v2944_v34, %v2943_v18  ;;  %v3059_v52 = vrot.slane %v3058_v63, 4  ;;  %v3018_v47 = vmul.f32 %v9746_v51, %v9746_v51  ;;  %v11944_v18 = vld [vmem:[#allocation25_spill] sm:$0xff] }
 0x37e   :  { %v2951_v49 = vadd.f32 %v2950_v54, %v9754_v39  ;;  %v3017_v59 = vmul.f32 %v9754_v39, %v9754_v39  ;;  %v2824_v30 = vadd.f32 %v9526_v0, %v2776_v17  ;;  %v2779_v57 = vadd.f32 %v7708_v60, %v9649_v5 }
 0x37f   :  { %v9765_v46 = vmax.f32 %v2825_v6, 0.0  ;;  %v2667_v42 = vpop.f32.mrf.mxu1  ;;  %v2946_v23 = vrot.slane %v2945_v55, 2  ;;  %v3060_v26 = vadd.f32 %v3059_v52, %v3058_v63  ;;  %v9772_v62 = vadd.f32 %v2385_v35, %v11944_v18  ;;  %v7634_v52 = vpop.f32.mrf.mxu0 }
 0x380   :  { %v3066_v61 = vadd.f32 %v3065_v21, %v3017_v59  ;;  %v9767_v32 = vmax.f32 %v2824_v30, 0.0  ;;  %v2952_v38 = vadd.f32 %v2951_v49, %v9746_v51  ;;  %v2827_v19 = vadd.f32 %v9526_v0, %v2779_v57 }
 0x381   :  { %v2778_v5 = vadd.f32 %v2667_v42, %v9656_v36  ;;  %v7711_v40 = vpop.f32.mrf.mxu1  ;;  %v2947_v15 = vadd.f32 %v2946_v23, %v2945_v55  ;;  %v3061_v2 = vrot.slane %v3060_v26, 2  ;;  %v3020_v36 = vmul.f32 %v9765_v46, %v9765_v46 }
 0x382   :  { %v2953_v37 = vadd.f32 %v2952_v38, %v9767_v32  ;;  %v3019_v20 = vmul.f32 %v9767_v32, %v9767_v32  ;;  %v3067_v34 = vadd.f32 %v3066_v61, %v3018_v47  ;;  %v2867_v63 = vmax.f32 %v2827_v19, 0.0  ;;  %v11945_v61 = vld [vmem:[#allocation26_spill] sm:$0xff] }
 0x383   :  { %v2826_v29 = vadd.f32 %v9526_v0, %v2778_v5  ;;  %v2781_v54 = vadd.f32 %v7711_v40, %v9665_v12  ;;  %v2677_v17 = vpop.f32.mrf.mxu1  ;;  %v2948_v35 = vrot.slane %v2947_v15, 1  ;;  %v3062_v21 = vadd.f32 %v3061_v2, %v3060_v26 }
 0x384   :  { %v3068_v6 = vadd.f32 %v3067_v34, %v3019_v20  ;;  %v2954_v60 = vadd.f32 %v2953_v37, %v9765_v46  ;;  %v2780_v55 = vadd.f32 %v2677_v17, %v9676_v1  ;;  %v9786_v49 = vsel %vm200_vm0, %v2867_v63, 0.0  ;;  %v11946_v37 = vld [vmem:[#allocation27_spill] sm:$0xff]  ;;  %v11947_v17 = vld [vmem:[#allocation28_spill] sm:$0xff] }
 0x385   :  { %v9788_v59 = vmax.f32 %v2826_v29, 0.0  ;;  %v2829_v12 = vadd.f32 %v9526_v0, %v2781_v54  ;;  %v7714_v30 = vpop.f32.mrf.mxu1  ;;  %v2949_v57 = vadd.f32 %v2948_v35, %v2947_v15  ;;  %v3063_v23 = vrot.slane %v3062_v21, 1 }
 0x386   :  { %v2828_v47 = vadd.f32 %v9526_v0, %v2780_v55  ;;  %v2783_v42 = vadd.f32 %v7714_v30, %v9698_v28  ;;  %v3069_v26 = vadd.f32 %v3068_v6, %v3020_v36  ;;  %v9794_v38 = vadd.f32 %v7631_v9, %v11945_v61  ;;  %v2405_v9 = vpop.f32.mrf.mxu0  ;;  %v11948_v30 = vld [vmem:[#allocation29_spill] sm:$0xff] }
 0x387   :  { %v2955_v1 = vadd.f32 %v2954_v60, %v9788_v59  ;;  %v3021_v19 = vmul.f32 %v9788_v59, %v9788_v59  ;;  %v9799_v18 = vmax.f32 %v2829_v12, 0.0  ;;  %2991 = vadd.xlane.f32.xlu0 %v2949_v57  ;;  %v2687_v5 = vpop.f32.mrf.mxu1  ;;  %v3064_v2 = vadd.f32 %v3063_v23, %v3062_v21 }
 0x388   :  { %v9801_v40 = vmax.f32 %v2828_v47, 0.0  ;;  %v2831_v15 = vadd.f32 %v9526_v0, %v2783_v42  ;;  %v2782_v28 = vadd.f32 %v2687_v5, %v9721_v25  ;;  %v9806_v20 = vadd.f32 %v2395_v13, %v11946_v37  ;;  %v7637_v23 = vpop.f32.mrf.mxu0  ;;  %v3471_v5 = vld [vmem:[#allocation6 + $0x3b0] sm:$0xff] }
 0x389   :  { %v3022_v34 = vmul.f32 %v9786_v49, %v9786_v49  ;;  %v7717_v63 = vpop.f32.mrf.mxu1  ;;  %v2956_v29 = vadd.f32 %v2955_v1, %v9786_v49  ;;  %v3070_v54 = vadd.f32 %v3069_v26, %v3021_v19  ;;  %v9812_v35 = vadd.f32 %v7634_v52, %v11947_v17  ;;  %3106 = vadd.xlane.f32.xlu1 %v3064_v2 }
 0x38a   :  { %v3024_v36 = vmul.f32 %v9799_v18, %v9799_v18  ;;  %v3023_v25 = vmul.f32 %v9801_v40, %v9801_v40  ;;  %v2830_v13 = vadd.f32 %v9526_v0, %v2782_v28  ;;  %v9819_v21 = vmax.f32 %v2831_v15, 0.0  ;;  %v3423_v15 = vld [vmem:[#allocation6 + $0x378] sm:$0xff]  ;;  %v3470_v28 = vld [vmem:[#allocation6 + $0x3a8] sm:$0xff]  ;;  %7751 = vmatprep.subr.mxu0 %v3471_v5 }
 0x38b   :  { %v2785_v6 = vadd.f32 %v7717_v63, %v9733_v11  ;;  %v2697_v60 = vpop.f32.mrf.mxu1  ;;  %v2957_v55 = vrot.slane %v2956_v29, 4  ;;  %v3071_v12 = vadd.f32 %v3070_v54, %v3022_v34  ;;  %v9823_v57 = vadd.f32 %v2405_v9, %v11948_v30  ;;  %7752 = vmatpush3.msra.mxu0 %v3471_v5  ;;  %7825 = vmatprep.subr.mxu1 %v3423_v15  ;;  %v11949_v30 = vld [vmem:[#allocation17_spill] sm:$0xff] }
 0x38c   :  { %v2963_v52 = vadd.f32 %v9799_v18, %v9801_v40  ;;  %v9827_v47 = vmax.f32 %v2830_v13, 0.0  ;;  %v2784_v42 = vadd.f32 %v2697_v60, %v9739_v56  ;;  %v3078_v26 = vadd.f32 %v3024_v36, %v3023_v25  ;;  %v3422_v56 = vld [vmem:[#allocation6 + $0x370] sm:$0xff]  ;;  %v3469_v25 = vld [vmem:[#allocation6 + $0x3a0] sm:$0xff]  ;;  %7826 = vmatpush3.msra.mxu1 %v3423_v15  ;;  %7753 = vmatprep.subr.mxu0 %v3470_v28 }
 0x38d   :  { %v2833_v61 = vadd.f32 %v9526_v0, %v2785_v6  ;;  %v7720_v1 = vpop.f32.mrf.mxu1  ;;  %v2958_v19 = vadd.f32 %v2957_v55, %v2956_v29  ;;  %v3072_v11 = vrot.slane %v3071_v12, 4  ;;  %v3026_v63 = vmul.f32 %v9819_v21, %v9819_v21  ;;  %v3421_v55 = vld [vmem:[#allocation6 + $0x368] sm:$0xff]  ;;  %7827 = vmatprep.subr.mxu1 %v3422_v56  ;;  %7754 = vmatpush3.msra.mxu0 %v3470_v28 }
 0x38e   :  { %v2964_v2 = vadd.f32 %v2963_v52, %v9827_v47  ;;  %v3025_v37 = vmul.f32 %v9827_v47, %v9827_v47  ;;  %v2832_v9 = vadd.f32 %v9526_v0, %v2784_v42  ;;  %v2787_v34 = vadd.f32 %v7720_v1, %v9750_v43  ;;  %v2415_v42 = vpop.f32.mrf.mxu0  ;;  %7828 = vmatpush3.msra.mxu1 %v3422_v56  ;;  %v3419_v56 = vld [vmem:[#allocation6 + $0x358] sm:$0xff] }
 0x38f   :  { %v9838_v54 = vmax.f32 %v2833_v61, 0.0  ;;  %v2707_v29 = vpop.f32.mrf.mxu1  ;;  %v2959_v17 = vrot.slane %v2958_v19, 2  ;;  %v3073_v36 = vadd.f32 %v3072_v11, %v3071_v12  ;;  %v9845_v52 = vadd.f32 %v7637_v23, %v11949_v30  ;;  %7755 = vmatprep.subr.mxu0 %v3469_v25  ;;  %7829 = vmatprep.subr.mxu1 %v3421_v55 }
 0x390   :  { %v3079_v13 = vadd.f32 %v3078_v26, %v3025_v37  ;;  %v9840_v6 = vmax.f32 %v2832_v9, 0.0  ;;  %v2965_v60 = vadd.f32 %v2964_v2, %v9819_v21  ;;  %v2835_v43 = vadd.f32 %v9526_v0, %v2787_v34  ;;  %v3420_v37 = vld [vmem:[#allocation6 + $0x360] sm:$0xff]  ;;  %7756 = vmatpush3.msra.mxu0 %v3469_v25  ;;  %7830 = vmatpush3.msra.mxu1 %v3421_v55  ;;  %v3418_v55 = vld [vmem:[#allocation6 + $0x350] sm:$0xff] }
 0x391   :  { %v2786_v61 = vadd.f32 %v2707_v29, %v9772_v62  ;;  %v7723_v12 = vpop.f32.mrf.mxu1  ;;  %v2960_v1 = vadd.f32 %v2959_v17, %v2958_v19  ;;  %v3074_v11 = vrot.slane %v3073_v36, 2  ;;  %v3028_v28 = vmul.f32 %v9838_v54, %v9838_v54  ;;  %7831 = vmatprep.subr.mxu1 %v3420_v37 }
 0x392   :  { %v2966_v26 = vadd.f32 %v2965_v60, %v9840_v6  ;;  %v3027_v5 = vmul.f32 %v9840_v6, %v9840_v6  ;;  %v3080_v2 = vadd.f32 %v3079_v13, %v3026_v63  ;;  %v2875_v15 = vmax.f32 %v2835_v43, 0.0  ;;  %v7640_v13 = vpop.f32.mrf.mxu0  ;;  %7832 = vmatpush3.msra.mxu1 %v3420_v37 }
 0x393   :  { %v2834_v23 = vadd.f32 %v9526_v0, %v2786_v61  ;;  %v2789_v9 = vadd.f32 %v7723_v12, %v9794_v38  ;;  %v2717_v62 = vpop.f32.mrf.mxu1  ;;  %v2961_v34 = vrot.slane %v2960_v1, 1  ;;  %v3075_v19 = vadd.f32 %v3074_v11, %v3073_v36  ;;  %v11950_v11 = vld [vmem:[#allocation18_spill] sm:$0xff]  ;;  %7833 = vmatprep.subr.mxu1 %v3419_v56 }
 0x394   :  { %v3081_v29 = vadd.f32 %v3080_v2, %v3027_v5  ;;  %v2967_v17 = vadd.f32 %v2966_v26, %v9838_v54  ;;  %v2788_v63 = vadd.f32 %v2717_v62, %v9806_v20  ;;  %v9859_v60 = vsel %vm200_vm0, %v2875_v15, 0.0  ;;  %7834 = vmatpush3.msra.mxu1 %v3419_v56  ;;  %v11952_v62 = vld [vmem:[#allocation20_spill] sm:$0xff] }
 0x395   :  { %v9861_v38 = vmax.f32 %v2834_v23, 0.0  ;;  %v2837_v36 = vadd.f32 %v9526_v0, %v2789_v9  ;;  %v7726_v25 = vpop.f32.mrf.mxu1  ;;  %v2962_v43 = vadd.f32 %v2961_v34, %v2960_v1  ;;  %v3076_v12 = vrot.slane %v3075_v19, 1  ;;  %v2425_v34 = vpop.f32.mrf.mxu0  ;;  %7835 = vmatprep.subr.mxu1 %v3418_v55 }
 0x396   :  { %v2836_v30 = vadd.f32 %v9526_v0, %v2788_v63  ;;  %v2791_v61 = vadd.f32 %v7726_v25, %v9812_v35  ;;  %v3082_v20 = vadd.f32 %v3081_v29, %v3028_v28  ;;  %v2416_v26 = vadd.f32 %v2415_v42, %v11950_v11  ;;  %7836 = vmatpush3.msra.mxu1 %v3418_v55 }
 0x397   :  { %v2968_v5 = vadd.f32 %v2967_v17, %v9861_v38  ;;  %v3029_v2 = vmul.f32 %v9861_v38, %v9861_v38  ;;  %v9870_v15 = vmax.f32 %v2837_v36, 0.0  ;;  %2993 = vadd.xlane.f32.xlu0 %v2962_v43  ;;  %v2727_v1 = vpop.f32.mrf.mxu1  ;;  %v3077_v37 = vadd.f32 %v3076_v12, %v3075_v19  ;;  %v3417_v19 = vld [vmem:[#allocation6 + $0x348] sm:$0xff]  ;;  %v11953_v12 = vld [vmem:[#allocation19_spill] sm:$0xff] }
 0x398   :  { %v9872_v23 = vmax.f32 %v2836_v30, 0.0  ;;  %v2839_v35 = vadd.f32 %v9526_v0, %v2791_v61  ;;  %v2790_v9 = vadd.f32 %v2727_v1, %v9823_v57  ;;  %v2431_v42 = vadd.f32 %v7640_v13, %v11952_v62  ;;  %7837 = vmatprep.subr.mxu1 %v3417_v19  ;;  %v3416_v1 = vld [vmem:[#allocation6 + $0x340] sm:$0xff]  ;;  %v3468_v62 = vld [vmem:[#allocation6 + $0x398] sm:$0xff] }
 0x399   :  { %11951 = vst [vmem:[#allocation21_spill] sm:$0xff] %v9870_v15  ;;  %v3030_v28 = vmul.f32 %v9859_v60, %v9859_v60  ;;  %v7729_v29 = vpop.f32.mrf.mxu1  ;;  %v2969_v17 = vadd.f32 %v2968_v5, %v9859_v60  ;;  %v3083_v63 = vadd.f32 %v3082_v20, %v3029_v2  ;;  %v3032_v36 = vmul.f32 %v9870_v15, %v9870_v15 }
 0x39a   :  { %v3031_v25 = vmul.f32 %v9872_v23, %v9872_v23  ;;  %v2838_v57 = vadd.f32 %v9526_v0, %v2790_v9  ;;  %3108 = vadd.xlane.f32.xlu1 %v3077_v37  ;;  %v9885_v56 = vmax.f32 %v2839_v35, 0.0  ;;  %v2793_v13 = vadd.f32 %v7729_v29, %v9845_v52  ;;  %7838 = vmatpush3.msra.mxu1 %v3417_v19  ;;  %v3467_v29 = vld [vmem:[#allocation6 + $0x390] sm:$0xff] }
 0x39b   :  { %v2737_v43 = vpop.f32.mrf.mxu1  ;;  %v2970_v30 = vrot.slane %v2969_v17, 4  ;;  %v3084_v61 = vadd.f32 %v3083_v63, %v3030_v28  ;;  %v2426_v20 = vadd.f32 %v2425_v34, %v11953_v12  ;;  %v2976_v11 = vadd.f32 %v9870_v15, %v9872_v23  ;;  %7839 = vmatprep.subr.mxu1 %v3416_v1  ;;  %v3415_v28 = vld [vmem:[#allocation6 + $0x338] sm:$0xff]  ;;  %7757 = vmatprep.subr.mxu0 %v3468_v62  ;;  %v3413_v15 = vld [vmem:[#allocation6 + $0x328] sm:$0xff] }
 0x39c   :  { %v9891_v5 = vmax.f32 %v2838_v57, 0.0  ;;  %v2792_v2 = vadd.f32 %v2737_v43, %v2416_v26  ;;  %v3091_v55 = vadd.f32 %v3032_v36, %v3031_v25  ;;  %v2841_v35 = vadd.f32 %v9526_v0, %v2793_v13  ;;  %7758 = vmatpush3.msra.mxu0 %v3468_v62  ;;  %7840 = vmatpush3.msra.mxu1 %v3416_v1  ;;  %v3414_v43 = vld [vmem:[#allocation6 + $0x330] sm:$0xff] }
 0x39d   :  { %v7732_v9 = vpop.f32.mrf.mxu1  ;;  %v2971_v37 = vadd.f32 %v2970_v30, %v2969_v17  ;;  %v3085_v52 = vrot.slane %v3084_v61, 4  ;;  %v3034_v36 = vmul.f32 %v9885_v56, %v9885_v56  ;;  %v3466_v30 = vld [vmem:[#allocation6 + $0x388] sm:$0xff]  ;;  %7841 = vmatprep.subr.mxu1 %v3415_v28  ;;  %7759 = vmatprep.subr.mxu0 %v3467_v29 }
 0x39e   :  { %11954 = vst [vmem:[#allocation22_spill] sm:$0xff] %v9891_v5  ;;  %v2977_v34 = vadd.f32 %v2976_v11, %v9891_v5  ;;  %v3033_v63 = vmul.f32 %v9891_v5, %v9891_v5  ;;  %v2840_v57 = vadd.f32 %v9526_v0, %v2792_v2  ;;  %v2795_v26 = vadd.f32 %v7732_v9, %v2431_v42 }
 0x39f   :  { %v9900_v25 = vmax.f32 %v2841_v35, 0.0  ;;  %v2747_v17 = vpop.f32.mrf.mxu1  ;;  %v2972_v19 = vrot.slane %v2971_v37, 2  ;;  %v3086_v13 = vadd.f32 %v3085_v52, %v3084_v61  ;;  %7842 = vmatpush3.msra.mxu1 %v3415_v28  ;;  %7760 = vmatpush3.msra.mxu0 %v3467_v29  ;;  %v3465_v29 = vld [vmem:[#allocation6 + $0x380] sm:$0xff] }
 0x3a0   :  { %v3092_v12 = vadd.f32 %v3091_v55, %v3033_v63  ;;  %v9902_v11 = vmax.f32 %v2840_v57, 0.0  ;;  %v2978_v5 = vadd.f32 %v2977_v34, %v9885_v56  ;;  %v2843_v42 = vadd.f32 %v9526_v0, %v2795_v26  ;;  %7843 = vmatprep.subr.mxu1 %v3414_v43  ;;  %7761 = vmatprep.subr.mxu0 %v3466_v30 }
 0x3a1   :  { %11955 = vst [vmem:[#allocation23_spill] sm:$0xff] %v9900_v25  ;;  %v2794_v2 = vadd.f32 %v2747_v17, %v2426_v20  ;;  %v2973_v9 = vadd.f32 %v2972_v19, %v2971_v37  ;;  %v3087_v35 = vrot.slane %v3086_v13, 2  ;;  %7844 = vmatpush3.msra.mxu1 %v3414_v43  ;;  %v3412_v20 = vld [vmem:[#allocation6 + $0x320] sm:$0xff]  ;;  %7762 = vmatpush3.msra.mxu0 %v3466_v30  ;;  %v3411_v17 = vld [vmem:[#allocation6 + $0x318] sm:$0xff] }
 0x3a2   :  { %v2979_v61 = vadd.f32 %v2978_v5, %v9902_v11  ;;  %v3035_v1 = vmul.f32 %v9902_v11, %v9902_v11  ;;  %v3093_v55 = vadd.f32 %v3092_v12, %v3034_v36  ;;  %v2883_v52 = vmax.f32 %v2843_v42, 0.0  ;;  %7845 = vmatprep.subr.mxu1 %v3413_v15  ;;  %7763 = vmatprep.subr.mxu0 %v3465_v29  ;;  %v3410_v12 = vld [vmem:[#allocation6 + $0x310] sm:$0xff] }
 0x3a3   :  { %v2842_v62 = vadd.f32 %v9526_v0, %v2794_v2  ;;  %v2974_v34 = vrot.slane %v2973_v9, 1  ;;  %v3088_v63 = vadd.f32 %v3087_v35, %v3086_v13  ;;  %v3036_v37 = vmul.f32 %v9900_v25, %v9900_v25  ;;  %7846 = vmatpush3.msra.mxu1 %v3413_v15  ;;  %7764 = vmatpush3.msra.mxu0 %v3465_v29 }
 0x3a4   :  { %v3094_v28 = vadd.f32 %v3093_v55, %v3035_v1  ;;  %v2980_v5 = vadd.f32 %v2979_v61, %v9900_v25  ;;  %v9917_v0 = vsel %vm200_vm0, %v2883_v52, 0.0  ;;  %7847 = vmatprep.subr.mxu1 %v3412_v20  ;;  %v3408_v1 = vld [vmem:[#allocation6 + $0x300] sm:$0xff] }
 0x3a5   :  { %v9913_v57 = vmax.f32 %v2842_v62, 0.0  ;;  %v2975_v26 = vadd.f32 %v2974_v34, %v2973_v9  ;;  %v3089_v36 = vrot.slane %v3088_v63, 1  ;;  %11957 = vst [vmem:[#allocation25_spill] sm:$0xff] %v9917_v0  ;;  %7848 = vmatpush3.msra.mxu1 %v3412_v20  ;;  %v3038_v15 = vmul.f32 %v9917_v0, %v9917_v0  ;;  %v3409_v9 = vld [vmem:[#allocation6 + $0x308] sm:$0xff]  ;;  %v9925_v62 = vld [vmem:[#allocation6 + $0x478] sm:$0xff] }
 0x3a6   :  { %v3095_v19 = vadd.f32 %v3094_v28, %v3036_v37  ;;  %7849 = vmatprep.subr.mxu1 %v3411_v17  ;;  %7917 = vmatprep.subr.mxu0 %v9925_v62 }
 0x3a7   :  { %11956 = vst [vmem:[#allocation24_spill] sm:$0xff] %v9913_v57  ;;  %v2981_v13 = vadd.f32 %v2980_v5, %v9913_v57  ;;  %v3037_v43 = vmul.f32 %v9913_v57, %v9913_v57  ;;  %2995 = vadd.xlane.f32.xlu0 %v2975_v26  ;;  %v3090_v30 = vadd.f32 %v3089_v36, %v3088_v63 }
 0x3a8   :  { %7850 = vmatpush3.msra.mxu1 %v3411_v17 }
 0x3a9   :  { %3110 = vadd.xlane.f32.xlu1 %v3090_v30  ;;  %v2982_v42 = vadd.f32 %v2981_v13, %v9917_v0  ;;  %v3096_v2 = vadd.f32 %v3095_v19, %v3037_v43  ;;  %7851 = vmatprep.subr.mxu1 %v3410_v12 }
 0x3aa   :  { %7852 = vmatpush3.msra.mxu1 %v3410_v12 }
 0x3ab   :  { %v2983_v35 = vrot.slane %v2982_v42, 4  ;;  %v3097_v61 = vadd.f32 %v3096_v2, %v3038_v15  ;;  %7853 = vmatprep.subr.mxu1 %v3409_v9 }
 0x3ac   :  { %7854 = vmatpush3.msra.mxu1 %v3409_v9 }
 0x3ad   :  { %v2984_v55 = vadd.f32 %v2983_v35, %v2982_v42  ;;  %v3098_v52 = vrot.slane %v3097_v61, 4  ;;  %7855 = vmatprep.subr.mxu1 %v3408_v1 }
 0x3ae   :  { %7856 = vmatpush3.msra.mxu1 %v3408_v1 }
 0x3af   :  { %v2985_v34 = vrot.slane %v2984_v55, 2  ;;  %v3099_v63 = vadd.f32 %v3098_v52, %v3097_v61 }
 0x3b1   :  { %v2986_v20 = vadd.f32 %v2985_v34, %v2984_v55  ;;  %v3100_v37 = vrot.slane %v3099_v63, 2 }
 0x3b3   :  { %v2987_v28 = vrot.slane %v2986_v20, 1  ;;  %v3101_v5 = vadd.f32 %v3100_v37, %v3099_v63 }
 0x3b5   :  { %v2988_v29 = vadd.f32 %v2987_v28, %v2986_v20  ;;  %v3102_v26 = vrot.slane %v3101_v5, 1  ;;  %v9936_v28 = vld [vmem:[#allocation9 + $0x40] sm:$0xff] }
 0x3b7   :  { %2997 = vadd.xlane.f32.xlu0 %v2988_v29  ;;  %v3103_v36 = vadd.f32 %v3102_v26, %v3101_v5  ;;  %v9938_v5 = vld [vmem:[#allocation9 + $0x48] sm:$0xff] }
 0x3b9   :  { %3112 = vadd.xlane.f32.xlu1 %v3103_v36 }
 0x400   :  { %v2990_v17 = vpop.xlane.xlu0 %2989 }
 0x401   :  { %v3114_v19 = vmul.f32 0.00017361112, %v2990_v17 }
 0x402   :  { %v3105_v13 = vpop.xlane.xlu1 %3104 }
 0x403   :  { %v3119_v43 = vmul.f32 0.00017361112, %v3105_v13  ;;  %v3124_v30 = vmul.f32 %v3114_v19, %v3114_v19  ;;  %v3139_v52 = vsub.f32 %v9542_v41, %v3114_v19  ;;  %v3140_v34 = vsub.f32 %v9540_v3, %v3114_v19  ;;  %v9944_v13 = vld [vmem:[#allocation9 + $0x50] sm:$0xff]  ;;  %v9946_v3 = vld [vmem:[#allocation9 + $0x58] sm:$0xff] }
 0x404   :  { %v3141_v63 = vsub.f32 %v9576_v45, %v3114_v19  ;;  %v3142_v20 = vsub.f32 %v9574_v4, %v3114_v19  ;;  %v3143_v26 = vsub.f32 %v9599_v44, %v3114_v19  ;;  %v3144_v36 = vsub.f32 %v9604_v50, %v3114_v19  ;;  %v9948_v45 = vld [vmem:[#allocation9 + $0x60] sm:$0xff]  ;;  %v9954_v44 = vld [vmem:[#allocation9 + $0x70] sm:$0xff]  ;;  %v9956_v50 = vld [vmem:[#allocation11 + $0x48] sm:$0xff] }
 0x405   :  { %v3129_v12 = vsub.f32 %v3119_v43, %v3124_v30  ;;  %v3145_v17 = vsub.f32 %v9623_v14, %v3114_v19  ;;  %v3146_v41 = vsub.f32 %v9630_v7, %v3114_v19  ;;  %v9950_v30 = vld [vmem:[#allocation11 + $0x40] sm:$0xff]  ;;  %v9958_v14 = vld [vmem:[#allocation11 + $0x50] sm:$0xff]  ;;  %v9960_v19 = vld [vmem:[#allocation11 + $0x58] sm:$0xff] }
 0x407   :  { %v3134_v15 = vmax.f32 %v3129_v12, 0.0 }
 0x409   :  { %v3179_v42 = vadd.f32 1e-05, %v3134_v15 }
 0x40b   :  { %8306 = vrsqrt.f32 %v3179_v42  ;;  %v9952_v42 = vld [vmem:[#allocation9 + $0x68] sm:$0xff] }
 0x410   :  { %v2992_v2 = vpop.xlane.xlu0 %2991 }
 0x411   :  { %v9928_v9 = vmul.f32 0.00017361112, %v2992_v2 }
 0x412   :  { %v3107_v35 = vpop.xlane.xlu1 %3106 }
 0x413   :  { %v3120_v61 = vmul.f32 0.00017361112, %v3107_v35  ;;  %v3125_v1 = vmul.f32 %v9928_v9, %v9928_v9 }
 0x415   :  { %v3130_v55 = vsub.f32 %v3120_v61, %v3125_v1 }
 0x417   :  { %v3135_v37 = vmax.f32 %v3130_v55, 0.0 }
 0x418   :  { %v8307_v29 = vpop.eup %8306 }
 0x419   :  { %v3180_v4 = vadd.f32 1e-05, %v3135_v37  ;;  %v3189_v43 = vmul.f32 %v8307_v29, %v3139_v52  ;;  %v3190_v12 = vmul.f32 %v8307_v29, %v3140_v34  ;;  %v3191_v15 = vmul.f32 %v8307_v29, %v3141_v63  ;;  %v9965_v34 = vld [vmem:[#allocation11 + $0x60] sm:$0xff]  ;;  %v9967_v63 = vld [vmem:[#allocation11 + $0x68] sm:$0xff]  ;;  %v9969_v37 = vld [vmem:[#allocation11 + $0x70] sm:$0xff] }
 0x41a   :  { %v3192_v7 = vmul.f32 %v8307_v29, %v3142_v20  ;;  %v3193_v2 = vmul.f32 %v8307_v29, %v3143_v26  ;;  %v3194_v35 = vmul.f32 %v8307_v29, %v3144_v36  ;;  %v3195_v61 = vmul.f32 %v8307_v29, %v3145_v17  ;;  %v9975_v17 = vld [vmem:[#allocation9 + $0x78] sm:$0xff] }
 0x41b   :  { %8308 = vrsqrt.f32 %v3180_v4  ;;  %v3238_v1 = vmul.f32 %v9936_v28, %v3189_v43  ;;  %v3239_v55 = vmul.f32 %v9938_v5, %v3190_v12  ;;  %v3240_v52 = vmul.f32 %v9944_v13, %v3191_v15 }
 0x41c   :  { %v3241_v20 = vmul.f32 %v9946_v3, %v3192_v7  ;;  %v3242_v58 = vmul.f32 %v9948_v45, %v3193_v2  ;;  %v3243_v26 = vmul.f32 %v9952_v42, %v3194_v35  ;;  %v3244_v36 = vmul.f32 %v9954_v44, %v3195_v61 }
 0x41d   :  { %v3287_v4 = vadd.f32 %v9950_v30, %v3238_v1  ;;  %v3288_v43 = vadd.f32 %v9956_v50, %v3239_v55  ;;  %v3289_v12 = vadd.f32 %v9958_v14, %v3240_v52  ;;  %v3196_v15 = vmul.f32 %v8307_v29, %v3146_v41  ;;  %v4066_v29 = vld [vmem:[#allocation6 + $0x470] sm:$0xff]  ;;  %v9987_v41 = vld [vmem:[#allocation11 + $0x78] sm:$0xff]  ;;  %v4065_v55 = vld [vmem:[#allocation6 + $0x468] sm:$0xff] }
 0x41e   :  { %v3290_v57 = vadd.f32 %v9960_v19, %v3241_v20  ;;  %v3291_v7 = vadd.f32 %v9965_v34, %v3242_v58  ;;  %v3292_v2 = vadd.f32 %v9967_v63, %v3243_v26  ;;  %v3293_v35 = vadd.f32 %v9969_v37, %v3244_v36 }
 0x41f   :  { %3327 = vst [vmem:[#allocation2 + $0x8] sm:$0xff] %v3287_v4  ;;  %7765 = vmatprep.mubr.f32.mxu0 %v3287_v4  ;;  %3328 = vst [vmem:[#allocation2 + $0x10] sm:$0xff] %v3288_v43  ;;  %v3245_v61 = vmul.f32 %v9975_v17, %v3196_v15  ;;  %v3147_v26 = vsub.f32 %v9651_v53, %v9928_v9  ;;  %v3148_v36 = vsub.f32 %v9635_v33, %v9928_v9  ;;  %v4064_v53 = vld [vmem:[#allocation6 + $0x460] sm:$0xff] }
 0x420   :  { %v2994_v0 = vpop.xlane.xlu0 %2993  ;;  %3329 = vst [vmem:[#allocation2 + $0x18] sm:$0xff] %v3289_v12  ;;  %7766 = vmatmul.mubr.f32.vlgmr.msra.gmra.mxu0 %v3288_v43  ;;  %3330 = vst [vmem:[#allocation2 + $0x20] sm:$0xff] %v3290_v57  ;;  %v3149_v43 = vsub.f32 %v9680_v31, %v9928_v9  ;;  %v3152_v33 = vsub.f32 %v9691_v16, %v9928_v9  ;;  %v3154_v31 = vsub.f32 %v9712_v10, %v9928_v9 }
 0x421   :  { %v9984_v25 = vmul.f32 0.00017361112, %v2994_v0  ;;  %3331 = vst [vmem:[#allocation2 + $0x28] sm:$0xff] %v3291_v7  ;;  %3332 = vst [vmem:[#allocation2 + $0x30] sm:$0xff] %v3292_v2  ;;  %7768 = vmatprep.mubr.f32.mxu0 %v3289_v12  ;;  %7918 = vmatpush3.msra.mxu0 %v9925_v62  ;;  %v3294_v52 = vadd.f32 %v9987_v41, %v3245_v61  ;;  %v3151_v12 = vsub.f32 %v9693_v8, %v9928_v9 }
 0x422   :  { %3333 = vst [vmem:[#allocation2 + $0x38] sm:$0xff] %v3293_v35  ;;  %7919 = vmatprep.subr.mxu0 %v4066_v29  ;;  %v3153_v61 = vsub.f32 %v9714_v24, %v9928_v9 }
 0x423   :  { %v3109_v58 = vpop.xlane.xlu1 %3108  ;;  %v3126_v1 = vmul.f32 %v9984_v25, %v9984_v25  ;;  %7920 = vmatpush3.msra.mxu0 %v4066_v29  ;;  %3334 = vst [vmem:[#allocation2 + $0x40] sm:$0xff] %v3294_v52 }
 0x424   :  { %v3121_v0 = vmul.f32 0.00017361112, %v3109_v58  ;;  %7769 = vmatmul.mubr.f32.gmra.mxu0 %v3290_v57  ;;  %7921 = vmatprep.subr.mxu0 %v4065_v55  ;;  %v3150_v57 = vsub.f32 %v9672_v27, %v9928_v9 }
 0x425   :  { %7771 = vmatprep.mubr.f32.mxu0 %v3291_v7  ;;  %7922 = vmatpush3.msra.mxu0 %v4065_v55 }
 0x426   :  { %v3131_v20 = vsub.f32 %v3121_v0, %v3126_v1  ;;  %v3367_v62 = vld [vmem:[#allocation2 + $0x4] sm:$0xff]  ;;  %v9997_v4 = vld [vmem:[#allocation2 + $0xc] sm:$0xff]  ;;  %7923 = vmatprep.subr.mxu0 %v4064_v53 }
 0x427   :  { %7857 = vmatprep.mubr.f32.mxu1 %v3367_v62  ;;  %v10012_v27 = vld [vmem:[#allocation2 + $0x14] sm:$0xff]  ;;  %v4063_v1 = vld [vmem:[#allocation6 + $0x458] sm:$0xff]  ;;  %v10015_v10 = vld [vmem:[#allocation2 + $0x1c] sm:$0xff]  ;;  %7924 = vmatpush3.msra.mxu0 %v4064_v53 }
 0x428   :  { %v3136_v15 = vmax.f32 %v3131_v20, 0.0  ;;  %v8309_v7 = vpop.eup %8308  ;;  %7858 = vmatmul.mubr.f32.vlgmr.msra.gmra.mxu1 %v9997_v4  ;;  %7772 = vmatmul.mubr.f32.gmra.mxu0 %v3292_v2 }
 0x429   :  { %7860 = vmatprep.mubr.f32.mxu1 %v10012_v27  ;;  %7774 = vmatprep.mubr.f32.mxu0 %v3293_v35  ;;  %v3197_v29 = vmul.f32 %v8309_v7, %v3147_v26  ;;  %v3198_v58 = vmul.f32 %v8309_v7, %v3148_v36  ;;  %v3199_v0 = vmul.f32 %v8309_v7, %v3149_v43  ;;  %v10021_v35 = vld [vmem:[#allocation2 + $0x24] sm:$0xff] }
 0x42a   :  { %v3181_v8 = vadd.f32 1e-05, %v3136_v15  ;;  %v3200_v16 = vmul.f32 %v8309_v7, %v3150_v57  ;;  %v3201_v55 = vmul.f32 %v8309_v7, %v3151_v12  ;;  %v3202_v24 = vmul.f32 %v8309_v7, %v3152_v33  ;;  %v4062_v57 = vld [vmem:[#allocation6 + $0x450] sm:$0xff]  ;;  %7925 = vmatprep.subr.mxu0 %v4063_v1 }
 0x42b   :  { %v3203_v20 = vmul.f32 %v8309_v7, %v3153_v61  ;;  %v3246_v9 = vmul.f32 %v9936_v28, %v3197_v29  ;;  %v3247_v2 = vmul.f32 %v9938_v5, %v3198_v58  ;;  %v3248_v62 = vmul.f32 %v9944_v13, %v3199_v0  ;;  %7926 = vmatpush3.msra.mxu0 %v4063_v1  ;;  %v10034_v58 = vld [vmem:[#allocation2 + $0x2c] sm:$0xff] }
 0x42c   :  { %8310 = vrsqrt.f32 %v3181_v8  ;;  %7861 = vmatmul.mubr.f32.gmra.mxu1 %v10015_v10  ;;  %7775 = vmatmul.mubr.f32.gmra.mxu0 %v3294_v52  ;;  %v3249_v26 = vmul.f32 %v9946_v3, %v3200_v16  ;;  %v3250_v36 = vmul.f32 %v9948_v45, %v3201_v55  ;;  %v3251_v43 = vmul.f32 %v9952_v42, %v3202_v24  ;;  %v10039_v55 = vld [vmem:[#allocation2 + $0x34] sm:$0xff] }
 0x42d   :  { %7863 = vmatprep.mubr.f32.mxu1 %v10021_v35  ;;  %v3295_v12 = vadd.f32 %v9950_v30, %v3246_v9  ;;  %v3296_v15 = vadd.f32 %v9956_v50, %v3247_v2  ;;  %v3297_v53 = vadd.f32 %v9958_v14, %v3248_v62  ;;  %v3252_v29 = vmul.f32 %v9954_v44, %v3203_v20  ;;  %v4061_v20 = vld [vmem:[#allocation6 + $0x448] sm:$0xff]  ;;  %v4060_v62 = vld [vmem:[#allocation6 + $0x440] sm:$0xff] }
 0x42e   :  { %v3298_v61 = vadd.f32 %v9960_v19, %v3249_v26  ;;  %v3299_v52 = vadd.f32 %v9965_v34, %v3250_v36  ;;  %v3300_v8 = vadd.f32 %v9967_v63, %v3251_v43  ;;  %7927 = vmatprep.subr.mxu0 %v4062_v57  ;;  %v3204_v16 = vmul.f32 %v8309_v7, %v3154_v31  ;;  %v10045_v31 = vld [vmem:[#allocation2 + $0x3c] sm:$0xff] }
 0x42f   :  { %3335 = vst [vmem:[#allocation2 + $0x58] sm:$0xff] %v3295_v12  ;;  %7777 = vmatprep.mubr.f32.mxu0 %v3295_v12  ;;  %3336 = vst [vmem:[#allocation2 + $0x60] sm:$0xff] %v3296_v15  ;;  %v3301_v1 = vadd.f32 %v9969_v37, %v3252_v29  ;;  %7928 = vmatpush3.msra.mxu0 %v4062_v57  ;;  %v3155_v43 = vsub.f32 %v9728_v22, %v9984_v25 }
 0x430   :  { %v2996_v33 = vpop.xlane.xlu0 %2995  ;;  %3337 = vst [vmem:[#allocation2 + $0x68] sm:$0xff] %v3297_v53  ;;  %7864 = vmatmul.mubr.f32.gmra.mxu1 %v10034_v58  ;;  %7778 = vmatmul.mubr.f32.gmra.mxu0 %v3296_v15  ;;  %3338 = vst [vmem:[#allocation2 + $0x70] sm:$0xff] %v3298_v61  ;;  %v3253_v2 = vmul.f32 %v9975_v17, %v3204_v16  ;;  %v3156_v12 = vsub.f32 %v9726_v48, %v9984_v25 }
 0x431   :  { %v10036_v0 = vmul.f32 0.00017361112, %v2996_v33  ;;  %3339 = vst [vmem:[#allocation2 + $0x78] sm:$0xff] %v3299_v52  ;;  %3340 = vst [vmem:[#allocation2 + $0x80] sm:$0xff] %v3300_v8  ;;  %7866 = vmatprep.mubr.f32.mxu1 %v10039_v55  ;;  %7780 = vmatprep.mubr.f32.mxu0 %v3297_v53  ;;  %v3157_v57 = vsub.f32 %v9754_v39, %v9984_v25  ;;  %v3158_v33 = vsub.f32 %v9746_v51, %v9984_v25 }
 0x432   :  { %v3111_v24 = vpop.xlane.xlu1 %3110  ;;  %3341 = vst [vmem:[#allocation2 + $0x88] sm:$0xff] %v3301_v1  ;;  %v3302_v36 = vadd.f32 %v9987_v41, %v3253_v2  ;;  %7929 = vmatprep.subr.mxu0 %v4061_v20  ;;  %v3160_v48 = vsub.f32 %v9765_v46, %v9984_v25  ;;  %v3161_v29 = vsub.f32 %v9788_v59, %v9984_v25 }
 0x433   :  { %v3122_v9 = vmul.f32 0.00017361112, %v3111_v24  ;;  %v3127_v7 = vmul.f32 %v10036_v0, %v10036_v0  ;;  %7930 = vmatpush3.msra.mxu0 %v4061_v20  ;;  %v3162_v39 = vsub.f32 %v9786_v49, %v9984_v25 }
 0x434   :  { %7867 = vmatmul.mubr.f32.gmra.mxu1 %v10045_v31  ;;  %7781 = vmatmul.mubr.f32.gmra.mxu0 %v3298_v61  ;;  %v3159_v61 = vsub.f32 %v9767_v32, %v9984_v25  ;;  %3342 = vst [vmem:[#allocation2 + $0x90] sm:$0xff] %v3302_v36  ;;  %v4059_v32 = vld [vmem:[#allocation6 + $0x438] sm:$0xff] }
 0x435   :  { %v3132_v26 = vsub.f32 %v3122_v9, %v3127_v7  ;;  %7783 = vmatprep.mubr.f32.mxu0 %v3299_v52  ;;  %7931 = vmatprep.subr.mxu0 %v4060_v62 }
 0x436   :  { %v3375_v15 = vld [vmem:[#allocation2 + $0x54] sm:$0xff]  ;;  %v10054_v53 = vld [vmem:[#allocation2 + $0x5c] sm:$0xff]  ;;  %7932 = vmatpush3.msra.mxu0 %v4060_v62 }
 0x437   :  { %v3137_v52 = vmax.f32 %v3132_v26, 0.0  ;;  %7869 = vmatprep.mubr.f32.mxu1 %v3375_v15  ;;  %v10069_v51 = vld [vmem:[#allocation2 + $0x64] sm:$0xff]  ;;  %v10072_v49 = vld [vmem:[#allocation2 + $0x6c] sm:$0xff]  ;;  %7933 = vmatprep.subr.mxu0 %v4059_v32 }
 0x438   :  { %7870 = vmatmul.mubr.f32.gmra.mxu1 %v10054_v53  ;;  %7784 = vmatmul.mubr.f32.gmra.mxu0 %v3300_v8  ;;  %v4058_v15 = vld [vmem:[#allocation6 + $0x430] sm:$0xff] }
 0x439   :  { %v8311_v22 = vpop.eup %8310  ;;  %v3182_v16 = vadd.f32 1e-05, %v3137_v52  ;;  %7872 = vmatprep.mubr.f32.mxu1 %v10069_v51  ;;  %7786 = vmatprep.mubr.f32.mxu0 %v3301_v1  ;;  %v10078_v1 = vld [vmem:[#allocation2 + $0x74] sm:$0xff] }
 0x43a   :  { %v3205_v24 = vmul.f32 %v8311_v22, %v3155_v43  ;;  %v3206_v20 = vmul.f32 %v8311_v22, %v3156_v12  ;;  %v3207_v9 = vmul.f32 %v8311_v22, %v3157_v57  ;;  %v3208_v46 = vmul.f32 %v8311_v22, %v3158_v33  ;;  %7934 = vmatpush3.msra.mxu0 %v4059_v32 }
 0x43b   :  { %v3209_v7 = vmul.f32 %v8311_v22, %v3159_v61  ;;  %v3210_v59 = vmul.f32 %v8311_v22, %v3160_v48  ;;  %v3211_v2 = vmul.f32 %v8311_v22, %v3161_v29  ;;  %8312 = vrsqrt.f32 %v3182_v16  ;;  %7935 = vmatprep.subr.mxu0 %v4058_v15 }
 0x43c   :  { %v3254_v25 = vmul.f32 %v9936_v28, %v3205_v24  ;;  %v3255_v8 = vmul.f32 %v9938_v5, %v3206_v20  ;;  %v3256_v26 = vmul.f32 %v9944_v13, %v3207_v9  ;;  %7873 = vmatmul.mubr.f32.gmra.mxu1 %v10072_v49  ;;  %7787 = vmatmul.mubr.f32.gmra.mxu0 %v3302_v36  ;;  %v10091_v20 = vld [vmem:[#allocation2 + $0x7c] sm:$0xff] }
 0x43d   :  { %v3257_v62 = vmul.f32 %v9946_v3, %v3208_v46  ;;  %v3258_v43 = vmul.f32 %v9948_v45, %v3209_v7  ;;  %v3259_v12 = vmul.f32 %v9952_v42, %v3210_v59  ;;  %7875 = vmatprep.mubr.f32.mxu1 %v10078_v1  ;;  %v3260_v52 = vmul.f32 %v9954_v44, %v3211_v2  ;;  %v10097_v7 = vld [vmem:[#allocation2 + $0x84] sm:$0xff] }
 0x43e   :  { %v3303_v57 = vadd.f32 %v9950_v30, %v3254_v25  ;;  %v3304_v33 = vadd.f32 %v9956_v50, %v3255_v8  ;;  %v3305_v61 = vadd.f32 %v9958_v14, %v3256_v26  ;;  %v3212_v24 = vmul.f32 %v8311_v22, %v3162_v39  ;;  %v4057_v39 = vld [vmem:[#allocation6 + $0x428] sm:$0xff]  ;;  %v10103_v25 = vld [vmem:[#allocation2 + $0x8c] sm:$0xff]  ;;  %7936 = vmatpush3.msra.mxu0 %v4058_v15 }
 0x43f   :  { %v3306_v36 = vadd.f32 %v9960_v19, %v3257_v62  ;;  %v3307_v29 = vadd.f32 %v9965_v34, %v3258_v43  ;;  %v3308_v16 = vadd.f32 %v9967_v63, %v3259_v12  ;;  %v3309_v46 = vadd.f32 %v9969_v37, %v3260_v52  ;;  %v4056_v26 = vld [vmem:[#allocation6 + $0x420] sm:$0xff]  ;;  %7937 = vmatprep.subr.mxu0 %v4057_v39 }
 0x440   :  { %v2998_v48 = vpop.xlane.xlu0 %2997  ;;  %3343 = vst [vmem:[#allocation2 + $0xa8] sm:$0xff] %v3303_v57  ;;  %7789 = vmatprep.mubr.f32.mxu0 %v3303_v57  ;;  %3344 = vst [vmem:[#allocation2 + $0xb0] sm:$0xff] %v3304_v33  ;;  %7876 = vmatmul.mubr.f32.gmra.mxu1 %v10091_v20  ;;  %v3261_v22 = vmul.f32 %v9975_v17, %v3212_v24  ;;  %v3163_v43 = vsub.f32 %v9801_v40, %v10036_v0 }
 0x441   :  { %v10093_v9 = vmul.f32 0.00017361112, %v2998_v48  ;;  %3345 = vst [vmem:[#allocation2 + $0xb8] sm:$0xff] %v3305_v61  ;;  %7790 = vmatmul.mubr.f32.gmra.mxu0 %v3304_v33  ;;  %3346 = vst [vmem:[#allocation2 + $0xc0] sm:$0xff] %v3306_v36  ;;  %7878 = vmatprep.mubr.f32.mxu1 %v10097_v7  ;;  %v3164_v12 = vsub.f32 %v9799_v18, %v10036_v0  ;;  %v3165_v15 = vsub.f32 %v9827_v47, %v10036_v0 }
 0x442   :  { %v3113_v59 = vpop.xlane.xlu1 %3112  ;;  %3347 = vst [vmem:[#allocation2 + $0xc8] sm:$0xff] %v3307_v29  ;;  %3348 = vst [vmem:[#allocation2 + $0xd0] sm:$0xff] %v3308_v16  ;;  %7792 = vmatprep.mubr.f32.mxu0 %v3305_v61  ;;  %v3310_v8 = vadd.f32 %v9987_v41, %v3261_v22  ;;  %7938 = vmatpush3.msra.mxu0 %v4057_v39  ;;  %v3166_v61 = vsub.f32 %v9819_v21, %v10036_v0  ;;  %v4055_v21 = vld [vmem:[#allocation6 + $0x418] sm:$0xff] }
 0x443   :  { %3349 = vst [vmem:[#allocation2 + $0xd8] sm:$0xff] %v3309_v46  ;;  %v3123_v32 = vmul.f32 0.00017361112, %v3113_v59  ;;  %v3128_v2 = vmul.f32 %v10093_v9, %v10093_v9  ;;  %v3167_v52 = vsub.f32 %v9840_v6, %v10036_v0  ;;  %7939 = vmatprep.subr.mxu0 %v4056_v26  ;;  %v3168_v18 = vsub.f32 %v9838_v54, %v10036_v0 }
 0x444   :  { %7879 = vmatmul.mubr.f32.gmra.mxu1 %v10103_v25  ;;  %3350 = vst [vmem:[#allocation2 + $0xe0] sm:$0xff] %v3310_v8  ;;  %7940 = vmatpush3.msra.mxu0 %v4056_v26 }
 0x445   :  { %7793 = vmatmul.mubr.f32.gmra.mxu0 %v3306_v36  ;;  %v3133_v62 = vsub.f32 %v3123_v32, %v3128_v2  ;;  %v3169_v36 = vsub.f32 %v9861_v38, %v10036_v0  ;;  %7941 = vmatprep.subr.mxu0 %v4055_v21 }
 0x446   :  { %7795 = vmatprep.mubr.f32.mxu0 %v3307_v29  ;;  %v3170_v29 = vsub.f32 %v9859_v60, %v10036_v0  ;;  %7942 = vmatpush3.msra.mxu0 %v4055_v21 }
 0x447   :  { %v3383_v57 = vld [vmem:[#allocation2 + $0xa4] sm:$0xff]  ;;  %v10111_v33 = vld [vmem:[#allocation2 + $0xac] sm:$0xff]  ;;  %v3138_v48 = vmax.f32 %v3133_v62, 0.0 }
 0x448   :  { %7881 = vmatprep.mubr.f32.mxu1 %v3383_v57  ;;  %v8313_v40 = vpop.eup %8312  ;;  %v10126_v47 = vld [vmem:[#allocation2 + $0xb4] sm:$0xff]  ;;  %v10129_v60 = vld [vmem:[#allocation2 + $0xbc] sm:$0xff] }
 0x449   :  { %7882 = vmatmul.mubr.f32.gmra.mxu1 %v10111_v33  ;;  %7796 = vmatmul.mubr.f32.gmra.mxu0 %v3308_v16  ;;  %v3183_v6 = vadd.f32 1e-05, %v3138_v48  ;;  %v3213_v24 = vmul.f32 %v8313_v40, %v3163_v43  ;;  %v3214_v59 = vmul.f32 %v8313_v40, %v3164_v12  ;;  %v3215_v22 = vmul.f32 %v8313_v40, %v3165_v15  ;;  %v4054_v12 = vld [vmem:[#allocation6 + $0x410] sm:$0xff] }
 0x44a   :  { %7884 = vmatprep.mubr.f32.mxu1 %v10126_v47  ;;  %7798 = vmatprep.mubr.f32.mxu0 %v3309_v46  ;;  %v3216_v54 = vmul.f32 %v8313_v40, %v3166_v61  ;;  %v3217_v39 = vmul.f32 %v8313_v40, %v3167_v52  ;;  %v3218_v32 = vmul.f32 %v8313_v40, %v3168_v18  ;;  %v10135_v46 = vld [vmem:[#allocation2 + $0xc4] sm:$0xff] }
 0x44b   :  { %v3219_v38 = vmul.f32 %v8313_v40, %v3169_v36  ;;  %8314 = vrsqrt.f32 %v3183_v6  ;;  %v3262_v0 = vmul.f32 %v9936_v28, %v3213_v24  ;;  %v3263_v16 = vmul.f32 %v9938_v5, %v3214_v59  ;;  %v10148_v6 = vld [vmem:[#allocation2 + $0xcc] sm:$0xff]  ;;  %7943 = vmatprep.subr.mxu0 %v4054_v12  ;;  %v10152_v59 = vld [vmem:[#allocation2 + $0xd4] sm:$0xff] }
 0x44c   :  { %v3264_v2 = vmul.f32 %v9944_v13, %v3215_v22  ;;  %v3265_v62 = vmul.f32 %v9946_v3, %v3216_v54  ;;  %v3266_v26 = vmul.f32 %v9948_v45, %v3217_v39  ;;  %v3267_v43 = vmul.f32 %v9952_v42, %v3218_v32  ;;  %7944 = vmatpush3.msra.mxu0 %v4054_v12  ;;  %v10157_v22 = vld [vmem:[#allocation2 + $0xdc] sm:$0xff]  ;;  %v4052_v54 = vld [vmem:[#allocation6 + $0x400] sm:$0xff] }
 0x44d   :  { %7885 = vmatmul.mubr.f32.gmra.mxu1 %v10129_v60  ;;  %7799 = vmatmul.mubr.f32.gmra.mxu0 %v3310_v8  ;;  %v3311_v57 = vadd.f32 %v9950_v30, %v3262_v0  ;;  %v3312_v15 = vadd.f32 %v9956_v50, %v3263_v16  ;;  %v3268_v52 = vmul.f32 %v9954_v44, %v3219_v38  ;;  %v11958_v32 = vld [vmem:[#allocation21_spill] sm:$0xff] }
 0x44e   :  { %7887 = vmatprep.mubr.f32.mxu1 %v10135_v46  ;;  %v3313_v61 = vadd.f32 %v9958_v14, %v3264_v2  ;;  %v3314_v48 = vadd.f32 %v9960_v19, %v3265_v62  ;;  %v3315_v8 = vadd.f32 %v9965_v34, %v3266_v26  ;;  %v3316_v18 = vadd.f32 %v9967_v63, %v3267_v43  ;;  %v11959_v2 = vld [vmem:[#allocation22_spill] sm:$0xff] }
 0x44f   :  { %v3220_v36 = vmul.f32 %v8313_v40, %v3170_v29  ;;  %3351 = vst [vmem:[#allocation2 + $0xf8] sm:$0xff] %v3311_v57  ;;  %7801 = vmatprep.mubr.f32.mxu0 %v3311_v57  ;;  %3352 = vst [vmem:[#allocation2 + $0x100] sm:$0xff] %v3312_v15  ;;  %v3317_v24 = vadd.f32 %v9969_v37, %v3268_v52  ;;  %v4053_v29 = vld [vmem:[#allocation6 + $0x408] sm:$0xff]  ;;  %v3171_v39 = vsub.f32 %v9872_v23, %v10093_v9  ;;  %v11960_v23 = vld [vmem:[#allocation23_spill] sm:$0xff] }
 0x450   :  { %3353 = vst [vmem:[#allocation2 + $0x108] sm:$0xff] %v3313_v61  ;;  %3354 = vst [vmem:[#allocation2 + $0x110] sm:$0xff] %v3314_v48  ;;  %7945 = vmatprep.subr.mxu0 %v4053_v29  ;;  %v3172_v38 = vsub.f32 %v11958_v32, %v10093_v9  ;;  %v3173_v62 = vsub.f32 %v11959_v2, %v10093_v9  ;;  %v3174_v26 = vsub.f32 %v9885_v56, %v10093_v9  ;;  %v11962_v52 = vld [vmem:[#allocation25_spill] sm:$0xff] }
 0x451   :  { %7888 = vmatmul.mubr.f32.gmra.mxu1 %v10148_v6  ;;  %7802 = vmatmul.mubr.f32.gmra.mxu0 %v3312_v15  ;;  %3355 = vst [vmem:[#allocation2 + $0x118] sm:$0xff] %v3315_v8  ;;  %3356 = vst [vmem:[#allocation2 + $0x120] sm:$0xff] %v3316_v18  ;;  %v3269_v40 = vmul.f32 %v9975_v17, %v3220_v36  ;;  %v3175_v43 = vsub.f32 %v9902_v11, %v10093_v9  ;;  %v11961_v15 = vld [vmem:[#allocation24_spill] sm:$0xff] }
 0x452   :  { %7890 = vmatprep.mubr.f32.mxu1 %v10152_v59  ;;  %7804 = vmatprep.mubr.f32.mxu0 %v3313_v61  ;;  %3357 = vst [vmem:[#allocation2 + $0x128] sm:$0xff] %v3317_v24  ;;  %v3176_v57 = vsub.f32 %v11960_v23, %v10093_v9  ;;  %v3177_v61 = vsub.f32 %v11961_v15, %v10093_v9 }
 0x453   :  { %v3318_v21 = vadd.f32 %v9987_v41, %v3269_v40  ;;  %7946 = vmatpush3.msra.mxu0 %v4053_v29 }
 0x454   :  { %7947 = vmatprep.subr.mxu0 %v4052_v54 }
 0x455   :  { %7891 = vmatmul.mubr.f32.gmra.mxu1 %v10157_v22  ;;  %7805 = vmatmul.mubr.f32.gmra.mxu0 %v3314_v48  ;;  %3358 = vst [vmem:[#allocation2 + $0x130] sm:$0xff] %v3318_v21  ;;  %v3178_v48 = vsub.f32 %v11962_v52, %v10093_v9 }
 0x456   :  { %7807 = vmatprep.mubr.f32.mxu0 %v3315_v8  ;;  %v3391_v0 = vld [vmem:[#allocation2 + $0xf4] sm:$0xff]  ;;  %v10164_v16 = vld [vmem:[#allocation2 + $0xfc] sm:$0xff]  ;;  %7948 = vmatpush3.msra.mxu0 %v4052_v54 }
 0x457   :  { %7893 = vmatprep.mubr.f32.mxu1 %v3391_v0  ;;  %v10179_v8 = vld [vmem:[#allocation2 + $0x104] sm:$0xff]  ;;  %v10182_v0 = vld [vmem:[#allocation2 + $0x10c] sm:$0xff] }
 0x458   :  { %v8315_v12 = vpop.eup %8314 }
 0x459   :  { %7894 = vmatmul.mubr.f32.gmra.mxu1 %v10164_v16  ;;  %7808 = vmatmul.mubr.f32.gmra.mxu0 %v3316_v18  ;;  %v3221_v56 = vmul.f32 %v8315_v12, %v3171_v39  ;;  %v3222_v11 = vmul.f32 %v8315_v12, %v3172_v38  ;;  %v3223_v36 = vmul.f32 %v8315_v12, %v3173_v62  ;;  %v10188_v18 = vld [vmem:[#allocation2 + $0x114] sm:$0xff] }
 0x45a   :  { %7896 = vmatprep.mubr.f32.mxu1 %v10179_v8  ;;  %7810 = vmatprep.mubr.f32.mxu0 %v3317_v24  ;;  %v3224_v40 = vmul.f32 %v8315_v12, %v3174_v26  ;;  %v3225_v29 = vmul.f32 %v8315_v12, %v3175_v43  ;;  %v3226_v54 = vmul.f32 %v8315_v12, %v3176_v57  ;;  %v10202_v43 = vld [vmem:[#allocation2 + $0x11c] sm:$0xff]  ;;  %v4018_v57 = vld [vmem:[#allocation2 + $0x44] sm:$0xff] }
 0x45b   :  { %v3227_v32 = vmul.f32 %v8315_v12, %v3177_v61  ;;  %v3270_v2 = vmul.f32 %v9936_v28, %v3221_v56  ;;  %v3271_v9 = vmul.f32 %v9938_v5, %v3222_v11  ;;  %v3272_v23 = vmul.f32 %v9944_v13, %v3223_v36 }
 0x45c   :  { %v3228_v15 = vmul.f32 %v8315_v12, %v3178_v48  ;;  %v3273_v24 = vmul.f32 %v9946_v3, %v3224_v40  ;;  %v3274_v39 = vmul.f32 %v9948_v45, %v3225_v29  ;;  %v3275_v38 = vmul.f32 %v9952_v42, %v3226_v54  ;;  %v10206_v42 = vld [vmem:[#allocation2 + $0x124] sm:$0xff] }
 0x45d   :  { %7897 = vmatmul.mubr.f32.gmra.mxu1 %v10182_v0  ;;  %7811 = vmatmul.mubr.f32.gmra.mxu0 %v3318_v21  ;;  %v3319_v28 = vadd.f32 %v9950_v30, %v3270_v2  ;;  %v3320_v5 = vadd.f32 %v9956_v50, %v3271_v9  ;;  %v3321_v13 = vadd.f32 %v9958_v14, %v3272_v23  ;;  %v3398_v50 = vld [vmem:[#allocation2 + $0x12c] sm:$0xff] }
 0x45e   :  { %7899 = vmatprep.mubr.f32.mxu1 %v10188_v18  ;;  %v3276_v62 = vmul.f32 %v9954_v44, %v3227_v32  ;;  %v3322_v26 = vadd.f32 %v9960_v19, %v3273_v24  ;;  %v3323_v21 = vadd.f32 %v9965_v34, %v3274_v39  ;;  %v3324_v3 = vadd.f32 %v9967_v63, %v3275_v38 }
 0x45f   :  { %v3277_v45 = vmul.f32 %v9975_v17, %v3228_v15  ;;  %3359 = vst [vmem:[#allocation2 + $0x148] sm:$0xff] %v3319_v28  ;;  %7813 = vmatprep.mubr.f32.mxu0 %v3319_v28  ;;  %3360 = vst [vmem:[#allocation2 + $0x150] sm:$0xff] %v3320_v5 }
 0x460   :  { %3361 = vst [vmem:[#allocation2 + $0x158] sm:$0xff] %v3321_v13  ;;  %v3325_v30 = vadd.f32 %v9969_v37, %v3276_v62  ;;  %3362 = vst [vmem:[#allocation2 + $0x160] sm:$0xff] %v3322_v26 }
 0x461   :  { %7900 = vmatmul.mubr.f32.gmra.mxu1 %v10202_v43  ;;  %7814 = vmatmul.mubr.f32.gmra.mxu0 %v3320_v5  ;;  %3363 = vst [vmem:[#allocation2 + $0x168] sm:$0xff] %v3323_v21  ;;  %3364 = vst [vmem:[#allocation2 + $0x170] sm:$0xff] %v3324_v3  ;;  %v3326_v44 = vadd.f32 %v9987_v41, %v3277_v45 }
 0x462   :  { %7902 = vmatprep.mubr.f32.mxu1 %v10206_v42  ;;  %7816 = vmatprep.mubr.f32.mxu0 %v3321_v13  ;;  %3365 = vst [vmem:[#allocation2 + $0x178] sm:$0xff] %v3325_v30 }
 0x463   :  { %3366 = vst [vmem:[#allocation2 + $0x180] sm:$0xff] %v3326_v44 }
 0x465   :  { %7903 = vmatmul.mubr.f32.gmra.mxu1 %v3398_v50  ;;  %7817 = vmatmul.mubr.f32.gmra.mxu0 %v3322_v26 }
 0x466   :  { %7819 = vmatprep.mubr.f32.mxu0 %v3323_v21  ;;  %v3399_v14 = vld [vmem:[#allocation2 + $0x144] sm:$0xff]  ;;  %v3400_v19 = vld [vmem:[#allocation2 + $0x14c] sm:$0xff] }
 0x467   :  { %7905 = vmatprep.mubr.f32.mxu1 %v3399_v14  ;;  %v3401_v34 = vld [vmem:[#allocation2 + $0x154] sm:$0xff]  ;;  %v3402_v63 = vld [vmem:[#allocation2 + $0x15c] sm:$0xff] }
 0x468   :  { %v3403_v37 = vld [vmem:[#allocation2 + $0x164] sm:$0xff]  ;;  %v3404_v17 = vld [vmem:[#allocation2 + $0x16c] sm:$0xff] }
 0x469   :  { %7906 = vmatmul.mubr.f32.gmra.mxu1 %v3400_v19  ;;  %7820 = vmatmul.mubr.f32.gmra.mxu0 %v3324_v3  ;;  %v3405_v41 = vld [vmem:[#allocation2 + $0x174] sm:$0xff] }
 0x46a   :  { %7908 = vmatprep.mubr.f32.mxu1 %v3401_v34  ;;  %7822 = vmatprep.mubr.f32.mxu0 %v3325_v30  ;;  %v3406_v12 = vld [vmem:[#allocation2 + $0x17c] sm:$0xff] }
 0x46b   :  { %v5021_v30 = vld [vmem:[#allocation6 + $0x570] sm:$0xff] }
 0x46d   :  { %7909 = vmatmul.mubr.f32.gmra.mxu1 %v3402_v63  ;;  %7823 = vmatmul.mubr.f32.gmra.mxu0 %v3326_v44  ;;  %v5020_v44 = vld [vmem:[#allocation6 + $0x568] sm:$0xff] }
 0x46e   :  { %7911 = vmatprep.mubr.f32.mxu1 %v3403_v37  ;;  %7949 = vmatprep.mubr.f32.mxu0 %v9997_v4  ;;  %v4026_v4 = vld [vmem:[#allocation2 + $0x94] sm:$0xff] }
 0x471   :  { %7912 = vmatmul.mubr.f32.gmra.mxu1 %v3404_v17  ;;  %7950 = vmatmul.mubr.f32.vlgmr.msra.gmra.mxu0 %v10012_v27  ;;  %v4034_v27 = vld [vmem:[#allocation2 + $0xe4] sm:$0xff] }
 0x472   :  { %7914 = vmatprep.mubr.f32.mxu1 %v3405_v41  ;;  %7952 = vmatprep.mubr.f32.mxu0 %v10015_v10  ;;  %v4042_v10 = vld [vmem:[#allocation2 + $0x134] sm:$0xff] }
 0x475   :  { %7915 = vmatmul.mubr.f32.gmra.mxu1 %v3406_v12  ;;  %7953 = vmatmul.mubr.f32.gmra.mxu0 %v10021_v35  ;;  %v4050_v35 = vld [vmem:[#allocation2 + $0x184] sm:$0xff] }
 0x476   :  { %7955 = vmatprep.mubr.f32.mxu0 %v10034_v58  ;;  %v8336_v58 = vld [vmem:[#allocation2] sm:$0xff] }
 0x479   :  { %7956 = vmatmul.mubr.f32.gmra.mxu0 %v10039_v55 }
 0x47a   :  { %7958 = vmatprep.mubr.f32.mxu0 %v10045_v31 }
 0x47d   :  { %7959 = vmatmul.mubr.f32.gmra.mxu0 %v4018_v57  ;;  %v5016_v57 = vld [vmem:[#allocation6 + $0x548] sm:$0xff] }
 0x47e   :  { %7961 = vmatprep.mubr.f32.mxu0 %v10054_v53 }
 0x481   :  { %7962 = vmatmul.mubr.f32.gmra.mxu0 %v10069_v51 }
 0x482   :  { %7964 = vmatprep.mubr.f32.mxu0 %v10072_v49 }
 0x485   :  { %7965 = vmatmul.mubr.f32.gmra.mxu0 %v10078_v1 }
 0x486   :  { %7967 = vmatprep.mubr.f32.mxu0 %v10091_v20 }
 0x489   :  { %7968 = vmatmul.mubr.f32.gmra.mxu0 %v10097_v7 }
 0x48a   :  { %7970 = vmatprep.mubr.f32.mxu0 %v10103_v25 }
 0x48d   :  { %7971 = vmatmul.mubr.f32.gmra.mxu0 %v4026_v4 }
 0x48e   :  { %7973 = vmatprep.mubr.f32.mxu0 %v10111_v33 }
 0x491   :  { %7974 = vmatmul.mubr.f32.gmra.mxu0 %v10126_v47 }
 0x492   :  { %7976 = vmatprep.mubr.f32.mxu0 %v10129_v60 }
 0x495   :  { %7977 = vmatmul.mubr.f32.gmra.mxu0 %v10135_v46 }
 0x496   :  { %7979 = vmatprep.mubr.f32.mxu0 %v10148_v6 }
 0x499   :  { %7980 = vmatmul.mubr.f32.gmra.mxu0 %v10152_v59 }
 0x49a   :  { %7982 = vmatprep.mubr.f32.mxu0 %v10157_v22 }
 0x49d   :  { %7983 = vmatmul.mubr.f32.gmra.mxu0 %v4034_v27 }
 0x49e   :  { %7985 = vmatprep.mubr.f32.mxu0 %v10164_v16 }
 0x4a1   :  { %7986 = vmatmul.mubr.f32.gmra.mxu0 %v10179_v8 }
 0x4a2   :  { %7988 = vmatprep.mubr.f32.mxu0 %v10182_v0 }
 0x4a5   :  { %7989 = vmatmul.mubr.f32.gmra.mxu0 %v10188_v18 }
 0x4a6   :  { %7991 = vmatprep.mubr.f32.mxu0 %v10202_v43  ;;  %v5022_v43 = vld [vmem:[#allocation6 + $0x578] sm:$0xff] }
 0x4a7   :  { %8009 = vmatprep.subr.mxu1 %v5022_v43 }
 0x4a8   :  { %8010 = vmatpush3.msra.mxu1 %v5022_v43 }
 0x4a9   :  { %7992 = vmatmul.mubr.f32.gmra.mxu0 %v10206_v42  ;;  %8011 = vmatprep.subr.mxu1 %v5021_v30 }
 0x4aa   :  { %7994 = vmatprep.mubr.f32.mxu0 %v3398_v50  ;;  %8012 = vmatpush3.msra.mxu1 %v5021_v30 }
 0x4ab   :  { %8013 = vmatprep.subr.mxu1 %v5020_v44 }
 0x4ac   :  { %8014 = vmatpush3.msra.mxu1 %v5020_v44 }
 0x4ad   :  { %7995 = vmatmul.mubr.f32.gmra.mxu0 %v4042_v10  ;;  %v5015_v10 = vld [vmem:[#allocation6 + $0x540] sm:$0xff] }
 0x4ae   :  { %7997 = vmatprep.mubr.f32.mxu0 %v3400_v19  ;;  %v5019_v19 = vld [vmem:[#allocation6 + $0x560] sm:$0xff] }
 0x4af   :  { %8015 = vmatprep.subr.mxu1 %v5019_v19 }
 0x4b0   :  { %8016 = vmatpush3.msra.mxu1 %v5019_v19 }
 0x4b1   :  { %7998 = vmatmul.mubr.f32.gmra.mxu0 %v3401_v34 }
 0x4b2   :  { %8000 = vmatprep.mubr.f32.mxu0 %v3402_v63  ;;  %v5018_v63 = vld [vmem:[#allocation6 + $0x558] sm:$0xff] }
 0x4b3   :  { %8017 = vmatprep.subr.mxu1 %v5018_v63 }
 0x4b4   :  { %8018 = vmatpush3.msra.mxu1 %v5018_v63 }
 0x4b5   :  { %8001 = vmatmul.mubr.f32.gmra.mxu0 %v3403_v37 }
 0x4b6   :  { %8003 = vmatprep.mubr.f32.mxu0 %v3404_v17 }
 0x4b9   :  { %8004 = vmatmul.mubr.f32.gmra.mxu0 %v3405_v41  ;;  %v5017_v41 = vld [vmem:[#allocation6 + $0x550] sm:$0xff] }
 0x4ba   :  { %8006 = vmatprep.mubr.f32.mxu0 %v3406_v12  ;;  %8019 = vmatprep.subr.mxu1 %v5017_v41 }
 0x4bb   :  { %8020 = vmatpush3.msra.mxu1 %v5017_v41 }
 0x4bc   :  { %8021 = vmatprep.subr.mxu1 %v5016_v57 }
 0x4bd   :  { %8007 = vmatmul.mubr.f32.gmra.mxu0 %v4050_v35  ;;  %8022 = vmatpush3.msra.mxu1 %v5016_v57 }
 0x4be   :  { %8133 = vmatprep.mubr.f32.mxu0 %v8336_v58  ;;  %v5014_v58 = vld [vmem:[#allocation6 + $0x538] sm:$0xff]  ;;  %8023 = vmatprep.subr.mxu1 %v5015_v10 }
 0x4bf   :  { %8024 = vmatpush3.msra.mxu1 %v5015_v10 }
 0x4c0   :  { %8025 = vmatprep.subr.mxu1 %v5014_v58 }
 0x4c1   :  { %8026 = vmatpush3.msra.mxu1 %v5014_v58 }
 0x4e0   :  { %v10237_v55 = vpop.f32.mrf.mxu0 }
 0x4e2   :  { %v10239_v31 = vpop.f32.mrf.mxu0 }
 0x4e4   :  { %v10241_v53 = vpop.f32.mrf.mxu0 }
 0x4e6   :  { %v10243_v51 = vpop.f32.mrf.mxu0 }
 0x4e8   :  { %v10245_v49 = vpop.f32.mrf.mxu1  ;;  %v10247_v1 = vpop.f32.mrf.mxu0 }
 0x4e9   :  { %v3818_v57 = vadd.f32 %v10245_v49, %v10237_v55 }
 0x4ea   :  { %v10249_v20 = vpop.f32.mrf.mxu1  ;;  %v10251_v7 = vpop.f32.mrf.mxu0 }
 0x4eb   :  { %v3813_v10 = vadd.f32 %v10249_v20, %v10239_v31 }
 0x4ec   :  { %v10253_v25 = vpop.f32.mrf.mxu1  ;;  %v10255_v33 = vpop.f32.mrf.mxu0 }
 0x4ed   :  { %v3828_v58 = vadd.f32 %v10253_v25, %v10241_v53 }
 0x4ee   :  { %v10257_v47 = vpop.f32.mrf.mxu1  ;;  %v10259_v60 = vpop.f32.mrf.mxu0 }
 0x4f0   :  { %v10261_v46 = vpop.f32.mrf.mxu1  ;;  %v10263_v6 = vpop.f32.mrf.mxu0 }
 0x4f1   :  { %v3838_v31 = vadd.f32 %v10261_v46, %v10247_v1 }
 0x4f2   :  { %v10265_v59 = vpop.f32.mrf.mxu1  ;;  %v10267_v22 = vpop.f32.mrf.mxu0 }
 0x4f3   :  { %v3833_v53 = vadd.f32 %v10265_v59, %v10251_v7 }
 0x4f4   :  { %v10269_v16 = vpop.f32.mrf.mxu1  ;;  %v10271_v61 = vpop.f32.mrf.mxu0 }
 0x4f5   :  { %v3848_v25 = vadd.f32 %v10269_v16, %v10255_v33 }
 0x4f6   :  { %v10273_v52 = vpop.f32.mrf.mxu0  ;;  %v10275_v48 = vpop.f32.mrf.mxu1 }
 0x4f8   :  { %v10277_v8 = vpop.f32.mrf.mxu0  ;;  %v10281_v11 = vpop.f32.mrf.mxu1 }
 0x4f9   :  { %v3858_v1 = vadd.f32 %v10281_v11, %v10263_v6 }
 0x4fa   :  { %v10279_v56 = vpop.f32.mrf.mxu0  ;;  %v10287_v29 = vpop.f32.mrf.mxu1 }
 0x4fb   :  { %v3853_v46 = vadd.f32 %v10287_v29, %v10267_v22 }
 0x4fc   :  { %v10283_v36 = vpop.f32.mrf.mxu0  ;;  %v10293_v0 = vpop.f32.mrf.mxu1 }
 0x4fd   :  { %v3868_v7 = vadd.f32 %v10293_v0, %v10271_v61 }
 0x4fe   :  { %v10285_v40 = vpop.f32.mrf.mxu0  ;;  %v10299_v23 = vpop.f32.mrf.mxu1 }
 0x4ff   :  { %v10398_v33 = vadd.f32 %v10299_v23, %v10273_v52 }
 0x500   :  { %v10305_v24 = vpop.f32.mrf.mxu1 }
 0x501   :  { %v10289_v54 = vpop.f32.mrf.mxu0  ;;  %v10405_v6 = vadd.f32 %v10305_v24, %v10277_v8 }
 0x502   :  { %v10311_v28 = vpop.f32.mrf.mxu1 }
 0x503   :  { %v10291_v32 = vpop.f32.mrf.mxu0  ;;  %v10409_v22 = vadd.f32 %v10311_v28, %v10279_v56 }
 0x504   :  { %v10317_v62 = vpop.f32.mrf.mxu1 }
 0x505   :  { %v10295_v2 = vpop.f32.mrf.mxu0  ;;  %v10422_v24 = vadd.f32 %v10317_v62, %v10283_v36 }
 0x506   :  { %v10323_v3 = vpop.f32.mrf.mxu1 }
 0x507   :  { %v10297_v9 = vpop.f32.mrf.mxu0  ;;  %v10426_v56 = vadd.f32 %v10323_v3, %v10285_v40 }
 0x509   :  { %v10301_v15 = vpop.f32.mrf.mxu0  ;;  %v10329_v50 = vpop.f32.mrf.mxu1 }
 0x50b   :  { %v10303_v18 = vpop.f32.mrf.mxu0  ;;  %v10335_v37 = vpop.f32.mrf.mxu1 }
 0x50c   :  { %v10438_v36 = vadd.f32 %v10335_v37, %v10291_v32 }
 0x50d   :  { %v10307_v39 = vpop.f32.mrf.mxu0  ;;  %v10341_v4 = vpop.f32.mrf.mxu1 }
 0x50f   :  { %v10309_v38 = vpop.f32.mrf.mxu0  ;;  %v10347_v43 = vpop.f32.mrf.mxu1 }
 0x511   :  { %v10313_v5 = vpop.f32.mrf.mxu0  ;;  %v10353_v19 = vpop.f32.mrf.mxu1 }
 0x513   :  { %v10315_v13 = vpop.f32.mrf.mxu0 }
 0x515   :  { %v10319_v26 = vpop.f32.mrf.mxu0 }
 0x517   :  { %v10321_v21 = vpop.f32.mrf.mxu0 }
 0x519   :  { %v10325_v45 = vpop.f32.mrf.mxu0 }
 0x51b   :  { %v10327_v42 = vpop.f32.mrf.mxu0 }
 0x51c   :  { %11963 = vst [vmem:[#allocation26_spill] sm:$0xff] %v10327_v42 }
 0x51d   :  { %v10331_v14 = vpop.f32.mrf.mxu0 }
 0x51e   :  { %11964 = vst [vmem:[#allocation27_spill] sm:$0xff] %v10331_v14  ;;  %v3823_v14 = vadd.f32 %v10257_v47, %v10243_v51  ;;  %v3843_v47 = vadd.f32 %v10275_v48, %v10259_v60 }
 0x51f   :  { %v10333_v34 = vpop.f32.mrf.mxu0 }
 0x520   :  { %11965 = vst [vmem:[#allocation28_spill] sm:$0xff] %v10333_v34 }
 0x521   :  { %v10337_v17 = vpop.f32.mrf.mxu0 }
 0x522   :  { %11966 = vst [vmem:[#allocation29_spill] sm:$0xff] %v10337_v17 }
 0x523   :  { %v10339_v12 = vpop.f32.mrf.mxu0 }
 0x524   :  { %11967 = vst [vmem:[#allocation17_spill] sm:$0xff] %v10339_v12  ;;  %v10363_v12 = vld [vmem:[#allocation8 + $0x2] ss:$0 sm:$0xff] }
 0x525   :  { %v10343_v27 = vpop.f32.mrf.mxu0 }
 0x526   :  { %11968 = vst [vmem:[#allocation18_spill] sm:$0xff] %v10343_v27 }
 0x527   :  { %v10345_v35 = vpop.f32.mrf.mxu0 }
 0x528   :  { %11969 = vst [vmem:[#allocation20_spill] sm:$0xff] %v10345_v35  ;;  %v10361_v35 = vpop.f32.mrf.mxu1 }
 0x529   :  { %v10349_v30 = vpop.f32.mrf.mxu0 }
 0x52a   :  { %11970 = vst [vmem:[#allocation19_spill] sm:$0xff] %v10349_v30 }
 0x52b   :  { %v10351_v44 = vpop.f32.mrf.mxu0 }
 0x52c   :  { %11971 = vst [vmem:[#allocation21_spill] sm:$0xff] %v10351_v44 }
 0x52d   :  { %v10355_v63 = vpop.f32.mrf.mxu0 }
 0x52e   :  { %11972 = vst [vmem:[#allocation22_spill] sm:$0xff] %v10355_v63 }
 0x52f   :  { %v10357_v41 = vpop.f32.mrf.mxu0 }
 0x530   :  { %11973 = vst [vmem:[#allocation23_spill] sm:$0xff] %v10357_v41  ;;  %v10370_v41 = vpop.f32.mrf.mxu1 }
 0x531   :  { %v7951_v27 = vpop.f32.mrf.mxu0 }
 0x532   :  { %v4334_v30 = vadd.f32 %v7951_v27, %v3818_v57 }
 0x533   :  { %v4134_v44 = vpop.f32.mrf.mxu0 }
 0x534   :  { %v4382_v63 = vadd.f32 %v10363_v12, %v4334_v30  ;;  %v4333_v17 = vadd.f32 %v4134_v44, %v3813_v10  ;;  %v10385_v30 = vpop.f32.mrf.mxu1 }
 0x535   :  { %v7954_v34 = vpop.f32.mrf.mxu0 }
 0x536   :  { %v4381_v55 = vadd.f32 %v10363_v12, %v4333_v17  ;;  %v4336_v49 = vadd.f32 %v7954_v34, %v3828_v58  ;;  %v10377_v20 = vmax.f32 %v4382_v63, 0.0  ;;  %v7895_v52 = vpop.f32.mrf.mxu1 }
 0x537   :  { %v4144_v42 = vpop.f32.mrf.mxu0 }
 0x538   :  { %v10379_v27 = vmax.f32 %v4381_v55, 0.0  ;;  %v4384_v34 = vadd.f32 %v10363_v12, %v4336_v49  ;;  %v4335_v17 = vadd.f32 %v4144_v42, %v3823_v14  ;;  %v4577_v61 = vmul.f32 %v10377_v20, %v10377_v20  ;;  %v3932_v55 = vpop.f32.mrf.mxu1 }
 0x539   :  { %v7957_v51 = vpop.f32.mrf.mxu0  ;;  %v10431_v14 = vadd.f32 %v10329_v50, %v10289_v54 }
 0x53a   :  { %v4338_v44 = vadd.f32 %v7957_v51, %v3838_v31  ;;  %v4576_v59 = vmul.f32 %v10379_v27, %v10379_v27  ;;  %v4383_v16 = vadd.f32 %v10363_v12, %v4335_v17  ;;  %v4501_v11 = vadd.f32 %v10377_v20, %v10379_v27 }
 0x53b   :  { %v4154_v60 = vpop.f32.mrf.mxu0  ;;  %v10415_v29 = vmax.f32 %v4384_v34, 0.0  ;;  %v10453_v17 = vadd.f32 %v10341_v4, %v10295_v2  ;;  %v10457_v51 = vadd.f32 %v10347_v43, %v10297_v9 }
 0x53c   :  { %v4337_v48 = vadd.f32 %v4154_v60, %v3833_v53  ;;  %v10417_v0 = vmax.f32 %v4383_v16, 0.0  ;;  %v4386_v23 = vadd.f32 %v10363_v12, %v4338_v44  ;;  %v4616_v63 = vadd.f32 %v4577_v61, %v4576_v59 }
 0x53d   :  { %v7960_v8 = vpop.f32.mrf.mxu0  ;;  %v4579_v54 = vmul.f32 %v10415_v29, %v10415_v29  ;;  %v10462_v16 = vadd.f32 %v10353_v19, %v10301_v15 }
 0x53e   :  { %v4385_v28 = vadd.f32 %v10363_v12, %v4337_v48  ;;  %v4340_v42 = vadd.f32 %v7960_v8, %v3848_v25  ;;  %v4502_v57 = vadd.f32 %v4501_v11, %v10417_v0  ;;  %v4578_v10 = vmul.f32 %v10417_v0, %v10417_v0  ;;  %v7898_v48 = vpop.f32.mrf.mxu1 }
 0x53f   :  { %v4164_v58 = vpop.f32.mrf.mxu0  ;;  %v10445_v49 = vmax.f32 %v4386_v23, 0.0 }
 0x540   :  { %v10440_v40 = vmax.f32 %v4385_v28, 0.0  ;;  %v4388_v62 = vadd.f32 %v10363_v12, %v4340_v42  ;;  %v4339_v3 = vadd.f32 %v4164_v58, %v3843_v47  ;;  %v4617_v50 = vadd.f32 %v4616_v63, %v4578_v10 }
 0x541   :  { %v4503_v31 = vadd.f32 %v4502_v57, %v10415_v29  ;;  %v7963_v53 = vpop.f32.mrf.mxu0  ;;  %v4581_v2 = vmul.f32 %v10445_v49, %v10445_v49  ;;  %v10481_v28 = vadd.f32 %v10361_v35, %v10303_v18  ;;  %v10485_v42 = vadd.f32 %v10370_v41, %v10307_v39  ;;  %v3942_v35 = vpop.f32.mrf.mxu1 }
 0x542   :  { %v4580_v25 = vmul.f32 %v10440_v40, %v10440_v40  ;;  %v4428_v32 = vmax.f32 %v4388_v62, 0.0  ;;  %v4387_v37 = vadd.f32 %v10363_v12, %v4339_v3  ;;  %v4342_v34 = vadd.f32 %v7963_v53, %v3858_v1 }
 0x543   :  { %v4504_v47 = vadd.f32 %v4503_v31, %v10440_v40  ;;  %v4618_v44 = vadd.f32 %v4617_v50, %v4579_v54  ;;  %v4174_v59 = vpop.f32.mrf.mxu0  ;;  %v10490_v58 = vadd.f32 %v10385_v30, %v10309_v38  ;;  %v10497_v18 = vadd.f32 %v7895_v52, %v10313_v5 }
 0x544   :  { %v10464_v60 = vmax.f32 %v4387_v37, 0.0  ;;  %v4390_v1 = vadd.f32 %v10363_v12, %v4342_v34  ;;  %v4341_v61 = vadd.f32 %v4174_v59, %v3853_v46  ;;  %v10471_v43 = vsel %vm200_vm0, %v4428_v32, 0.0 }
 0x545   :  { %v4619_v4 = vadd.f32 %v4618_v44, %v4580_v25  ;;  %v4505_v11 = vadd.f32 %v4504_v47, %v10445_v49  ;;  %v7966_v23 = vpop.f32.mrf.mxu0  ;;  %v4583_v39 = vmul.f32 %v10471_v43, %v10471_v43  ;;  %v10503_v38 = vadd.f32 %v3932_v55, %v10315_v13  ;;  %v7901_v47 = vpop.f32.mrf.mxu1 }
 0x546   :  { %v4582_v15 = vmul.f32 %v10464_v60, %v10464_v60  ;;  %v10476_v19 = vmax.f32 %v4390_v1, 0.0  ;;  %v4389_v8 = vadd.f32 %v10363_v12, %v4341_v61  ;;  %v4344_v46 = vadd.f32 %v7966_v23, %v3868_v7 }
 0x547   :  { %v4506_v63 = vadd.f32 %v4505_v11, %v10464_v60  ;;  %v4184_v57 = vpop.f32.mrf.mxu0  ;;  %v4620_v10 = vadd.f32 %v4619_v4, %v4581_v2  ;;  %v10514_v37 = vadd.f32 %v7898_v48, %v10319_v26 }
 0x548   :  { %v10492_v62 = vmax.f32 %v4389_v8, 0.0  ;;  %v4392_v7 = vadd.f32 %v10363_v12, %v4344_v46  ;;  %v4343_v3 = vadd.f32 %v4184_v57, %v10398_v33  ;;  %v4585_v30 = vmul.f32 %v10476_v19, %v10476_v19 }
 0x549   :  { %v7969_v41 = vpop.f32.mrf.mxu0  ;;  %v4507_v54 = vadd.f32 %v4506_v63, %v10471_v43  ;;  %v4621_v50 = vadd.f32 %v4620_v10, %v4582_v15 }
 0x54a   :  { %v4584_v33 = vmul.f32 %v10492_v62, %v10492_v62  ;;  %v4391_v5 = vadd.f32 %v10363_v12, %v4343_v3  ;;  %v10510_v52 = vmax.f32 %v4392_v7, 0.0  ;;  %v4346_v31 = vadd.f32 %v7969_v41, %v10405_v6  ;;  %v3952_v3 = vpop.f32.mrf.mxu1 }
 0x54b   :  { %v4194_v53 = vpop.f32.mrf.mxu0  ;;  %v4508_v25 = vrot.slane %v4507_v54, 4  ;;  %v4622_v32 = vadd.f32 %v4621_v50, %v4583_v39  ;;  %v4514_v13 = vadd.f32 %v10476_v19, %v10492_v62  ;;  %v10536_v7 = vadd.f32 %v3942_v35, %v10321_v21 }
 0x54c   :  { %v10518_v55 = vmax.f32 %v4391_v5, 0.0  ;;  %v4345_v34 = vadd.f32 %v4194_v53, %v10409_v22  ;;  %v4629_v44 = vadd.f32 %v4585_v30, %v4584_v33  ;;  %v4394_v59 = vadd.f32 %v10363_v12, %v4346_v31 }
 0x54d   :  { %v7972_v1 = vpop.f32.mrf.mxu0  ;;  %v4509_v61 = vadd.f32 %v4508_v25, %v4507_v54  ;;  %v4623_v6 = vrot.slane %v4622_v32, 4  ;;  %v4587_v11 = vmul.f32 %v10510_v52, %v10510_v52 }
 0x54e   :  { %v4515_v2 = vadd.f32 %v4514_v13, %v10518_v55  ;;  %v4586_v26 = vmul.f32 %v10518_v55, %v10518_v55  ;;  %v4393_v48 = vadd.f32 %v10363_v12, %v4345_v34  ;;  %v4348_v4 = vadd.f32 %v7972_v1, %v10422_v24 }
 0x54f   :  { %v10529_v22 = vmax.f32 %v4394_v59, 0.0  ;;  %v4204_v23 = vpop.f32.mrf.mxu0  ;;  %v4510_v15 = vrot.slane %v4509_v61, 2  ;;  %v4624_v8 = vadd.f32 %v4623_v6, %v4622_v32 }
 0x550   :  { %v4630_v46 = vadd.f32 %v4629_v44, %v4586_v26  ;;  %v10531_v63 = vmax.f32 %v4393_v48, 0.0  ;;  %v4516_v57 = vadd.f32 %v4515_v2, %v10510_v52  ;;  %v4396_v10 = vadd.f32 %v10363_v12, %v4348_v4  ;;  %v7904_v44 = vpop.f32.mrf.mxu1 }
 0x551   :  { %v4347_v24 = vadd.f32 %v4204_v23, %v10426_v56  ;;  %v7975_v39 = vpop.f32.mrf.mxu0  ;;  %v4511_v41 = vadd.f32 %v4510_v15, %v4509_v61  ;;  %v4625_v54 = vrot.slane %v4624_v8, 2  ;;  %v4589_v56 = vmul.f32 %v10529_v22, %v10529_v22 }
 0x552   :  { %v4517_v50 = vadd.f32 %v4516_v57, %v10531_v63  ;;  %v4588_v30 = vmul.f32 %v10531_v63, %v10531_v63  ;;  %v4631_v33 = vadd.f32 %v4630_v46, %v4587_v11  ;;  %v4436_v5 = vmax.f32 %v4396_v10, 0.0 }
 0x553   :  { %v4395_v31 = vadd.f32 %v10363_v12, %v4347_v24  ;;  %v4350_v53 = vadd.f32 %v7975_v39, %v10431_v14  ;;  %v4214_v25 = vpop.f32.mrf.mxu0  ;;  %v4512_v21 = vrot.slane %v4511_v41, 1  ;;  %v4626_v35 = vadd.f32 %v4625_v54, %v4624_v8  ;;  %v11975_v24 = vld [vmem:[#allocation26_spill] sm:$0xff] }
 0x554   :  { %v4632_v32 = vadd.f32 %v4631_v33, %v4588_v30  ;;  %v4518_v13 = vadd.f32 %v4517_v50, %v10529_v22  ;;  %v4349_v34 = vadd.f32 %v4214_v25, %v10438_v36  ;;  %v10550_v59 = vsel %vm200_vm0, %v4436_v5, 0.0  ;;  %v11976_v30 = vld [vmem:[#allocation27_spill] sm:$0xff] }
 0x555   :  { %v10552_v1 = vmax.f32 %v4395_v31, 0.0  ;;  %v4398_v14 = vadd.f32 %v10363_v12, %v4350_v53  ;;  %v7978_v61 = vpop.f32.mrf.mxu0  ;;  %v4513_v6 = vadd.f32 %v4512_v21, %v4511_v41  ;;  %v4627_v48 = vrot.slane %v4626_v35, 1 }
 0x556   :  { %v4397_v2 = vadd.f32 %v10363_v12, %v4349_v34  ;;  %v4352_v26 = vadd.f32 %v7978_v61, %v10453_v17  ;;  %v4633_v4 = vadd.f32 %v4632_v32, %v4589_v56  ;;  %v10558_v11 = vadd.f32 %v7901_v47, %v10325_v45  ;;  %v3962_v45 = vpop.f32.mrf.mxu1  ;;  %v11977_v56 = vld [vmem:[#allocation28_spill] sm:$0xff] }
 0x557   :  { %v4519_v36 = vadd.f32 %v4518_v13, %v10552_v1  ;;  %v4590_v23 = vmul.f32 %v10552_v1, %v10552_v1  ;;  %v10563_v15 = vmax.f32 %v4398_v14, 0.0  ;;  %4566 = vadd.xlane.f32.xlu0 %v4513_v6  ;;  %v4224_v8 = vpop.f32.mrf.mxu0  ;;  %v4628_v10 = vadd.f32 %v4627_v48, %v4626_v35 }
 0x558   :  { %v10565_v46 = vmax.f32 %v4397_v2, 0.0  ;;  %v4400_v57 = vadd.f32 %v10363_v12, %v4352_v26  ;;  %v4351_v17 = vadd.f32 %v4224_v8, %v10457_v51  ;;  %v10570_v39 = vadd.f32 %v3952_v3, %v11975_v24  ;;  %v7907_v14 = vpop.f32.mrf.mxu1 }
 0x559   :  { %v4591_v47 = vmul.f32 %v10550_v59, %v10550_v59  ;;  %v7981_v41 = vpop.f32.mrf.mxu0  ;;  %v4520_v54 = vadd.f32 %v4519_v36, %v10550_v59  ;;  %v4634_v50 = vadd.f32 %v4633_v4, %v4590_v23  ;;  %v10576_v33 = vadd.f32 %v7904_v44, %v11976_v30  ;;  %4681 = vadd.xlane.f32.xlu1 %v4628_v10 }
 0x55a   :  { %v4593_v5 = vmul.f32 %v10563_v15, %v10563_v15  ;;  %v4592_v51 = vmul.f32 %v10565_v46, %v10565_v46  ;;  %v4399_v3 = vadd.f32 %v10363_v12, %v4351_v17  ;;  %v10583_v31 = vmax.f32 %v4400_v57, 0.0  ;;  %v3972_v30 = vpop.f32.mrf.mxu1 }
 0x55b   :  { %v4354_v53 = vadd.f32 %v7981_v41, %v10462_v16  ;;  %v4234_v25 = vpop.f32.mrf.mxu0  ;;  %v4521_v21 = vrot.slane %v4520_v54, 4  ;;  %v4635_v35 = vadd.f32 %v4634_v50, %v4591_v47  ;;  %v10587_v32 = vadd.f32 %v3962_v45, %v11977_v56 }
 0x55c   :  { %v4527_v13 = vadd.f32 %v10563_v15, %v10565_v46  ;;  %v10591_v34 = vmax.f32 %v4399_v3, 0.0  ;;  %v4353_v44 = vadd.f32 %v4234_v25, %v10481_v28  ;;  %v4642_v61 = vadd.f32 %v4593_v5, %v4592_v51 }
 0x55d   :  { %v4402_v6 = vadd.f32 %v10363_v12, %v4354_v53  ;;  %v7984_v2 = vpop.f32.mrf.mxu0  ;;  %v4522_v26 = vadd.f32 %v4521_v21, %v4520_v54  ;;  %v4636_v16 = vrot.slane %v4635_v35, 4  ;;  %v4595_v8 = vmul.f32 %v10583_v31, %v10583_v31  ;;  %v11978_v54 = vld [vmem:[#allocation29_spill] sm:$0xff] }
 0x55e   :  { %v4528_v48 = vadd.f32 %v4527_v13, %v10591_v34  ;;  %v4594_v4 = vmul.f32 %v10591_v34, %v10591_v34  ;;  %v4401_v36 = vadd.f32 %v10363_v12, %v4353_v44  ;;  %v4356_v23 = vadd.f32 %v7984_v2, %v10485_v42 }
 0x55f   :  { %v10602_v28 = vmax.f32 %v4402_v6, 0.0  ;;  %v4244_v57 = vpop.f32.mrf.mxu0  ;;  %v4523_v17 = vrot.slane %v4522_v26, 2  ;;  %v4637_v10 = vadd.f32 %v4636_v16, %v4635_v35  ;;  %v10609_v50 = vadd.f32 %v7907_v14, %v11978_v54  ;;  %v7910_v16 = vpop.f32.mrf.mxu1 }
 0x560   :  { %v4643_v24 = vadd.f32 %v4642_v61, %v4594_v4  ;;  %v10604_v45 = vmax.f32 %v4401_v36, 0.0  ;;  %v4529_v47 = vadd.f32 %v4528_v48, %v10583_v31  ;;  %v4404_v41 = vadd.f32 %v10363_v12, %v4356_v23 }
 0x561   :  { %v4355_v42 = vadd.f32 %v4244_v57, %v10490_v58  ;;  %v7987_v5 = vpop.f32.mrf.mxu0  ;;  %v4524_v51 = vadd.f32 %v4523_v17, %v4522_v26  ;;  %v4638_v3 = vrot.slane %v4637_v10, 2  ;;  %v4597_v58 = vmul.f32 %v10602_v28, %v10602_v28 }
 0x562   :  { %v4530_v53 = vadd.f32 %v4529_v47, %v10604_v45  ;;  %v4596_v25 = vmul.f32 %v10604_v45, %v10604_v45  ;;  %v4644_v21 = vadd.f32 %v4643_v24, %v4595_v8  ;;  %v4444_v35 = vmax.f32 %v4404_v41, 0.0  ;;  %v5000_v8 = vld [vmem:[#allocation6 + $0x4f8] sm:$0xff] }
 0x563   :  { %v4403_v56 = vadd.f32 %v10363_v12, %v4355_v42  ;;  %v4358_v13 = vadd.f32 %v7987_v5, %v10497_v18  ;;  %v4254_v44 = vpop.f32.mrf.mxu0  ;;  %v4525_v14 = vrot.slane %v4524_v51, 1  ;;  %v4639_v61 = vadd.f32 %v4638_v3, %v4637_v10  ;;  %8101 = vmatprep.subr.mxu0 %v5000_v8 }
 0x564   :  { %v4645_v6 = vadd.f32 %v4644_v21, %v4596_v25  ;;  %v4531_v2 = vadd.f32 %v4530_v53, %v10602_v28  ;;  %v4357_v26 = vadd.f32 %v4254_v44, %v10503_v38  ;;  %v10623_v48 = vsel %vm200_vm0, %v4444_v35, 0.0  ;;  %v11979_v38 = vld [vmem:[#allocation17_spill] sm:$0xff]  ;;  %8102 = vmatpush3.msra.mxu0 %v5000_v8  ;;  %v3982_v35 = vpop.f32.mrf.mxu1  ;;  %v11981_v8 = vld [vmem:[#allocation20_spill] sm:$0xff] }
 0x565   :  { %v10625_v4 = vmax.f32 %v4403_v56, 0.0  ;;  %v4406_v18 = vadd.f32 %v10363_v12, %v4358_v13  ;;  %v7990_v36 = vpop.f32.mrf.mxu0  ;;  %v4526_v23 = vadd.f32 %v4525_v14, %v4524_v51  ;;  %v4640_v10 = vrot.slane %v4639_v61, 1  ;;  %v4999_v51 = vld [vmem:[#allocation6 + $0x4f0] sm:$0xff] }
 0x566   :  { %v4405_v57 = vadd.f32 %v10363_v12, %v4357_v26  ;;  %v4360_v17 = vadd.f32 %v7990_v36, %v10514_v37  ;;  %v4646_v24 = vadd.f32 %v4645_v6, %v4597_v58  ;;  %v10631_v47 = vadd.f32 %v3972_v30, %v11979_v38  ;;  %8103 = vmatprep.subr.mxu0 %v4999_v51  ;;  %v11980_v30 = vld [vmem:[#allocation18_spill] sm:$0xff]  ;;  %v7913_v38 = vpop.f32.mrf.mxu1 }
 0x567   :  { %v4532_v41 = vadd.f32 %v4531_v2, %v10625_v4  ;;  %v4598_v54 = vmul.f32 %v10625_v4, %v10625_v4  ;;  %v10636_v42 = vmax.f32 %v4406_v18, 0.0  ;;  %4568 = vadd.xlane.f32.xlu0 %v4526_v23  ;;  %v4264_v5 = vpop.f32.mrf.mxu0  ;;  %v4641_v25 = vadd.f32 %v4640_v10, %v4639_v61  ;;  %8104 = vmatpush3.msra.mxu0 %v4999_v51  ;;  %v4998_v58 = vld [vmem:[#allocation6 + $0x4e8] sm:$0xff]  ;;  %v4997_v23 = vld [vmem:[#allocation6 + $0x4e0] sm:$0xff] }
 0x568   :  { %v10638_v3 = vmax.f32 %v4405_v57, 0.0  ;;  %v4408_v37 = vadd.f32 %v10363_v12, %v4360_v17  ;;  %v4359_v53 = vadd.f32 %v4264_v5, %v10536_v7  ;;  %v10643_v21 = vadd.f32 %v7910_v16, %v11980_v30  ;;  %8105 = vmatprep.subr.mxu0 %v4998_v58 }
 0x569   :  { %v4599_v56 = vmul.f32 %v10623_v48, %v10623_v48  ;;  %v7993_v13 = vpop.f32.mrf.mxu0  ;;  %v4533_v44 = vadd.f32 %v4532_v41, %v10623_v48  ;;  %v4647_v14 = vadd.f32 %v4646_v24, %v4598_v54  ;;  %v4601_v6 = vmul.f32 %v10636_v42, %v10636_v42  ;;  %4683 = vadd.xlane.f32.xlu1 %v4641_v25 }
 0x56a   :  { %v4600_v7 = vmul.f32 %v10638_v3, %v10638_v3  ;;  %v4407_v61 = vadd.f32 %v10363_v12, %v4359_v53  ;;  %v10653_v2 = vmax.f32 %v4408_v37, 0.0  ;;  %v4362_v26 = vadd.f32 %v7993_v13, %v10558_v11  ;;  %8106 = vmatpush3.msra.mxu0 %v4998_v58  ;;  %v5013_v37 = vld [vmem:[#allocation6 + $0x530] sm:$0xff]  ;;  %v5012_v53 = vld [vmem:[#allocation6 + $0x528] sm:$0xff] }
 0x56b   :  { %v4274_v16 = vpop.f32.mrf.mxu0  ;;  %v4534_v18 = vrot.slane %v4533_v44, 4  ;;  %v4648_v36 = vadd.f32 %v4647_v14, %v4599_v56  ;;  %v10657_v57 = vadd.f32 %v3982_v35, %v11981_v8  ;;  %v4540_v17 = vadd.f32 %v10636_v42, %v10638_v3  ;;  %8107 = vmatprep.subr.mxu0 %v4997_v23  ;;  %8027 = vmatprep.subr.mxu1 %v5013_v37  ;;  %v4996_v56 = vld [vmem:[#allocation6 + $0x4d8] sm:$0xff] }
 0x56c   :  { %v10661_v10 = vmax.f32 %v4407_v61, 0.0  ;;  %v4361_v24 = vadd.f32 %v4274_v16, %v10570_v39  ;;  %v4655_v41 = vadd.f32 %v4601_v6, %v4600_v7  ;;  %v4410_v11 = vadd.f32 %v10363_v12, %v4362_v26  ;;  %8108 = vmatpush3.msra.mxu0 %v4997_v23  ;;  %8028 = vmatpush3.msra.mxu1 %v5013_v37  ;;  %v5011_v7 = vld [vmem:[#allocation6 + $0x520] sm:$0xff]  ;;  %v4995_v61 = vld [vmem:[#allocation6 + $0x4d0] sm:$0xff] }
 0x56d   :  { %v7996_v54 = vpop.f32.mrf.mxu0  ;;  %v4535_v5 = vadd.f32 %v4534_v18, %v4533_v44  ;;  %v4649_v51 = vrot.slane %v4648_v36, 4  ;;  %v4603_v13 = vmul.f32 %v10653_v2, %v10653_v2  ;;  %8109 = vmatprep.subr.mxu0 %v4996_v56  ;;  %8029 = vmatprep.subr.mxu1 %v5012_v53  ;;  %v11982_v23 = vld [vmem:[#allocation19_spill] sm:$0xff] }
 0x56e   :  { %v4541_v25 = vadd.f32 %v4540_v17, %v10661_v10  ;;  %v4602_v30 = vmul.f32 %v10661_v10, %v10661_v10  ;;  %v4409_v35 = vadd.f32 %v10363_v12, %v4361_v24  ;;  %v4364_v39 = vadd.f32 %v7996_v54, %v10576_v33  ;;  %8110 = vmatpush3.msra.mxu0 %v4996_v56  ;;  %v3992_v17 = vpop.f32.mrf.mxu1 }
 0x56f   :  { %v10672_v14 = vmax.f32 %v4410_v11, 0.0  ;;  %v4284_v44 = vpop.f32.mrf.mxu0  ;;  %v4536_v58 = vrot.slane %v4535_v5, 2  ;;  %v4650_v6 = vadd.f32 %v4649_v51, %v4648_v36  ;;  %v10679_v8 = vadd.f32 %v7913_v38, %v11982_v23  ;;  %8030 = vmatpush3.msra.mxu1 %v5012_v53  ;;  %8111 = vmatprep.subr.mxu0 %v4995_v61  ;;  %v4993_v53 = vld [vmem:[#allocation6 + $0x4c0] sm:$0xff] }
 0x570   :  { %v4656_v26 = vadd.f32 %v4655_v41, %v4602_v30  ;;  %v10674_v16 = vmax.f32 %v4409_v35, 0.0  ;;  %v4542_v18 = vadd.f32 %v4541_v25, %v10653_v2  ;;  %v4412_v33 = vadd.f32 %v10363_v12, %v4364_v39  ;;  %v4994_v41 = vld [vmem:[#allocation6 + $0x4c8] sm:$0xff]  ;;  %8031 = vmatprep.subr.mxu1 %v5011_v7  ;;  %8112 = vmatpush3.msra.mxu0 %v4995_v61  ;;  %v7916_v61 = vpop.f32.mrf.mxu1 }
 0x571   :  { %v4363_v24 = vadd.f32 %v4284_v44, %v10587_v32  ;;  %v7999_v36 = vpop.f32.mrf.mxu0  ;;  %v4537_v11 = vadd.f32 %v4536_v58, %v4535_v5  ;;  %v4651_v54 = vrot.slane %v4650_v6, 2  ;;  %8032 = vmatpush3.msra.mxu1 %v5011_v7  ;;  %8113 = vmatprep.subr.mxu0 %v4994_v41  ;;  %v4605_v56 = vmul.f32 %v10672_v14, %v10672_v14 }
 0x572   :  { %v4543_v51 = vadd.f32 %v4542_v18, %v10674_v16  ;;  %v4604_v37 = vmul.f32 %v10674_v16, %v10674_v16  ;;  %v4657_v25 = vadd.f32 %v4656_v26, %v4603_v13  ;;  %v4452_v30 = vmax.f32 %v4412_v33, 0.0  ;;  %8114 = vmatpush3.msra.mxu0 %v4994_v41  ;;  %v4992_v33 = vld [vmem:[#allocation6 + $0x4b8] sm:$0xff] }
 0x573   :  { %v4411_v38 = vadd.f32 %v10363_v12, %v4363_v24  ;;  %v4366_v35 = vadd.f32 %v7999_v36, %v10609_v50  ;;  %v4294_v32 = vpop.f32.mrf.mxu0  ;;  %v4538_v39 = vrot.slane %v4537_v11, 1  ;;  %v4652_v5 = vadd.f32 %v4651_v54, %v4650_v6  ;;  %8115 = vmatprep.subr.mxu0 %v4993_v53  ;;  %v11983_v54 = vld [vmem:[#allocation21_spill] sm:$0xff] }
 0x574   :  { %v4658_v44 = vadd.f32 %v4657_v25, %v4604_v37  ;;  %v4544_v58 = vadd.f32 %v4543_v51, %v10672_v14  ;;  %v4365_v13 = vadd.f32 %v4294_v32, %v10631_v47  ;;  %v10693_v26 = vsel %vm200_vm0, %v4452_v30, 0.0  ;;  %8116 = vmatpush3.msra.mxu0 %v4993_v53  ;;  %v4991_v30 = vld [vmem:[#allocation6 + $0x4b0] sm:$0xff]  ;;  %v4002_v53 = vpop.f32.mrf.mxu1 }
 0x575   :  { %v10695_v50 = vmax.f32 %v4411_v38, 0.0  ;;  %v4414_v6 = vadd.f32 %v10363_v12, %v4366_v35  ;;  %v8002_v7 = vpop.f32.mrf.mxu0  ;;  %v4539_v18 = vadd.f32 %v4538_v39, %v4537_v11  ;;  %v4653_v36 = vrot.slane %v4652_v5, 1  ;;  %8117 = vmatprep.subr.mxu0 %v4992_v33 }
 0x576   :  { %v4413_v23 = vadd.f32 %v10363_v12, %v4365_v13  ;;  %v4368_v24 = vadd.f32 %v8002_v7, %v10643_v21  ;;  %v4659_v47 = vadd.f32 %v4658_v44, %v4605_v56  ;;  %v3993_v41 = vadd.f32 %v3992_v17, %v11983_v54  ;;  %8118 = vmatpush3.msra.mxu0 %v4992_v33  ;;  %v11985_v17 = vld [vmem:[#allocation22_spill] sm:$0xff] }
 0x577   :  { %v4545_v51 = vadd.f32 %v4544_v58, %v10695_v50  ;;  %v4606_v37 = vmul.f32 %v10695_v50, %v10695_v50  ;;  %v10704_v25 = vmax.f32 %v4414_v6, 0.0  ;;  %4570 = vadd.xlane.f32.xlu0 %v4539_v18  ;;  %v4304_v11 = vpop.f32.mrf.mxu0  ;;  %v4654_v32 = vadd.f32 %v4653_v36, %v4652_v5  ;;  %8119 = vmatprep.subr.mxu0 %v4991_v30  ;;  %v4990_v6 = vld [vmem:[#allocation6 + $0x4a8] sm:$0xff]  ;;  %v4989_v36 = vld [vmem:[#allocation6 + $0x4a0] sm:$0xff] }
 0x578   :  { %v10706_v38 = vmax.f32 %v4413_v23, 0.0  ;;  %v4416_v21 = vadd.f32 %v10363_v12, %v4368_v24  ;;  %v4367_v35 = vadd.f32 %v4304_v11, %v10657_v57  ;;  %v4008_v39 = vadd.f32 %v7916_v61, %v11985_v17  ;;  %8120 = vmatpush3.msra.mxu0 %v4991_v30  ;;  %v5010_v17 = vld [vmem:[#allocation6 + $0x518] sm:$0xff] }
 0x579   :  { %11984 = vst [vmem:[#allocation24_spill] sm:$0xff] %v10704_v25  ;;  %v4607_v56 = vmul.f32 %v10693_v26, %v10693_v26  ;;  %v8005_v44 = vpop.f32.mrf.mxu0  ;;  %v4546_v58 = vadd.f32 %v4545_v51, %v10693_v26  ;;  %v4660_v13 = vadd.f32 %v4659_v47, %v4606_v37  ;;  %v4609_v7 = vmul.f32 %v10704_v25, %v10704_v25  ;;  %v11986_v47 = vld [vmem:[#allocation23_spill] sm:$0xff] }
 0x57a   :  { %v4608_v57 = vmul.f32 %v10706_v38, %v10706_v38  ;;  %v4415_v5 = vadd.f32 %v10363_v12, %v4367_v35  ;;  %4685 = vadd.xlane.f32.xlu1 %v4654_v32  ;;  %v10719_v61 = vmax.f32 %v4416_v21, 0.0  ;;  %v4370_v18 = vadd.f32 %v8005_v44, %v10679_v8  ;;  %8121 = vmatprep.subr.mxu0 %v4990_v6  ;;  %v5009_v44 = vld [vmem:[#allocation6 + $0x510] sm:$0xff] }
 0x57b   :  { %v4314_v33 = vpop.f32.mrf.mxu0  ;;  %v4547_v23 = vrot.slane %v4546_v58, 4  ;;  %v4661_v24 = vadd.f32 %v4660_v13, %v4607_v56  ;;  %v4003_v54 = vadd.f32 %v4002_v53, %v11986_v47  ;;  %v4553_v51 = vadd.f32 %v10704_v25, %v10706_v38  ;;  %8122 = vmatpush3.msra.mxu0 %v4990_v6  ;;  %8033 = vmatprep.subr.mxu1 %v5010_v17  ;;  %v4986_v25 = vld [vmem:[#allocation6 + $0x488] sm:$0xff] }
 0x57c   :  { %v10725_v37 = vmax.f32 %v4415_v5, 0.0  ;;  %v4369_v11 = vadd.f32 %v4314_v33, %v3993_v41  ;;  %v4668_v35 = vadd.f32 %v4609_v7, %v4608_v57  ;;  %v4418_v30 = vadd.f32 %v10363_v12, %v4370_v18  ;;  %8123 = vmatprep.subr.mxu0 %v4989_v36  ;;  %v4988_v41 = vld [vmem:[#allocation6 + $0x498] sm:$0xff]  ;;  %8034 = vmatpush3.msra.mxu1 %v5010_v17  ;;  %v5008_v33 = vld [vmem:[#allocation6 + $0x508] sm:$0xff] }
 0x57d   :  { %v8008_v21 = vpop.f32.mrf.mxu0  ;;  %v4548_v32 = vadd.f32 %v4547_v23, %v4546_v58  ;;  %v4662_v8 = vrot.slane %v4661_v24, 4  ;;  %v4611_v6 = vmul.f32 %v10719_v61, %v10719_v61  ;;  %8124 = vmatpush3.msra.mxu0 %v4989_v36  ;;  %v4987_v23 = vld [vmem:[#allocation6 + $0x490] sm:$0xff]  ;;  %8035 = vmatprep.subr.mxu1 %v5009_v44 }
 0x57e   :  { %11987 = vst [vmem:[#allocation25_spill] sm:$0xff] %v10725_v37  ;;  %v4554_v56 = vadd.f32 %v4553_v51, %v10725_v37  ;;  %v4610_v53 = vmul.f32 %v10725_v37, %v10725_v37  ;;  %v4417_v13 = vadd.f32 %v10363_v12, %v4369_v11  ;;  %v4372_v5 = vadd.f32 %v8008_v21, %v4008_v39 }
 0x57f   :  { %v10734_v7 = vmax.f32 %v4418_v30, 0.0  ;;  %v4324_v58 = vpop.f32.mrf.mxu0  ;;  %v4549_v57 = vrot.slane %v4548_v32, 2  ;;  %v4663_v18 = vadd.f32 %v4662_v8, %v4661_v24  ;;  %8125 = vmatprep.subr.mxu0 %v4988_v41  ;;  %8036 = vmatpush3.msra.mxu1 %v5009_v44 }
 0x580   :  { %v4669_v47 = vadd.f32 %v4668_v35, %v4610_v53  ;;  %v10736_v51 = vmax.f32 %v4417_v13, 0.0  ;;  %v4555_v11 = vadd.f32 %v4554_v56, %v10719_v61  ;;  %v4420_v39 = vadd.f32 %v10363_v12, %v4372_v5  ;;  %8126 = vmatpush3.msra.mxu0 %v4988_v41  ;;  %8037 = vmatprep.subr.mxu1 %v5008_v33  ;;  %v5007_v5 = vld [vmem:[#allocation6 + $0x500] sm:$0xff] }
 0x581   :  { %v4371_v21 = vadd.f32 %v4324_v58, %v4003_v54  ;;  %v4550_v37 = vadd.f32 %v4549_v57, %v4548_v32  ;;  %v4664_v30 = vrot.slane %v4663_v18, 2  ;;  %8127 = vmatprep.subr.mxu0 %v4987_v23  ;;  %8038 = vmatpush3.msra.mxu1 %v5008_v33  ;;  %v4985_v54 = vld [vmem:[#allocation6 + $0x480] sm:$0xff]  ;;  %v4613_v32 = vmul.f32 %v10734_v7, %v10734_v7 }
 0x582   :  { %v4556_v24 = vadd.f32 %v4555_v11, %v10736_v51  ;;  %v4612_v36 = vmul.f32 %v10736_v51, %v10736_v51  ;;  %v4670_v35 = vadd.f32 %v4669_v47, %v4611_v6  ;;  %v4460_v8 = vmax.f32 %v4420_v39, 0.0  ;;  %8128 = vmatpush3.msra.mxu0 %v4987_v23  ;;  %8039 = vmatprep.subr.mxu1 %v5007_v5 }
 0x583   :  { %v4419_v17 = vadd.f32 %v10363_v12, %v4371_v21  ;;  %v4551_v56 = vrot.slane %v4550_v37, 1  ;;  %v4665_v53 = vadd.f32 %v4664_v30, %v4663_v18  ;;  %8129 = vmatprep.subr.mxu0 %v4986_v25  ;;  %8040 = vmatpush3.msra.mxu1 %v5007_v5 }
 0x584   :  { %v4671_v44 = vadd.f32 %v4670_v35, %v4612_v36  ;;  %v4557_v13 = vadd.f32 %v4556_v24, %v10734_v7  ;;  %8130 = vmatpush3.msra.mxu0 %v4986_v25  ;;  %v10751_v12 = vsel %vm200_vm0, %v4460_v8, 0.0  ;;  %v10759_v24 = vld [vmem:[#allocation6 + $0x5f8] sm:$0xff] }
 0x585   :  { %v10747_v41 = vmax.f32 %v4419_v17, 0.0  ;;  %v4552_v6 = vadd.f32 %v4551_v56, %v4550_v37  ;;  %v4666_v58 = vrot.slane %v4665_v53, 1  ;;  %11988 = vst [vmem:[#allocation26_spill] sm:$0xff] %v10751_v12  ;;  %8131 = vmatprep.subr.mxu0 %v4985_v54  ;;  %v4615_v37 = vmul.f32 %v10751_v12, %v10751_v12  ;;  %8193 = vmatprep.subr.mxu1 %v10759_v24 }
 0x586   :  { %v4672_v57 = vadd.f32 %v4671_v44, %v4613_v32  ;;  %8132 = vmatpush3.msra.mxu0 %v4985_v54 }
 0x587   :  { %v4558_v18 = vadd.f32 %v4557_v13, %v10747_v41  ;;  %v4614_v33 = vmul.f32 %v10747_v41, %v10747_v41  ;;  %4572 = vadd.xlane.f32.xlu0 %v4552_v6  ;;  %v4667_v23 = vadd.f32 %v4666_v58, %v4665_v53 }
 0x589   :  { %4687 = vadd.xlane.f32.xlu1 %v4667_v23  ;;  %v4559_v25 = vadd.f32 %v4558_v18, %v10751_v12  ;;  %v4673_v47 = vadd.f32 %v4672_v57, %v4614_v33 }
 0x58b   :  { %v4560_v11 = vrot.slane %v4559_v25, 4  ;;  %v4674_v39 = vadd.f32 %v4673_v47, %v4615_v37 }
 0x58d   :  { %v4561_v21 = vadd.f32 %v4560_v11, %v4559_v25  ;;  %v4675_v30 = vrot.slane %v4674_v39, 4 }
 0x58f   :  { %v4562_v36 = vrot.slane %v4561_v21, 2  ;;  %v4676_v35 = vadd.f32 %v4675_v30, %v4674_v39 }
 0x591   :  { %v4563_v8 = vadd.f32 %v4562_v36, %v4561_v21  ;;  %v4677_v17 = vrot.slane %v4676_v35, 2 }
 0x593   :  { %v4564_v56 = vrot.slane %v4563_v8, 1  ;;  %v4678_v53 = vadd.f32 %v4677_v17, %v4676_v35 }
 0x595   :  { %v4565_v54 = vadd.f32 %v4564_v56, %v4563_v8  ;;  %v4679_v32 = vrot.slane %v4678_v53, 1  ;;  %v10770_v56 = vld [vmem:[#allocation9 + $0x80] sm:$0xff] }
 0x597   :  { %4574 = vadd.xlane.f32.xlu0 %v4565_v54  ;;  %v4680_v44 = vadd.f32 %v4679_v32, %v4678_v53  ;;  %v10772_v53 = vld [vmem:[#allocation9 + $0x88] sm:$0xff] }
 0x599   :  { %4689 = vadd.xlane.f32.xlu1 %v4680_v44 }
 0x5e0   :  { %v4567_v13 = vpop.xlane.xlu0 %4566 }
 0x5e1   :  { %v4691_v5 = vmul.f32 0.00017361112, %v4567_v13 }
 0x5e2   :  { %v4682_v6 = vpop.xlane.xlu1 %4681 }
 0x5e3   :  { %v4696_v58 = vmul.f32 0.00017361112, %v4682_v6  ;;  %v4701_v57 = vmul.f32 %v4691_v5, %v4691_v5  ;;  %v4716_v30 = vsub.f32 %v10379_v27, %v4691_v5  ;;  %v4717_v36 = vsub.f32 %v10377_v20, %v4691_v5  ;;  %v10778_v6 = vld [vmem:[#allocation9 + $0x90] sm:$0xff]  ;;  %v10780_v20 = vld [vmem:[#allocation9 + $0x98] sm:$0xff] }
 0x5e4   :  { %v4718_v35 = vsub.f32 %v10417_v0, %v4691_v5  ;;  %v4719_v8 = vsub.f32 %v10415_v29, %v4691_v5  ;;  %v4720_v32 = vsub.f32 %v10440_v40, %v4691_v5  ;;  %v4721_v44 = vsub.f32 %v10445_v49, %v4691_v5  ;;  %v10782_v0 = vld [vmem:[#allocation9 + $0xa0] sm:$0xff]  ;;  %v10788_v40 = vld [vmem:[#allocation9 + $0xb0] sm:$0xff]  ;;  %v10790_v49 = vld [vmem:[#allocation11 + $0x88] sm:$0xff] }
 0x5e5   :  { %v4706_v18 = vsub.f32 %v4696_v58, %v4701_v57  ;;  %v4722_v13 = vsub.f32 %v10464_v60, %v4691_v5  ;;  %v4723_v27 = vsub.f32 %v10471_v43, %v4691_v5  ;;  %v10784_v57 = vld [vmem:[#allocation11 + $0x80] sm:$0xff]  ;;  %v10792_v60 = vld [vmem:[#allocation11 + $0x90] sm:$0xff]  ;;  %v10794_v5 = vld [vmem:[#allocation11 + $0x98] sm:$0xff] }
 0x5e7   :  { %v4711_v33 = vmax.f32 %v4706_v18, 0.0 }
 0x5e9   :  { %v4756_v23 = vadd.f32 1e-05, %v4711_v33 }
 0x5eb   :  { %8316 = vrsqrt.f32 %v4756_v23  ;;  %v10786_v23 = vld [vmem:[#allocation9 + $0xa8] sm:$0xff] }
 0x5f0   :  { %v4569_v37 = vpop.xlane.xlu0 %4568 }
 0x5f1   :  { %v10762_v25 = vmul.f32 0.00017361112, %v4569_v37 }
 0x5f2   :  { %v4684_v47 = vpop.xlane.xlu1 %4683 }
 0x5f3   :  { %v4697_v11 = vmul.f32 0.00017361112, %v4684_v47  ;;  %v4702_v39 = vmul.f32 %v10762_v25, %v10762_v25 }
 0x5f5   :  { %v4707_v21 = vsub.f32 %v4697_v11, %v4702_v39 }
 0x5f7   :  { %v4712_v17 = vmax.f32 %v4707_v21, 0.0 }
 0x5f8   :  { %v8317_v54 = vpop.eup %8316 }
 0x5f9   :  { %v4757_v29 = vadd.f32 1e-05, %v4712_v17  ;;  %v4766_v58 = vmul.f32 %v8317_v54, %v4716_v30  ;;  %v4767_v18 = vmul.f32 %v8317_v54, %v4717_v36  ;;  %v4768_v33 = vmul.f32 %v8317_v54, %v4718_v35  ;;  %v10799_v36 = vld [vmem:[#allocation11 + $0xa0] sm:$0xff]  ;;  %v10801_v35 = vld [vmem:[#allocation11 + $0xa8] sm:$0xff]  ;;  %v10803_v17 = vld [vmem:[#allocation11 + $0xb0] sm:$0xff] }
 0x5fa   :  { %v4769_v43 = vmul.f32 %v8317_v54, %v4719_v8  ;;  %v4770_v37 = vmul.f32 %v8317_v54, %v4720_v32  ;;  %v4771_v47 = vmul.f32 %v8317_v54, %v4721_v44  ;;  %v4772_v11 = vmul.f32 %v8317_v54, %v4722_v13  ;;  %v10809_v13 = vld [vmem:[#allocation9 + $0xb8] sm:$0xff] }
 0x5fb   :  { %8318 = vrsqrt.f32 %v4757_v29  ;;  %v4815_v39 = vmul.f32 %v10770_v56, %v4766_v58  ;;  %v4816_v21 = vmul.f32 %v10772_v53, %v4767_v18  ;;  %v4817_v30 = vmul.f32 %v10778_v6, %v4768_v33 }
 0x5fc   :  { %v4818_v8 = vmul.f32 %v10780_v20, %v4769_v43  ;;  %v4819_v9 = vmul.f32 %v10782_v0, %v4770_v37  ;;  %v4820_v32 = vmul.f32 %v10786_v23, %v4771_v47  ;;  %v4821_v44 = vmul.f32 %v10788_v40, %v4772_v11 }
 0x5fd   :  { %v4864_v29 = vadd.f32 %v10784_v57, %v4815_v39  ;;  %v10813_v58 = vadd.f32 %v10790_v49, %v4816_v21  ;;  %v10816_v18 = vadd.f32 %v10792_v60, %v4817_v30  ;;  %v4773_v33 = vmul.f32 %v8317_v54, %v4723_v27 }
 0x5fe   :  { %v10819_v43 = vadd.f32 %v10794_v5, %v4818_v8  ;;  %v10822_v37 = vadd.f32 %v10799_v36, %v4819_v9  ;;  %v10825_v47 = vadd.f32 %v10801_v35, %v4820_v32  ;;  %v10828_v11 = vadd.f32 %v10803_v17, %v4821_v44  ;;  %v5608_v9 = vld [vmem:[#allocation6 + $0x5f0] sm:$0xff]  ;;  %v5607_v8 = vld [vmem:[#allocation6 + $0x5e8] sm:$0xff] }
 0x5ff   :  { %11989 = vst [vmem:[#allocation27_spill] sm:$0xff] %v10816_v18  ;;  %4904 = vst [vmem:[#allocation2 + $0x8] sm:$0xff] %v4864_v29  ;;  %8041 = vmatprep.mubr.f32.mxu1 %v4864_v29  ;;  %8134 = vmatmul.mubr.f32.vlgmr.msra.gmra.mxu0 %v4864_v29  ;;  %v4822_v54 = vmul.f32 %v10809_v13, %v4773_v33  ;;  %v4725_v29 = vsub.f32 %v10476_v19, %v10762_v25  ;;  %v5606_v33 = vld [vmem:[#allocation6 + $0x5e0] sm:$0xff] }
 0x600   :  { %v4571_v12 = vpop.xlane.xlu0 %4570  ;;  %11990 = vst [vmem:[#allocation28_spill] sm:$0xff] %v10819_v43  ;;  %11991 = vst [vmem:[#allocation29_spill] sm:$0xff] %v10822_v37  ;;  %8042 = vmatmul.mubr.f32.vlgmr.msra.gmra.mxu1 %v10813_v58  ;;  %8136 = vmatprep.mubr.f32.mxu0 %v10813_v58  ;;  %v4730_v19 = vsub.f32 %v10552_v1, %v10762_v25 }
 0x601   :  { %11992 = vst [vmem:[#allocation17_spill] sm:$0xff] %v10825_v47  ;;  %v10830_v39 = vmul.f32 0.00017361112, %v4571_v12  ;;  %4905 = vst [vmem:[#allocation2 + $0x10] sm:$0xff] %v10813_v58  ;;  %v10841_v12 = vld [vmem:[#allocation11 + $0xb8] sm:$0xff]  ;;  %8044 = vmatprep.mubr.f32.mxu1 %v10816_v18  ;;  %8194 = vmatpush3.msra.mxu1 %v10759_v24  ;;  %v4724_v24 = vsub.f32 %v10492_v62, %v10762_v25  ;;  %v4729_v62 = vsub.f32 %v10529_v22, %v10762_v25 }
 0x602   :  { %4906 = vst [vmem:[#allocation2 + $0x18] sm:$0xff] %v10816_v18  ;;  %4907 = vst [vmem:[#allocation2 + $0x20] sm:$0xff] %v10819_v43  ;;  %8195 = vmatprep.subr.mxu1 %v5608_v9  ;;  %v10849_v32 = vadd.f32 %v10841_v12, %v4822_v54  ;;  %v4726_v54 = vsub.f32 %v10518_v55, %v10762_v25  ;;  %v4731_v55 = vsub.f32 %v10550_v59, %v10762_v25 }
 0x603   :  { %4908 = vst [vmem:[#allocation2 + $0x28] sm:$0xff] %v10822_v37  ;;  %4909 = vst [vmem:[#allocation2 + $0x30] sm:$0xff] %v10825_v47  ;;  %v4686_v27 = vpop.xlane.xlu1 %4685  ;;  %v4703_v30 = vmul.f32 %v10830_v39, %v10830_v39  ;;  %8137 = vmatmul.mubr.f32.gmra.mxu0 %v10816_v18  ;;  %8196 = vmatpush3.msra.mxu1 %v5608_v9 }
 0x604   :  { %4910 = vst [vmem:[#allocation2 + $0x38] sm:$0xff] %v10828_v11  ;;  %v4698_v21 = vmul.f32 0.00017361112, %v4686_v27  ;;  %8045 = vmatmul.mubr.f32.gmra.mxu1 %v10819_v43  ;;  %8139 = vmatprep.mubr.f32.mxu0 %v10819_v43  ;;  %4911 = vst [vmem:[#allocation2 + $0x40] sm:$0xff] %v10849_v32  ;;  %v4727_v27 = vsub.f32 %v10510_v52, %v10762_v25  ;;  %v5605_v52 = vld [vmem:[#allocation6 + $0x5d8] sm:$0xff] }
 0x605   :  { %8047 = vmatprep.mubr.f32.mxu1 %v10822_v37  ;;  %8197 = vmatprep.subr.mxu1 %v5607_v8 }
 0x606   :  { %v4708_v44 = vsub.f32 %v4698_v21, %v4703_v30  ;;  %v4728_v21 = vsub.f32 %v10531_v63, %v10762_v25  ;;  %8198 = vmatpush3.msra.mxu1 %v5607_v8 }
 0x607   :  { %8140 = vmatmul.mubr.f32.gmra.mxu0 %v10822_v37  ;;  %8199 = vmatprep.subr.mxu1 %v5606_v33 }
 0x608   :  { %v4713_v9 = vmax.f32 %v4708_v44, 0.0  ;;  %v8319_v30 = vpop.eup %8318  ;;  %8142 = vmatprep.mubr.f32.mxu0 %v10825_v47  ;;  %8048 = vmatmul.mubr.f32.gmra.mxu1 %v10825_v47  ;;  %v5604_v47 = vld [vmem:[#allocation6 + $0x5d0] sm:$0xff] }
 0x609   :  { %8050 = vmatprep.mubr.f32.mxu1 %v10828_v11  ;;  %v4774_v44 = vmul.f32 %v8319_v30, %v4724_v24  ;;  %v4775_v8 = vmul.f32 %v8319_v30, %v4725_v29  ;;  %v4776_v37 = vmul.f32 %v8319_v30, %v4726_v54  ;;  %8200 = vmatpush3.msra.mxu1 %v5606_v33  ;;  %v10880_v24 = vld [vmem:[#allocation2] sm:$0xff] }
 0x60a   :  { %v4758_v63 = vadd.f32 1e-05, %v4713_v9  ;;  %v4777_v22 = vmul.f32 %v8319_v30, %v4727_v27  ;;  %v4778_v43 = vmul.f32 %v8319_v30, %v4728_v21  ;;  %v4779_v18 = vmul.f32 %v8319_v30, %v4729_v62  ;;  %8201 = vmatprep.subr.mxu1 %v5605_v52 }
 0x60b   :  { %v4780_v1 = vmul.f32 %v8319_v30, %v4730_v19  ;;  %8143 = vmatmul.mubr.f32.gmra.mxu0 %v10828_v11  ;;  %v4823_v59 = vmul.f32 %v10770_v56, %v4774_v44  ;;  %v4824_v25 = vmul.f32 %v10772_v53, %v4775_v8  ;;  %v4825_v9 = vmul.f32 %v10778_v6, %v4776_v37 }
 0x60c   :  { %8320 = vrsqrt.f32 %v4758_v63  ;;  %8051 = vmatmul.mubr.f32.gmra.mxu1 %v10849_v32  ;;  %8145 = vmatprep.mubr.f32.mxu0 %v10880_v24  ;;  %v4826_v29 = vmul.f32 %v10780_v20, %v4777_v22  ;;  %v4827_v33 = vmul.f32 %v10782_v0, %v4778_v43  ;;  %v4828_v54 = vmul.f32 %v10786_v23, %v4779_v18 }
 0x60d   :  { %v4872_v27 = vadd.f32 %v10784_v57, %v4823_v59  ;;  %v10888_v21 = vadd.f32 %v10790_v49, %v4824_v25  ;;  %v10891_v37 = vadd.f32 %v10792_v60, %v4825_v9  ;;  %8202 = vmatpush3.msra.mxu1 %v5605_v52  ;;  %v4829_v62 = vmul.f32 %v10788_v40, %v4780_v1  ;;  %v5602_v9 = vld [vmem:[#allocation6 + $0x5c0] sm:$0xff] }
 0x60e   :  { %v10895_v63 = vadd.f32 %v10794_v5, %v4826_v29  ;;  %v10898_v44 = vadd.f32 %v10799_v36, %v4827_v33  ;;  %v10901_v18 = vadd.f32 %v10801_v35, %v4828_v54  ;;  %8203 = vmatprep.subr.mxu1 %v5604_v47  ;;  %v4781_v43 = vmul.f32 %v8319_v30, %v4731_v55  ;;  %v5603_v55 = vld [vmem:[#allocation6 + $0x5c8] sm:$0xff]  ;;  %v5601_v54 = vld [vmem:[#allocation6 + $0x5b8] sm:$0xff] }
 0x60f   :  { %4912 = vst [vmem:[#allocation2 + $0x58] sm:$0xff] %v4872_v27  ;;  %8053 = vmatprep.mubr.f32.mxu1 %v4872_v27  ;;  %8146 = vmatmul.mubr.f32.gmra.mxu0 %v4872_v27  ;;  %4913 = vst [vmem:[#allocation2 + $0x60] sm:$0xff] %v10888_v21  ;;  %v10908_v52 = vadd.f32 %v10803_v17, %v4829_v62  ;;  %v4733_v33 = vsub.f32 %v10563_v15, %v10830_v39 }
 0x610   :  { %v4573_v19 = vpop.xlane.xlu0 %4572  ;;  %4914 = vst [vmem:[#allocation2 + $0x68] sm:$0xff] %v10891_v37  ;;  %8054 = vmatmul.mubr.f32.gmra.mxu1 %v10888_v21  ;;  %8148 = vmatprep.mubr.f32.mxu0 %v10888_v21  ;;  %4915 = vst [vmem:[#allocation2 + $0x70] sm:$0xff] %v10895_v63  ;;  %v4830_v30 = vmul.f32 %v10809_v13, %v4781_v43  ;;  %v4734_v27 = vsub.f32 %v10591_v34, %v10830_v39 }
 0x611   :  { %v10903_v8 = vmul.f32 0.00017361112, %v4573_v19  ;;  %4916 = vst [vmem:[#allocation2 + $0x78] sm:$0xff] %v10898_v44  ;;  %4917 = vst [vmem:[#allocation2 + $0x80] sm:$0xff] %v10901_v18  ;;  %8056 = vmatprep.mubr.f32.mxu1 %v10891_v37  ;;  %8204 = vmatpush3.msra.mxu1 %v5604_v47  ;;  %v4732_v47 = vsub.f32 %v10565_v46, %v10830_v39  ;;  %v4735_v62 = vsub.f32 %v10583_v31, %v10830_v39  ;;  %v5600_v31 = vld [vmem:[#allocation6 + $0x5b0] sm:$0xff] }
 0x612   :  { %v4688_v22 = vpop.xlane.xlu1 %4687  ;;  %4918 = vst [vmem:[#allocation2 + $0x88] sm:$0xff] %v10908_v52  ;;  %v10922_v25 = vadd.f32 %v10841_v12, %v4830_v30  ;;  %8205 = vmatprep.subr.mxu1 %v5603_v55  ;;  %v4736_v19 = vsub.f32 %v10604_v45, %v10830_v39  ;;  %v4737_v46 = vsub.f32 %v10602_v28, %v10830_v39 }
 0x613   :  { %v4699_v1 = vmul.f32 0.00017361112, %v4688_v22  ;;  %v4704_v59 = vmul.f32 %v10903_v8, %v10903_v8  ;;  %8149 = vmatmul.mubr.f32.gmra.mxu0 %v10891_v37  ;;  %8206 = vmatpush3.msra.mxu1 %v5603_v55  ;;  %v4738_v15 = vsub.f32 %v10625_v4, %v10830_v39  ;;  %v4739_v34 = vsub.f32 %v10623_v48, %v10830_v39 }
 0x614   :  { %8057 = vmatmul.mubr.f32.gmra.mxu1 %v10895_v63  ;;  %8151 = vmatprep.mubr.f32.mxu0 %v10895_v63  ;;  %4919 = vst [vmem:[#allocation2 + $0x90] sm:$0xff] %v10922_v25 }
 0x615   :  { %v4709_v29 = vsub.f32 %v4699_v1, %v4704_v59  ;;  %8059 = vmatprep.mubr.f32.mxu1 %v10898_v44  ;;  %8207 = vmatprep.subr.mxu1 %v5602_v9 }
 0x616   :  { %8208 = vmatpush3.msra.mxu1 %v5602_v9 }
 0x617   :  { %v4714_v43 = vmax.f32 %v4709_v29, 0.0  ;;  %8152 = vmatmul.mubr.f32.gmra.mxu0 %v10898_v44  ;;  %8209 = vmatprep.subr.mxu1 %v5601_v54 }
 0x618   :  { %8060 = vmatmul.mubr.f32.gmra.mxu1 %v10901_v18  ;;  %8154 = vmatprep.mubr.f32.mxu0 %v10901_v18 }
 0x619   :  { %v8321_v22 = vpop.eup %8320  ;;  %v4759_v45 = vadd.f32 1e-05, %v4714_v43  ;;  %8062 = vmatprep.mubr.f32.mxu1 %v10908_v52  ;;  %8210 = vmatpush3.msra.mxu1 %v5601_v54  ;;  %v5599_v43 = vld [vmem:[#allocation6 + $0x5a8] sm:$0xff] }
 0x61a   :  { %v4782_v30 = vmul.f32 %v8321_v22, %v4732_v47  ;;  %v4783_v55 = vmul.f32 %v8321_v22, %v4733_v33  ;;  %v4784_v1 = vmul.f32 %v8321_v22, %v4734_v27  ;;  %v4785_v59 = vmul.f32 %v8321_v22, %v4735_v62  ;;  %8211 = vmatprep.subr.mxu1 %v5600_v31 }
 0x61b   :  { %v4786_v28 = vmul.f32 %v8321_v22, %v4736_v19  ;;  %v4787_v9 = vmul.f32 %v8321_v22, %v4737_v46  ;;  %v4788_v29 = vmul.f32 %v8321_v22, %v4738_v15  ;;  %8322 = vrsqrt.f32 %v4759_v45  ;;  %8155 = vmatmul.mubr.f32.gmra.mxu0 %v10908_v52  ;;  %8212 = vmatpush3.msra.mxu1 %v5600_v31 }
 0x61c   :  { %v4831_v48 = vmul.f32 %v10770_v56, %v4782_v30  ;;  %v4832_v4 = vmul.f32 %v10772_v53, %v4783_v55  ;;  %v4833_v39 = vmul.f32 %v10778_v6, %v4784_v1  ;;  %8063 = vmatmul.mubr.f32.gmra.mxu1 %v10922_v25  ;;  %8157 = vmatprep.mubr.f32.mxu0 %v10880_v24 }
 0x61d   :  { %v4834_v47 = vmul.f32 %v10780_v20, %v4785_v59  ;;  %v4835_v33 = vmul.f32 %v10782_v0, %v4786_v28  ;;  %v4836_v54 = vmul.f32 %v10786_v23, %v4787_v9  ;;  %v4837_v46 = vmul.f32 %v10788_v40, %v4788_v29  ;;  %8213 = vmatprep.subr.mxu1 %v5599_v43 }
 0x61e   :  { %v4880_v27 = vadd.f32 %v10784_v57, %v4831_v48  ;;  %v10959_v62 = vadd.f32 %v10790_v49, %v4832_v4  ;;  %v10962_v19 = vadd.f32 %v10792_v60, %v4833_v39  ;;  %v4789_v1 = vmul.f32 %v8321_v22, %v4739_v34  ;;  %v5598_v34 = vld [vmem:[#allocation6 + $0x5a0] sm:$0xff]  ;;  %8214 = vmatpush3.msra.mxu1 %v5599_v43  ;;  %v5597_v4 = vld [vmem:[#allocation6 + $0x598] sm:$0xff] }
 0x61f   :  { %v10966_v45 = vadd.f32 %v10794_v5, %v4834_v47  ;;  %v10969_v30 = vadd.f32 %v10799_v36, %v4835_v33  ;;  %v10972_v55 = vadd.f32 %v10801_v35, %v4836_v54  ;;  %v10979_v31 = vadd.f32 %v10803_v17, %v4837_v46  ;;  %8215 = vmatprep.subr.mxu1 %v5598_v34  ;;  %v5596_v33 = vld [vmem:[#allocation6 + $0x590] sm:$0xff] }
 0x620   :  { %v4575_v15 = vpop.xlane.xlu0 %4574  ;;  %4920 = vst [vmem:[#allocation2 + $0xa8] sm:$0xff] %v4880_v27  ;;  %8065 = vmatprep.mubr.f32.mxu1 %v4880_v27  ;;  %8158 = vmatmul.mubr.f32.gmra.mxu0 %v4880_v27  ;;  %4921 = vst [vmem:[#allocation2 + $0xb0] sm:$0xff] %v10959_v62  ;;  %v4838_v22 = vmul.f32 %v10809_v13, %v4789_v1  ;;  %v4740_v43 = vsub.f32 %v10638_v3, %v10903_v8 }
 0x621   :  { %v10974_v59 = vmul.f32 0.00017361112, %v4575_v15  ;;  %4922 = vst [vmem:[#allocation2 + $0xb8] sm:$0xff] %v10962_v19  ;;  %8066 = vmatmul.mubr.f32.gmra.mxu1 %v10959_v62  ;;  %8160 = vmatprep.mubr.f32.mxu0 %v10959_v62  ;;  %4923 = vst [vmem:[#allocation2 + $0xc0] sm:$0xff] %v10966_v45  ;;  %v4741_v47 = vsub.f32 %v10636_v42, %v10903_v8  ;;  %v4742_v54 = vsub.f32 %v10661_v10, %v10903_v8 }
 0x622   :  { %v4690_v28 = vpop.xlane.xlu1 %4689  ;;  %4924 = vst [vmem:[#allocation2 + $0xc8] sm:$0xff] %v10969_v30  ;;  %4925 = vst [vmem:[#allocation2 + $0xd0] sm:$0xff] %v10972_v55  ;;  %8068 = vmatprep.mubr.f32.mxu1 %v10962_v19  ;;  %v10993_v48 = vadd.f32 %v10841_v12, %v4838_v22  ;;  %8216 = vmatpush3.msra.mxu1 %v5598_v34  ;;  %v4743_v27 = vsub.f32 %v10653_v2, %v10903_v8  ;;  %v5595_v2 = vld [vmem:[#allocation6 + $0x588] sm:$0xff] }
 0x623   :  { %4926 = vst [vmem:[#allocation2 + $0xd8] sm:$0xff] %v10979_v31  ;;  %v4700_v9 = vmul.f32 0.00017361112, %v4690_v28  ;;  %v4705_v29 = vmul.f32 %v10974_v59, %v10974_v59  ;;  %8217 = vmatprep.subr.mxu1 %v5597_v4  ;;  %v4744_v46 = vsub.f32 %v10674_v16, %v10903_v8  ;;  %v4745_v3 = vsub.f32 %v10672_v14, %v10903_v8 }
 0x624   :  { %8161 = vmatmul.mubr.f32.gmra.mxu0 %v10962_v19  ;;  %4927 = vst [vmem:[#allocation2 + $0xe0] sm:$0xff] %v10993_v48  ;;  %8218 = vmatpush3.msra.mxu1 %v5597_v4  ;;  %v4746_v42 = vsub.f32 %v10695_v50, %v10903_v8  ;;  %v4747_v10 = vsub.f32 %v10693_v26, %v10903_v8 }
 0x625   :  { %8069 = vmatmul.mubr.f32.gmra.mxu1 %v10966_v45  ;;  %8163 = vmatprep.mubr.f32.mxu0 %v10966_v45  ;;  %v4710_v39 = vsub.f32 %v4700_v9, %v4705_v29 }
 0x626   :  { %8071 = vmatprep.mubr.f32.mxu1 %v10969_v30  ;;  %8219 = vmatprep.subr.mxu1 %v5596_v33 }
 0x627   :  { %v4715_v15 = vmax.f32 %v4710_v39, 0.0  ;;  %8220 = vmatpush3.msra.mxu1 %v5596_v33  ;;  %v5594_v39 = vld [vmem:[#allocation6 + $0x580] sm:$0xff] }
 0x628   :  { %8164 = vmatmul.mubr.f32.gmra.mxu0 %v10969_v30  ;;  %v8323_v1 = vpop.eup %8322  ;;  %8221 = vmatprep.subr.mxu1 %v5595_v2 }
 0x629   :  { %8072 = vmatmul.mubr.f32.gmra.mxu1 %v10972_v55  ;;  %8166 = vmatprep.mubr.f32.mxu0 %v10972_v55  ;;  %v4760_v16 = vadd.f32 1e-05, %v4715_v15  ;;  %v4790_v28 = vmul.f32 %v8323_v1, %v4740_v43  ;;  %v4791_v22 = vmul.f32 %v8323_v1, %v4741_v47  ;;  %v4792_v34 = vmul.f32 %v8323_v1, %v4742_v54 }
 0x62a   :  { %8074 = vmatprep.mubr.f32.mxu1 %v10979_v31  ;;  %v4793_v9 = vmul.f32 %v8323_v1, %v4743_v27  ;;  %v4794_v14 = vmul.f32 %v8323_v1, %v4744_v46  ;;  %v4795_v29 = vmul.f32 %v8323_v1, %v4745_v3  ;;  %v4796_v4 = vmul.f32 %v8323_v1, %v4746_v42 }
 0x62b   :  { %8324 = vrsqrt.f32 %v4760_v16  ;;  %v4839_v26 = vmul.f32 %v10770_v56, %v4790_v28  ;;  %v4840_v50 = vmul.f32 %v10772_v53, %v4791_v22  ;;  %v4841_v8 = vmul.f32 %v10778_v6, %v4792_v34  ;;  %8222 = vmatpush3.msra.mxu1 %v5595_v2  ;;  %v11993_v34 = vld [vmem:[#allocation24_spill] sm:$0xff] }
 0x62c   :  { %8167 = vmatmul.mubr.f32.gmra.mxu0 %v10979_v31  ;;  %v4842_v43 = vmul.f32 %v10780_v20, %v4793_v9  ;;  %v4843_v47 = vmul.f32 %v10782_v0, %v4794_v14  ;;  %v4844_v33 = vmul.f32 %v10786_v23, %v4795_v29  ;;  %v4845_v15 = vmul.f32 %v10788_v40, %v4796_v4  ;;  %v11994_v14 = vld [vmem:[#allocation25_spill] sm:$0xff] }
 0x62d   :  { %8075 = vmatmul.mubr.f32.gmra.mxu1 %v10993_v48  ;;  %8169 = vmatprep.mubr.f32.mxu0 %v10880_v24  ;;  %v4888_v54 = vadd.f32 %v10784_v57, %v4839_v26  ;;  %v11030_v27 = vadd.f32 %v10790_v49, %v4840_v50  ;;  %v11033_v46 = vadd.f32 %v10792_v60, %v4841_v8 }
 0x62e   :  { %v11037_v3 = vadd.f32 %v10794_v5, %v4842_v43  ;;  %v11040_v42 = vadd.f32 %v10799_v36, %v4843_v47  ;;  %v11043_v16 = vadd.f32 %v10801_v35, %v4844_v33  ;;  %v4797_v28 = vmul.f32 %v8323_v1, %v4747_v10  ;;  %8223 = vmatprep.subr.mxu1 %v5594_v39 }
 0x62f   :  { %4928 = vst [vmem:[#allocation2 + $0xf8] sm:$0xff] %v4888_v54  ;;  %8077 = vmatprep.mubr.f32.mxu1 %v4888_v54  ;;  %4929 = vst [vmem:[#allocation2 + $0x100] sm:$0xff] %v11030_v27  ;;  %v11048_v2 = vadd.f32 %v10803_v17, %v4845_v15  ;;  %8224 = vmatpush3.msra.mxu1 %v5594_v39  ;;  %v4748_v22 = vsub.f32 %v10706_v38, %v10974_v59  ;;  %v11995_v39 = vld [vmem:[#allocation26_spill] sm:$0xff] }
 0x630   :  { %8170 = vmatmul.mubr.f32.gmra.mxu0 %v4888_v54  ;;  %4930 = vst [vmem:[#allocation2 + $0x108] sm:$0xff] %v11033_v46  ;;  %4931 = vst [vmem:[#allocation2 + $0x110] sm:$0xff] %v11037_v3  ;;  %v4846_v1 = vmul.f32 %v10809_v13, %v4797_v28  ;;  %v4749_v9 = vsub.f32 %v11993_v34, %v10974_v59  ;;  %v4750_v29 = vsub.f32 %v11994_v14, %v10974_v59 }
 0x631   :  { %8078 = vmatmul.mubr.f32.gmra.mxu1 %v11030_v27  ;;  %8172 = vmatprep.mubr.f32.mxu0 %v11030_v27  ;;  %4932 = vst [vmem:[#allocation2 + $0x118] sm:$0xff] %v11040_v42  ;;  %4933 = vst [vmem:[#allocation2 + $0x120] sm:$0xff] %v11043_v16  ;;  %v4751_v4 = vsub.f32 %v10719_v61, %v10974_v59  ;;  %v4752_v26 = vsub.f32 %v10736_v51, %v10974_v59 }
 0x632   :  { %8080 = vmatprep.mubr.f32.mxu1 %v11033_v46  ;;  %4934 = vst [vmem:[#allocation2 + $0x128] sm:$0xff] %v11048_v2  ;;  %v11059_v10 = vadd.f32 %v10841_v12, %v4846_v1  ;;  %v4753_v8 = vsub.f32 %v10734_v7, %v10974_v59  ;;  %v4754_v38 = vsub.f32 %v10747_v41, %v10974_v59 }
 0x633   :  { %v4755_v43 = vsub.f32 %v11995_v39, %v10974_v59 }
 0x634   :  { %8173 = vmatmul.mubr.f32.gmra.mxu0 %v11033_v46  ;;  %4935 = vst [vmem:[#allocation2 + $0x130] sm:$0xff] %v11059_v10 }
 0x635   :  { %8081 = vmatmul.mubr.f32.gmra.mxu1 %v11037_v3  ;;  %8175 = vmatprep.mubr.f32.mxu0 %v11037_v3 }
 0x636   :  { %8083 = vmatprep.mubr.f32.mxu1 %v11040_v42 }
 0x638   :  { %8176 = vmatmul.mubr.f32.gmra.mxu0 %v11040_v42  ;;  %v8325_v50 = vpop.eup %8324 }
 0x639   :  { %8084 = vmatmul.mubr.f32.gmra.mxu1 %v11043_v16  ;;  %8178 = vmatprep.mubr.f32.mxu0 %v11043_v16  ;;  %v4798_v61 = vmul.f32 %v8325_v50, %v4748_v22  ;;  %v4799_v51 = vmul.f32 %v8325_v50, %v4749_v9  ;;  %v4800_v47 = vmul.f32 %v8325_v50, %v4750_v29 }
 0x63a   :  { %8086 = vmatprep.mubr.f32.mxu1 %v11048_v2  ;;  %v4801_v33 = vmul.f32 %v8325_v50, %v4751_v4  ;;  %v4802_v54 = vmul.f32 %v8325_v50, %v4752_v26  ;;  %v4803_v15 = vmul.f32 %v8325_v50, %v4753_v8  ;;  %v4804_v28 = vmul.f32 %v8325_v50, %v4754_v38 }
 0x63b   :  { %v4805_v7 = vmul.f32 %v8325_v50, %v4755_v43  ;;  %v4847_v41 = vmul.f32 %v10770_v56, %v4798_v61  ;;  %v4848_v59 = vmul.f32 %v10772_v53, %v4799_v51  ;;  %v4849_v1 = vmul.f32 %v10778_v6, %v4800_v47 }
 0x63c   :  { %8179 = vmatmul.mubr.f32.gmra.mxu0 %v11048_v2  ;;  %v4850_v34 = vmul.f32 %v10780_v20, %v4801_v33  ;;  %v4851_v22 = vmul.f32 %v10782_v0, %v4802_v54  ;;  %v4852_v9 = vmul.f32 %v10786_v23, %v4803_v15  ;;  %v4853_v14 = vmul.f32 %v10788_v40, %v4804_v28 }
 0x63d   :  { %8087 = vmatmul.mubr.f32.gmra.mxu1 %v11059_v10  ;;  %8181 = vmatprep.mubr.f32.mxu0 %v10880_v24  ;;  %v4896_v29 = vadd.f32 %v10784_v57, %v4847_v41  ;;  %v11098_v56 = vadd.f32 %v10790_v49, %v4848_v59  ;;  %v11101_v53 = vadd.f32 %v10792_v60, %v4849_v1  ;;  %v11996_v49 = vld [vmem:[#allocation27_spill] sm:$0xff]  ;;  %v11997_v60 = vld [vmem:[#allocation28_spill] sm:$0xff] }
 0x63e   :  { %v11104_v6 = vadd.f32 %v10794_v5, %v4850_v34  ;;  %v11107_v20 = vadd.f32 %v10799_v36, %v4851_v22  ;;  %v11110_v0 = vadd.f32 %v10801_v35, %v4852_v9  ;;  %v11113_v23 = vadd.f32 %v10803_v17, %v4853_v14  ;;  %v11998_v5 = vld [vmem:[#allocation29_spill] sm:$0xff]  ;;  %v5560_v35 = vld [vmem:[#allocation2 + $0x48] sm:$0xff] }
 0x63f   :  { %v4854_v57 = vmul.f32 %v10809_v13, %v4805_v7  ;;  %4936 = vst [vmem:[#allocation2 + $0x148] sm:$0xff] %v4896_v29  ;;  %8089 = vmatprep.mubr.f32.mxu1 %v4896_v29  ;;  %4937 = vst [vmem:[#allocation2 + $0x150] sm:$0xff] %v11098_v56  ;;  %v11999_v36 = vld [vmem:[#allocation17_spill] sm:$0xff]  ;;  %v5576_v13 = vld [vmem:[#allocation2 + $0xe8] sm:$0xff] }
 0x640   :  { %8182 = vmatmul.mubr.f32.gmra.mxu0 %v4896_v29  ;;  %4938 = vst [vmem:[#allocation2 + $0x158] sm:$0xff] %v11101_v53  ;;  %4939 = vst [vmem:[#allocation2 + $0x160] sm:$0xff] %v11104_v6  ;;  %v5568_v17 = vld [vmem:[#allocation2 + $0x98] sm:$0xff] }
 0x641   :  { %8090 = vmatmul.mubr.f32.gmra.mxu1 %v11098_v56  ;;  %8184 = vmatprep.mubr.f32.mxu0 %v11098_v56  ;;  %4940 = vst [vmem:[#allocation2 + $0x168] sm:$0xff] %v11107_v20  ;;  %4941 = vst [vmem:[#allocation2 + $0x170] sm:$0xff] %v11110_v0  ;;  %v4903_v40 = vadd.f32 %v10841_v12, %v4854_v57 }
 0x642   :  { %4942 = vst [vmem:[#allocation2 + $0x178] sm:$0xff] %v11113_v23  ;;  %8092 = vmatprep.mubr.f32.mxu1 %v11101_v53 }
 0x643   :  { %4943 = vst [vmem:[#allocation2 + $0x180] sm:$0xff] %v4903_v40 }
 0x644   :  { %8185 = vmatmul.mubr.f32.gmra.mxu0 %v11101_v53 }
 0x645   :  { %8093 = vmatmul.mubr.f32.gmra.mxu1 %v11104_v6  ;;  %8187 = vmatprep.mubr.f32.mxu0 %v11104_v6 }
 0x646   :  { %8095 = vmatprep.mubr.f32.mxu1 %v11107_v20 }
 0x648   :  { %8188 = vmatmul.mubr.f32.gmra.mxu0 %v11107_v20 }
 0x649   :  { %8096 = vmatmul.mubr.f32.gmra.mxu1 %v11110_v0  ;;  %8190 = vmatprep.mubr.f32.mxu0 %v11110_v0 }
 0x64a   :  { %8098 = vmatprep.mubr.f32.mxu1 %v11113_v23 }
 0x64c   :  { %8191 = vmatmul.mubr.f32.gmra.mxu0 %v11113_v23 }
 0x64d   :  { %8099 = vmatmul.mubr.f32.gmra.mxu1 %v4903_v40 }
 0x64e   :  { %8225 = vmatprep.mubr.f32.mxu1 %v10813_v58  ;;  %v5584_v58 = vld [vmem:[#allocation2 + $0x138] sm:$0xff] }
 0x651   :  { %8226 = vmatmul.mubr.f32.vlgmr.msra.gmra.mxu1 %v11996_v49 }
 0x652   :  { %8228 = vmatprep.mubr.f32.mxu1 %v11997_v60 }
 0x655   :  { %8229 = vmatmul.mubr.f32.gmra.mxu1 %v11998_v5 }
 0x656   :  { %8231 = vmatprep.mubr.f32.mxu1 %v11999_v36 }
 0x659   :  { %8232 = vmatmul.mubr.f32.gmra.mxu1 %v10828_v11  ;;  %v5592_v11 = vld [vmem:[#allocation2 + $0x188] sm:$0xff] }
 0x65a   :  { %8234 = vmatprep.mubr.f32.mxu1 %v10849_v32 }
 0x65d   :  { %8235 = vmatmul.mubr.f32.gmra.mxu1 %v5560_v35 }
 0x65e   :  { %8237 = vmatprep.mubr.f32.mxu1 %v10888_v21 }
 0x661   :  { %8238 = vmatmul.mubr.f32.gmra.mxu1 %v10891_v37 }
 0x662   :  { %8240 = vmatprep.mubr.f32.mxu1 %v10895_v63 }
 0x665   :  { %8241 = vmatmul.mubr.f32.gmra.mxu1 %v10898_v44 }
 0x666   :  { %8243 = vmatprep.mubr.f32.mxu1 %v10901_v18 }
 0x669   :  { %8244 = vmatmul.mubr.f32.gmra.mxu1 %v10908_v52 }
 0x66a   :  { %8246 = vmatprep.mubr.f32.mxu1 %v10922_v25 }
 0x66d   :  { %8247 = vmatmul.mubr.f32.gmra.mxu1 %v5568_v17 }
 0x66e   :  { %8249 = vmatprep.mubr.f32.mxu1 %v10959_v62 }
 0x671   :  { %8250 = vmatmul.mubr.f32.gmra.mxu1 %v10962_v19 }
 0x672   :  { %8252 = vmatprep.mubr.f32.mxu1 %v10966_v45 }
 0x675   :  { %8253 = vmatmul.mubr.f32.gmra.mxu1 %v10969_v30 }
 0x676   :  { %8255 = vmatprep.mubr.f32.mxu1 %v10972_v55 }
 0x679   :  { %8256 = vmatmul.mubr.f32.gmra.mxu1 %v10979_v31 }
 0x67a   :  { %8258 = vmatprep.mubr.f32.mxu1 %v10993_v48 }
 0x67d   :  { %8259 = vmatmul.mubr.f32.gmra.mxu1 %v5576_v13 }
 0x67e   :  { %8261 = vmatprep.mubr.f32.mxu1 %v11030_v27 }
 0x681   :  { %8262 = vmatmul.mubr.f32.gmra.mxu1 %v11033_v46 }
 0x682   :  { %8264 = vmatprep.mubr.f32.mxu1 %v11037_v3 }
 0x685   :  { %8265 = vmatmul.mubr.f32.gmra.mxu1 %v11040_v42 }
 0x686   :  { %8267 = vmatprep.mubr.f32.mxu1 %v11043_v16 }
 0x689   :  { %8268 = vmatmul.mubr.f32.gmra.mxu1 %v11048_v2 }
 0x68a   :  { %8270 = vmatprep.mubr.f32.mxu1 %v11059_v10 }
 0x68d   :  { %8271 = vmatmul.mubr.f32.gmra.mxu1 %v5584_v58 }
 0x68e   :  { %8273 = vmatprep.mubr.f32.mxu1 %v11098_v56 }
 0x691   :  { %8274 = vmatmul.mubr.f32.gmra.mxu1 %v11101_v53 }
 0x692   :  { %8276 = vmatprep.mubr.f32.mxu1 %v11104_v6 }
 0x695   :  { %8277 = vmatmul.mubr.f32.gmra.mxu1 %v11107_v20 }
 0x696   :  { %8279 = vmatprep.mubr.f32.mxu1 %v11110_v0 }
 0x699   :  { %8280 = vmatmul.mubr.f32.gmra.mxu1 %v11113_v23 }
 0x69a   :  { %8282 = vmatprep.mubr.f32.mxu1 %v4903_v40 }
 0x69d   :  { %8283 = vmatmul.mubr.f32.gmra.mxu1 %v5592_v11 }
 0x6bf   :  { %v8135_v12 = vpop.f32.mrf.mxu0 }
 0x6c0   :  { %v8043_v32 = vpop.f32.mrf.mxu1 }
 0x6c1   :  { %v11169_v24 = vpop.f32.mrf.mxu0  ;;  %v5360_v13 = vadd.f32 %v8135_v12, %v8043_v32 }
 0x6c2   :  { %v5089_v21 = vpop.f32.mrf.mxu1 }
 0x6c3   :  { %v11171_v37 = vpop.f32.mrf.mxu0 }
 0x6c4   :  { %v11173_v63 = vpop.f32.mrf.mxu1 }
 0x6c5   :  { %v11177_v18 = vpop.f32.mrf.mxu0 }
 0x6c6   :  { %v11175_v44 = vpop.f32.mrf.mxu1 }
 0x6c7   :  { %v11183_v62 = vpop.f32.mrf.mxu0  ;;  %v5365_v12 = vadd.f32 %v11177_v18, %v11175_v44 }
 0x6c8   :  { %v11179_v52 = vpop.f32.mrf.mxu1 }
 0x6c9   :  { %v11189_v30 = vpop.f32.mrf.mxu0 }
 0x6ca   :  { %v11181_v25 = vpop.f32.mrf.mxu1 }
 0x6cb   :  { %v11195_v48 = vpop.f32.mrf.mxu0  ;;  %v5375_v44 = vadd.f32 %v11189_v30, %v11181_v25 }
 0x6cc   :  { %v11185_v19 = vpop.f32.mrf.mxu1 }
 0x6cd   :  { %v11201_v3 = vpop.f32.mrf.mxu0 }
 0x6ce   :  { %v11187_v45 = vpop.f32.mrf.mxu1 }
 0x6cf   :  { %v11207_v2 = vpop.f32.mrf.mxu0  ;;  %v5385_v30 = vadd.f32 %v11201_v3, %v11187_v45 }
 0x6d0   :  { %v11191_v55 = vpop.f32.mrf.mxu1 }
 0x6d1   :  { %v11213_v26 = vpop.f32.mrf.mxu0 }
 0x6d2   :  { %v11193_v31 = vpop.f32.mrf.mxu1 }
 0x6d3   :  { %v11219_v38 = vpop.f32.mrf.mxu0  ;;  %v5395_v45 = vadd.f32 %v11213_v26, %v11193_v31 }
 0x6d4   :  { %v11197_v27 = vpop.f32.mrf.mxu1 }
 0x6d5   :  { %v11225_v61 = vpop.f32.mrf.mxu0 }
 0x6d6   :  { %v11199_v46 = vpop.f32.mrf.mxu1 }
 0x6d7   :  { %v11231_v33 = vpop.f32.mrf.mxu0 }
 0x6d8   :  { %v11203_v42 = vpop.f32.mrf.mxu1 }
 0x6d9   :  { %v11237_v28 = vpop.f32.mrf.mxu0  ;;  %v5420_v31 = vadd.f32 %v11231_v33, %v11203_v42 }
 0x6da   :  { %v11205_v16 = vpop.f32.mrf.mxu1 }
 0x6db   :  { %v11243_v59 = vpop.f32.mrf.mxu0 }
 0x6dc   :  { %v11209_v10 = vpop.f32.mrf.mxu1 }
 0x6dd   :  { %v11249_v22 = vpop.f32.mrf.mxu0 }
 0x6de   :  { %v11211_v4 = vpop.f32.mrf.mxu1 }
 0x6df   :  { %v11360_v42 = vadd.f32 %v11249_v22, %v11211_v4 }
 0x6e0   :  { %v11255_v29 = vpop.f32.mrf.mxu0 }
 0x6e1   :  { %v11215_v50 = vpop.f32.mrf.mxu1 }
 0x6e2   :  { %v11261_v6 = vpop.f32.mrf.mxu0 }
 0x6e3   :  { %v11217_v8 = vpop.f32.mrf.mxu1 }
 0x6e4   :  { %v11267_v23 = vpop.f32.mrf.mxu0 }
 0x6e5   :  { %v11221_v39 = vpop.f32.mrf.mxu1 }
 0x6e6   :  { %v11273_v49 = vpop.f32.mrf.mxu0 }
 0x6e7   :  { %v11223_v43 = vpop.f32.mrf.mxu1 }
 0x6e8   :  { %v11279_v36 = vpop.f32.mrf.mxu0 }
 0x6e9   :  { %v11227_v51 = vpop.f32.mrf.mxu1 }
 0x6ea   :  { %v11285_v58 = vpop.f32.mrf.mxu0 }
 0x6eb   :  { %v11229_v47 = vpop.f32.mrf.mxu1 }
 0x6ed   :  { %v11233_v54 = vpop.f32.mrf.mxu1 }
 0x6ef   :  { %v11235_v15 = vpop.f32.mrf.mxu1 }
 0x6f1   :  { %v11239_v7 = vpop.f32.mrf.mxu1 }
 0x6f3   :  { %v11241_v41 = vpop.f32.mrf.mxu1 }
 0x6f5   :  { %v11245_v1 = vpop.f32.mrf.mxu1 }
 0x6f7   :  { %v11247_v34 = vpop.f32.mrf.mxu1 }
 0x6f9   :  { %v11251_v9 = vpop.f32.mrf.mxu1 }
 0x6fb   :  { %v11253_v14 = vpop.f32.mrf.mxu1 }
 0x6fc   :  { %12000 = vst [vmem:[#allocation18_spill] sm:$0xff] %v11253_v14 }
 0x6fd   :  { %v11257_v56 = vpop.f32.mrf.mxu1 }
 0x6fe   :  { %12001 = vst [vmem:[#allocation20_spill] sm:$0xff] %v11257_v56  ;;  %v11293_v56 = vpop.f32.mrf.mxu0 }
 0x6ff   :  { %v11259_v53 = vpop.f32.mrf.mxu1 }
 0x700   :  { %12002 = vst [vmem:[#allocation19_spill] sm:$0xff] %v11259_v53 }
 0x701   :  { %v11263_v20 = vpop.f32.mrf.mxu1 }
 0x702   :  { %12003 = vst [vmem:[#allocation21_spill] sm:$0xff] %v11263_v20 }
 0x703   :  { %v11265_v0 = vpop.f32.mrf.mxu1 }
 0x704   :  { %12004 = vst [vmem:[#allocation22_spill] sm:$0xff] %v11265_v0  ;;  %v11287_v0 = vld [vmem:[#allocation8 + $0x3] ss:$0 sm:$0xff] }
 0x705   :  { %v11269_v57 = vpop.f32.mrf.mxu1 }
 0x706   :  { %12005 = vst [vmem:[#allocation23_spill] sm:$0xff] %v11269_v57 }
 0x707   :  { %v11271_v40 = vpop.f32.mrf.mxu1 }
 0x708   :  { %12006 = vst [vmem:[#allocation24_spill] sm:$0xff] %v11271_v40  ;;  %v5355_v40 = vadd.f32 %v11169_v24, %v5089_v21 }
 0x709   :  { %v11275_v60 = vpop.f32.mrf.mxu1 }
 0x70a   :  { %12007 = vst [vmem:[#allocation25_spill] sm:$0xff] %v11275_v60  ;;  %v5370_v60 = vadd.f32 %v11171_v37, %v11173_v63  ;;  %v5380_v63 = vadd.f32 %v11183_v62, %v11179_v52  ;;  %v5390_v52 = vadd.f32 %v11195_v48, %v11185_v19 }
 0x70b   :  { %v11277_v5 = vpop.f32.mrf.mxu1 }
 0x70c   :  { %12008 = vst [vmem:[#allocation26_spill] sm:$0xff] %v11277_v5 }
 0x70d   :  { %v11281_v35 = vpop.f32.mrf.mxu1 }
 0x70e   :  { %12009 = vst [vmem:[#allocation27_spill] sm:$0xff] %v11281_v35 }
 0x70f   :  { %v11283_v17 = vpop.f32.mrf.mxu1 }
 0x710   :  { %12010 = vst [vmem:[#allocation28_spill] sm:$0xff] %v11283_v17 }
 0x711   :  { %v8227_v11 = vpop.f32.mrf.mxu1 }
 0x712   :  { %v5876_v57 = vadd.f32 %v8227_v11, %v5360_v13  ;;  %v5400_v11 = vadd.f32 %v11207_v2, %v11191_v55  ;;  %v5410_v55 = vadd.f32 %v11219_v38, %v11197_v27  ;;  %v5415_v27 = vadd.f32 %v11237_v28, %v11205_v16 }
 0x713   :  { %v5676_v20 = vpop.f32.mrf.mxu1 }
 0x714   :  { %v5924_v5 = vadd.f32 %v11287_v0, %v5876_v57  ;;  %v5875_v53 = vadd.f32 %v5676_v20, %v5355_v40  ;;  %v11305_v20 = vpop.f32.mrf.mxu0 }
 0x715   :  { %v8230_v35 = vpop.f32.mrf.mxu1 }
 0x716   :  { %v5923_v32 = vadd.f32 %v11287_v0, %v5875_v53  ;;  %v5878_v17 = vadd.f32 %v8230_v35, %v5370_v60  ;;  %v11298_v14 = vmax.f32 %v5924_v5, 0.0 }
 0x717   :  { %v5686_v24 = vpop.f32.mrf.mxu1 }
 0x718   :  { %v11300_v21 = vmax.f32 %v5923_v32, 0.0  ;;  %v5926_v13 = vadd.f32 %v11287_v0, %v5878_v17  ;;  %v5877_v37 = vadd.f32 %v5686_v24, %v5365_v12  ;;  %v6119_v40 = vmul.f32 %v11298_v14, %v11298_v14  ;;  %v11326_v12 = vpop.f32.mrf.mxu0 }
 0x719   :  { %v8233_v57 = vpop.f32.mrf.mxu1 }
 0x71a   :  { %v6118_v18 = vmul.f32 %v11300_v21, %v11300_v21  ;;  %v5925_v53 = vadd.f32 %v11287_v0, %v5877_v37  ;;  %v11314_v60 = vmax.f32 %v5926_v13, 0.0  ;;  %v5880_v5 = vadd.f32 %v8233_v57, %v5380_v63  ;;  %v11351_v26 = vpop.f32.mrf.mxu0 }
 0x71b   :  { %v5696_v35 = vpop.f32.mrf.mxu1  ;;  %v6043_v62 = vadd.f32 %v11298_v14, %v11300_v21 }
 0x71c   :  { %v11320_v17 = vmax.f32 %v5925_v53, 0.0  ;;  %v5879_v25 = vadd.f32 %v5696_v35, %v5375_v44  ;;  %v6158_v32 = vadd.f32 %v6119_v40, %v6118_v18  ;;  %v5928_v24 = vadd.f32 %v11287_v0, %v5880_v5  ;;  %v11374_v4 = vpop.f32.mrf.mxu0 }
 0x71d   :  { %v8236_v13 = vpop.f32.mrf.mxu1  ;;  %v6121_v3 = vmul.f32 %v11314_v60, %v11314_v60  ;;  %v5405_v5 = vadd.f32 %v11225_v61, %v11199_v46  ;;  %v5430_v46 = vadd.f32 %v11243_v59, %v11209_v10  ;;  %v11372_v10 = vadd.f32 %v11261_v6, %v11217_v8 }
 0x71e   :  { %v6044_v19 = vadd.f32 %v6043_v62, %v11320_v17  ;;  %v6120_v48 = vmul.f32 %v11320_v17, %v11320_v17  ;;  %v5927_v37 = vadd.f32 %v11287_v0, %v5879_v25  ;;  %v5882_v63 = vadd.f32 %v8236_v13, %v5390_v52 }
 0x71f   :  { %v11339_v2 = vmax.f32 %v5928_v24, 0.0  ;;  %v5706_v57 = vpop.f32.mrf.mxu1 }
 0x720   :  { %v6159_v44 = vadd.f32 %v6158_v32, %v6120_v48  ;;  %v11341_v18 = vmax.f32 %v5927_v37, 0.0  ;;  %v6045_v53 = vadd.f32 %v6044_v19, %v11314_v60  ;;  %v5930_v40 = vadd.f32 %v11287_v0, %v5882_v63 }
 0x721   :  { %v5881_v38 = vadd.f32 %v5706_v57, %v5385_v30  ;;  %v8239_v35 = vpop.f32.mrf.mxu1  ;;  %v6123_v28 = vmul.f32 %v11339_v2, %v11339_v2  ;;  %v11368_v19 = vadd.f32 %v11255_v29, %v11215_v50  ;;  %v11386_v29 = vadd.f32 %v11267_v23, %v11221_v39  ;;  %v11404_v23 = vpop.f32.mrf.mxu0 }
 0x722   :  { %v6046_v52 = vadd.f32 %v6045_v53, %v11341_v18  ;;  %v6122_v62 = vmul.f32 %v11341_v18, %v11341_v18  ;;  %v6160_v25 = vadd.f32 %v6159_v44, %v6121_v3  ;;  %v5970_v32 = vmax.f32 %v5930_v40, 0.0 }
 0x723   :  { %v5929_v16 = vadd.f32 %v11287_v0, %v5881_v38  ;;  %v5884_v61 = vadd.f32 %v8239_v35, %v5400_v11  ;;  %v5716_v33 = vpop.f32.mrf.mxu1  ;;  %v11395_v44 = vadd.f32 %v11273_v49, %v11223_v43  ;;  %v11402_v39 = vadd.f32 %v11279_v36, %v11227_v51 }
 0x724   :  { %v6161_v30 = vadd.f32 %v6160_v25, %v6122_v62  ;;  %v6047_v24 = vadd.f32 %v6046_v52, %v11339_v2  ;;  %v5883_v13 = vadd.f32 %v5716_v33, %v5395_v45  ;;  %v11381_v37 = vsel %vm200_vm0, %v5970_v32, 0.0 }
 0x725   :  { %v11376_v59 = vmax.f32 %v5929_v16, 0.0  ;;  %v5932_v22 = vadd.f32 %v11287_v0, %v5884_v61  ;;  %v8242_v11 = vpop.f32.mrf.mxu1  ;;  %v6125_v38 = vmul.f32 %v11381_v37, %v11381_v37  ;;  %v11411_v43 = vadd.f32 %v11285_v58, %v11229_v47 }
 0x726   :  { %v5931_v63 = vadd.f32 %v11287_v0, %v5883_v13  ;;  %v5886_v45 = vadd.f32 %v8242_v11, %v5410_v55  ;;  %v6162_v50 = vadd.f32 %v6161_v30, %v6123_v28  ;;  %v11422_v33 = vadd.f32 %v11293_v56, %v11233_v54  ;;  %v11428_v30 = vpop.f32.mrf.mxu0 }
 0x727   :  { %v6048_v8 = vadd.f32 %v6047_v24, %v11376_v59  ;;  %v6124_v6 = vmul.f32 %v11376_v59, %v11376_v59  ;;  %v11391_v3 = vmax.f32 %v5932_v22, 0.0  ;;  %v5726_v57 = vpop.f32.mrf.mxu1 }
 0x728   :  { %v11397_v53 = vmax.f32 %v5931_v63, 0.0  ;;  %v5934_v55 = vadd.f32 %v11287_v0, %v5886_v45  ;;  %v5885_v40 = vadd.f32 %v5726_v57, %v5405_v5 }
 0x729   :  { %v8245_v35 = vpop.f32.mrf.mxu1  ;;  %v6049_v52 = vadd.f32 %v6048_v8, %v11381_v37  ;;  %v6163_v62 = vadd.f32 %v6162_v50, %v6124_v6  ;;  %v6127_v49 = vmul.f32 %v11391_v3, %v11391_v3 }
 0x72a   :  { %v6126_v51 = vmul.f32 %v11397_v53, %v11397_v53  ;;  %v5933_v36 = vadd.f32 %v11287_v0, %v5885_v40  ;;  %v11418_v5 = vmax.f32 %v5934_v55, 0.0  ;;  %v5888_v25 = vadd.f32 %v8245_v35, %v5420_v31 }
 0x72b   :  { %v5736_v32 = vpop.f32.mrf.mxu1  ;;  %v6050_v16 = vrot.slane %v6049_v52, 4  ;;  %v6164_v61 = vadd.f32 %v6163_v62, %v6125_v38  ;;  %v6056_v47 = vadd.f32 %v11391_v3, %v11397_v53 }
 0x72c   :  { %v11426_v58 = vmax.f32 %v5933_v36, 0.0  ;;  %v5887_v28 = vadd.f32 %v5736_v32, %v5415_v27  ;;  %v6171_v24 = vadd.f32 %v6127_v49, %v6126_v51  ;;  %v5936_v13 = vadd.f32 %v11287_v0, %v5888_v25 }
 0x72d   :  { %v8248_v22 = vpop.f32.mrf.mxu1  ;;  %v6051_v31 = vadd.f32 %v6050_v16, %v6049_v52  ;;  %v6165_v11 = vrot.slane %v6164_v61, 4  ;;  %v6129_v50 = vmul.f32 %v11418_v5, %v11418_v5  ;;  %v11445_v52 = vadd.f32 %v11305_v20, %v11235_v15 }
 0x72e   :  { %v6057_v63 = vadd.f32 %v6056_v47, %v11426_v58  ;;  %v6128_v54 = vmul.f32 %v11426_v58, %v11426_v58  ;;  %v5935_v56 = vadd.f32 %v11287_v0, %v5887_v28  ;;  %v5890_v45 = vadd.f32 %v8248_v22, %v5430_v46  ;;  %v11447_v46 = vpop.f32.mrf.mxu0 }
 0x72f   :  { %v11437_v27 = vmax.f32 %v5936_v13, 0.0  ;;  %v5746_v8 = vpop.f32.mrf.mxu1  ;;  %v6052_v6 = vrot.slane %v6051_v31, 2  ;;  %v6166_v57 = vadd.f32 %v6165_v11, %v6164_v61 }
 0x730   :  { %v6172_v55 = vadd.f32 %v6171_v24, %v6128_v54  ;;  %v11439_v40 = vmax.f32 %v5935_v56, 0.0  ;;  %v6058_v38 = vadd.f32 %v6057_v63, %v11418_v5  ;;  %v5938_v35 = vadd.f32 %v11287_v0, %v5890_v45  ;;  %v11459_v11 = vpop.f32.mrf.mxu0 }
 0x731   :  { %v5889_v62 = vadd.f32 %v5746_v8, %v11360_v42  ;;  %v8251_v49 = vpop.f32.mrf.mxu1  ;;  %v6053_v51 = vadd.f32 %v6052_v6, %v6051_v31  ;;  %v6167_v36 = vrot.slane %v6166_v57, 2  ;;  %v6131_v42 = vmul.f32 %v11437_v27, %v11437_v27 }
 0x732   :  { %v6059_v25 = vadd.f32 %v6058_v38, %v11439_v40  ;;  %v6130_v32 = vmul.f32 %v11439_v40, %v11439_v40  ;;  %v6173_v16 = vadd.f32 %v6172_v55, %v6129_v50  ;;  %v5978_v61 = vmax.f32 %v5938_v35, 0.0 }
 0x733   :  { %v5937_v47 = vadd.f32 %v11287_v0, %v5889_v62  ;;  %v5892_v28 = vadd.f32 %v8251_v49, %v11368_v19  ;;  %v5756_v15 = vpop.f32.mrf.mxu1  ;;  %v6054_v20 = vrot.slane %v6053_v51, 1  ;;  %v6168_v24 = vadd.f32 %v6167_v36, %v6166_v57 }
 0x734   :  { %v6174_v13 = vadd.f32 %v6173_v16, %v6130_v32  ;;  %v6060_v22 = vadd.f32 %v6059_v25, %v11437_v27  ;;  %v5891_v31 = vadd.f32 %v5756_v15, %v11372_v10  ;;  %v11463_v63 = vsel %vm200_vm0, %v5978_v61, 0.0 }
 0x735   :  { %v11465_v54 = vmax.f32 %v5937_v47, 0.0  ;;  %v5940_v19 = vadd.f32 %v11287_v0, %v5892_v28  ;;  %v8254_v56 = vpop.f32.mrf.mxu1  ;;  %v6055_v45 = vadd.f32 %v6054_v20, %v6053_v51  ;;  %v6169_v6 = vrot.slane %v6168_v24, 1 }
 0x736   :  { %v5939_v50 = vadd.f32 %v11287_v0, %v5891_v31  ;;  %v5894_v8 = vadd.f32 %v8254_v56, %v11386_v29  ;;  %v6175_v57 = vadd.f32 %v6174_v13, %v6131_v42  ;;  %v5480_v10 = vadd.f32 %v11326_v12, %v11239_v7  ;;  %v11483_v7 = vpop.f32.mrf.mxu0 }
 0x737   :  { %v6061_v55 = vadd.f32 %v6060_v22, %v11465_v54  ;;  %v6132_v38 = vmul.f32 %v11465_v54, %v11465_v54  ;;  %v11475_v35 = vmax.f32 %v5940_v19, 0.0  ;;  %6108 = vadd.xlane.f32.xlu0 %v6055_v45  ;;  %v5766_v62 = vpop.f32.mrf.mxu1  ;;  %v6170_v36 = vadd.f32 %v6169_v6, %v6168_v24 }
 0x738   :  { %v11477_v49 = vmax.f32 %v5939_v50, 0.0  ;;  %v5942_v51 = vadd.f32 %v11287_v0, %v5894_v8  ;;  %v5893_v29 = vadd.f32 %v5766_v62, %v11395_v44  ;;  %v5475_v25 = vadd.f32 %v11351_v26, %v11241_v41  ;;  %v11505_v31 = vpop.f32.mrf.mxu0 }
 0x739   :  { %v6133_v12 = vmul.f32 %v11463_v63, %v11463_v63  ;;  %v8257_v32 = vpop.f32.mrf.mxu1  ;;  %v6062_v16 = vadd.f32 %v6061_v55, %v11463_v63  ;;  %v6176_v61 = vadd.f32 %v6175_v57, %v6132_v38  ;;  %v5490_v47 = vadd.f32 %v11374_v4, %v11245_v1  ;;  %6223 = vadd.xlane.f32.xlu1 %v6170_v36 }
 0x73a   :  { %v6135_v28 = vmul.f32 %v11475_v35, %v11475_v35  ;;  %v6134_v44 = vmul.f32 %v11477_v49, %v11477_v49  ;;  %v5941_v41 = vadd.f32 %v11287_v0, %v5893_v29  ;;  %v11495_v26 = vmax.f32 %v5942_v51, 0.0 }
 0x73b   :  { %v5896_v15 = vadd.f32 %v8257_v32, %v11402_v39  ;;  %v5776_v20 = vpop.f32.mrf.mxu1  ;;  %v6063_v24 = vrot.slane %v6062_v16, 4  ;;  %v6177_v42 = vadd.f32 %v6176_v61, %v6133_v12  ;;  %v5485_v13 = vadd.f32 %v11404_v23, %v11247_v34 }
 0x73c   :  { %v6069_v1 = vadd.f32 %v11475_v35, %v11477_v49  ;;  %v11502_v4 = vmax.f32 %v5941_v41, 0.0  ;;  %v5895_v22 = vadd.f32 %v5776_v20, %v11411_v43  ;;  %v6184_v19 = vadd.f32 %v6135_v28, %v6134_v44 }
 0x73d   :  { %v5944_v56 = vadd.f32 %v11287_v0, %v5896_v15  ;;  %v8260_v45 = vpop.f32.mrf.mxu1  ;;  %v6064_v39 = vadd.f32 %v6063_v24, %v6062_v16  ;;  %v6178_v50 = vrot.slane %v6177_v42, 4  ;;  %v6137_v43 = vmul.f32 %v11495_v26, %v11495_v26  ;;  %v11523_v16 = vpop.f32.mrf.mxu0 }
 0x73e   :  { %v6070_v8 = vadd.f32 %v6069_v1, %v11502_v4  ;;  %v6136_v34 = vmul.f32 %v11502_v4, %v11502_v4  ;;  %v5943_v23 = vadd.f32 %v11287_v0, %v5895_v22  ;;  %v5898_v6 = vadd.f32 %v8260_v45, %v11422_v33 }
 0x73f   :  { %v11515_v57 = vmax.f32 %v5944_v56, 0.0  ;;  %v5786_v55 = vpop.f32.mrf.mxu1  ;;  %v6065_v38 = vrot.slane %v6064_v39, 2  ;;  %v6179_v62 = vadd.f32 %v6178_v50, %v6177_v42  ;;  %v5500_v32 = vadd.f32 %v11428_v30, %v11251_v9 }
 0x740   :  { %v6185_v51 = vadd.f32 %v6184_v19, %v6136_v34  ;;  %v11517_v29 = vmax.f32 %v5943_v23, 0.0  ;;  %v6071_v36 = vadd.f32 %v6070_v8, %v11495_v26  ;;  %v5946_v12 = vadd.f32 %v11287_v0, %v5898_v6 }
 0x741   :  { %v5897_v33 = vadd.f32 %v5786_v55, %v11445_v52  ;;  %v8263_v61 = vpop.f32.mrf.mxu1  ;;  %v6066_v28 = vadd.f32 %v6065_v38, %v6064_v39  ;;  %v6180_v44 = vrot.slane %v6179_v62, 2  ;;  %v6139_v30 = vmul.f32 %v11515_v57, %v11515_v57  ;;  %v11533_v39 = vpop.f32.mrf.mxu0 }
 0x742   :  { %v6072_v41 = vadd.f32 %v6071_v36, %v11517_v29  ;;  %v6138_v15 = vmul.f32 %v11517_v29, %v11517_v29  ;;  %v6186_v20 = vadd.f32 %v6185_v51, %v6137_v43  ;;  %v5986_v24 = vmax.f32 %v5946_v12, 0.0 }
 0x743   :  { %v5945_v42 = vadd.f32 %v11287_v0, %v5897_v33  ;;  %v5900_v1 = vadd.f32 %v8263_v61, %v5480_v10  ;;  %v5796_v22 = vpop.f32.mrf.mxu1  ;;  %v6067_v19 = vrot.slane %v6066_v28, 1  ;;  %v6181_v9 = vadd.f32 %v6180_v44, %v6179_v62  ;;  %v12012_v62 = vld [vmem:[#allocation18_spill] sm:$0xff] }
 0x744   :  { %v6187_v52 = vadd.f32 %v6186_v20, %v6138_v15  ;;  %v6073_v56 = vadd.f32 %v6072_v41, %v11515_v57  ;;  %v5899_v45 = vadd.f32 %v5796_v22, %v5475_v25  ;;  %v11537_v50 = vsel %vm200_vm0, %v5986_v24, 0.0  ;;  %v12013_v41 = vld [vmem:[#allocation20_spill] sm:$0xff]  ;;  %v5524_v20 = vpop.f32.mrf.mxu0  ;;  %v12014_v22 = vld [vmem:[#allocation19_spill] sm:$0xff] }
 0x745   :  { %v11539_v8 = vmax.f32 %v5945_v42, 0.0  ;;  %v5948_v10 = vadd.f32 %v11287_v0, %v5900_v1  ;;  %v8266_v34 = vpop.f32.mrf.mxu1  ;;  %v6068_v23 = vadd.f32 %v6067_v19, %v6066_v28  ;;  %v6182_v55 = vrot.slane %v6181_v9, 1 }
 0x746   :  { %v5947_v6 = vadd.f32 %v11287_v0, %v5899_v45  ;;  %v5902_v43 = vadd.f32 %v8266_v34, %v5490_v47  ;;  %v6188_v38 = vadd.f32 %v6187_v52, %v6139_v30  ;;  %v5495_v25 = vadd.f32 %v11447_v46, %v12012_v62  ;;  %v12015_v34 = vld [vmem:[#allocation21_spill] sm:$0xff] }
 0x747   :  { %v6074_v51 = vadd.f32 %v6073_v56, %v11539_v8  ;;  %v6140_v36 = vmul.f32 %v11539_v8, %v11539_v8  ;;  %v11548_v12 = vmax.f32 %v5948_v10, 0.0  ;;  %6110 = vadd.xlane.f32.xlu1 %v6068_v23  ;;  %v5806_v33 = vpop.f32.mrf.mxu1  ;;  %v6183_v47 = vadd.f32 %v6182_v55, %v6181_v9  ;;  %v8189_v55 = vpop.f32.mrf.mxu0 }
 0x748   :  { %v11550_v61 = vmax.f32 %v5947_v6, 0.0  ;;  %v5950_v28 = vadd.f32 %v11287_v0, %v5902_v43  ;;  %v5901_v44 = vadd.f32 %v5806_v33, %v5485_v13  ;;  %v5510_v15 = vadd.f32 %v11459_v11, %v12013_v41 }
 0x749   :  { %v6141_v46 = vmul.f32 %v11537_v50, %v11537_v50  ;;  %v8269_v24 = vpop.f32.mrf.mxu1  ;;  %v6075_v42 = vadd.f32 %v6074_v51, %v11537_v50  ;;  %v6189_v1 = vadd.f32 %v6188_v38, %v6140_v36  ;;  %v5505_v19 = vadd.f32 %v11483_v7, %v12014_v22  ;;  %6225 = vadd.xlane.f32.xlu0 %v6183_v47  ;;  %v12016_v47 = vld [vmem:[#allocation22_spill] sm:$0xff] }
 0x74a   :  { %v6143_v30 = vmul.f32 %v11548_v12, %v11548_v12  ;;  %v6142_v13 = vmul.f32 %v11550_v61, %v11550_v61  ;;  %v5949_v9 = vadd.f32 %v11287_v0, %v5901_v44  ;;  %v11565_v11 = vmax.f32 %v5950_v28, 0.0 }
 0x74b   :  { %v5904_v52 = vadd.f32 %v8269_v24, %v5500_v32  ;;  %v5816_v56 = vpop.f32.mrf.mxu1  ;;  %v6076_v45 = vrot.slane %v6075_v42, 4  ;;  %v6190_v10 = vadd.f32 %v6189_v1, %v6141_v46  ;;  %v5520_v23 = vadd.f32 %v11505_v31, %v12015_v34 }
 0x74c   :  { %v6082_v7 = vadd.f32 %v11548_v12, %v11550_v61  ;;  %v11571_v6 = vmax.f32 %v5949_v9, 0.0  ;;  %v5903_v43 = vadd.f32 %v5816_v56, %v5495_v25  ;;  %v6197_v38 = vadd.f32 %v6143_v30, %v6142_v13  ;;  %v5534_v9 = vpop.f32.mrf.mxu0 }
 0x74d   :  { %v5952_v62 = vadd.f32 %v11287_v0, %v5904_v52  ;;  %v8272_v51 = vpop.f32.mrf.mxu1  ;;  %v6077_v36 = vadd.f32 %v6076_v45, %v6075_v42  ;;  %v6191_v33 = vrot.slane %v6190_v10, 4  ;;  %v5515_v41 = vadd.f32 %v11523_v16, %v12016_v47 }
 0x74e   :  { %v6083_v32 = vadd.f32 %v6082_v7, %v11571_v6  ;;  %v6144_v28 = vmul.f32 %v11571_v6, %v11571_v6  ;;  %v5951_v31 = vadd.f32 %v11287_v0, %v5903_v43  ;;  %v5906_v44 = vadd.f32 %v8272_v51, %v5510_v15 }
 0x74f   :  { %v6145_v25 = vmul.f32 %v11565_v11, %v11565_v11  ;;  %v5826_v46 = vpop.f32.mrf.mxu1  ;;  %v6078_v24 = vrot.slane %v6077_v36, 2  ;;  %v6192_v1 = vadd.f32 %v6191_v33, %v6190_v10  ;;  %v11586_v52 = vmax.f32 %v5952_v62, 0.0 }
 0x750   :  { %v6198_v22 = vadd.f32 %v6197_v38, %v6144_v28  ;;  %v11582_v42 = vmax.f32 %v5951_v31, 0.0  ;;  %v6084_v30 = vadd.f32 %v6083_v32, %v11565_v11  ;;  %v5954_v13 = vadd.f32 %v11287_v0, %v5906_v44  ;;  %v12017_v31 = vld [vmem:[#allocation23_spill] sm:$0xff]  ;;  %v8192_v44 = vpop.f32.mrf.mxu0 }
 0x751   :  { %v5905_v15 = vadd.f32 %v5826_v46, %v5505_v19  ;;  %v8275_v56 = vpop.f32.mrf.mxu1  ;;  %v6079_v45 = vadd.f32 %v6078_v24, %v6077_v36  ;;  %v6193_v16 = vrot.slane %v6192_v1, 2  ;;  %v5530_v62 = vadd.f32 %v11533_v39, %v12017_v31 }
 0x752   :  { %v6085_v34 = vadd.f32 %v6084_v30, %v11582_v42  ;;  %v6146_v7 = vmul.f32 %v11582_v42, %v11582_v42  ;;  %v6199_v10 = vadd.f32 %v6198_v22, %v6145_v25  ;;  %v5994_v43 = vmax.f32 %v5954_v13, 0.0  ;;  %v12018_v30 = vld [vmem:[#allocation24_spill] sm:$0xff] }
 0x753   :  { %v5953_v38 = vadd.f32 %v11287_v0, %v5905_v15  ;;  %v5908_v51 = vadd.f32 %v8275_v56, %v5520_v23  ;;  %v5836_v33 = vpop.f32.mrf.mxu1  ;;  %v6080_v32 = vrot.slane %v6079_v45, 1  ;;  %v6194_v28 = vadd.f32 %v6193_v16, %v6192_v1 }
 0x754   :  { %v6086_v19 = vadd.f32 %v6085_v34, %v11586_v52  ;;  %v5907_v36 = vadd.f32 %v5836_v33, %v5515_v41  ;;  %v6200_v47 = vadd.f32 %v6199_v10, %v6146_v7  ;;  %v5525_v13 = vadd.f32 %v5524_v20, %v12018_v30  ;;  %v5544_v33 = vpop.f32.mrf.mxu0 }
 0x755   :  { %v11595_v46 = vmax.f32 %v5953_v38, 0.0  ;;  %v5956_v24 = vadd.f32 %v11287_v0, %v5908_v51  ;;  %v8278_v25 = vpop.f32.mrf.mxu1  ;;  %v6081_v22 = vadd.f32 %v6080_v32, %v6079_v45  ;;  %v6195_v1 = vrot.slane %v6194_v28, 1  ;;  %v12019_v38 = vld [vmem:[#allocation25_spill] sm:$0xff] }
 0x756   :  { %v5955_v23 = vadd.f32 %v11287_v0, %v5907_v36  ;;  %v5910_v15 = vadd.f32 %v8278_v25, %v5530_v62  ;;  %v6147_v39 = vmul.f32 %v11586_v52, %v11586_v52  ;;  %v11604_v41 = vsel %vm200_vm0, %v5994_v43, 0.0 }
 0x757   :  { %v6087_v56 = vadd.f32 %v6086_v19, %v11595_v46  ;;  %v11607_v16 = vmax.f32 %v5956_v24, 0.0  ;;  %6112 = vadd.xlane.f32.xlu0 %v6081_v22  ;;  %v5846_v34 = vpop.f32.mrf.mxu1  ;;  %v6196_v10 = vadd.f32 %v6195_v1, %v6194_v28  ;;  %v5540_v51 = vadd.f32 %v8189_v55, %v12019_v38  ;;  %v12020_v19 = vld [vmem:[#allocation26_spill] sm:$0xff]  ;;  %v12021_v24 = vld [vmem:[#allocation27_spill] sm:$0xff]  ;;  %v12023_v1 = vld [vmem:[#allocation28_spill] sm:$0xff] }
 0x758   :  { %v11609_v45 = vmax.f32 %v5955_v23, 0.0  ;;  %v5958_v20 = vadd.f32 %v11287_v0, %v5910_v15  ;;  %v5909_v7 = vadd.f32 %v5846_v34, %v5525_v13  ;;  %v6148_v32 = vmul.f32 %v11595_v46, %v11595_v46 }
 0x759   :  { %v8281_v43 = vpop.f32.mrf.mxu1  ;;  %v6088_v31 = vadd.f32 %v6087_v56, %v11604_v41  ;;  %v6201_v62 = vadd.f32 %v6200_v47, %v6147_v39  ;;  %v5535_v36 = vadd.f32 %v5534_v9, %v12020_v19  ;;  %v5550_v25 = vadd.f32 %v8192_v44, %v12021_v24  ;;  %6227 = vadd.xlane.f32.xlu1 %v6196_v10 }
 0x75a   :  { %v6150_v22 = vmul.f32 %v11609_v45, %v11609_v45  ;;  %v5957_v30 = vadd.f32 %v11287_v0, %v5909_v7  ;;  %v6151_v55 = vmul.f32 %v11607_v16, %v11607_v16  ;;  %v11623_v28 = vmax.f32 %v5958_v20, 0.0 }
 0x75b   :  { %v5912_v13 = vadd.f32 %v8281_v43, %v5540_v51  ;;  %v5856_v23 = vpop.f32.mrf.mxu1  ;;  %v6089_v15 = vrot.slane %v6088_v31, 4  ;;  %v5545_v47 = vadd.f32 %v5544_v33, %v12023_v1  ;;  %v6095_v9 = vadd.f32 %v11607_v16, %v11609_v45 }
 0x75c   :  { %12022 = vst [vmem:[#allocation29_spill] sm:$0xff] %v11623_v28  ;;  %v11628_v44 = vmax.f32 %v5957_v30, 0.0  ;;  %v5911_v39 = vadd.f32 %v5856_v23, %v5535_v36  ;;  %v6210_v56 = vadd.f32 %v6151_v55, %v6150_v22  ;;  %v6202_v38 = vadd.f32 %v6201_v62, %v6148_v32 }
 0x75d   :  { %v5960_v34 = vadd.f32 %v11287_v0, %v5912_v13  ;;  %v8284_v7 = vpop.f32.mrf.mxu1  ;;  %v6090_v10 = vadd.f32 %v6089_v15, %v6088_v31  ;;  %v6149_v19 = vmul.f32 %v11604_v41, %v11604_v41  ;;  %v6153_v36 = vmul.f32 %v11623_v28, %v11623_v28 }
 0x75e   :  { %v6096_v20 = vadd.f32 %v6095_v9, %v11628_v44  ;;  %v6152_v51 = vmul.f32 %v11628_v44, %v11628_v44  ;;  %v5959_v43 = vadd.f32 %v11287_v0, %v5911_v39  ;;  %v5914_v33 = vadd.f32 %v8284_v7, %v5550_v25 }
 0x75f   :  { %v11639_v24 = vmax.f32 %v5960_v34, 0.0  ;;  %v5866_v22 = vpop.f32.mrf.mxu1  ;;  %v6091_v30 = vrot.slane %v6090_v10, 2  ;;  %v6203_v25 = vadd.f32 %v6202_v38, %v6149_v19 }
 0x760   :  { %v6211_v31 = vadd.f32 %v6210_v56, %v6152_v51  ;;  %v11641_v32 = vmax.f32 %v5959_v43, 0.0  ;;  %v6097_v62 = vadd.f32 %v6096_v20, %v11623_v28  ;;  %v5962_v55 = vadd.f32 %v11287_v0, %v5914_v33 }
 0x761   :  { %12024 = vst [vmem:[#allocation17_spill] sm:$0xff] %v11639_v24  ;;  %v5913_v13 = vadd.f32 %v5866_v22, %v5545_v47  ;;  %v6092_v23 = vadd.f32 %v6091_v30, %v6090_v10  ;;  %v6155_v56 = vmul.f32 %v11639_v24, %v11639_v24  ;;  %v6204_v10 = vrot.slane %v6203_v25, 4 }
 0x762   :  { %12025 = vst [vmem:[#allocation30_spill] sm:$0xff] %v11641_v32  ;;  %v6098_v15 = vadd.f32 %v6097_v62, %v11641_v32  ;;  %v6154_v1 = vmul.f32 %v11641_v32, %v11641_v32  ;;  %v6212_v9 = vadd.f32 %v6211_v31, %v6153_v36  ;;  %v6002_v39 = vmax.f32 %v5962_v55, 0.0 }
 0x763   :  { %v5961_v34 = vadd.f32 %v11287_v0, %v5913_v13  ;;  %v6093_v7 = vrot.slane %v6092_v23, 1  ;;  %v6205_v31 = vadd.f32 %v6204_v10, %v6203_v25 }
 0x764   :  { %v6213_v51 = vadd.f32 %v6212_v9, %v6154_v1  ;;  %v6099_v20 = vadd.f32 %v6098_v15, %v11639_v24  ;;  %v11656_v38 = vsel %vm200_vm0, %v6002_v39, 0.0  ;;  %v11706_v24 = vld [vmem:[#allocation11 + $0xf8] sm:$0xff] }
 0x765   :  { %v11652_v43 = vmax.f32 %v5961_v34, 0.0  ;;  %v6094_v47 = vadd.f32 %v6093_v7, %v6092_v23  ;;  %12027 = vst [vmem:[#allocation20_spill] sm:$0xff] %v11656_v38  ;;  %v6157_v36 = vmul.f32 %v11656_v38, %v11656_v38  ;;  %v6206_v23 = vrot.slane %v6205_v31, 2 }
 0x766   :  { %v6214_v33 = vadd.f32 %v6213_v51, %v6155_v56 }
 0x767   :  { %12026 = vst [vmem:[#allocation18_spill] sm:$0xff] %v11652_v43  ;;  %v6100_v19 = vadd.f32 %v6099_v20, %v11652_v43  ;;  %v6156_v0 = vmul.f32 %v11652_v43, %v11652_v43  ;;  %6114 = vadd.xlane.f32.xlu1 %v6094_v47  ;;  %v6207_v34 = vadd.f32 %v6206_v23, %v6205_v31 }
 0x769   :  { %v6101_v22 = vadd.f32 %v6100_v19, %v11656_v38  ;;  %v6215_v30 = vadd.f32 %v6214_v33, %v6156_v0  ;;  %v6208_v47 = vrot.slane %v6207_v34, 1  ;;  %v11704_v38 = vld [vmem:[#allocation11 + $0xf0] sm:$0xff] }
 0x76b   :  { %v6102_v62 = vrot.slane %v6101_v22, 4  ;;  %v6216_v55 = vadd.f32 %v6215_v30, %v6157_v36  ;;  %v6209_v33 = vadd.f32 %v6208_v47, %v6207_v34 }
 0x76d   :  { %v6103_v13 = vadd.f32 %v6102_v62, %v6101_v22  ;;  %v6217_v48 = vrot.slane %v6216_v55, 4 }
 0x76f   :  { %v6104_v15 = vrot.slane %v6103_v13, 2  ;;  %v6218_v1 = vadd.f32 %v6217_v48, %v6216_v55 }
 0x771   :  { %v6105_v9 = vadd.f32 %v6104_v15, %v6103_v13  ;;  %v6219_v39 = vrot.slane %v6218_v1, 2 }
 0x773   :  { %v6106_v7 = vrot.slane %v6105_v9, 1  ;;  %v6220_v56 = vadd.f32 %v6219_v39, %v6218_v1  ;;  %v11669_v1 = vld [vmem:[#allocation9 + $0xc0] sm:$0xff] }
 0x775   :  { %v6107_v51 = vadd.f32 %v6106_v7, %v6105_v9  ;;  %v6221_v20 = vrot.slane %v6220_v56, 1 }
 0x777   :  { %6116 = vadd.xlane.f32.xlu0 %v6107_v51  ;;  %v6222_v43 = vadd.f32 %v6221_v20, %v6220_v56  ;;  %v11675_v56 = vld [vmem:[#allocation9 + $0xc8] sm:$0xff]  ;;  %v11677_v51 = vld [vmem:[#allocation9 + $0xd0] sm:$0xff]  ;;  %v11679_v20 = vld [vmem:[#allocation9 + $0xd8] sm:$0xff] }
 0x779   :  { %6231 = vadd.xlane.f32.xlu1 %v6222_v43 }
 0x77b   :  { %6229 = vadd.xlane.f32.xlu0 %v6209_v33 }
 0x7c0   :  { %v6109_v25 = vpop.xlane.xlu0 %6108 }
 0x7c1   :  { %v6233_v10 = vmul.f32 0.00017361112, %v6109_v25 }
 0x7c2   :  { %v6224_v19 = vpop.xlane.xlu1 %6223 }
 0x7c3   :  { %v6238_v0 = vmul.f32 0.00017361112, %v6224_v19  ;;  %v6243_v36 = vmul.f32 %v6233_v10, %v6233_v10  ;;  %v6258_v15 = vsub.f32 %v11300_v21, %v6233_v10  ;;  %v6259_v9 = vsub.f32 %v11298_v14, %v6233_v10  ;;  %v11684_v14 = vld [vmem:[#allocation9 + $0xe0] sm:$0xff]  ;;  %v11690_v19 = vld [vmem:[#allocation9 + $0xf8] sm:$0xff] }
 0x7c4   :  { %v6260_v39 = vsub.f32 %v11320_v17, %v6233_v10  ;;  %v6261_v34 = vsub.f32 %v11314_v60, %v6233_v10  ;;  %v6262_v7 = vsub.f32 %v11341_v18, %v6233_v10  ;;  %v6263_v33 = vsub.f32 %v11339_v2, %v6233_v10  ;;  %v11686_v17 = vld [vmem:[#allocation9 + $0xe8] sm:$0xff]  ;;  %v11688_v60 = vld [vmem:[#allocation9 + $0xf0] sm:$0xff] }
 0x7c5   :  { %v6248_v22 = vsub.f32 %v6238_v0, %v6243_v36  ;;  %v6264_v21 = vsub.f32 %v11376_v59, %v6233_v10  ;;  %v6265_v25 = vsub.f32 %v11381_v37, %v6233_v10  ;;  %v11692_v0 = vld [vmem:[#allocation11 + $0xc0] sm:$0xff]  ;;  %v11694_v36 = vld [vmem:[#allocation11 + $0xc8] sm:$0xff]  ;;  %v11696_v59 = vld [vmem:[#allocation11 + $0xd0] sm:$0xff] }
 0x7c6   :  { %v11698_v37 = vld [vmem:[#allocation11 + $0xd8] sm:$0xff]  ;;  %v11700_v10 = vld [vmem:[#allocation11 + $0xe0] sm:$0xff] }
 0x7c7   :  { %v6253_v30 = vmax.f32 %v6248_v22, 0.0 }
 0x7c9   :  { %v6298_v62 = vadd.f32 1e-05, %v6253_v30 }
 0x7cb   :  { %8326 = vrsqrt.f32 %v6298_v62 }
 0x7d0   :  { %v6111_v31 = vpop.xlane.xlu1 %6110 }
 0x7d1   :  { %v11664_v55 = vmul.f32 0.00017361112, %v6111_v31 }
 0x7d2   :  { %v6226_v13 = vpop.xlane.xlu0 %6225 }
 0x7d3   :  { %v6239_v48 = vmul.f32 0.00017361112, %v6226_v13  ;;  %v6244_v23 = vmul.f32 %v11664_v55, %v11664_v55 }
 0x7d5   :  { %v6249_v43 = vsub.f32 %v6239_v48, %v6244_v23 }
 0x7d7   :  { %v6254_v18 = vmax.f32 %v6249_v43, 0.0  ;;  %v11702_v43 = vld [vmem:[#allocation11 + $0xe8] sm:$0xff] }
 0x7d8   :  { %v8327_v47 = vpop.eup %8326 }
 0x7d9   :  { %v6308_v22 = vmul.f32 %v8327_v47, %v6258_v15  ;;  %v6309_v30 = vmul.f32 %v8327_v47, %v6259_v9  ;;  %v6310_v2 = vmul.f32 %v8327_v47, %v6260_v39  ;;  %v6311_v62 = vmul.f32 %v8327_v47, %v6261_v34 }
 0x7da   :  { %v6312_v31 = vmul.f32 %v8327_v47, %v6262_v7  ;;  %v6313_v13 = vmul.f32 %v8327_v47, %v6263_v33  ;;  %v6314_v48 = vmul.f32 %v8327_v47, %v6264_v21  ;;  %v6315_v23 = vmul.f32 %v8327_v47, %v6265_v25 }
 0x7db   :  { %v6357_v15 = vmul.f32 %v11669_v1, %v6308_v22  ;;  %v6358_v9 = vmul.f32 %v11675_v56, %v6309_v30  ;;  %v6359_v39 = vmul.f32 %v11677_v51, %v6310_v2  ;;  %v6360_v34 = vmul.f32 %v11679_v20, %v6311_v62 }
 0x7dc   :  { %v6361_v32 = vmul.f32 %v11684_v14, %v6312_v31  ;;  %v6362_v7 = vmul.f32 %v11686_v17, %v6313_v13  ;;  %v6363_v47 = vmul.f32 %v11688_v60, %v6314_v48  ;;  %v6364_v33 = vmul.f32 %v11690_v19, %v6315_v23 }
 0x7dd   :  { %v6406_v21 = vadd.f32 %v11692_v0, %v6357_v15  ;;  %v6407_v25 = vadd.f32 %v11694_v36, %v6358_v9  ;;  %v6408_v22 = vadd.f32 %v11696_v59, %v6359_v39  ;;  %v6409_v30 = vadd.f32 %v11698_v37, %v6360_v34 }
 0x7de   :  { %v6410_v2 = vadd.f32 %v11700_v10, %v6361_v32  ;;  %v6411_v62 = vadd.f32 %v11702_v43, %v6362_v7  ;;  %v6412_v31 = vadd.f32 %v11704_v38, %v6363_v47  ;;  %v6413_v13 = vadd.f32 %v11706_v24, %v6364_v33 }
 0x7df   :  { %6446 = vst [vmem:[#allocation12] sm:$0xff] %v6406_v21  ;;  %6447 = vst [vmem:[#allocation12 + $0x8] sm:$0xff] %v6407_v25  ;;  %v6299_v48 = vadd.f32 1e-05, %v6254_v18  ;;  %v6266_v47 = vsub.f32 %v11397_v53, %v11664_v55  ;;  %v6268_v18 = vsub.f32 %v11426_v58, %v11664_v55  ;;  %v6269_v33 = vsub.f32 %v11418_v5, %v11664_v55 }
 0x7e0   :  { %v6113_v28 = vpop.xlane.xlu0 %6112  ;;  %6448 = vst [vmem:[#allocation12 + $0x10] sm:$0xff] %v6408_v22  ;;  %6449 = vst [vmem:[#allocation12 + $0x18] sm:$0xff] %v6409_v30  ;;  %v6270_v25 = vsub.f32 %v11439_v40, %v11664_v55  ;;  %v6271_v22 = vsub.f32 %v11437_v27, %v11664_v55  ;;  %v6272_v30 = vsub.f32 %v11465_v54, %v11664_v55 }
 0x7e1   :  { %v11724_v23 = vmul.f32 0.00017361112, %v6113_v28  ;;  %6450 = vst [vmem:[#allocation12 + $0x20] sm:$0xff] %v6410_v2  ;;  %6451 = vst [vmem:[#allocation12 + $0x28] sm:$0xff] %v6411_v62  ;;  %8328 = vrsqrt.f32 %v6299_v48  ;;  %v6267_v28 = vsub.f32 %v11391_v3, %v11664_v55  ;;  %v6273_v53 = vsub.f32 %v11463_v63, %v11664_v55 }
 0x7e2   :  { %6452 = vst [vmem:[#allocation12 + $0x30] sm:$0xff] %v6412_v31  ;;  %6453 = vst [vmem:[#allocation12 + $0x38] sm:$0xff] %v6413_v13  ;;  %v6228_v32 = vpop.xlane.xlu1 %6227 }
 0x7e3   :  { %v6240_v15 = vmul.f32 0.00017361112, %v6228_v32  ;;  %v6245_v9 = vmul.f32 %v11724_v23, %v11724_v23 }
 0x7e5   :  { %v6250_v39 = vsub.f32 %v6240_v15, %v6245_v9 }
 0x7e7   :  { %v6255_v34 = vmax.f32 %v6250_v39, 0.0 }
 0x7e9   :  { %v6300_v7 = vadd.f32 1e-05, %v6255_v34 }
 0x7eb   :  { %8330 = vrsqrt.f32 %v6300_v7 }
 0x7ee   :  { %v8329_v21 = vpop.eup %8328 }
 0x7ef   :  { %v6316_v3 = vmul.f32 %v8329_v21, %v6266_v47  ;;  %v6317_v2 = vmul.f32 %v8329_v21, %v6267_v28  ;;  %v6318_v62 = vmul.f32 %v8329_v21, %v6268_v18  ;;  %v6319_v58 = vmul.f32 %v8329_v21, %v6269_v33 }
 0x7f0   :  { %v6320_v31 = vmul.f32 %v8329_v21, %v6270_v25  ;;  %v6321_v13 = vmul.f32 %v8329_v21, %v6271_v22  ;;  %v6322_v5 = vmul.f32 %v8329_v21, %v6272_v30  ;;  %v6323_v48 = vmul.f32 %v8329_v21, %v6273_v53 }
 0x7f1   :  { %v6365_v32 = vmul.f32 %v11669_v1, %v6316_v3  ;;  %v6366_v40 = vmul.f32 %v11675_v56, %v6317_v2  ;;  %v6367_v27 = vmul.f32 %v11677_v51, %v6318_v62  ;;  %v6368_v15 = vmul.f32 %v11679_v20, %v6319_v58 }
 0x7f2   :  { %v6369_v54 = vmul.f32 %v11684_v14, %v6320_v31  ;;  %v6370_v63 = vmul.f32 %v11686_v17, %v6321_v13  ;;  %v6371_v55 = vmul.f32 %v11688_v60, %v6322_v5  ;;  %v6372_v9 = vmul.f32 %v11690_v19, %v6323_v48 }
 0x7f3   :  { %v6414_v39 = vadd.f32 %v11692_v0, %v6365_v32  ;;  %v6415_v34 = vadd.f32 %v11694_v36, %v6366_v40  ;;  %v6416_v7 = vadd.f32 %v11696_v59, %v6367_v27  ;;  %v6417_v47 = vadd.f32 %v11698_v37, %v6368_v15 }
 0x7f4   :  { %v6418_v28 = vadd.f32 %v11700_v10, %v6369_v54  ;;  %v6419_v18 = vadd.f32 %v11702_v43, %v6370_v63  ;;  %v6420_v33 = vadd.f32 %v11704_v38, %v6371_v55  ;;  %v6421_v21 = vadd.f32 %v11706_v24, %v6372_v9  ;;  %v6115_v54 = vpop.xlane.xlu1 %6114 }
 0x7f5   :  { %6454 = vst [vmem:[#allocation12 + $0x40] sm:$0xff] %v6414_v39  ;;  %6455 = vst [vmem:[#allocation12 + $0x48] sm:$0xff] %v6415_v34  ;;  %v6274_v25 = vsub.f32 %v11477_v49, %v11724_v23  ;;  %v6275_v22 = vsub.f32 %v11475_v35, %v11724_v23  ;;  %v6276_v30 = vsub.f32 %v11502_v4, %v11724_v23 }
 0x7f6   :  { %6456 = vst [vmem:[#allocation12 + $0x50] sm:$0xff] %v6416_v7  ;;  %6457 = vst [vmem:[#allocation12 + $0x58] sm:$0xff] %v6417_v47  ;;  %v6277_v53 = vsub.f32 %v11495_v26, %v11724_v23  ;;  %v6278_v2 = vsub.f32 %v11517_v29, %v11724_v23  ;;  %v6279_v62 = vsub.f32 %v11515_v57, %v11724_v23 }
 0x7f7   :  { %6458 = vst [vmem:[#allocation12 + $0x60] sm:$0xff] %v6418_v28  ;;  %6459 = vst [vmem:[#allocation12 + $0x68] sm:$0xff] %v6419_v18  ;;  %v6280_v58 = vsub.f32 %v11539_v8, %v11724_v23  ;;  %v6281_v49 = vsub.f32 %v11537_v50, %v11724_v23 }
 0x7f8   :  { %6460 = vst [vmem:[#allocation12 + $0x70] sm:$0xff] %v6420_v33  ;;  %6461 = vst [vmem:[#allocation12 + $0x78] sm:$0xff] %v6421_v21  ;;  %v8331_v3 = vpop.eup %8330  ;;  %v11792_v33 = vmul.f32 0.00017361112, %v6115_v54 }
 0x7f9   :  { %v6324_v35 = vmul.f32 %v8331_v3, %v6274_v25  ;;  %v6325_v31 = vmul.f32 %v8331_v3, %v6275_v22  ;;  %v6326_v13 = vmul.f32 %v8331_v3, %v6276_v30  ;;  %v6327_v4 = vmul.f32 %v8331_v3, %v6277_v53 }
 0x7fa   :  { %v6328_v5 = vmul.f32 %v8331_v3, %v6278_v2  ;;  %v6329_v48 = vmul.f32 %v8331_v3, %v6279_v62  ;;  %v6330_v26 = vmul.f32 %v8331_v3, %v6280_v58  ;;  %v6331_v32 = vmul.f32 %v8331_v3, %v6281_v49 }
 0x7fb   :  { %v6373_v40 = vmul.f32 %v11669_v1, %v6324_v35  ;;  %v6374_v29 = vmul.f32 %v11675_v56, %v6325_v31  ;;  %v6375_v57 = vmul.f32 %v11677_v51, %v6326_v13  ;;  %v6376_v27 = vmul.f32 %v11679_v20, %v6327_v4 }
 0x7fc   :  { %v6377_v8 = vmul.f32 %v11684_v14, %v6328_v5  ;;  %v6378_v50 = vmul.f32 %v11686_v17, %v6329_v48  ;;  %v6379_v23 = vmul.f32 %v11688_v60, %v6330_v26  ;;  %v6380_v15 = vmul.f32 %v11690_v19, %v6331_v32 }
 0x7fd   :  { %v6422_v63 = vadd.f32 %v11692_v0, %v6373_v40  ;;  %v6423_v55 = vadd.f32 %v11694_v36, %v6374_v29  ;;  %v6424_v9 = vadd.f32 %v11696_v59, %v6375_v57  ;;  %v6425_v39 = vadd.f32 %v11698_v37, %v6376_v27  ;;  %v12028_v27 = vld [vmem:[#allocation29_spill] sm:$0xff] }
 0x7fe   :  { %v6426_v34 = vadd.f32 %v11700_v10, %v6377_v8  ;;  %v6427_v7 = vadd.f32 %v11702_v43, %v6378_v50  ;;  %v6428_v47 = vadd.f32 %v11704_v38, %v6379_v23  ;;  %v6429_v28 = vadd.f32 %v11706_v24, %v6380_v15  ;;  %v12029_v50 = vld [vmem:[#allocation30_spill] sm:$0xff]  ;;  %v12030_v23 = vld [vmem:[#allocation17_spill] sm:$0xff] }
 0x7ff   :  { %6462 = vst [vmem:[#allocation12 + $0x80] sm:$0xff] %v6422_v63  ;;  %6463 = vst [vmem:[#allocation12 + $0x88] sm:$0xff] %v6423_v55  ;;  %v6246_v3 = vmul.f32 %v11792_v33, %v11792_v33  ;;  %v6282_v4 = vsub.f32 %v11550_v61, %v11792_v33  ;;  %v6283_v5 = vsub.f32 %v11548_v12, %v11792_v33  ;;  %v12032_v63 = vld [vmem:[#allocation20_spill] sm:$0xff] }
 0x800   :  { %v6117_v18 = vpop.xlane.xlu0 %6116  ;;  %6464 = vst [vmem:[#allocation12 + $0x90] sm:$0xff] %v6424_v9  ;;  %6465 = vst [vmem:[#allocation12 + $0x98] sm:$0xff] %v6425_v39  ;;  %v6284_v48 = vsub.f32 %v11571_v6, %v11792_v33  ;;  %v6285_v26 = vsub.f32 %v11565_v11, %v11792_v33  ;;  %v6286_v32 = vsub.f32 %v11582_v42, %v11792_v33 }
 0x801   :  { %v6237_v21 = vmul.f32 0.00017361112, %v6117_v18  ;;  %6466 = vst [vmem:[#allocation12 + $0xa0] sm:$0xff] %v6426_v34  ;;  %6467 = vst [vmem:[#allocation12 + $0xa8] sm:$0xff] %v6427_v7  ;;  %v6287_v40 = vsub.f32 %v11586_v52, %v11792_v33  ;;  %v6288_v29 = vsub.f32 %v11595_v46, %v11792_v33  ;;  %v6289_v61 = vsub.f32 %v11604_v41, %v11792_v33  ;;  %v12031_v52 = vld [vmem:[#allocation18_spill] sm:$0xff] }
 0x802   :  { %6468 = vst [vmem:[#allocation12 + $0xb0] sm:$0xff] %v6428_v47  ;;  %6469 = vst [vmem:[#allocation12 + $0xb8] sm:$0xff] %v6429_v28  ;;  %v6232_v25 = vpop.xlane.xlu1 %6231 }
 0x803   :  { %v6242_v30 = vmul.f32 0.00017361112, %v6232_v25  ;;  %v6247_v53 = vmul.f32 %v6237_v21, %v6237_v21  ;;  %v6290_v12 = vsub.f32 %v11609_v45, %v6237_v21  ;;  %v6291_v57 = vsub.f32 %v11607_v16, %v6237_v21 }
 0x804   :  { %v6230_v22 = vpop.xlane.xlu0 %6229  ;;  %v6292_v6 = vsub.f32 %v11628_v44, %v6237_v21  ;;  %v6293_v11 = vsub.f32 %v12028_v27, %v6237_v21  ;;  %v6294_v42 = vsub.f32 %v12029_v50, %v6237_v21  ;;  %v6295_v15 = vsub.f32 %v12030_v23, %v6237_v21 }
 0x805   :  { %v6241_v2 = vmul.f32 0.00017361112, %v6230_v22  ;;  %v6252_v62 = vsub.f32 %v6242_v30, %v6247_v53  ;;  %v6296_v54 = vsub.f32 %v12031_v52, %v6237_v21  ;;  %v6297_v46 = vsub.f32 %v12032_v63, %v6237_v21 }
 0x807   :  { %v6251_v58 = vsub.f32 %v6241_v2, %v6246_v3  ;;  %v6257_v49 = vmax.f32 %v6252_v62, 0.0 }
 0x809   :  { %v6256_v35 = vmax.f32 %v6251_v58, 0.0  ;;  %v6302_v31 = vadd.f32 1e-05, %v6257_v49 }
 0x80b   :  { %8332 = vrsqrt.f32 %v6302_v31  ;;  %v6301_v13 = vadd.f32 1e-05, %v6256_v35 }
 0x80d   :  { %8334 = vrsqrt.f32 %v6301_v13 }
 0x818   :  { %v8333_v8 = vpop.eup %8332 }
 0x819   :  { %v6340_v55 = vmul.f32 %v8333_v8, %v6290_v12  ;;  %v6341_v9 = vmul.f32 %v8333_v8, %v6291_v57  ;;  %v6342_v41 = vmul.f32 %v8333_v8, %v6292_v6  ;;  %v6343_v39 = vmul.f32 %v8333_v8, %v6293_v11 }
 0x81a   :  { %v6344_v45 = vmul.f32 %v8333_v8, %v6294_v42  ;;  %v6345_v34 = vmul.f32 %v8333_v8, %v6295_v15  ;;  %v6346_v16 = vmul.f32 %v8333_v8, %v6296_v54  ;;  %v6347_v7 = vmul.f32 %v8333_v8, %v6297_v46  ;;  %v8335_v33 = vpop.eup %8334 }
 0x81b   :  { %v6389_v44 = vmul.f32 %v11669_v1, %v6340_v55  ;;  %v6390_v47 = vmul.f32 %v11675_v56, %v6341_v9  ;;  %v6391_v28 = vmul.f32 %v11677_v51, %v6342_v41  ;;  %v6392_v18 = vmul.f32 %v11679_v20, %v6343_v39 }
 0x81c   :  { %v6393_v25 = vmul.f32 %v11684_v14, %v6344_v45  ;;  %v6394_v21 = vmul.f32 %v11686_v17, %v6345_v34  ;;  %v6395_v22 = vmul.f32 %v11688_v60, %v6346_v16  ;;  %v6396_v30 = vmul.f32 %v11690_v19, %v6347_v7 }
 0x81d   :  { %v6438_v53 = vadd.f32 %v11692_v0, %v6389_v44  ;;  %v6439_v3 = vadd.f32 %v11694_v36, %v6390_v47  ;;  %v6440_v2 = vadd.f32 %v11696_v59, %v6391_v28  ;;  %v6441_v62 = vadd.f32 %v11698_v37, %v6392_v18 }
 0x81e   :  { %v6442_v58 = vadd.f32 %v11700_v10, %v6393_v25  ;;  %v6443_v49 = vadd.f32 %v11702_v43, %v6394_v21  ;;  %v6444_v35 = vadd.f32 %v11704_v38, %v6395_v22  ;;  %v6445_v31 = vadd.f32 %v11706_v24, %v6396_v30 }
 0x81f   :  { %6478 = vst [vmem:[#allocation12 + $0x100] sm:$0xff] %v6438_v53  ;;  %6479 = vst [vmem:[#allocation12 + $0x108] sm:$0xff] %v6439_v3  ;;  %v6332_v13 = vmul.f32 %v8335_v33, %v6282_v4  ;;  %v6333_v12 = vmul.f32 %v8335_v33, %v6283_v5  ;;  %v6334_v57 = vmul.f32 %v8335_v33, %v6284_v48 }
 0x820   :  { %6480 = vst [vmem:[#allocation12 + $0x110] sm:$0xff] %v6440_v2  ;;  %6481 = vst [vmem:[#allocation12 + $0x118] sm:$0xff] %v6441_v62  ;;  %v6335_v6 = vmul.f32 %v8335_v33, %v6285_v26  ;;  %v6336_v27 = vmul.f32 %v8335_v33, %v6286_v32  ;;  %v6337_v11 = vmul.f32 %v8335_v33, %v6287_v40 }
 0x821   :  { %6482 = vst [vmem:[#allocation12 + $0x120] sm:$0xff] %v6442_v58  ;;  %6483 = vst [vmem:[#allocation12 + $0x128] sm:$0xff] %v6443_v49  ;;  %v6338_v8 = vmul.f32 %v8335_v33, %v6288_v29  ;;  %v6339_v50 = vmul.f32 %v8335_v33, %v6289_v61  ;;  %v6381_v42 = vmul.f32 %v11669_v1, %v6332_v13 }
 0x822   :  { %6484 = vst [vmem:[#allocation12 + $0x130] sm:$0xff] %v6444_v35  ;;  %6485 = vst [vmem:[#allocation12 + $0x138] sm:$0xff] %v6445_v31  ;;  %v6382_v23 = vmul.f32 %v11675_v56, %v6333_v12  ;;  %v6383_v15 = vmul.f32 %v11677_v51, %v6334_v57  ;;  %v6384_v52 = vmul.f32 %v11679_v20, %v6335_v6 }
 0x823   :  { %v6385_v4 = vmul.f32 %v11684_v14, %v6336_v27  ;;  %v6386_v5 = vmul.f32 %v11686_v17, %v6337_v11  ;;  %v6387_v48 = vmul.f32 %v11688_v60, %v6338_v8  ;;  %v6388_v26 = vmul.f32 %v11690_v19, %v6339_v50 }
 0x824   :  { %v6430_v32 = vadd.f32 %v11692_v0, %v6381_v42  ;;  %v6431_v1 = vadd.f32 %v11694_v36, %v6382_v23  ;;  %v6432_v56 = vadd.f32 %v11696_v59, %v6383_v15  ;;  %v6433_v51 = vadd.f32 %v11698_v37, %v6384_v52 }
 0x825   :  { %v6434_v20 = vadd.f32 %v11700_v10, %v6385_v4  ;;  %v6435_v40 = vadd.f32 %v11702_v43, %v6386_v5  ;;  %v6436_v14 = vadd.f32 %v11704_v38, %v6387_v48  ;;  %v6437_v17 = vadd.f32 %v11706_v24, %v6388_v26 }
 0x826   :  { %6470 = vst [vmem:[#allocation12 + $0xc0] sm:$0xff] %v6430_v32  ;;  %6471 = vst [vmem:[#allocation12 + $0xc8] sm:$0xff] %v6431_v1 }
 0x827   :  { %6472 = vst [vmem:[#allocation12 + $0xd0] sm:$0xff] %v6432_v56  ;;  %6473 = vst [vmem:[#allocation12 + $0xd8] sm:$0xff] %v6433_v51 }
 0x828   :  { %6474 = vst [vmem:[#allocation12 + $0xe0] sm:$0xff] %v6434_v20  ;;  %6475 = vst [vmem:[#allocation12 + $0xe8] sm:$0xff] %v6435_v40 }
 0x829   :  { %6476 = vst [vmem:[#allocation12 + $0xf0] sm:$0xff] %v6436_v14  ;;  %6477 = vst [vmem:[#allocation12 + $0xf8] sm:$0xff] %v6437_v17 }
 0x82a   :  { %8449 = shalt.err (!%p8446_p1)
}
 0x82b   :  { %6497 = dma.vmem_to_hbm [thread:$0]  %s6492_s4, 5120, %s11863_s5, [#allocation5], %s8468_s23, %s8468_s23, %s8469_s24  }
 0x82c   :  { %8464 = dma.done.wait [#allocation5], 5120  }
 0x82d   :  { %8465 = vsyncadd [#allocation5], 4294962176 }
 0x82e   :  { %6501 = vsyncpa [#allocation4], 1 }
 0x82f   :  { %6502 = vsyncpa [#allocation7], 1 }
 0x830   :  { %6503 = vsyncpa [#allocation10], 1 }
 0x831   :  { %6504 = vsyncpa [#allocation5], 1 }

</bundles_post_ra>
